<compile_context>
chip_gen: v5e
topology: v5e:2x2
jax: 0.10.0
libtpu: 0.0.40
codegen_flags: <defaults>
</compile_context>

<pallas_src>
import jax
import jax.numpy as jnp
import numpy as np
from jax.experimental import pallas as pl
from jax.experimental.pallas import tpu as pltpu

EPS = 1e-5
STRIP_TARGET = 512          # target rows (matmul M dim) per im2col strip


def _round_up(x, m):
    return ((x + m - 1) // m) * m


def _pick_hs(Hp, Wp, target=STRIP_TARGET):
    """Largest divisor of Hp whose strip (hs * Wp rows) stays <= target rows."""
    best = 1
    for h in range(1, Hp + 1):
        if Hp % h == 0 and h * Wp <= max(target, Wp):
            best = h
    return best


def downblock_kernel(xw_ref, w1_ref, g1_ref, b1_ref, w2_ref, g2_ref, b2_ref,
                     out_ref, pad1_ref, pad2_ref, patch_ref):
    # xw_ref   : (4*N, Hp, Wp, Cpi)  bf16 -- 2x2 pool windows pre-split on axis 0,
    #                                        channels zero-padded to Cpi (lane mult.)
    # w1_ref   : (9*Cpi, Cp)         bf16 -- conv1 weights, rows ordered (kh, kw, cin)
    # w2_ref   : (9*Cp,  Cp)         bf16 -- conv2 weights
    # gK/bK    : (1, Cp)             f32  -- BN gamma / beta (zero-padded channels)
    # out_ref  : (M, Cp)             f32  -- M = N*Hp*Wp, lane-dense output slab
    # pad1_ref : (N, Hp+2, Wpad, Cpi) bf16 -- conv1 input, 1-px zero halo
    # pad2_ref : (N, Hp+2, Wpad, Cp)  bf16 -- conv1 output / conv2 input, zero halo
    # patch_ref: (2, S, Kmax)        bf16 -- double-buffered im2col strip
    four_n, Hp, Wp, Cpi = xw_ref.shape
    N = four_n // 4
    Cp = pad2_ref.shape[-1]
    _, S, _ = patch_ref.shape
    hs = S // Wp                     # pooled rows per strip
    n_hb = Hp // hs                  # strips per image
    n_strips = N * n_hb
    M = N * Hp * Wp
    K1, K2 = 9 * Cpi, 9 * Cp
    f32 = jnp.float32
    bf16 = patch_ref.dtype

    # ---- zero ONLY the 1-px halo frame (interiors are always fully overwritten;
    #      the 8-aligned W columns >= Wp+2 are never read by any tap) ----
    def zero_halo(pad_ref, C):
        pad_ref[:, 0:1, 0:Wp + 2, :] = jnp.zeros((N, 1, Wp + 2, C), bf16)
        pad_ref[:, Hp + 1:Hp + 2, 0:Wp + 2, :] = jnp.zeros((N, 1, Wp + 2, C), bf16)
        pad_ref[:, 1:Hp + 1, 0:1, :] = jnp.zeros((N, Hp, 1, C), bf16)
        pad_ref[:, 1:Hp + 1, Wp + 1:Wp + 2, :] = jnp.zeros((N, Hp, 1, C), bf16)

    zero_halo(pad1_ref, Cpi)
    zero_halo(pad2_ref, Cp)

    # ---- MaxPool2d(2): elementwise max over the 4 pre-split slabs, per image ----
    for n in range(N):
        pooled = jnp.maximum(jnp.maximum(xw_ref[n], xw_ref[N + n]),
                             jnp.maximum(xw_ref[2 * N + n], xw_ref[3 * N + n]))
        pad1_ref[n, 1:Hp + 1, 1:Wp + 1, :] = pooled          # full-lane, unmasked

    def conv_pass(pad_ref, C, K, w_ref, sink):
        """Strip loop: im2col into the double-buffered patch strip, one bf16 MXU
        matmul (f32 accumulation) per strip.  Raw f32 strip result is handed to
        `sink(n, hb, y)`; returns the BN (sum, sum-of-squares) accumulators."""
        s1 = jnp.zeros((1, Cp), f32)
        s2 = jnp.zeros((1, Cp), f32)
        for s in range(n_strips):
            n, hb = s // n_hb, s % n_hb
            slot = s % 2               # double buffer: strip s+1's im2col stores can
            h0 = hb * hs               # overlap strip s's matmul (no WAR hazard)
            for k in range(9):
                dh, dw = k // 3, k % 3
                tap = pad_ref[n, h0 + dh:h0 + dh + hs, dw:dw + Wp, :]
                patch_ref[slot, :, k * C:(k + 1) * C] = tap.reshape(S, C)
            y = jnp.dot(patch_ref[slot, :, 0:K], w_ref[...],
                        preferred_element_type=f32)          # (S, Cp) f32
            s1 = s1 + jnp.sum(y, axis=0, keepdims=True)
            s2 = s2 + jnp.sum(y * y, axis=0, keepdims=True)
            sink(n, hb, y)
        return s1, s2

    def bn_coeffs(s1, s2, g_row, b_row):
        # training-mode BatchNorm2d, biased variance, single-pass stats
        mean = s1 * (1.0 / M)
        var = jnp.maximum(s2 * (1.0 / M) - mean * mean, 0.0)  # clamp cancellation
        scale = g_row * jax.lax.rsqrt(var + EPS)
        shift = b_row - mean * scale
        return scale, shift

    # ---- conv1: raw result strips staged (bf16) in pad2's interior, stats in f32 ---
    def sink1(n, hb, y):
        pad2_ref[n, 1 + hb * hs:1 + hb * hs + hs, 1:Wp + 1, :] = (
            y.reshape(hs, Wp, Cp).astype(bf16))

    s1a, s2a = conv_pass(pad1_ref, Cpi, K1, w1_ref, sink1)
    scale1, shift1 = bn_coeffs(s1a, s2a, g1_ref[...], b1_ref[...])
    scale1 = scale1.reshape(1, 1, Cp)          # hoisted out of the apply loop
    shift1 = shift1.reshape(1, 1, Cp)

    # ---- BN1 + ReLU applied in place on pad2's interior (halo stays zero) ----
    for s in range(n_strips):
        n, hb = s // n_hb, s % n_hb
        h0 = 1 + hb * hs
        yb = pad2_ref[n, h0:h0 + hs, 1:Wp + 1, :].astype(f32)
        act = jnp.maximum(yb * scale1 + shift1, 0.0)
        pad2_ref[n, h0:h0 + hs, 1:Wp + 1, :] = act.astype(bf16)

    # ---- conv2: raw f32 result strips land directly in the lane-dense output ----
    def sink2(n, hb, y):
        r0 = (n * Hp + hb * hs) * Wp
        out_ref[r0:r0 + S, :] = y

    s1b, s2b = conv_pass(pad2_ref, Cp, K2, w2_ref, sink2)
    scale2, shift2 = bn_coeffs(s1b, s2b, g2_ref[...], b2_ref[...])

    # ---- BN2 + ReLU applied in place on the output slab ----
    for s in range(n_strips):
        n, hb = s // n_hb, s % n_hb
        r0 = (n * Hp + hb * hs) * Wp
        out_ref[r0:r0 + S, :] = jnp.maximum(
            out_ref[r0:r0 + S, :] * scale2 + shift2, 0.0)


def downblock_forward(x_nchw, params):
    """PyTorch-equivalent DownBlock forward. x: (N, Cin, H, W) -> (N, Cout, H/2, W/2)."""
    w1, g1, b1, w2, g2, b2 = params
    N, Cin, H, W = x_nchw.shape
    Cout = w1.shape[-1]
    assert H % 2 == 0 and W % 2 == 0
    Hp, Wp = H // 2, W // 2
    Cpi = _round_up(Cin, 128)          # conv1 per-tap lanes (kept lane-aligned)
    Cp = _round_up(Cout, 128)          # conv2 / output lanes
    M = N * Hp * Wp
    hs = _pick_hs(Hp, Wp)
    S = hs * Wp                        # im2col strip rows
    Wpad = _round_up(Wp + 2, 8)        # sublane-aligned padded width
    Kmax = 9 * max(Cpi, Cp)

    # 2x2 pool windows -> leading axis (pure layout permute), channels zero-padded to
    # Cpi so every in-kernel store is full-lane, then cast to bf16 (halves input DMA;
    # max-pool commutes with monotonic bf16 rounding so results are unchanged).
    xw = x_nchw.reshape(N, Cin, Hp, 2, Wp, 2)
    xw = jnp.transpose(xw, (3, 5, 0, 2, 4, 1)).reshape(4 * N, Hp, Wp, Cin)
    xw = jnp.pad(xw, ((0, 0), (0, 0), (0, 0), (0, Cpi - Cin))).astype(jnp.bfloat16)

    def pack_w(w, cpad):
        # (3, 3, cin, Cout) HWIO -> (9*cpad, Cp) bf16, rows ordered (kh, kw, cin_pad)
        cin = w.shape[2]
        wp = jnp.zeros((3, 3, cpad, Cp), jnp.float32).at[:, :, :cin, :Cout].set(w)
        return wp.reshape(9 * cpad, Cp).astype(jnp.bfloat16)

    def pack_v(v):  # (Cout,) -> (1, Cp) f32, zero-padded channels
        return jnp.zeros((1, Cp), jnp.float32).at[0, :Cout].set(v)

    w1m, w2m = pack_w(w1, Cpi), pack_w(w2, Cp)
    g1p, b1p, g2p, b2p = pack_v(g1), pack_v(b1), pack_v(g2), pack_v(b2)

    def full(shape):
        nd = len(shape)
        return pl.BlockSpec(shape, lambda i, nd=nd: (0,) * nd)

    def nbytes(shape, dtype):
        n = 1
        for d in shape:
            n *= int(d)
        return n * jnp.dtype(dtype).itemsize

    # VMEM budget: in/out blocks (x2 for pipeline buffers), weights and scratch, with
    # 2x headroom; capped at 64 MiB so a fitting config also fits v7x physical VMEM.
    # On v5e/v6e (128 MiB) the cap could be raised to buy a larger strip.
    vmem_est = (2 * nbytes(xw.shape, jnp.bfloat16)
                + 2 * nbytes((M, Cp), jnp.float32)
                + 2 * nbytes(w1m.shape, jnp.bfloat16)
                + 2 * nbytes(w2m.shape, jnp.bfloat16)
                + nbytes((N, Hp + 2, Wpad, Cpi), jnp.bfloat16)
                + nbytes((N, Hp + 2, Wpad, Cp), jnp.bfloat16)
                + nbytes((2, S, Kmax), jnp.bfloat16) + (2 << 20))
    vmem_limit = int(min(max(2 * vmem_est, 32 << 20), 64 << 20))

    out = pl.pallas_call(
        downblock_kernel,
        out_shape=jax.ShapeDtypeStruct((M, Cp), jnp.float32),
        grid=(1,),
        in_specs=[full(xw.shape),
                  full(w1m.shape), full(g1p.shape), full(b1p.shape),
                  full(w2m.shape), full(g2p.shape), full(b2p.shape)],
        out_specs=full((M, Cp)),
        scratch_shapes=[pltpu.VMEM((N, Hp + 2, Wpad, Cpi), jnp.bfloat16),
                        pltpu.VMEM((N, Hp + 2, Wpad, Cp), jnp.bfloat16),
                        pltpu.VMEM((2, S, Kmax), jnp.bfloat16)],
        compiler_params=pltpu.CompilerParams(
            dimension_semantics=("arbitrary",),
            vmem_limit_bytes=vmem_limit),
    )(xw, w1m, g1p, b1p, w2m, g2p, b2p)

    y = out.reshape(N, Hp, Wp, Cp)[..., :Cout]
    return jnp.transpose(y, (0, 3, 1, 2))      # NHWC -> NCHW


def reference_forward(x_nchw, params):
    """Pure-JAX reference with matched precision (bf16 conv operands, f32 accum/BN)."""
    w1, g1, b1, w2, g2, b2 = params
    x = jnp.transpose(x_nchw, (0, 2, 3, 1)).astype(jnp.float32)    # NHWC
    x = jax.lax.reduce_window(x, -jnp.inf, jax.lax.max,
                              window_dimensions=(1, 2, 2, 1),
                              window_strides=(1, 2, 2, 1), padding="VALID")

    def conv(x, w):
        return jax.lax.conv_general_dilated(
            x.astype(jnp.bfloat16), w.astype(jnp.bfloat16),
            window_strides=(1, 1), padding="SAME",
            dimension_numbers=("NHWC", "HWIO", "NHWC"),
            preferred_element_type=jnp.float32)

    def bn_relu(y, g, b):
        mean = jnp.mean(y, axis=(0, 1, 2), keepdims=True)
        var = jnp.mean((y - mean) ** 2, axis=(0, 1, 2), keepdims=True)
        yhat = (y - mean) * jax.lax.rsqrt(var + EPS)
        return jnp.maximum(yhat * g.reshape(1, 1, 1, -1) + b.reshape(1, 1, 1, -1), 0.0)

    h = bn_relu(conv(x, w1), g1, b1)
    h = bn_relu(conv(h, w2), g2, b2)
    return jnp.transpose(h, (0, 3, 1, 2))


def init_params(key, cin, cout):
    ks = jax.random.split(key, 6)
    w1 = 0.2 * jax.random.normal(ks[0], (3, 3, cin, cout), jnp.float32)
    g1 = 1.0 + 0.1 * jax.random.normal(ks[1], (cout,), jnp.float32)
    b1 = 0.1 * jax.random.normal(ks[2], (cout,), jnp.float32)
    w2 = 0.2 * jax.random.normal(ks[3], (3, 3, cout, cout), jnp.float32)
    g2 = 1.0 + 0.1 * jax.random.normal(ks[4], (cout,), jnp.float32)
    b2 = 0.1 * jax.random.normal(ks[5], (cout,), jnp.float32)
    return (w1, g1, b1, w2, g2, b2)


if __name__ == "__main__":
    key = jax.random.PRNGKey(0)
    k_x, k_p = jax.random.split(key)

    N, Cin, Cout, H, W = 2, 4, 8, 16, 16
    x = jax.random.normal(k_x, (N, Cin, H, W), jnp.float32)
    params = init_params(k_p, Cin, Cout)

    y = jax.block_until_ready(downblock_forward(x, params))
    y_ref = jax.block_until_ready(reference_forward(x, params))

    assert y.shape == (N, Cout, H // 2, W // 2)
    np.testing.assert_allclose(np.asarray(y), np.asarray(y_ref), rtol=2e-2, atol=2e-2)

    print("KERNEL_OK")
</pallas_src>

<mosaic_0001>
module attributes {stable_mosaic.version = 11 : i64} {
  func.func @downblock_kernel(%arg0: i32, %arg1: memref<8x8x8x128xbf16, #tpu.memory_space<vmem>>, %arg2: memref<1152x128xbf16, #tpu.memory_space<vmem>>, %arg3: memref<1x128xf32, #tpu.memory_space<vmem>>, %arg4: memref<1x128xf32, #tpu.memory_space<vmem>>, %arg5: memref<1152x128xbf16, #tpu.memory_space<vmem>>, %arg6: memref<1x128xf32, #tpu.memory_space<vmem>>, %arg7: memref<1x128xf32, #tpu.memory_space<vmem>>, %arg8: memref<128x128xf32, #tpu.memory_space<vmem>>, %arg9: memref<2x10x16x128xbf16, #tpu.memory_space<vmem>>, %arg10: memref<2x10x16x128xbf16, #tpu.memory_space<vmem>>, %arg11: memref<2x64x1152xbf16, #tpu.memory_space<vmem>>) attributes {dimension_semantics = [#tpu.dimension_semantics<arbitrary>], iteration_bounds = array<i64: 1>, scalar_prefetch = 0 : i64, scratch_operands = 3 : i64, tpu.core_type = #tpu.core_type<tc>, window_params = [{pipeline_mode = #tpu.pipeline_mode<synchronous>, transform_indices = @transform_0, window_bounds = array<i64: 8, 8, 8, 128>}, {pipeline_mode = #tpu.pipeline_mode<synchronous>, transform_indices = @transform_1, window_bounds = array<i64: 1152, 128>}, {pipeline_mode = #tpu.pipeline_mode<synchronous>, transform_indices = @transform_2, window_bounds = array<i64: 1, 128>}, {pipeline_mode = #tpu.pipeline_mode<synchronous>, transform_indices = @transform_3, window_bounds = array<i64: 1, 128>}, {pipeline_mode = #tpu.pipeline_mode<synchronous>, transform_indices = @transform_4, window_bounds = array<i64: 1152, 128>}, {pipeline_mode = #tpu.pipeline_mode<synchronous>, transform_indices = @transform_5, window_bounds = array<i64: 1, 128>}, {pipeline_mode = #tpu.pipeline_mode<synchronous>, transform_indices = @transform_6, window_bounds = array<i64: 1, 128>}, {pipeline_mode = #tpu.pipeline_mode<synchronous>, transform_indices = @transform_7, window_bounds = array<i64: 128, 128>}]} {
    %cst = arith.constant 0.000000e+00 : bf16
    %0 = vector.broadcast %cst : bf16 to vector<2x1x10x128xbf16>
    %c0 = arith.constant 0 : index
    %c0_0 = arith.constant 0 : index
    %c0_1 = arith.constant 0 : index
    %c0_2 = arith.constant 0 : index
    %1 = vector.load %arg9[%c0, %c0_0, %c0_1, %c0_2] : memref<2x10x16x128xbf16, #tpu.memory_space<vmem>>, vector<2x1x10x128xbf16>
    tpu.vector_store %arg9[%c0, %c0_0, %c0_1, %c0_2], %0 {strides = array<i32>} : memref<2x10x16x128xbf16, #tpu.memory_space<vmem>>, vector<2x1x10x128xbf16>,
    %cst_3 = arith.constant 0.000000e+00 : bf16
    %2 = vector.broadcast %cst_3 : bf16 to vector<2x1x10x128xbf16>
    %c0_4 = arith.constant 0 : index
    %c9 = arith.constant 9 : index
    %c0_5 = arith.constant 0 : index
    %c0_6 = arith.constant 0 : index
    %3 = vector.load %arg9[%c0_4, %c9, %c0_5, %c0_6] : memref<2x10x16x128xbf16, #tpu.memory_space<vmem>>, vector<2x1x10x128xbf16>
    tpu.vector_store %arg9[%c0_4, %c9, %c0_5, %c0_6], %2 {strides = array<i32>} : memref<2x10x16x128xbf16, #tpu.memory_space<vmem>>, vector<2x1x10x128xbf16>,
    %cst_7 = arith.constant 0.000000e+00 : bf16
    %4 = vector.broadcast %cst_7 : bf16 to vector<2x8x1x128xbf16>
    %c0_8 = arith.constant 0 : index
    %c1 = arith.constant 1 : index
    %c0_9 = arith.constant 0 : index
    %c0_10 = arith.constant 0 : index
    %5 = vector.load %arg9[%c0_8, %c1, %c0_9, %c0_10] : memref<2x10x16x128xbf16, #tpu.memory_space<vmem>>, vector<2x8x1x128xbf16>
    tpu.vector_store %arg9[%c0_8, %c1, %c0_9, %c0_10], %4 {strides = array<i32>} : memref<2x10x16x128xbf16, #tpu.memory_space<vmem>>, vector<2x8x1x128xbf16>,
    %cst_11 = arith.constant 0.000000e+00 : bf16
    %6 = vector.broadcast %cst_11 : bf16 to vector<2x8x1x128xbf16>
    %c0_12 = arith.constant 0 : index
    %c1_13 = arith.constant 1 : index
    %c9_14 = arith.constant 9 : index
    %c0_15 = arith.constant 0 : index
    %7 = vector.load %arg9[%c0_12, %c1_13, %c9_14, %c0_15] : memref<2x10x16x128xbf16, #tpu.memory_space<vmem>>, vector<2x8x1x128xbf16>
    tpu.vector_store %arg9[%c0_12, %c1_13, %c9_14, %c0_15], %6 {strides = array<i32>} : memref<2x10x16x128xbf16, #tpu.memory_space<vmem>>, vector<2x8x1x128xbf16>,
    %cst_16 = arith.constant 0.000000e+00 : bf16
    %8 = vector.broadcast %cst_16 : bf16 to vector<2x1x10x128xbf16>
    %c0_17 = arith.constant 0 : index
    %c0_18 = arith.constant 0 : index
    %c0_19 = arith.constant 0 : index
    %c0_20 = arith.constant 0 : index
    %9 = vector.load %arg10[%c0_17, %c0_18, %c0_19, %c0_20] : memref<2x10x16x128xbf16, #tpu.memory_space<vmem>>, vector<2x1x10x128xbf16>
    tpu.vector_store %arg10[%c0_17, %c0_18, %c0_19, %c0_20], %8 {strides = array<i32>} : memref<2x10x16x128xbf16, #tpu.memory_space<vmem>>, vector<2x1x10x128xbf16>,
    %cst_21 = arith.constant 0.000000e+00 : bf16
    %10 = vector.broadcast %cst_21 : bf16 to vector<2x1x10x128xbf16>
    %c0_22 = arith.constant 0 : index
    %c9_23 = arith.constant 9 : index
    %c0_24 = arith.constant 0 : index
    %c0_25 = arith.constant 0 : index
    %11 = vector.load %arg10[%c0_22, %c9_23, %c0_24, %c0_25] : memref<2x10x16x128xbf16, #tpu.memory_space<vmem>>, vector<2x1x10x128xbf16>
    tpu.vector_store %arg10[%c0_22, %c9_23, %c0_24, %c0_25], %10 {strides = array<i32>} : memref<2x10x16x128xbf16, #tpu.memory_space<vmem>>, vector<2x1x10x128xbf16>,
    %cst_26 = arith.constant 0.000000e+00 : bf16
    %12 = vector.broadcast %cst_26 : bf16 to vector<2x8x1x128xbf16>
    %c0_27 = arith.constant 0 : index
    %c1_28 = arith.constant 1 : index
    %c0_29 = arith.constant 0 : index
    %c0_30 = arith.constant 0 : index
    %13 = vector.load %arg10[%c0_27, %c1_28, %c0_29, %c0_30] : memref<2x10x16x128xbf16, #tpu.memory_space<vmem>>, vector<2x8x1x128xbf16>
    tpu.vector_store %arg10[%c0_27, %c1_28, %c0_29, %c0_30], %12 {strides = array<i32>} : memref<2x10x16x128xbf16, #tpu.memory_space<vmem>>, vector<2x8x1x128xbf16>,
    %cst_31 = arith.constant 0.000000e+00 : bf16
    %14 = vector.broadcast %cst_31 : bf16 to vector<2x8x1x128xbf16>
    %c0_32 = arith.constant 0 : index
    %c1_33 = arith.constant 1 : index
    %c9_34 = arith.constant 9 : index
    %c0_35 = arith.constant 0 : index
    %15 = vector.load %arg10[%c0_32, %c1_33, %c9_34, %c0_35] : memref<2x10x16x128xbf16, #tpu.memory_space<vmem>>, vector<2x8x1x128xbf16>
    tpu.vector_store %arg10[%c0_32, %c1_33, %c9_34, %c0_35], %14 {strides = array<i32>} : memref<2x10x16x128xbf16, #tpu.memory_space<vmem>>, vector<2x8x1x128xbf16>,
    %c0_36 = arith.constant 0 : index
    %c0_37 = arith.constant 0 : index
    %c0_38 = arith.constant 0 : index
    %c0_39 = arith.constant 0 : index
    %16 = vector.load %arg1[%c0_36, %c0_37, %c0_38, %c0_39] : memref<8x8x8x128xbf16, #tpu.memory_space<vmem>>, vector<1x8x8x128xbf16>
    %17 = vector.shape_cast %16 : vector<1x8x8x128xbf16> to vector<8x8x128xbf16>
    %c2 = arith.constant 2 : index
    %c0_40 = arith.constant 0 : index
    %c0_41 = arith.constant 0 : index
    %c0_42 = arith.constant 0 : index
    %18 = vector.load %arg1[%c2, %c0_40, %c0_41, %c0_42] : memref<8x8x8x128xbf16, #tpu.memory_space<vmem>>, vector<1x8x8x128xbf16>
    %19 = vector.shape_cast %18 : vector<1x8x8x128xbf16> to vector<8x8x128xbf16>
    %20 = arith.maximumf %17, %19 : vector<8x8x128xbf16>
    %c4 = arith.constant 4 : index
    %c0_43 = arith.constant 0 : index
    %c0_44 = arith.constant 0 : index
    %c0_45 = arith.constant 0 : index
    %21 = vector.load %arg1[%c4, %c0_43, %c0_44, %c0_45] : memref<8x8x8x128xbf16, #tpu.memory_space<vmem>>, vector<1x8x8x128xbf16>
    %22 = vector.shape_cast %21 : vector<1x8x8x128xbf16> to vector<8x8x128xbf16>
    %c6 = arith.constant 6 : index
    %c0_46 = arith.constant 0 : index
    %c0_47 = arith.constant 0 : index
    %c0_48 = arith.constant 0 : index
    %23 = vector.load %arg1[%c6, %c0_46, %c0_47, %c0_48] : memref<8x8x8x128xbf16, #tpu.memory_space<vmem>>, vector<1x8x8x128xbf16>
    %24 = vector.shape_cast %23 : vector<1x8x8x128xbf16> to vector<8x8x128xbf16>
    %25 = arith.maximumf %22, %24 : vector<8x8x128xbf16>
    %26 = arith.maximumf %20, %25 : vector<8x8x128xbf16>
    %c0_49 = arith.constant 0 : index
    %c1_50 = arith.constant 1 : index
    %c1_51 = arith.constant 1 : index
    %c0_52 = arith.constant 0 : index
    %27 = vector.load %arg9[%c0_49, %c1_50, %c1_51, %c0_52] : memref<2x10x16x128xbf16, #tpu.memory_space<vmem>>, vector<1x8x8x128xbf16>
    %28 = vector.shape_cast %27 : vector<1x8x8x128xbf16> to vector<8x8x128xbf16>
    %29 = vector.shape_cast %26 : vector<8x8x128xbf16> to vector<1x8x8x128xbf16>
    tpu.vector_store %arg9[%c0_49, %c1_50, %c1_51, %c0_52], %29 {strides = array<i32>} : memref<2x10x16x128xbf16, #tpu.memory_space<vmem>>, vector<1x8x8x128xbf16>,
    %c1_53 = arith.constant 1 : index
    %c0_54 = arith.constant 0 : index
    %c0_55 = arith.constant 0 : index
    %c0_56 = arith.constant 0 : index
    %30 = vector.load %arg1[%c1_53, %c0_54, %c0_55, %c0_56] : memref<8x8x8x128xbf16, #tpu.memory_space<vmem>>, vector<1x8x8x128xbf16>
    %31 = vector.shape_cast %30 : vector<1x8x8x128xbf16> to vector<8x8x128xbf16>
    %c3 = arith.constant 3 : index
    %c0_57 = arith.constant 0 : index
    %c0_58 = arith.constant 0 : index
    %c0_59 = arith.constant 0 : index
    %32 = vector.load %arg1[%c3, %c0_57, %c0_58, %c0_59] : memref<8x8x8x128xbf16, #tpu.memory_space<vmem>>, vector<1x8x8x128xbf16>
    %33 = vector.shape_cast %32 : vector<1x8x8x128xbf16> to vector<8x8x128xbf16>
    %34 = arith.maximumf %31, %33 : vector<8x8x128xbf16>
    %c5 = arith.constant 5 : index
    %c0_60 = arith.constant 0 : index
    %c0_61 = arith.constant 0 : index
    %c0_62 = arith.constant 0 : index
    %35 = vector.load %arg1[%c5, %c0_60, %c0_61, %c0_62] : memref<8x8x8x128xbf16, #tpu.memory_space<vmem>>, vector<1x8x8x128xbf16>
    %36 = vector.shape_cast %35 : vector<1x8x8x128xbf16> to vector<8x8x128xbf16>
    %c7 = arith.constant 7 : index
    %c0_63 = arith.constant 0 : index
    %c0_64 = arith.constant 0 : index
    %c0_65 = arith.constant 0 : index
    %37 = vector.load %arg1[%c7, %c0_63, %c0_64, %c0_65] : memref<8x8x8x128xbf16, #tpu.memory_space<vmem>>, vector<1x8x8x128xbf16>
    %38 = vector.shape_cast %37 : vector<1x8x8x128xbf16> to vector<8x8x128xbf16>
    %39 = arith.maximumf %36, %38 : vector<8x8x128xbf16>
    %40 = arith.maximumf %34, %39 : vector<8x8x128xbf16>
    %c1_66 = arith.constant 1 : index
    %c1_67 = arith.constant 1 : index
    %c1_68 = arith.constant 1 : index
    %c0_69 = arith.constant 0 : index
    %41 = vector.load %arg9[%c1_66, %c1_67, %c1_68, %c0_69] : memref<2x10x16x128xbf16, #tpu.memory_space<vmem>>, vector<1x8x8x128xbf16>
    %42 = vector.shape_cast %41 : vector<1x8x8x128xbf16> to vector<8x8x128xbf16>
    %43 = vector.shape_cast %40 : vector<8x8x128xbf16> to vector<1x8x8x128xbf16>
    tpu.vector_store %arg9[%c1_66, %c1_67, %c1_68, %c0_69], %43 {strides = array<i32>} : memref<2x10x16x128xbf16, #tpu.memory_space<vmem>>, vector<1x8x8x128xbf16>,
    %cst_70 = arith.constant 0.000000e+00 : f32
    %44 = vector.broadcast %cst_70 : f32 to vector<1x128xf32>
    %cst_71 = arith.constant 0.000000e+00 : f32
    %45 = vector.broadcast %cst_71 : f32 to vector<1x128xf32>
    %c0_72 = arith.constant 0 : index
    %c0_73 = arith.constant 0 : index
    %c0_74 = arith.constant 0 : index
    %c0_75 = arith.constant 0 : index
    %46 = vector.load %arg9[%c0_72, %c0_73, %c0_74, %c0_75] : memref<2x10x16x128xbf16, #tpu.memory_space<vmem>>, vector<1x8x8x128xbf16>
    %47 = vector.shape_cast %46 : vector<1x8x8x128xbf16> to vector<8x8x128xbf16>
    %48 = vector.shape_cast %47 : vector<8x8x128xbf16> to vector<64x128xbf16>
    %c0_76 = arith.constant 0 : index
    %c0_77 = arith.constant 0 : index
    %c0_78 = arith.constant 0 : index
    %49 = vector.load %arg11[%c0_76, %c0_77, %c0_78] : memref<2x64x1152xbf16, #tpu.memory_space<vmem>>, vector<1x64x128xbf16>
    %50 = vector.shape_cast %49 : vector<1x64x128xbf16> to vector<64x128xbf16>
    %51 = vector.shape_cast %48 : vector<64x128xbf16> to vector<1x64x128xbf16>
    tpu.vector_store %arg11[%c0_76, %c0_77, %c0_78], %51 {strides = array<i32>} : memref<2x64x1152xbf16, #tpu.memory_space<vmem>>, vector<1x64x128xbf16>,
    %c0_79 = arith.constant 0 : index
    %c0_80 = arith.constant 0 : index
    %c1_81 = arith.constant 1 : index
    %c0_82 = arith.constant 0 : index
    %52 = vector.load %arg9[%c0_79, %c0_80, %c1_81, %c0_82] : memref<2x10x16x128xbf16, #tpu.memory_space<vmem>>, vector<1x8x8x128xbf16>
    %53 = vector.shape_cast %52 : vector<1x8x8x128xbf16> to vector<8x8x128xbf16>
    %54 = vector.shape_cast %53 : vector<8x8x128xbf16> to vector<64x128xbf16>
    %c0_83 = arith.constant 0 : index
    %c0_84 = arith.constant 0 : index
    %c128 = arith.constant 128 : index
    %55 = vector.load %arg11[%c0_83, %c0_84, %c128] : memref<2x64x1152xbf16, #tpu.memory_space<vmem>>, vector<1x64x128xbf16>
    %56 = vector.shape_cast %55 : vector<1x64x128xbf16> to vector<64x128xbf16>
    %57 = vector.shape_cast %54 : vector<64x128xbf16> to vector<1x64x128xbf16>
    tpu.vector_store %arg11[%c0_83, %c0_84, %c128], %57 {strides = array<i32>} : memref<2x64x1152xbf16, #tpu.memory_space<vmem>>, vector<1x64x128xbf16>,
    %c0_85 = arith.constant 0 : index
    %c0_86 = arith.constant 0 : index
    %c2_87 = arith.constant 2 : index
    %c0_88 = arith.constant 0 : index
    %58 = vector.load %arg9[%c0_85, %c0_86, %c2_87, %c0_88] : memref<2x10x16x128xbf16, #tpu.memory_space<vmem>>, vector<1x8x8x128xbf16>
    %59 = vector.shape_cast %58 : vector<1x8x8x128xbf16> to vector<8x8x128xbf16>
    %60 = vector.shape_cast %59 : vector<8x8x128xbf16> to vector<64x128xbf16>
    %c0_89 = arith.constant 0 : index
    %c0_90 = arith.constant 0 : index
    %c256 = arith.constant 256 : index
    %61 = vector.load %arg11[%c0_89, %c0_90, %c256] : memref<2x64x1152xbf16, #tpu.memory_space<vmem>>, vector<1x64x128xbf16>
    %62 = vector.shape_cast %61 : vector<1x64x128xbf16> to vector<64x128xbf16>
    %63 = vector.shape_cast %60 : vector<64x128xbf16> to vector<1x64x128xbf16>
    tpu.vector_store %arg11[%c0_89, %c0_90, %c256], %63 {strides = array<i32>} : memref<2x64x1152xbf16, #tpu.memory_space<vmem>>, vector<1x64x128xbf16>,
    %c0_91 = arith.constant 0 : index
    %c1_92 = arith.constant 1 : index
    %c0_93 = arith.constant 0 : index
    %c0_94 = arith.constant 0 : index
    %64 = vector.load %arg9[%c0_91, %c1_92, %c0_93, %c0_94] : memref<2x10x16x128xbf16, #tpu.memory_space<vmem>>, vector<1x8x8x128xbf16>
    %65 = vector.shape_cast %64 : vector<1x8x8x128xbf16> to vector<8x8x128xbf16>
    %66 = vector.shape_cast %65 : vector<8x8x128xbf16> to vector<64x128xbf16>
    %c0_95 = arith.constant 0 : index
    %c0_96 = arith.constant 0 : index
    %c384 = arith.constant 384 : index
    %67 = vector.load %arg11[%c0_95, %c0_96, %c384] : memref<2x64x1152xbf16, #tpu.memory_space<vmem>>, vector<1x64x128xbf16>
    %68 = vector.shape_cast %67 : vector<1x64x128xbf16> to vector<64x128xbf16>
    %69 = vector.shape_cast %66 : vector<64x128xbf16> to vector<1x64x128xbf16>
    tpu.vector_store %arg11[%c0_95, %c0_96, %c384], %69 {strides = array<i32>} : memref<2x64x1152xbf16, #tpu.memory_space<vmem>>, vector<1x64x128xbf16>,
    %c0_97 = arith.constant 0 : index
    %c1_98 = arith.constant 1 : index
    %c1_99 = arith.constant 1 : index
    %c0_100 = arith.constant 0 : index
    %70 = vector.load %arg9[%c0_97, %c1_98, %c1_99, %c0_100] : memref<2x10x16x128xbf16, #tpu.memory_space<vmem>>, vector<1x8x8x128xbf16>
    %71 = vector.shape_cast %70 : vector<1x8x8x128xbf16> to vector<8x8x128xbf16>
    %72 = vector.shape_cast %71 : vector<8x8x128xbf16> to vector<64x128xbf16>
    %c0_101 = arith.constant 0 : index
    %c0_102 = arith.constant 0 : index
    %c512 = arith.constant 512 : index
    %73 = vector.load %arg11[%c0_101, %c0_102, %c512] : memref<2x64x1152xbf16, #tpu.memory_space<vmem>>, vector<1x64x128xbf16>
    %74 = vector.shape_cast %73 : vector<1x64x128xbf16> to vector<64x128xbf16>
    %75 = vector.shape_cast %72 : vector<64x128xbf16> to vector<1x64x128xbf16>
    tpu.vector_store %arg11[%c0_101, %c0_102, %c512], %75 {strides = array<i32>} : memref<2x64x1152xbf16, #tpu.memory_space<vmem>>, vector<1x64x128xbf16>,
    %c0_103 = arith.constant 0 : index
    %c1_104 = arith.constant 1 : index
    %c2_105 = arith.constant 2 : index
    %c0_106 = arith.constant 0 : index
    %76 = vector.load %arg9[%c0_103, %c1_104, %c2_105, %c0_106] : memref<2x10x16x128xbf16, #tpu.memory_space<vmem>>, vector<1x8x8x128xbf16>
    %77 = vector.shape_cast %76 : vector<1x8x8x128xbf16> to vector<8x8x128xbf16>
    %78 = vector.shape_cast %77 : vector<8x8x128xbf16> to vector<64x128xbf16>
    %c0_107 = arith.constant 0 : index
    %c0_108 = arith.constant 0 : index
    %c640 = arith.constant 640 : index
    %79 = vector.load %arg11[%c0_107, %c0_108, %c640] : memref<2x64x1152xbf16, #tpu.memory_space<vmem>>, vector<1x64x128xbf16>
    %80 = vector.shape_cast %79 : vector<1x64x128xbf16> to vector<64x128xbf16>
    %81 = vector.shape_cast %78 : vector<64x128xbf16> to vector<1x64x128xbf16>
    tpu.vector_store %arg11[%c0_107, %c0_108, %c640], %81 {strides = array<i32>} : memref<2x64x1152xbf16, #tpu.memory_space<vmem>>, vector<1x64x128xbf16>,
    %c0_109 = arith.constant 0 : index
    %c2_110 = arith.constant 2 : index
    %c0_111 = arith.constant 0 : index
    %c0_112 = arith.constant 0 : index
    %82 = vector.load %arg9[%c0_109, %c2_110, %c0_111, %c0_112] : memref<2x10x16x128xbf16, #tpu.memory_space<vmem>>, vector<1x8x8x128xbf16>
    %83 = vector.shape_cast %82 : vector<1x8x8x128xbf16> to vector<8x8x128xbf16>
    %84 = vector.shape_cast %83 : vector<8x8x128xbf16> to vector<64x128xbf16>
    %c0_113 = arith.constant 0 : index
    %c0_114 = arith.constant 0 : index
    %c768 = arith.constant 768 : index
    %85 = vector.load %arg11[%c0_113, %c0_114, %c768] : memref<2x64x1152xbf16, #tpu.memory_space<vmem>>, vector<1x64x128xbf16>
    %86 = vector.shape_cast %85 : vector<1x64x128xbf16> to vector<64x128xbf16>
    %87 = vector.shape_cast %84 : vector<64x128xbf16> to vector<1x64x128xbf16>
    tpu.vector_store %arg11[%c0_113, %c0_114, %c768], %87 {strides = array<i32>} : memref<2x64x1152xbf16, #tpu.memory_space<vmem>>, vector<1x64x128xbf16>,
    %c0_115 = arith.constant 0 : index
    %c2_116 = arith.constant 2 : index
    %c1_117 = arith.constant 1 : index
    %c0_118 = arith.constant 0 : index
    %88 = vector.load %arg9[%c0_115, %c2_116, %c1_117, %c0_118] : memref<2x10x16x128xbf16, #tpu.memory_space<vmem>>, vector<1x8x8x128xbf16>
    %89 = vector.shape_cast %88 : vector<1x8x8x128xbf16> to vector<8x8x128xbf16>
    %90 = vector.shape_cast %89 : vector<8x8x128xbf16> to vector<64x128xbf16>
    %c0_119 = arith.constant 0 : index
    %c0_120 = arith.constant 0 : index
    %c896 = arith.constant 896 : index
    %91 = vector.load %arg11[%c0_119, %c0_120, %c896] : memref<2x64x1152xbf16, #tpu.memory_space<vmem>>, vector<1x64x128xbf16>
    %92 = vector.shape_cast %91 : vector<1x64x128xbf16> to vector<64x128xbf16>
    %93 = vector.shape_cast %90 : vector<64x128xbf16> to vector<1x64x128xbf16>
    tpu.vector_store %arg11[%c0_119, %c0_120, %c896], %93 {strides = array<i32>} : memref<2x64x1152xbf16, #tpu.memory_space<vmem>>, vector<1x64x128xbf16>,
    %c0_121 = arith.constant 0 : index
    %c2_122 = arith.constant 2 : index
    %c2_123 = arith.constant 2 : index
    %c0_124 = arith.constant 0 : index
    %94 = vector.load %arg9[%c0_121, %c2_122, %c2_123, %c0_124] : memref<2x10x16x128xbf16, #tpu.memory_space<vmem>>, vector<1x8x8x128xbf16>
    %95 = vector.shape_cast %94 : vector<1x8x8x128xbf16> to vector<8x8x128xbf16>
    %96 = vector.shape_cast %95 : vector<8x8x128xbf16> to vector<64x128xbf16>
    %c0_125 = arith.constant 0 : index
    %c0_126 = arith.constant 0 : index
    %c1024 = arith.constant 1024 : index
    %97 = vector.load %arg11[%c0_125, %c0_126, %c1024] : memref<2x64x1152xbf16, #tpu.memory_space<vmem>>, vector<1x64x128xbf16>
    %98 = vector.shape_cast %97 : vector<1x64x128xbf16> to vector<64x128xbf16>
    %99 = vector.shape_cast %96 : vector<64x128xbf16> to vector<1x64x128xbf16>
    tpu.vector_store %arg11[%c0_125, %c0_126, %c1024], %99 {strides = array<i32>} : memref<2x64x1152xbf16, #tpu.memory_space<vmem>>, vector<1x64x128xbf16>,
    %c0_127 = arith.constant 0 : index
    %c0_128 = arith.constant 0 : index
    %c0_129 = arith.constant 0 : index
    %100 = vector.load %arg11[%c0_127, %c0_128, %c0_129] : memref<2x64x1152xbf16, #tpu.memory_space<vmem>>, vector<1x64x1152xbf16>
    %101 = vector.shape_cast %100 : vector<1x64x1152xbf16> to vector<64x1152xbf16>
    %c0_130 = arith.constant 0 : index
    %c0_131 = arith.constant 0 : index
    %102 = vector.load %arg2[%c0_130, %c0_131] : memref<1152x128xbf16, #tpu.memory_space<vmem>>, vector<1152x128xbf16>
    %cst_132 = arith.constant dense<0.000000e+00> : vector<64x128xf32>
    %103 = tpu.matmul %101, %102, %cst_132 {dimension_numbers = #tpu.dot_dimension_numbers<[1], [0], [0], [1], [0, 0, 1, 1], [], []>} : vector<64x1152xbf16>, vector<1152x128xbf16>, vector<64x128xf32> -> vector<64x128xf32>
    %cst_133 = arith.constant dense<0.000000e+00> : vector<128xf32>
    %104 = vector.multi_reduction <add>, %103, %cst_133 [0] : vector<64x128xf32> to vector<128xf32>
    %105 = vector.shape_cast %104 : vector<128xf32> to vector<1x128xf32>
    %106 = arith.addf %44, %105 : vector<1x128xf32>
    %107 = arith.mulf %103, %103 : vector<64x128xf32>
    %cst_134 = arith.constant dense<0.000000e+00> : vector<128xf32>
    %108 = vector.multi_reduction <add>, %107, %cst_134 [0] : vector<64x128xf32> to vector<128xf32>
    %109 = vector.shape_cast %108 : vector<128xf32> to vector<1x128xf32>
    %110 = arith.addf %45, %109 : vector<1x128xf32>
    %111 = vector.shape_cast %103 : vector<64x128xf32> to vector<8x8x128xf32>
    %112 = arith.truncf %111 : vector<8x8x128xf32> to vector<8x8x128xbf16>
    %c0_135 = arith.constant 0 : index
    %c1_136 = arith.constant 1 : index
    %c1_137 = arith.constant 1 : index
    %c0_138 = arith.constant 0 : index
    %113 = vector.load %arg10[%c0_135, %c1_136, %c1_137, %c0_138] : memref<2x10x16x128xbf16, #tpu.memory_space<vmem>>, vector<1x8x8x128xbf16>
    %114 = vector.shape_cast %113 : vector<1x8x8x128xbf16> to vector<8x8x128xbf16>
    %115 = vector.shape_cast %112 : vector<8x8x128xbf16> to vector<1x8x8x128xbf16>
    tpu.vector_store %arg10[%c0_135, %c1_136, %c1_137, %c0_138], %115 {strides = array<i32>} : memref<2x10x16x128xbf16, #tpu.memory_space<vmem>>, vector<1x8x8x128xbf16>,
    %c1_139 = arith.constant 1 : index
    %c0_140 = arith.constant 0 : index
    %c0_141 = arith.constant 0 : index
    %c0_142 = arith.constant 0 : index
    %116 = vector.load %arg9[%c1_139, %c0_140, %c0_141, %c0_142] : memref<2x10x16x128xbf16, #tpu.memory_space<vmem>>, vector<1x8x8x128xbf16>
    %117 = vector.shape_cast %116 : vector<1x8x8x128xbf16> to vector<8x8x128xbf16>
    %118 = vector.shape_cast %117 : vector<8x8x128xbf16> to vector<64x128xbf16>
    %c1_143 = arith.constant 1 : index
    %c0_144 = arith.constant 0 : index
    %c0_145 = arith.constant 0 : index
    %119 = vector.load %arg11[%c1_143, %c0_144, %c0_145] : memref<2x64x1152xbf16, #tpu.memory_space<vmem>>, vector<1x64x128xbf16>
    %120 = vector.shape_cast %119 : vector<1x64x128xbf16> to vector<64x128xbf16>
    %121 = vector.shape_cast %118 : vector<64x128xbf16> to vector<1x64x128xbf16>
    tpu.vector_store %arg11[%c1_143, %c0_144, %c0_145], %121 {strides = array<i32>} : memref<2x64x1152xbf16, #tpu.memory_space<vmem>>, vector<1x64x128xbf16>,
    %c1_146 = arith.constant 1 : index
    %c0_147 = arith.constant 0 : index
    %c1_148 = arith.constant 1 : index
    %c0_149 = arith.constant 0 : index
    %122 = vector.load %arg9[%c1_146, %c0_147, %c1_148, %c0_149] : memref<2x10x16x128xbf16, #tpu.memory_space<vmem>>, vector<1x8x8x128xbf16>
    %123 = vector.shape_cast %122 : vector<1x8x8x128xbf16> to vector<8x8x128xbf16>
    %124 = vector.shape_cast %123 : vector<8x8x128xbf16> to vector<64x128xbf16>
    %c1_150 = arith.constant 1 : index
    %c0_151 = arith.constant 0 : index
    %c128_152 = arith.constant 128 : index
    %125 = vector.load %arg11[%c1_150, %c0_151, %c128_152] : memref<2x64x1152xbf16, #tpu.memory_space<vmem>>, vector<1x64x128xbf16>
    %126 = vector.shape_cast %125 : vector<1x64x128xbf16> to vector<64x128xbf16>
    %127 = vector.shape_cast %124 : vector<64x128xbf16> to vector<1x64x128xbf16>
    tpu.vector_store %arg11[%c1_150, %c0_151, %c128_152], %127 {strides = array<i32>} : memref<2x64x1152xbf16, #tpu.memory_space<vmem>>, vector<1x64x128xbf16>,
    %c1_153 = arith.constant 1 : index
    %c0_154 = arith.constant 0 : index
    %c2_155 = arith.constant 2 : index
    %c0_156 = arith.constant 0 : index
    %128 = vector.load %arg9[%c1_153, %c0_154, %c2_155, %c0_156] : memref<2x10x16x128xbf16, #tpu.memory_space<vmem>>, vector<1x8x8x128xbf16>
    %129 = vector.shape_cast %128 : vector<1x8x8x128xbf16> to vector<8x8x128xbf16>
    %130 = vector.shape_cast %129 : vector<8x8x128xbf16> to vector<64x128xbf16>
    %c1_157 = arith.constant 1 : index
    %c0_158 = arith.constant 0 : index
    %c256_159 = arith.constant 256 : index
    %131 = vector.load %arg11[%c1_157, %c0_158, %c256_159] : memref<2x64x1152xbf16, #tpu.memory_space<vmem>>, vector<1x64x128xbf16>
    %132 = vector.shape_cast %131 : vector<1x64x128xbf16> to vector<64x128xbf16>
    %133 = vector.shape_cast %130 : vector<64x128xbf16> to vector<1x64x128xbf16>
    tpu.vector_store %arg11[%c1_157, %c0_158, %c256_159], %133 {strides = array<i32>} : memref<2x64x1152xbf16, #tpu.memory_space<vmem>>, vector<1x64x128xbf16>,
    %c1_160 = arith.constant 1 : index
    %c1_161 = arith.constant 1 : index
    %c0_162 = arith.constant 0 : index
    %c0_163 = arith.constant 0 : index
    %134 = vector.load %arg9[%c1_160, %c1_161, %c0_162, %c0_163] : memref<2x10x16x128xbf16, #tpu.memory_space<vmem>>, vector<1x8x8x128xbf16>
    %135 = vector.shape_cast %134 : vector<1x8x8x128xbf16> to vector<8x8x128xbf16>
    %136 = vector.shape_cast %135 : vector<8x8x128xbf16> to vector<64x128xbf16>
    %c1_164 = arith.constant 1 : index
    %c0_165 = arith.constant 0 : index
    %c384_166 = arith.constant 384 : index
    %137 = vector.load %arg11[%c1_164, %c0_165, %c384_166] : memref<2x64x1152xbf16, #tpu.memory_space<vmem>>, vector<1x64x128xbf16>
    %138 = vector.shape_cast %137 : vector<1x64x128xbf16> to vector<64x128xbf16>
    %139 = vector.shape_cast %136 : vector<64x128xbf16> to vector<1x64x128xbf16>
    tpu.vector_store %arg11[%c1_164, %c0_165, %c384_166], %139 {strides = array<i32>} : memref<2x64x1152xbf16, #tpu.memory_space<vmem>>, vector<1x64x128xbf16>,
    %c1_167 = arith.constant 1 : index
    %c1_168 = arith.constant 1 : index
    %c1_169 = arith.constant 1 : index
    %c0_170 = arith.constant 0 : index
    %140 = vector.load %arg9[%c1_167, %c1_168, %c1_169, %c0_170] : memref<2x10x16x128xbf16, #tpu.memory_space<vmem>>, vector<1x8x8x128xbf16>
    %141 = vector.shape_cast %140 : vector<1x8x8x128xbf16> to vector<8x8x128xbf16>
    %142 = vector.shape_cast %141 : vector<8x8x128xbf16> to vector<64x128xbf16>
    %c1_171 = arith.constant 1 : index
    %c0_172 = arith.constant 0 : index
    %c512_173 = arith.constant 512 : index
    %143 = vector.load %arg11[%c1_171, %c0_172, %c512_173] : memref<2x64x1152xbf16, #tpu.memory_space<vmem>>, vector<1x64x128xbf16>
    %144 = vector.shape_cast %143 : vector<1x64x128xbf16> to vector<64x128xbf16>
    %145 = vector.shape_cast %142 : vector<64x128xbf16> to vector<1x64x128xbf16>
    tpu.vector_store %arg11[%c1_171, %c0_172, %c512_173], %145 {strides = array<i32>} : memref<2x64x1152xbf16, #tpu.memory_space<vmem>>, vector<1x64x128xbf16>,
    %c1_174 = arith.constant 1 : index
    %c1_175 = arith.constant 1 : index
    %c2_176 = arith.constant 2 : index
    %c0_177 = arith.constant 0 : index
    %146 = vector.load %arg9[%c1_174, %c1_175, %c2_176, %c0_177] : memref<2x10x16x128xbf16, #tpu.memory_space<vmem>>, vector<1x8x8x128xbf16>
    %147 = vector.shape_cast %146 : vector<1x8x8x128xbf16> to vector<8x8x128xbf16>
    %148 = vector.shape_cast %147 : vector<8x8x128xbf16> to vector<64x128xbf16>
    %c1_178 = arith.constant 1 : index
    %c0_179 = arith.constant 0 : index
    %c640_180 = arith.constant 640 : index
    %149 = vector.load %arg11[%c1_178, %c0_179, %c640_180] : memref<2x64x1152xbf16, #tpu.memory_space<vmem>>, vector<1x64x128xbf16>
    %150 = vector.shape_cast %149 : vector<1x64x128xbf16> to vector<64x128xbf16>
    %151 = vector.shape_cast %148 : vector<64x128xbf16> to vector<1x64x128xbf16>
    tpu.vector_store %arg11[%c1_178, %c0_179, %c640_180], %151 {strides = array<i32>} : memref<2x64x1152xbf16, #tpu.memory_space<vmem>>, vector<1x64x128xbf16>,
    %c1_181 = arith.constant 1 : index
    %c2_182 = arith.constant 2 : index
    %c0_183 = arith.constant 0 : index
    %c0_184 = arith.constant 0 : index
    %152 = vector.load %arg9[%c1_181, %c2_182, %c0_183, %c0_184] : memref<2x10x16x128xbf16, #tpu.memory_space<vmem>>, vector<1x8x8x128xbf16>
    %153 = vector.shape_cast %152 : vector<1x8x8x128xbf16> to vector<8x8x128xbf16>
    %154 = vector.shape_cast %153 : vector<8x8x128xbf16> to vector<64x128xbf16>
    %c1_185 = arith.constant 1 : index
    %c0_186 = arith.constant 0 : index
    %c768_187 = arith.constant 768 : index
    %155 = vector.load %arg11[%c1_185, %c0_186, %c768_187] : memref<2x64x1152xbf16, #tpu.memory_space<vmem>>, vector<1x64x128xbf16>
    %156 = vector.shape_cast %155 : vector<1x64x128xbf16> to vector<64x128xbf16>
    %157 = vector.shape_cast %154 : vector<64x128xbf16> to vector<1x64x128xbf16>
    tpu.vector_store %arg11[%c1_185, %c0_186, %c768_187], %157 {strides = array<i32>} : memref<2x64x1152xbf16, #tpu.memory_space<vmem>>, vector<1x64x128xbf16>,
    %c1_188 = arith.constant 1 : index
    %c2_189 = arith.constant 2 : index
    %c1_190 = arith.constant 1 : index
    %c0_191 = arith.constant 0 : index
    %158 = vector.load %arg9[%c1_188, %c2_189, %c1_190, %c0_191] : memref<2x10x16x128xbf16, #tpu.memory_space<vmem>>, vector<1x8x8x128xbf16>
    %159 = vector.shape_cast %158 : vector<1x8x8x128xbf16> to vector<8x8x128xbf16>
    %160 = vector.shape_cast %159 : vector<8x8x128xbf16> to vector<64x128xbf16>
    %c1_192 = arith.constant 1 : index
    %c0_193 = arith.constant 0 : index
    %c896_194 = arith.constant 896 : index
    %161 = vector.load %arg11[%c1_192, %c0_193, %c896_194] : memref<2x64x1152xbf16, #tpu.memory_space<vmem>>, vector<1x64x128xbf16>
    %162 = vector.shape_cast %161 : vector<1x64x128xbf16> to vector<64x128xbf16>
    %163 = vector.shape_cast %160 : vector<64x128xbf16> to vector<1x64x128xbf16>
    tpu.vector_store %arg11[%c1_192, %c0_193, %c896_194], %163 {strides = array<i32>} : memref<2x64x1152xbf16, #tpu.memory_space<vmem>>, vector<1x64x128xbf16>,
    %c1_195 = arith.constant 1 : index
    %c2_196 = arith.constant 2 : index
    %c2_197 = arith.constant 2 : index
    %c0_198 = arith.constant 0 : index
    %164 = vector.load %arg9[%c1_195, %c2_196, %c2_197, %c0_198] : memref<2x10x16x128xbf16, #tpu.memory_space<vmem>>, vector<1x8x8x128xbf16>
    %165 = vector.shape_cast %164 : vector<1x8x8x128xbf16> to vector<8x8x128xbf16>
    %166 = vector.shape_cast %165 : vector<8x8x128xbf16> to vector<64x128xbf16>
    %c1_199 = arith.constant 1 : index
    %c0_200 = arith.constant 0 : index
    %c1024_201 = arith.constant 1024 : index
    %167 = vector.load %arg11[%c1_199, %c0_200, %c1024_201] : memref<2x64x1152xbf16, #tpu.memory_space<vmem>>, vector<1x64x128xbf16>
    %168 = vector.shape_cast %167 : vector<1x64x128xbf16> to vector<64x128xbf16>
    %169 = vector.shape_cast %166 : vector<64x128xbf16> to vector<1x64x128xbf16>
    tpu.vector_store %arg11[%c1_199, %c0_200, %c1024_201], %169 {strides = array<i32>} : memref<2x64x1152xbf16, #tpu.memory_space<vmem>>, vector<1x64x128xbf16>,
    %c1_202 = arith.constant 1 : index
    %c0_203 = arith.constant 0 : index
    %c0_204 = arith.constant 0 : index
    %170 = vector.load %arg11[%c1_202, %c0_203, %c0_204] : memref<2x64x1152xbf16, #tpu.memory_space<vmem>>, vector<1x64x1152xbf16>
    %171 = vector.shape_cast %170 : vector<1x64x1152xbf16> to vector<64x1152xbf16>
    %c0_205 = arith.constant 0 : index
    %c0_206 = arith.constant 0 : index
    %172 = vector.load %arg2[%c0_205, %c0_206] : memref<1152x128xbf16, #tpu.memory_space<vmem>>, vector<1152x128xbf16>
    %cst_207 = arith.constant dense<0.000000e+00> : vector<64x128xf32>
    %173 = tpu.matmul %171, %172, %cst_207 {dimension_numbers = #tpu.dot_dimension_numbers<[1], [0], [0], [1], [0, 0, 1, 1], [], []>} : vector<64x1152xbf16>, vector<1152x128xbf16>, vector<64x128xf32> -> vector<64x128xf32>
    %cst_208 = arith.constant dense<0.000000e+00> : vector<128xf32>
    %174 = vector.multi_reduction <add>, %173, %cst_208 [0] : vector<64x128xf32> to vector<128xf32>
    %175 = vector.shape_cast %174 : vector<128xf32> to vector<1x128xf32>
    %176 = arith.addf %106, %175 : vector<1x128xf32>
    %177 = arith.mulf %173, %173 : vector<64x128xf32>
    %cst_209 = arith.constant dense<0.000000e+00> : vector<128xf32>
    %178 = vector.multi_reduction <add>, %177, %cst_209 [0] : vector<64x128xf32> to vector<128xf32>
    %179 = vector.shape_cast %178 : vector<128xf32> to vector<1x128xf32>
    %180 = arith.addf %110, %179 : vector<1x128xf32>
    %181 = vector.shape_cast %173 : vector<64x128xf32> to vector<8x8x128xf32>
    %182 = arith.truncf %181 : vector<8x8x128xf32> to vector<8x8x128xbf16>
    %c1_210 = arith.constant 1 : index
    %c1_211 = arith.constant 1 : index
    %c1_212 = arith.constant 1 : index
    %c0_213 = arith.constant 0 : index
    %183 = vector.load %arg10[%c1_210, %c1_211, %c1_212, %c0_213] : memref<2x10x16x128xbf16, #tpu.memory_space<vmem>>, vector<1x8x8x128xbf16>
    %184 = vector.shape_cast %183 : vector<1x8x8x128xbf16> to vector<8x8x128xbf16>
    %185 = vector.shape_cast %182 : vector<8x8x128xbf16> to vector<1x8x8x128xbf16>
    tpu.vector_store %arg10[%c1_210, %c1_211, %c1_212, %c0_213], %185 {strides = array<i32>} : memref<2x10x16x128xbf16, #tpu.memory_space<vmem>>, vector<1x8x8x128xbf16>,
    %c0_214 = arith.constant 0 : index
    %c0_215 = arith.constant 0 : index
    %186 = vector.load %arg3[%c0_214, %c0_215] : memref<1x128xf32, #tpu.memory_space<vmem>>, vector<1x128xf32>
    %c0_216 = arith.constant 0 : index
    %c0_217 = arith.constant 0 : index
    %187 = vector.load %arg4[%c0_216, %c0_217] : memref<1x128xf32, #tpu.memory_space<vmem>>, vector<1x128xf32>
    %cst_218 = arith.constant 7.812500e-03 : f32
    %188 = vector.broadcast %cst_218 : f32 to vector<1x128xf32>
    %189 = arith.mulf %176, %188 : vector<1x128xf32>
    %cst_219 = arith.constant 7.812500e-03 : f32
    %190 = vector.broadcast %cst_219 : f32 to vector<1x128xf32>
    %191 = arith.mulf %180, %190 : vector<1x128xf32>
    %192 = arith.mulf %189, %189 : vector<1x128xf32>
    %193 = arith.subf %191, %192 : vector<1x128xf32>
    %cst_220 = arith.constant 0.000000e+00 : f32
    %194 = vector.broadcast %cst_220 : f32 to vector<1x128xf32>
    %195 = arith.maximumf %193, %194 : vector<1x128xf32>
    %cst_221 = arith.constant 9.99999974E-6 : f32
    %196 = vector.broadcast %cst_221 : f32 to vector<1x128xf32>
    %197 = arith.addf %195, %196 : vector<1x128xf32>
    %198 = math.rsqrt %197 : vector<1x128xf32>
    %199 = arith.mulf %186, %198 : vector<1x128xf32>
    %200 = arith.mulf %189, %199 : vector<1x128xf32>
    %201 = arith.subf %187, %200 : vector<1x128xf32>
    %202 = vector.shape_cast %199 : vector<1x128xf32> to vector<1x1x128xf32>
    %203 = vector.shape_cast %201 : vector<1x128xf32> to vector<1x1x128xf32>
    %c0_222 = arith.constant 0 : index
    %c1_223 = arith.constant 1 : index
    %c1_224 = arith.constant 1 : index
    %c0_225 = arith.constant 0 : index
    %204 = vector.load %arg10[%c0_222, %c1_223, %c1_224, %c0_225] : memref<2x10x16x128xbf16, #tpu.memory_space<vmem>>, vector<1x8x8x128xbf16>
    %205 = vector.shape_cast %204 : vector<1x8x8x128xbf16> to vector<8x8x128xbf16>
    %206 = arith.extf %205 : vector<8x8x128xbf16> to vector<8x8x128xf32>
    %207 = vector.broadcast %202 : vector<1x1x128xf32> to vector<8x8x128xf32>
    %208 = arith.mulf %206, %207 : vector<8x8x128xf32>
    %209 = vector.broadcast %203 : vector<1x1x128xf32> to vector<8x8x128xf32>
    %210 = arith.addf %208, %209 : vector<8x8x128xf32>
    %cst_226 = arith.constant 0.000000e+00 : f32
    %211 = vector.broadcast %cst_226 : f32 to vector<8x8x128xf32>
    %212 = arith.maximumf %210, %211 : vector<8x8x128xf32>
    %213 = arith.truncf %212 : vector<8x8x128xf32> to vector<8x8x128xbf16>
    %c0_227 = arith.constant 0 : index
    %c1_228 = arith.constant 1 : index
    %c1_229 = arith.constant 1 : index
    %c0_230 = arith.constant 0 : index
    %214 = vector.load %arg10[%c0_227, %c1_228, %c1_229, %c0_230] : memref<2x10x16x128xbf16, #tpu.memory_space<vmem>>, vector<1x8x8x128xbf16>
    %215 = vector.shape_cast %214 : vector<1x8x8x128xbf16> to vector<8x8x128xbf16>
    %216 = vector.shape_cast %213 : vector<8x8x128xbf16> to vector<1x8x8x128xbf16>
    tpu.vector_store %arg10[%c0_227, %c1_228, %c1_229, %c0_230], %216 {strides = array<i32>} : memref<2x10x16x128xbf16, #tpu.memory_space<vmem>>, vector<1x8x8x128xbf16>,
    %c1_231 = arith.constant 1 : index
    %c1_232 = arith.constant 1 : index
    %c1_233 = arith.constant 1 : index
    %c0_234 = arith.constant 0 : index
    %217 = vector.load %arg10[%c1_231, %c1_232, %c1_233, %c0_234] : memref<2x10x16x128xbf16, #tpu.memory_space<vmem>>, vector<1x8x8x128xbf16>
    %218 = vector.shape_cast %217 : vector<1x8x8x128xbf16> to vector<8x8x128xbf16>
    %219 = arith.extf %218 : vector<8x8x128xbf16> to vector<8x8x128xf32>
    %220 = vector.broadcast %202 : vector<1x1x128xf32> to vector<8x8x128xf32>
    %221 = arith.mulf %219, %220 : vector<8x8x128xf32>
    %222 = vector.broadcast %203 : vector<1x1x128xf32> to vector<8x8x128xf32>
    %223 = arith.addf %221, %222 : vector<8x8x128xf32>
    %cst_235 = arith.constant 0.000000e+00 : f32
    %224 = vector.broadcast %cst_235 : f32 to vector<8x8x128xf32>
    %225 = arith.maximumf %223, %224 : vector<8x8x128xf32>
    %226 = arith.truncf %225 : vector<8x8x128xf32> to vector<8x8x128xbf16>
    %c1_236 = arith.constant 1 : index
    %c1_237 = arith.constant 1 : index
    %c1_238 = arith.constant 1 : index
    %c0_239 = arith.constant 0 : index
    %227 = vector.load %arg10[%c1_236, %c1_237, %c1_238, %c0_239] : memref<2x10x16x128xbf16, #tpu.memory_space<vmem>>, vector<1x8x8x128xbf16>
    %228 = vector.shape_cast %227 : vector<1x8x8x128xbf16> to vector<8x8x128xbf16>
    %229 = vector.shape_cast %226 : vector<8x8x128xbf16> to vector<1x8x8x128xbf16>
    tpu.vector_store %arg10[%c1_236, %c1_237, %c1_238, %c0_239], %229 {strides = array<i32>} : memref<2x10x16x128xbf16, #tpu.memory_space<vmem>>, vector<1x8x8x128xbf16>,
    %cst_240 = arith.constant 0.000000e+00 : f32
    %230 = vector.broadcast %cst_240 : f32 to vector<1x128xf32>
    %cst_241 = arith.constant 0.000000e+00 : f32
    %231 = vector.broadcast %cst_241 : f32 to vector<1x128xf32>
    %c0_242 = arith.constant 0 : index
    %c0_243 = arith.constant 0 : index
    %c0_244 = arith.constant 0 : index
    %c0_245 = arith.constant 0 : index
    %232 = vector.load %arg10[%c0_242, %c0_243, %c0_244, %c0_245] : memref<2x10x16x128xbf16, #tpu.memory_space<vmem>>, vector<1x8x8x128xbf16>
    %233 = vector.shape_cast %232 : vector<1x8x8x128xbf16> to vector<8x8x128xbf16>
    %234 = vector.shape_cast %233 : vector<8x8x128xbf16> to vector<64x128xbf16>
    %c0_246 = arith.constant 0 : index
    %c0_247 = arith.constant 0 : index
    %c0_248 = arith.constant 0 : index
    %235 = vector.load %arg11[%c0_246, %c0_247, %c0_248] : memref<2x64x1152xbf16, #tpu.memory_space<vmem>>, vector<1x64x128xbf16>
    %236 = vector.shape_cast %235 : vector<1x64x128xbf16> to vector<64x128xbf16>
    %237 = vector.shape_cast %234 : vector<64x128xbf16> to vector<1x64x128xbf16>
    tpu.vector_store %arg11[%c0_246, %c0_247, %c0_248], %237 {strides = array<i32>} : memref<2x64x1152xbf16, #tpu.memory_space<vmem>>, vector<1x64x128xbf16>,
    %c0_249 = arith.constant 0 : index
    %c0_250 = arith.constant 0 : index
    %c1_251 = arith.constant 1 : index
    %c0_252 = arith.constant 0 : index
    %238 = vector.load %arg10[%c0_249, %c0_250, %c1_251, %c0_252] : memref<2x10x16x128xbf16, #tpu.memory_space<vmem>>, vector<1x8x8x128xbf16>
    %239 = vector.shape_cast %238 : vector<1x8x8x128xbf16> to vector<8x8x128xbf16>
    %240 = vector.shape_cast %239 : vector<8x8x128xbf16> to vector<64x128xbf16>
    %c0_253 = arith.constant 0 : index
    %c0_254 = arith.constant 0 : index
    %c128_255 = arith.constant 128 : index
    %241 = vector.load %arg11[%c0_253, %c0_254, %c128_255] : memref<2x64x1152xbf16, #tpu.memory_space<vmem>>, vector<1x64x128xbf16>
    %242 = vector.shape_cast %241 : vector<1x64x128xbf16> to vector<64x128xbf16>
    %243 = vector.shape_cast %240 : vector<64x128xbf16> to vector<1x64x128xbf16>
    tpu.vector_store %arg11[%c0_253, %c0_254, %c128_255], %243 {strides = array<i32>} : memref<2x64x1152xbf16, #tpu.memory_space<vmem>>, vector<1x64x128xbf16>,
    %c0_256 = arith.constant 0 : index
    %c0_257 = arith.constant 0 : index
    %c2_258 = arith.constant 2 : index
    %c0_259 = arith.constant 0 : index
    %244 = vector.load %arg10[%c0_256, %c0_257, %c2_258, %c0_259] : memref<2x10x16x128xbf16, #tpu.memory_space<vmem>>, vector<1x8x8x128xbf16>
    %245 = vector.shape_cast %244 : vector<1x8x8x128xbf16> to vector<8x8x128xbf16>
    %246 = vector.shape_cast %245 : vector<8x8x128xbf16> to vector<64x128xbf16>
    %c0_260 = arith.constant 0 : index
    %c0_261 = arith.constant 0 : index
    %c256_262 = arith.constant 256 : index
    %247 = vector.load %arg11[%c0_260, %c0_261, %c256_262] : memref<2x64x1152xbf16, #tpu.memory_space<vmem>>, vector<1x64x128xbf16>
    %248 = vector.shape_cast %247 : vector<1x64x128xbf16> to vector<64x128xbf16>
    %249 = vector.shape_cast %246 : vector<64x128xbf16> to vector<1x64x128xbf16>
    tpu.vector_store %arg11[%c0_260, %c0_261, %c256_262], %249 {strides = array<i32>} : memref<2x64x1152xbf16, #tpu.memory_space<vmem>>, vector<1x64x128xbf16>,
    %c0_263 = arith.constant 0 : index
    %c1_264 = arith.constant 1 : index
    %c0_265 = arith.constant 0 : index
    %c0_266 = arith.constant 0 : index
    %250 = vector.load %arg10[%c0_263, %c1_264, %c0_265, %c0_266] : memref<2x10x16x128xbf16, #tpu.memory_space<vmem>>, vector<1x8x8x128xbf16>
    %251 = vector.shape_cast %250 : vector<1x8x8x128xbf16> to vector<8x8x128xbf16>
    %252 = vector.shape_cast %251 : vector<8x8x128xbf16> to vector<64x128xbf16>
    %c0_267 = arith.constant 0 : index
    %c0_268 = arith.constant 0 : index
    %c384_269 = arith.constant 384 : index
    %253 = vector.load %arg11[%c0_267, %c0_268, %c384_269] : memref<2x64x1152xbf16, #tpu.memory_space<vmem>>, vector<1x64x128xbf16>
    %254 = vector.shape_cast %253 : vector<1x64x128xbf16> to vector<64x128xbf16>
    %255 = vector.shape_cast %252 : vector<64x128xbf16> to vector<1x64x128xbf16>
    tpu.vector_store %arg11[%c0_267, %c0_268, %c384_269], %255 {strides = array<i32>} : memref<2x64x1152xbf16, #tpu.memory_space<vmem>>, vector<1x64x128xbf16>,
    %c0_270 = arith.constant 0 : index
    %c1_271 = arith.constant 1 : index
    %c1_272 = arith.constant 1 : index
    %c0_273 = arith.constant 0 : index
    %256 = vector.load %arg10[%c0_270, %c1_271, %c1_272, %c0_273] : memref<2x10x16x128xbf16, #tpu.memory_space<vmem>>, vector<1x8x8x128xbf16>
    %257 = vector.shape_cast %256 : vector<1x8x8x128xbf16> to vector<8x8x128xbf16>
    %258 = vector.shape_cast %257 : vector<8x8x128xbf16> to vector<64x128xbf16>
    %c0_274 = arith.constant 0 : index
    %c0_275 = arith.constant 0 : index
    %c512_276 = arith.constant 512 : index
    %259 = vector.load %arg11[%c0_274, %c0_275, %c512_276] : memref<2x64x1152xbf16, #tpu.memory_space<vmem>>, vector<1x64x128xbf16>
    %260 = vector.shape_cast %259 : vector<1x64x128xbf16> to vector<64x128xbf16>
    %261 = vector.shape_cast %258 : vector<64x128xbf16> to vector<1x64x128xbf16>
    tpu.vector_store %arg11[%c0_274, %c0_275, %c512_276], %261 {strides = array<i32>} : memref<2x64x1152xbf16, #tpu.memory_space<vmem>>, vector<1x64x128xbf16>,
    %c0_277 = arith.constant 0 : index
    %c1_278 = arith.constant 1 : index
    %c2_279 = arith.constant 2 : index
    %c0_280 = arith.constant 0 : index
    %262 = vector.load %arg10[%c0_277, %c1_278, %c2_279, %c0_280] : memref<2x10x16x128xbf16, #tpu.memory_space<vmem>>, vector<1x8x8x128xbf16>
    %263 = vector.shape_cast %262 : vector<1x8x8x128xbf16> to vector<8x8x128xbf16>
    %264 = vector.shape_cast %263 : vector<8x8x128xbf16> to vector<64x128xbf16>
    %c0_281 = arith.constant 0 : index
    %c0_282 = arith.constant 0 : index
    %c640_283 = arith.constant 640 : index
    %265 = vector.load %arg11[%c0_281, %c0_282, %c640_283] : memref<2x64x1152xbf16, #tpu.memory_space<vmem>>, vector<1x64x128xbf16>
    %266 = vector.shape_cast %265 : vector<1x64x128xbf16> to vector<64x128xbf16>
    %267 = vector.shape_cast %264 : vector<64x128xbf16> to vector<1x64x128xbf16>
    tpu.vector_store %arg11[%c0_281, %c0_282, %c640_283], %267 {strides = array<i32>} : memref<2x64x1152xbf16, #tpu.memory_space<vmem>>, vector<1x64x128xbf16>,
    %c0_284 = arith.constant 0 : index
    %c2_285 = arith.constant 2 : index
    %c0_286 = arith.constant 0 : index
    %c0_287 = arith.constant 0 : index
    %268 = vector.load %arg10[%c0_284, %c2_285, %c0_286, %c0_287] : memref<2x10x16x128xbf16, #tpu.memory_space<vmem>>, vector<1x8x8x128xbf16>
    %269 = vector.shape_cast %268 : vector<1x8x8x128xbf16> to vector<8x8x128xbf16>
    %270 = vector.shape_cast %269 : vector<8x8x128xbf16> to vector<64x128xbf16>
    %c0_288 = arith.constant 0 : index
    %c0_289 = arith.constant 0 : index
    %c768_290 = arith.constant 768 : index
    %271 = vector.load %arg11[%c0_288, %c0_289, %c768_290] : memref<2x64x1152xbf16, #tpu.memory_space<vmem>>, vector<1x64x128xbf16>
    %272 = vector.shape_cast %271 : vector<1x64x128xbf16> to vector<64x128xbf16>
    %273 = vector.shape_cast %270 : vector<64x128xbf16> to vector<1x64x128xbf16>
    tpu.vector_store %arg11[%c0_288, %c0_289, %c768_290], %273 {strides = array<i32>} : memref<2x64x1152xbf16, #tpu.memory_space<vmem>>, vector<1x64x128xbf16>,
    %c0_291 = arith.constant 0 : index
    %c2_292 = arith.constant 2 : index
    %c1_293 = arith.constant 1 : index
    %c0_294 = arith.constant 0 : index
    %274 = vector.load %arg10[%c0_291, %c2_292, %c1_293, %c0_294] : memref<2x10x16x128xbf16, #tpu.memory_space<vmem>>, vector<1x8x8x128xbf16>
    %275 = vector.shape_cast %274 : vector<1x8x8x128xbf16> to vector<8x8x128xbf16>
    %276 = vector.shape_cast %275 : vector<8x8x128xbf16> to vector<64x128xbf16>
    %c0_295 = arith.constant 0 : index
    %c0_296 = arith.constant 0 : index
    %c896_297 = arith.constant 896 : index
    %277 = vector.load %arg11[%c0_295, %c0_296, %c896_297] : memref<2x64x1152xbf16, #tpu.memory_space<vmem>>, vector<1x64x128xbf16>
    %278 = vector.shape_cast %277 : vector<1x64x128xbf16> to vector<64x128xbf16>
    %279 = vector.shape_cast %276 : vector<64x128xbf16> to vector<1x64x128xbf16>
    tpu.vector_store %arg11[%c0_295, %c0_296, %c896_297], %279 {strides = array<i32>} : memref<2x64x1152xbf16, #tpu.memory_space<vmem>>, vector<1x64x128xbf16>,
    %c0_298 = arith.constant 0 : index
    %c2_299 = arith.constant 2 : index
    %c2_300 = arith.constant 2 : index
    %c0_301 = arith.constant 0 : index
    %280 = vector.load %arg10[%c0_298, %c2_299, %c2_300, %c0_301] : memref<2x10x16x128xbf16, #tpu.memory_space<vmem>>, vector<1x8x8x128xbf16>
    %281 = vector.shape_cast %280 : vector<1x8x8x128xbf16> to vector<8x8x128xbf16>
    %282 = vector.shape_cast %281 : vector<8x8x128xbf16> to vector<64x128xbf16>
    %c0_302 = arith.constant 0 : index
    %c0_303 = arith.constant 0 : index
    %c1024_304 = arith.constant 1024 : index
    %283 = vector.load %arg11[%c0_302, %c0_303, %c1024_304] : memref<2x64x1152xbf16, #tpu.memory_space<vmem>>, vector<1x64x128xbf16>
    %284 = vector.shape_cast %283 : vector<1x64x128xbf16> to vector<64x128xbf16>
    %285 = vector.shape_cast %282 : vector<64x128xbf16> to vector<1x64x128xbf16>
    tpu.vector_store %arg11[%c0_302, %c0_303, %c1024_304], %285 {strides = array<i32>} : memref<2x64x1152xbf16, #tpu.memory_space<vmem>>, vector<1x64x128xbf16>,
    %c0_305 = arith.constant 0 : index
    %c0_306 = arith.constant 0 : index
    %c0_307 = arith.constant 0 : index
    %286 = vector.load %arg11[%c0_305, %c0_306, %c0_307] : memref<2x64x1152xbf16, #tpu.memory_space<vmem>>, vector<1x64x1152xbf16>
    %287 = vector.shape_cast %286 : vector<1x64x1152xbf16> to vector<64x1152xbf16>
    %c0_308 = arith.constant 0 : index
    %c0_309 = arith.constant 0 : index
    %288 = vector.load %arg5[%c0_308, %c0_309] : memref<1152x128xbf16, #tpu.memory_space<vmem>>, vector<1152x128xbf16>
    %cst_310 = arith.constant dense<0.000000e+00> : vector<64x128xf32>
    %289 = tpu.matmul %287, %288, %cst_310 {dimension_numbers = #tpu.dot_dimension_numbers<[1], [0], [0], [1], [0, 0, 1, 1], [], []>} : vector<64x1152xbf16>, vector<1152x128xbf16>, vector<64x128xf32> -> vector<64x128xf32>
    %cst_311 = arith.constant dense<0.000000e+00> : vector<128xf32>
    %290 = vector.multi_reduction <add>, %289, %cst_311 [0] : vector<64x128xf32> to vector<128xf32>
    %291 = vector.shape_cast %290 : vector<128xf32> to vector<1x128xf32>
    %292 = arith.addf %230, %291 : vector<1x128xf32>
    %293 = arith.mulf %289, %289 : vector<64x128xf32>
    %cst_312 = arith.constant dense<0.000000e+00> : vector<128xf32>
    %294 = vector.multi_reduction <add>, %293, %cst_312 [0] : vector<64x128xf32> to vector<128xf32>
    %295 = vector.shape_cast %294 : vector<128xf32> to vector<1x128xf32>
    %296 = arith.addf %231, %295 : vector<1x128xf32>
    %c0_313 = arith.constant 0 : index
    %c0_314 = arith.constant 0 : index
    %297 = vector.load %arg8[%c0_313, %c0_314] : memref<128x128xf32, #tpu.memory_space<vmem>>, vector<64x128xf32>
    tpu.vector_store %arg8[%c0_313, %c0_314], %289 {strides = array<i32>} : memref<128x128xf32, #tpu.memory_space<vmem>>, vector<64x128xf32>,
    %c1_315 = arith.constant 1 : index
    %c0_316 = arith.constant 0 : index
    %c0_317 = arith.constant 0 : index
    %c0_318 = arith.constant 0 : index
    %298 = vector.load %arg10[%c1_315, %c0_316, %c0_317, %c0_318] : memref<2x10x16x128xbf16, #tpu.memory_space<vmem>>, vector<1x8x8x128xbf16>
    %299 = vector.shape_cast %298 : vector<1x8x8x128xbf16> to vector<8x8x128xbf16>
    %300 = vector.shape_cast %299 : vector<8x8x128xbf16> to vector<64x128xbf16>
    %c1_319 = arith.constant 1 : index
    %c0_320 = arith.constant 0 : index
    %c0_321 = arith.constant 0 : index
    %301 = vector.load %arg11[%c1_319, %c0_320, %c0_321] : memref<2x64x1152xbf16, #tpu.memory_space<vmem>>, vector<1x64x128xbf16>
    %302 = vector.shape_cast %301 : vector<1x64x128xbf16> to vector<64x128xbf16>
    %303 = vector.shape_cast %300 : vector<64x128xbf16> to vector<1x64x128xbf16>
    tpu.vector_store %arg11[%c1_319, %c0_320, %c0_321], %303 {strides = array<i32>} : memref<2x64x1152xbf16, #tpu.memory_space<vmem>>, vector<1x64x128xbf16>,
    %c1_322 = arith.constant 1 : index
    %c0_323 = arith.constant 0 : index
    %c1_324 = arith.constant 1 : index
    %c0_325 = arith.constant 0 : index
    %304 = vector.load %arg10[%c1_322, %c0_323, %c1_324, %c0_325] : memref<2x10x16x128xbf16, #tpu.memory_space<vmem>>, vector<1x8x8x128xbf16>
    %305 = vector.shape_cast %304 : vector<1x8x8x128xbf16> to vector<8x8x128xbf16>
    %306 = vector.shape_cast %305 : vector<8x8x128xbf16> to vector<64x128xbf16>
    %c1_326 = arith.constant 1 : index
    %c0_327 = arith.constant 0 : index
    %c128_328 = arith.constant 128 : index
    %307 = vector.load %arg11[%c1_326, %c0_327, %c128_328] : memref<2x64x1152xbf16, #tpu.memory_space<vmem>>, vector<1x64x128xbf16>
    %308 = vector.shape_cast %307 : vector<1x64x128xbf16> to vector<64x128xbf16>
    %309 = vector.shape_cast %306 : vector<64x128xbf16> to vector<1x64x128xbf16>
    tpu.vector_store %arg11[%c1_326, %c0_327, %c128_328], %309 {strides = array<i32>} : memref<2x64x1152xbf16, #tpu.memory_space<vmem>>, vector<1x64x128xbf16>,
    %c1_329 = arith.constant 1 : index
    %c0_330 = arith.constant 0 : index
    %c2_331 = arith.constant 2 : index
    %c0_332 = arith.constant 0 : index
    %310 = vector.load %arg10[%c1_329, %c0_330, %c2_331, %c0_332] : memref<2x10x16x128xbf16, #tpu.memory_space<vmem>>, vector<1x8x8x128xbf16>
    %311 = vector.shape_cast %310 : vector<1x8x8x128xbf16> to vector<8x8x128xbf16>
    %312 = vector.shape_cast %311 : vector<8x8x128xbf16> to vector<64x128xbf16>
    %c1_333 = arith.constant 1 : index
    %c0_334 = arith.constant 0 : index
    %c256_335 = arith.constant 256 : index
    %313 = vector.load %arg11[%c1_333, %c0_334, %c256_335] : memref<2x64x1152xbf16, #tpu.memory_space<vmem>>, vector<1x64x128xbf16>
    %314 = vector.shape_cast %313 : vector<1x64x128xbf16> to vector<64x128xbf16>
    %315 = vector.shape_cast %312 : vector<64x128xbf16> to vector<1x64x128xbf16>
    tpu.vector_store %arg11[%c1_333, %c0_334, %c256_335], %315 {strides = array<i32>} : memref<2x64x1152xbf16, #tpu.memory_space<vmem>>, vector<1x64x128xbf16>,
    %c1_336 = arith.constant 1 : index
    %c1_337 = arith.constant 1 : index
    %c0_338 = arith.constant 0 : index
    %c0_339 = arith.constant 0 : index
    %316 = vector.load %arg10[%c1_336, %c1_337, %c0_338, %c0_339] : memref<2x10x16x128xbf16, #tpu.memory_space<vmem>>, vector<1x8x8x128xbf16>
    %317 = vector.shape_cast %316 : vector<1x8x8x128xbf16> to vector<8x8x128xbf16>
    %318 = vector.shape_cast %317 : vector<8x8x128xbf16> to vector<64x128xbf16>
    %c1_340 = arith.constant 1 : index
    %c0_341 = arith.constant 0 : index
    %c384_342 = arith.constant 384 : index
    %319 = vector.load %arg11[%c1_340, %c0_341, %c384_342] : memref<2x64x1152xbf16, #tpu.memory_space<vmem>>, vector<1x64x128xbf16>
    %320 = vector.shape_cast %319 : vector<1x64x128xbf16> to vector<64x128xbf16>
    %321 = vector.shape_cast %318 : vector<64x128xbf16> to vector<1x64x128xbf16>
    tpu.vector_store %arg11[%c1_340, %c0_341, %c384_342], %321 {strides = array<i32>} : memref<2x64x1152xbf16, #tpu.memory_space<vmem>>, vector<1x64x128xbf16>,
    %c1_343 = arith.constant 1 : index
    %c1_344 = arith.constant 1 : index
    %c1_345 = arith.constant 1 : index
    %c0_346 = arith.constant 0 : index
    %322 = vector.load %arg10[%c1_343, %c1_344, %c1_345, %c0_346] : memref<2x10x16x128xbf16, #tpu.memory_space<vmem>>, vector<1x8x8x128xbf16>
    %323 = vector.shape_cast %322 : vector<1x8x8x128xbf16> to vector<8x8x128xbf16>
    %324 = vector.shape_cast %323 : vector<8x8x128xbf16> to vector<64x128xbf16>
    %c1_347 = arith.constant 1 : index
    %c0_348 = arith.constant 0 : index
    %c512_349 = arith.constant 512 : index
    %325 = vector.load %arg11[%c1_347, %c0_348, %c512_349] : memref<2x64x1152xbf16, #tpu.memory_space<vmem>>, vector<1x64x128xbf16>
    %326 = vector.shape_cast %325 : vector<1x64x128xbf16> to vector<64x128xbf16>
    %327 = vector.shape_cast %324 : vector<64x128xbf16> to vector<1x64x128xbf16>
    tpu.vector_store %arg11[%c1_347, %c0_348, %c512_349], %327 {strides = array<i32>} : memref<2x64x1152xbf16, #tpu.memory_space<vmem>>, vector<1x64x128xbf16>,
    %c1_350 = arith.constant 1 : index
    %c1_351 = arith.constant 1 : index
    %c2_352 = arith.constant 2 : index
    %c0_353 = arith.constant 0 : index
    %328 = vector.load %arg10[%c1_350, %c1_351, %c2_352, %c0_353] : memref<2x10x16x128xbf16, #tpu.memory_space<vmem>>, vector<1x8x8x128xbf16>
    %329 = vector.shape_cast %328 : vector<1x8x8x128xbf16> to vector<8x8x128xbf16>
    %330 = vector.shape_cast %329 : vector<8x8x128xbf16> to vector<64x128xbf16>
    %c1_354 = arith.constant 1 : index
    %c0_355 = arith.constant 0 : index
    %c640_356 = arith.constant 640 : index
    %331 = vector.load %arg11[%c1_354, %c0_355, %c640_356] : memref<2x64x1152xbf16, #tpu.memory_space<vmem>>, vector<1x64x128xbf16>
    %332 = vector.shape_cast %331 : vector<1x64x128xbf16> to vector<64x128xbf16>
    %333 = vector.shape_cast %330 : vector<64x128xbf16> to vector<1x64x128xbf16>
    tpu.vector_store %arg11[%c1_354, %c0_355, %c640_356], %333 {strides = array<i32>} : memref<2x64x1152xbf16, #tpu.memory_space<vmem>>, vector<1x64x128xbf16>,
    %c1_357 = arith.constant 1 : index
    %c2_358 = arith.constant 2 : index
    %c0_359 = arith.constant 0 : index
    %c0_360 = arith.constant 0 : index
    %334 = vector.load %arg10[%c1_357, %c2_358, %c0_359, %c0_360] : memref<2x10x16x128xbf16, #tpu.memory_space<vmem>>, vector<1x8x8x128xbf16>
    %335 = vector.shape_cast %334 : vector<1x8x8x128xbf16> to vector<8x8x128xbf16>
    %336 = vector.shape_cast %335 : vector<8x8x128xbf16> to vector<64x128xbf16>
    %c1_361 = arith.constant 1 : index
    %c0_362 = arith.constant 0 : index
    %c768_363 = arith.constant 768 : index
    %337 = vector.load %arg11[%c1_361, %c0_362, %c768_363] : memref<2x64x1152xbf16, #tpu.memory_space<vmem>>, vector<1x64x128xbf16>
    %338 = vector.shape_cast %337 : vector<1x64x128xbf16> to vector<64x128xbf16>
    %339 = vector.shape_cast %336 : vector<64x128xbf16> to vector<1x64x128xbf16>
    tpu.vector_store %arg11[%c1_361, %c0_362, %c768_363], %339 {strides = array<i32>} : memref<2x64x1152xbf16, #tpu.memory_space<vmem>>, vector<1x64x128xbf16>,
    %c1_364 = arith.constant 1 : index
    %c2_365 = arith.constant 2 : index
    %c1_366 = arith.constant 1 : index
    %c0_367 = arith.constant 0 : index
    %340 = vector.load %arg10[%c1_364, %c2_365, %c1_366, %c0_367] : memref<2x10x16x128xbf16, #tpu.memory_space<vmem>>, vector<1x8x8x128xbf16>
    %341 = vector.shape_cast %340 : vector<1x8x8x128xbf16> to vector<8x8x128xbf16>
    %342 = vector.shape_cast %341 : vector<8x8x128xbf16> to vector<64x128xbf16>
    %c1_368 = arith.constant 1 : index
    %c0_369 = arith.constant 0 : index
    %c896_370 = arith.constant 896 : index
    %343 = vector.load %arg11[%c1_368, %c0_369, %c896_370] : memref<2x64x1152xbf16, #tpu.memory_space<vmem>>, vector<1x64x128xbf16>
    %344 = vector.shape_cast %343 : vector<1x64x128xbf16> to vector<64x128xbf16>
    %345 = vector.shape_cast %342 : vector<64x128xbf16> to vector<1x64x128xbf16>
    tpu.vector_store %arg11[%c1_368, %c0_369, %c896_370], %345 {strides = array<i32>} : memref<2x64x1152xbf16, #tpu.memory_space<vmem>>, vector<1x64x128xbf16>,
    %c1_371 = arith.constant 1 : index
    %c2_372 = arith.constant 2 : index
    %c2_373 = arith.constant 2 : index
    %c0_374 = arith.constant 0 : index
    %346 = vector.load %arg10[%c1_371, %c2_372, %c2_373, %c0_374] : memref<2x10x16x128xbf16, #tpu.memory_space<vmem>>, vector<1x8x8x128xbf16>
    %347 = vector.shape_cast %346 : vector<1x8x8x128xbf16> to vector<8x8x128xbf16>
    %348 = vector.shape_cast %347 : vector<8x8x128xbf16> to vector<64x128xbf16>
    %c1_375 = arith.constant 1 : index
    %c0_376 = arith.constant 0 : index
    %c1024_377 = arith.constant 1024 : index
    %349 = vector.load %arg11[%c1_375, %c0_376, %c1024_377] : memref<2x64x1152xbf16, #tpu.memory_space<vmem>>, vector<1x64x128xbf16>
    %350 = vector.shape_cast %349 : vector<1x64x128xbf16> to vector<64x128xbf16>
    %351 = vector.shape_cast %348 : vector<64x128xbf16> to vector<1x64x128xbf16>
    tpu.vector_store %arg11[%c1_375, %c0_376, %c1024_377], %351 {strides = array<i32>} : memref<2x64x1152xbf16, #tpu.memory_space<vmem>>, vector<1x64x128xbf16>,
    %c1_378 = arith.constant 1 : index
    %c0_379 = arith.constant 0 : index
    %c0_380 = arith.constant 0 : index
    %352 = vector.load %arg11[%c1_378, %c0_379, %c0_380] : memref<2x64x1152xbf16, #tpu.memory_space<vmem>>, vector<1x64x1152xbf16>
    %353 = vector.shape_cast %352 : vector<1x64x1152xbf16> to vector<64x1152xbf16>
    %c0_381 = arith.constant 0 : index
    %c0_382 = arith.constant 0 : index
    %354 = vector.load %arg5[%c0_381, %c0_382] : memref<1152x128xbf16, #tpu.memory_space<vmem>>, vector<1152x128xbf16>
    %cst_383 = arith.constant dense<0.000000e+00> : vector<64x128xf32>
    %355 = tpu.matmul %353, %354, %cst_383 {dimension_numbers = #tpu.dot_dimension_numbers<[1], [0], [0], [1], [0, 0, 1, 1], [], []>} : vector<64x1152xbf16>, vector<1152x128xbf16>, vector<64x128xf32> -> vector<64x128xf32>
    %cst_384 = arith.constant dense<0.000000e+00> : vector<128xf32>
    %356 = vector.multi_reduction <add>, %355, %cst_384 [0] : vector<64x128xf32> to vector<128xf32>
    %357 = vector.shape_cast %356 : vector<128xf32> to vector<1x128xf32>
    %358 = arith.addf %292, %357 : vector<1x128xf32>
    %359 = arith.mulf %355, %355 : vector<64x128xf32>
    %cst_385 = arith.constant dense<0.000000e+00> : vector<128xf32>
    %360 = vector.multi_reduction <add>, %359, %cst_385 [0] : vector<64x128xf32> to vector<128xf32>
    %361 = vector.shape_cast %360 : vector<128xf32> to vector<1x128xf32>
    %362 = arith.addf %296, %361 : vector<1x128xf32>
    %c64 = arith.constant 64 : index
    %c0_386 = arith.constant 0 : index
    %363 = vector.load %arg8[%c64, %c0_386] : memref<128x128xf32, #tpu.memory_space<vmem>>, vector<64x128xf32>
    tpu.vector_store %arg8[%c64, %c0_386], %355 {strides = array<i32>} : memref<128x128xf32, #tpu.memory_space<vmem>>, vector<64x128xf32>,
    %c0_387 = arith.constant 0 : index
    %c0_388 = arith.constant 0 : index
    %364 = vector.load %arg6[%c0_387, %c0_388] : memref<1x128xf32, #tpu.memory_space<vmem>>, vector<1x128xf32>
    %c0_389 = arith.constant 0 : index
    %c0_390 = arith.constant 0 : index
    %365 = vector.load %arg7[%c0_389, %c0_390] : memref<1x128xf32, #tpu.memory_space<vmem>>, vector<1x128xf32>
    %cst_391 = arith.constant 7.812500e-03 : f32
    %366 = vector.broadcast %cst_391 : f32 to vector<1x128xf32>
    %367 = arith.mulf %358, %366 : vector<1x128xf32>
    %cst_392 = arith.constant 7.812500e-03 : f32
    %368 = vector.broadcast %cst_392 : f32 to vector<1x128xf32>
    %369 = arith.mulf %362, %368 : vector<1x128xf32>
    %370 = arith.mulf %367, %367 : vector<1x128xf32>
    %371 = arith.subf %369, %370 : vector<1x128xf32>
    %cst_393 = arith.constant 0.000000e+00 : f32
    %372 = vector.broadcast %cst_393 : f32 to vector<1x128xf32>
    %373 = arith.maximumf %371, %372 : vector<1x128xf32>
    %cst_394 = arith.constant 9.99999974E-6 : f32
    %374 = vector.broadcast %cst_394 : f32 to vector<1x128xf32>
    %375 = arith.addf %373, %374 : vector<1x128xf32>
    %376 = math.rsqrt %375 : vector<1x128xf32>
    %377 = arith.mulf %364, %376 : vector<1x128xf32>
    %378 = arith.mulf %367, %377 : vector<1x128xf32>
    %379 = arith.subf %365, %378 : vector<1x128xf32>
    %c0_395 = arith.constant 0 : index
    %c0_396 = arith.constant 0 : index
    %380 = vector.load %arg8[%c0_395, %c0_396] : memref<128x128xf32, #tpu.memory_space<vmem>>, vector<64x128xf32>
    %381 = vector.broadcast %377 : vector<1x128xf32> to vector<64x128xf32>
    %382 = arith.mulf %380, %381 : vector<64x128xf32>
    %383 = vector.broadcast %379 : vector<1x128xf32> to vector<64x128xf32>
    %384 = arith.addf %382, %383 : vector<64x128xf32>
    %cst_397 = arith.constant 0.000000e+00 : f32
    %385 = vector.broadcast %cst_397 : f32 to vector<64x128xf32>
    %386 = arith.maximumf %384, %385 : vector<64x128xf32>
    %c0_398 = arith.constant 0 : index
    %c0_399 = arith.constant 0 : index
    %387 = vector.load %arg8[%c0_398, %c0_399] : memref<128x128xf32, #tpu.memory_space<vmem>>, vector<64x128xf32>
    tpu.vector_store %arg8[%c0_398, %c0_399], %386 {strides = array<i32>} : memref<128x128xf32, #tpu.memory_space<vmem>>, vector<64x128xf32>,
    %c64_400 = arith.constant 64 : index
    %c0_401 = arith.constant 0 : index
    %388 = vector.load %arg8[%c64_400, %c0_401] : memref<128x128xf32, #tpu.memory_space<vmem>>, vector<64x128xf32>
    %389 = vector.broadcast %377 : vector<1x128xf32> to vector<64x128xf32>
    %390 = arith.mulf %388, %389 : vector<64x128xf32>
    %391 = vector.broadcast %379 : vector<1x128xf32> to vector<64x128xf32>
    %392 = arith.addf %390, %391 : vector<64x128xf32>
    %cst_402 = arith.constant 0.000000e+00 : f32
    %393 = vector.broadcast %cst_402 : f32 to vector<64x128xf32>
    %394 = arith.maximumf %392, %393 : vector<64x128xf32>
    %c64_403 = arith.constant 64 : index
    %c0_404 = arith.constant 0 : index
    %395 = vector.load %arg8[%c64_403, %c0_404] : memref<128x128xf32, #tpu.memory_space<vmem>>, vector<64x128xf32>
    tpu.vector_store %arg8[%c64_403, %c0_404], %394 {strides = array<i32>} : memref<128x128xf32, #tpu.memory_space<vmem>>, vector<64x128xf32>,
    return
  }
  func.func @transform_0(%arg0: i32) -> (i32, i32, i32, i32) {
    %c0_i32 = arith.constant 0 : i32
    %c0_i32_0 = arith.constant 0 : i32
    %c0_i32_1 = arith.constant 0 : i32
    %c0_i32_2 = arith.constant 0 : i32
    %c0_i32_3 = arith.constant 0 : i32
    return %c0_i32, %c0_i32_0, %c0_i32_1, %c0_i32_2 : i32, i32, i32, i32
  }
  func.func @transform_1(%arg0: i32) -> (i32, i32) {
    %c0_i32 = arith.constant 0 : i32
    %c0_i32_0 = arith.constant 0 : i32
    %c0_i32_1 = arith.constant 0 : i32
    return %c0_i32, %c0_i32_0 : i32, i32
  }
  func.func @transform_2(%arg0: i32) -> (i32, i32) {
    %c0_i32 = arith.constant 0 : i32
    %c0_i32_0 = arith.constant 0 : i32
    %c0_i32_1 = arith.constant 0 : i32
    return %c0_i32, %c0_i32_0 : i32, i32
  }
  func.func @transform_3(%arg0: i32) -> (i32, i32) {
    %c0_i32 = arith.constant 0 : i32
    %c0_i32_0 = arith.constant 0 : i32
    %c0_i32_1 = arith.constant 0 : i32
    return %c0_i32, %c0_i32_0 : i32, i32
  }
  func.func @transform_4(%arg0: i32) -> (i32, i32) {
    %c0_i32 = arith.constant 0 : i32
    %c0_i32_0 = arith.constant 0 : i32
    %c0_i32_1 = arith.constant 0 : i32
    return %c0_i32, %c0_i32_0 : i32, i32
  }
  func.func @transform_5(%arg0: i32) -> (i32, i32) {
    %c0_i32 = arith.constant 0 : i32
    %c0_i32_0 = arith.constant 0 : i32
    %c0_i32_1 = arith.constant 0 : i32
    return %c0_i32, %c0_i32_0 : i32, i32
  }
  func.func @transform_6(%arg0: i32) -> (i32, i32) {
    %c0_i32 = arith.constant 0 : i32
    %c0_i32_0 = arith.constant 0 : i32
    %c0_i32_1 = arith.constant 0 : i32
    return %c0_i32, %c0_i32_0 : i32, i32
  }
  func.func @transform_7(%arg0: i32) -> (i32, i32) {
    %c0_i32 = arith.constant 0 : i32
    %c0_i32_0 = arith.constant 0 : i32
    %c0_i32_1 = arith.constant 0 : i32
    return %c0_i32, %c0_i32_0 : i32, i32
  }
}

</mosaic_0001>

<bundles_post_ra>
// kernel: tpu_custom_call.1
= control target key start
LH: loop header
LB: loop body
LE: loop exit
PB: predicated region body
PF: predicated region fallthrough
CT: control target
= control target key end

     0   :  { %12 = vsyncpa [#allocation6], 0  ;;  %s13209_s0 = inlined_call_operand.hbm [shape: bf16[8,8,8,128], index: 0, kind: input, shape index: {}]   ;;  %s13210_s1 = inlined_call_operand.hbm [shape: bf16[1152,128], index: 1, kind: input, shape index: {}]   ;;  %s13211_s2 = inlined_call_operand.vmem [shape: f32[1,128], index: 2, kind: input, shape index: {}]   ;;  %s13212_s3 = inlined_call_operand.vmem [shape: f32[1,128], index: 3, kind: input, shape index: {}]   ;;  %s13213_s4 = inlined_call_operand.hbm [shape: bf16[1152,128], index: 4, kind: input, shape index: {}]   ;;  %s13214_s5 = inlined_call_operand.vmem [shape: f32[1,128], index: 5, kind: input, shape index: {}]   ;;  %s13215_s6 = inlined_call_operand.vmem [shape: f32[1,128], index: 6, kind: input, shape index: {}]   ;;  %s13216_s7 = inlined_call_operand.hbm [shape: f32[128,128], index: 7, kind: output, shape index: {}]  }
   0x1   :  { %13 = vsyncpa [#allocation9], 0 }
   0x2   :  { %14 = vsyncpa [#allocation7], 0  ;;  %s32_s26 = sshll.u32 %s13210_s1, 4  ;;  %s11347_s27 = smov [#allocation8]   ;;  %s33_s26 = int_to_ptr.hbm [resolvable:$true] %s32_s26 }
   0x3   :  { %s34_s28 = sshll.u32 %s11347_s27, 4  ;;  %s19_s8 = sshll.u32 %s13209_s0, 4  ;;  %s35_s28 = int_to_ptr.vmem [resolvable:$true] %s34_s28  ;;  %s20_s8 = int_to_ptr.hbm [resolvable:$true] %s19_s8 }
   0x4   :  { %s11348_s9 = smov 64   ;;  %s11349_s10 = smov 4  }
   0x5   :  { %40 = dma.hbm_to_vmem [thread:$0]  %s33_s26, 9216, %s35_s28, [#allocation9], %s11348_s9, %s11348_s9, %s11349_s10  }
   0x6   :  { %s11350_s11 = smov [#allocation5]   ;;  %s49_s15 = sshll.u32 %s13213_s4, 4  ;;  %s50_s15 = int_to_ptr.hbm [resolvable:$true] %s49_s15 }
   0x7   :  { %s21_s12 = sshll.u32 %s11350_s11, 4  ;;  %s11351_s1 = smov [#allocation10]   ;;  %s22_s12 = int_to_ptr.vmem [resolvable:$true] %s21_s12 }
   0x8   :  { %27 = dma.hbm_to_vmem [thread:$0]  %s20_s8, 4096, %s22_s12, [#allocation6], %s11348_s9, %s11348_s9, %s11349_s10  }
   0x9   :  { %s51_s16 = sshll.u32 %s11351_s1, 4  ;;  %s52_s16 = int_to_ptr.vmem [resolvable:$true] %s51_s16 }
   0xa   :  { %57 = dma.hbm_to_vmem [thread:$0]  %s50_s15, 9216, %s52_s16, [#allocation9], %s11348_s9, %s11348_s9, %s11349_s10  }
   0xb   :  { %11341 = dma.done.wait [#allocation6], 4096  }
   0xc   :  { %11342 = vsyncadd [#allocation6], 4294963200 }
   0xd   :  { %11343 = dma.done.wait [#allocation9], 18432  }
   0xe   :  { %11344 = vsyncadd [#allocation9], 4294948864  ;;  %v11352_v0 = vmov 0   ;;  %v10691_v1 = vld [vmem:[#allocation8 + $0x38] sm:$0xff]  ;;  %v10690_v4 = vld [vmem:[#allocation8 + $0x30] sm:$0xff]  ;;  %vm85_vm0 = vcmask 1040384  }
   0xf   :  { %75 = vst [vmem:[#allocation2] sm:$0xf] %v11352_v0  ;;  %v10707_v2 = vld [vmem:[#allocation8 + $0xb8] sm:$0xff]  ;;  %2341 = vmatpush.bf16.msra.mxu0 %v10691_v1  ;;  %v10706_v5 = vld [vmem:[#allocation8 + $0xb0] sm:$0xff]  ;;  %vm86_vm1 = vsmask.f32 256 }
  0x10   :  { %186 = vst [vmem:[#allocation3] sm:$0xf] %v11352_v0  ;;  %v10715_v3 = vld [vmem:[#allocation8 + $0xf8] sm:$0xff]  ;;  %2399 = vmatpush.bf16.msra.mxu2 %v10707_v2  ;;  %v10714_v7 = vld [vmem:[#allocation8 + $0xf0] sm:$0xff]  ;;  %v10689_v9 = vld [vmem:[#allocation8 + $0x28] sm:$0xff]  ;;  %vm1009_vm4 = vcmask 1042432  }
  0x11   :  { %76 = vst [vmem:[#allocation2 + $0x4] sm:$0x1] %v11352_v0  ;;  %v10699_v6 = vld [vmem:[#allocation8 + $0x78] sm:$0xff]  ;;  %2428 = vmatpush.bf16.msra.mxu3 %v10715_v3  ;;  %v10698_v8 = vld [vmem:[#allocation8 + $0x70] sm:$0xff]  ;;  %v10705_v10 = vld [vmem:[#allocation8 + $0xa8] sm:$0xff]  ;;  %vm1010_vm5 = vcmask 1046532  }
  0x12   :  { %77 = vst [vmem:[#allocation2 + $0x50] sm:$0xf] %v11352_v0  ;;  %2370 = vmatpush.bf16.msra.mxu1 %v10699_v6  ;;  %v10713_v11 = vld [vmem:[#allocation8 + $0xe8] sm:$0xff]  ;;  %vm11406_vm2 = vmand %vm85_vm0, %vm86_vm1  ;;  %vm136_vm3 = vsmask.f32 7938  ;;  %v10688_v13 = vld [vmem:[#allocation8 + $0x20] sm:$0xff] }
  0x13   :  { %78 = vst [vmem:[#allocation2 + $0x54] sm:$0x1] %v11352_v0  ;;  %2342 = vmatpush.bf16.msra.mxu0 %v10690_v4  ;;  %v10704_v14 = vld [vmem:[#allocation8 + $0xa0] sm:$0xff]  ;;  %v10697_v15 = vld [vmem:[#allocation8 + $0x68] sm:$0xff]  ;;  %vm11414_vm6 = vmand %vm85_vm0, %vm136_vm3  ;;  %vm503_vm7 = vcmask 1043456   ;;  %s8810_s23 = sshll.u32 %s13216_s7, 4  ;;  %s8811_s23 = int_to_ptr.hbm [resolvable:$true] %s8810_s23 }
  0x14   :  { %80 = vst [vmem:[#allocation2 + $0x48] sm:$0xf] %v11352_v0  ;;  %2400 = vmatpush.bf16.msra.mxu2 %v10706_v5  ;;  %v88_v16 = vld [vmem:[#allocation2 + $0x8] sm:$0x1]  ;;  %v11081_v17 = vld [vmem:[#allocation5] sm:$0xff]   ;;  %v10687_v31 = vld [vmem:[#allocation8 + $0x18] sm:$0xff] }
  0x15   :  { %81 = vst [vmem:[#allocation2 + $0x4c] sm:$0x1] %v11352_v0  ;;  %2429 = vmatpush.bf16.msra.mxu3 %v10714_v7  ;;  %v89_v18 = vsel %vm11406_vm2, 0, %v88_v16  ;;  %v11082_v19 = vunpack.c.l.bf16 %v11081_v17  ;;  %v11097_v20 = vld [vmem:[#allocation5 + $0x40] sm:$0xff]   ;;  %v11083_v23 = vunpack.c.h.bf16 %v11081_v17  ;;  %v10703_v32 = vld [vmem:[#allocation8 + $0x98] sm:$0xff]  ;;  %vm11420_vm8 = vmor %vm1009_vm4, %vm1010_vm5  ;;  %s11354_s24 = smov 128  }
  0x16   :  { %82 = vst [vmem:[#allocation2 + $0x98] sm:$0xf] %v11352_v0  ;;  %2371 = vmatpush.bf16.msra.mxu1 %v10698_v8  ;;  %v11113_v21 = vld [vmem:[#allocation5 + $0x80] sm:$0xff]   ;;  %v11098_v25 = vunpack.c.l.bf16 %v11097_v20  ;;  %v11099_v30 = vunpack.c.h.bf16 %v11097_v20  ;;  %v10711_v37 = vld [vmem:[#allocation8 + $0xd8] sm:$0xff]  ;;  %v138_v40 = vld [vmem:[#allocation2 + $0xc] sm:$0x1] }
  0x17   :  { %83 = vst [vmem:[#allocation2 + $0x9c] sm:$0x1] %v11352_v0  ;;  %2343 = vmatpush.bf16.msra.mxu0 %v10689_v9  ;;  %v11129_v22 = vld [vmem:[#allocation5 + $0xc0] sm:$0xff]   ;;  %v11114_v26 = vunpack.c.l.bf16 %v11113_v21  ;;  %v11115_v35 = vunpack.c.h.bf16 %v11113_v21  ;;  %v10695_v44 = vld [vmem:[#allocation8 + $0x58] sm:$0xff]  ;;  %v139_v45 = vsel %vm11414_vm6, 0, %v138_v40  ;;  %v11426_v50 = vld [vmem:[#allocation5 + $0x8] sm:$0xff]  }
  0x18   :  { %187 = vst [vmem:[#allocation3 + $0x4] sm:$0x1] %v11352_v0  ;;  %2401 = vmatpush.bf16.msra.mxu2 %v10705_v10  ;;  %v10712_v24 = vld [vmem:[#allocation8 + $0xe0] sm:$0xff]  ;;  %v11130_v27 = vunpack.c.l.bf16 %v11129_v22  ;;  %v11131_v36 = vunpack.c.h.bf16 %v11129_v22  ;;  %v325_v38 = vmax.f32 %v11082_v19, %v11098_v25  ;;  %v326_v43 = vmax.f32 %v11083_v23, %v11099_v30  ;;  %v91_v48 = vld [vmem:[#allocation2 + $0x10] sm:$0x1]  ;;  %v11211_v54 = vld [vmem:[#allocation5 + $0x48] sm:$0xff]  }
  0x19   :  { %188 = vst [vmem:[#allocation3 + $0x50] sm:$0xf] %v11352_v0  ;;  %2430 = vmatpush.bf16.msra.mxu3 %v10713_v11  ;;  %v814_v28 = vld [vmem:[#allocation2] sm:$0xf]  ;;  %v978_v42 = vld [vmem:[#allocation2 + $0x4] sm:$0x1]  ;;  %v11086_v61 = vunpack.c.l.bf16 %v11426_v50  ;;  %v11102_v2 = vunpack.c.l.bf16 %v11211_v54  ;;  %v11087_v7 = vunpack.c.h.bf16 %v11426_v50  ;;  %v11103_v11 = vunpack.c.h.bf16 %v11211_v54  ;;  %vm11444_vm11 = vmand %vm503_vm7, %vm136_vm3 }
  0x1a   :  { %189 = vst [vmem:[#allocation3 + $0x54] sm:$0x1] %v11352_v0  ;;  %2372 = vmatpush.bf16.msra.mxu1 %v10697_v15  ;;  %v10696_v33 = vld [vmem:[#allocation8 + $0x60] sm:$0xff]  ;;  %v375_v39 = vmax.f32 %v11114_v26, %v11130_v27  ;;  %v1014_v47 = vrot.slane %v978_v42, 5  ;;  %v376_v49 = vmax.f32 %v11115_v35, %v11131_v36  ;;  %v92_v53 = vsel %vm11406_vm2, 0, %v91_v48  ;;  %v10686_v55 = vld [vmem:[#allocation8 + $0x10] sm:$0xff] }
  0x1b   :  { %191 = vst [vmem:[#allocation3 + $0x48] sm:$0xf] %v11352_v0  ;;  %v977_v41 = vld [vmem:[#allocation2] sm:$0xe]  ;;  %2344 = vmatpush.bf16.msra.mxu0 %v10688_v13  ;;  %v10702_v56 = vld [vmem:[#allocation8 + $0x90] sm:$0xff]  ;;  %v10685_v13 = vld [vmem:[#allocation8 + $0x8] sm:$0xff]  ;;  %v11453_v40 = vmax.f32 %v11087_v7, %v11103_v11 }
  0x1c   :  { %192 = vst [vmem:[#allocation3 + $0x4c] sm:$0x1] %v11352_v0  ;;  %2402 = vmatpush.bf16.msra.mxu2 %v10704_v14  ;;  %v8824_v46 = vrot.slane %v977_v41, 9  ;;  %v407_v51 = vmax.f32 %v325_v38, %v375_v39  ;;  %v5044_v52 = vld [vmem:[#allocation3] sm:$0xf]  ;;  %v408_v60 = vmax.f32 %v326_v43, %v376_v49  ;;  %v10710_v3 = vld [vmem:[#allocation8 + $0xd0] sm:$0xff] }
  0x1d   :  { %193 = vst [vmem:[#allocation3 + $0x98] sm:$0xf] %v11352_v0  ;;  %2431 = vmatpush.bf16.msra.mxu3 %v10712_v24  ;;  %v5204_v58 = vld [vmem:[#allocation3] sm:$0xe]  ;;  %v10694_v4 = vld [vmem:[#allocation8 + $0x50] sm:$0xff]  ;;  %v10701_v14 = vld [vmem:[#allocation8 + $0x88] sm:$0xff]  ;;  %v327_v24 = vmax.f32 %v11086_v61, %v11102_v2 }
  0x1e   :  { %194 = vst [vmem:[#allocation3 + $0x9c] sm:$0x1] %v11352_v0  ;;  %2373 = vmatpush.bf16.msra.mxu1 %v10696_v33  ;;  %v1015_v57 = vsel %vm11420_vm8, %v8824_v46, %v1014_v47  ;;  %v415_v62 = vpack.c.bf16 %v407_v51, %v407_v51  ;;  %v9736_v63 = vrot.slane %v5204_v58, 9  ;;  %v830_v1 = vld [vmem:[#allocation2] sm:$0xf]  ;;  %v416_v5 = vpack.c.bf16 %v408_v60, %v408_v60  ;;  %v11438_v25 = vld [vmem:[#allocation5 + $0x88] sm:$0xff]  }
  0x1f   :  { %90 = vst [vmem:[#allocation2 + $0x8] sm:$0x1] %v89_v18  ;;  %v5205_v59 = vld [vmem:[#allocation3 + $0x4] sm:$0x1]  ;;  %2345 = vmatpush.bf16.msra.mxu0 %v10687_v31  ;;  %vm846_vm9 = vsmask.f32 3328  ;;  %v11118_v39 = vunpack.c.l.bf16 %v11438_v25 }
  0x20   :  { %822 = vst [vmem:[#allocation4] sm:$0xf] %v814_v28  ;;  %v5238_v0 = vrot.slane %v5205_v59, 5  ;;  %2403 = vmatpush.bf16.msra.mxu2 %v10703_v32  ;;  %v831_v6 = vld [vmem:[#allocation2 + $0x4] sm:$0x1]  ;;  %v424_v8 = vshrl.u32 %v415_v62, 16 }
  0x21   :  { %140 = vst [vmem:[#allocation2 + $0xc] sm:$0x1] %v139_v45  ;;  %2432 = vmatpush.bf16.msra.mxu3 %v10711_v37  ;;  %v427_v9 = vshll.u32 %v415_v62, 16  ;;  %vm847_vm10 = vsmask.f32 7440  ;;  %v432_v16 = vshrl.u32 %v416_v5, 16 }
  0x22   :  { %93 = vst [vmem:[#allocation2 + $0x10] sm:$0x1] %v92_v53  ;;  %2374 = vmatpush.bf16.msra.mxu1 %v10695_v44  ;;  %v435_v17 = vshll.u32 %v416_v5, 16  ;;  %v850_v18 = vshrl.u32 %v830_v1, 16  ;;  %v853_v19 = vshll.u32 %v830_v1, 16  ;;  %v426_v20 = vrot.slane %v424_v8, 7  ;;  %vm11465_vm12 = vmor %vm846_vm9, %vm847_vm10 }
  0x23   :  { %1052 = vst [vmem:[#allocation4 + $0x8] sm:$0xf] %v1015_v57  ;;  %v5239_v21 = vsel %vm11420_vm8, %v9736_v63, %v5238_v0  ;;  %v859_v22 = vshll.u32 %v831_v6, 16  ;;  %v94_v23 = vld [vmem:[#allocation2 + $0x18] sm:$0x1]  ;;  %v11440_v26 = vld [vmem:[#allocation5 + $0xc8] sm:$0xff]   ;;  %2346 = vmatpush.bf16.msra.mxu0 %v10686_v55 }
  0x24   :  { %2404 = vmatpush.bf16.msra.mxu2 %v10702_v56  ;;  %v11448_v30 = vrot.slane %v432_v16, 7  ;;  %v852_v31 = vrot.slane %v850_v18, 4  ;;  %v855_v32 = vrot.slane %v853_v19, 5  ;;  %v95_v33 = vsel %vm11406_vm2, 0, %v94_v23  ;;  %v10709_v35 = vld [vmem:[#allocation8 + $0xc8] sm:$0xff]  ;;  %v10684_v41 = vld [vmem:[#allocation8] sm:$0xff] }
  0x25   :  { %2433 = vmatpush.bf16.msra.mxu3 %v10710_v3  ;;  %v429_v36 = vor.u32 %v427_v9, %v426_v20  ;;  %v430_v37 = vrot.slane %v426_v20, 4  ;;  %96 = vst [vmem:[#allocation2 + $0x18] sm:$0x1] %v95_v33  ;;  %v10700_v42 = vld [vmem:[#allocation8 + $0x80] sm:$0xff]  ;;  %v10693_v43 = vld [vmem:[#allocation8 + $0x48] sm:$0xff]  ;;  %v861_v47 = vrot.slane %v859_v22, 5  ;;  %v11134_v49 = vunpack.c.l.bf16 %v11440_v26 }
  0x26   :  { %v505_v15 = vld [vmem:[#allocation2 + $0x8] sm:$0xf]  ;;  %2375 = vmatpush.bf16.msra.mxu1 %v10694_v4  ;;  %v437_v45 = vor.u32 %v435_v17, %v11448_v30  ;;  %v856_v46 = vor.u32 %v855_v32, %v852_v31  ;;  %v5060_v48 = vld [vmem:[#allocation3] sm:$0xf]  ;;  %v5061_v54 = vld [vmem:[#allocation3 + $0x4] sm:$0x1]  ;;  %v11119_v3 = vunpack.c.h.bf16 %v11438_v25  ;;  %v11135_v4 = vunpack.c.h.bf16 %v11440_v26 }
  0x27   :  { %v11434_v10 = vld [vmem:[#allocation4] sm:$0xf]  ;;  %v506_v50 = vsel %vm11444_vm11, %v429_v36, %v505_v15  ;;  %v5077_v55 = vshrl.u32 %v5060_v48, 16  ;;  %v5080_v56 = vshll.u32 %v5060_v48, 16  ;;  %2347 = vmatpush.bf16.msra.mxu0 %v10685_v13  ;;  %v10723_v59 = vld [vmem:[#allocation8 + $0x138] sm:$0xff]  ;;  %v5086_v61 = vshll.u32 %v5061_v54, 16 }
  0x28   :  { %5052 = vst [vmem:[#allocation4] sm:$0xf] %v5044_v52  ;;  %v508_v28 = vld [vmem:[#allocation2 + $0xc] sm:$0x1]  ;;  %v10708_v51 = vld [vmem:[#allocation8 + $0xc0] sm:$0xff]  ;;  %2405 = vmatpush.bf16.msra.mxu2 %v10701_v14  ;;  %v857_v60 = vrot.slane %v856_v46, 4  ;;  %v377_v62 = vmax.f32 %v11118_v39, %v11134_v49  ;;  %v378_v16 = vmax.f32 %v11119_v3, %v11135_v4 }
  0x29   :  { %v511_v38 = vld [vmem:[#allocation2 + $0x10] sm:$0xf]  ;;  %v509_v52 = vsel %vm11406_vm2, %v430_v37, %v508_v28  ;;  %507 = vst [vmem:[#allocation2 + $0x8] sm:$0xf] %v506_v50  ;;  %v10692_v58 = vld [vmem:[#allocation8 + $0x40] sm:$0xff]  ;;  %2434 = vmatpush.bf16.msra.mxu3 %v10709_v35  ;;  %v5079_v0 = vrot.slane %v5077_v55, 4 }
  0x2a   :  { %v11455_v44 = vld [vmem:[#allocation4 + $0x8] sm:$0xf]  ;;  %v512_v57 = vsel %vm11444_vm11, %v437_v45, %v511_v38  ;;  %v11471_v63 = vld [vmem:[#allocation5 + $0x10] sm:$0xff]   ;;  %510 = vst [vmem:[#allocation2 + $0xc] sm:$0x1] %v509_v52  ;;  %v5082_v1 = vrot.slane %v5080_v56, 5  ;;  %2376 = vmatpush.bf16.msra.mxu1 %v10693_v43  ;;  %v862_v6 = vsel %vm11465_vm12, %v857_v60, %v861_v47  ;;  %v409_v8 = vmax.f32 %v327_v24, %v377_v62 }
  0x2b   :  { %5276 = vst [vmem:[#allocation4 + $0x8] sm:$0xf] %v5239_v21  ;;  %v141_v2 = vld [vmem:[#allocation2 + $0x14] sm:$0x1]  ;;  %v438_v5 = vrot.slane %v11448_v30, 4  ;;  %v10731_v7 = vld [vmem:[#allocation8 + $0x178] sm:$0xff]  ;;  %v11090_v17 = vunpack.c.l.bf16 %v11471_v63  ;;  %2348 = vmatpush.bf16.msra.mxu0 %v10684_v41  ;;  %v410_v25 = vmax.f32 %v11453_v40, %v378_v16  ;;  %v11091_v47 = vunpack.c.h.bf16 %v11471_v63 }
  0x2c   :  { %513 = vst [vmem:[#allocation2 + $0x10] sm:$0xf] %v512_v57  ;;  %v142_v9 = vsel %vm11414_vm6, 0, %v141_v2  ;;  %v11480_v11 = vld [vmem:[#allocation5 + $0x50] sm:$0xff]   ;;  %v5083_v13 = vor.u32 %v5082_v1, %v5079_v0  ;;  %v144_v14 = vld [vmem:[#allocation2 + $0x1c] sm:$0x1]  ;;  %2406 = vmatpush.bf16.msra.mxu2 %v10700_v42  ;;  %v417_v18 = vpack.c.bf16 %v409_v8, %v409_v8 }
  0x2d   :  { %969 = vst [vmem:[#allocation4 + $0x4] sm:$0xf] %v862_v6  ;;  %v97_v15 = vld [vmem:[#allocation2 + $0x20] sm:$0x1]  ;;  %v145_v19 = vsel %vm11414_vm6, 0, %v144_v14  ;;  %v11106_v21 = vunpack.c.l.bf16 %v11480_v11  ;;  %2435 = vmatpush.bf16.msra.mxu3 %v10708_v51  ;;  %v5088_v22 = vrot.slane %v5086_v61, 5  ;;  %v418_v41 = vpack.c.bf16 %v410_v25, %v410_v25 }
  0x2e   :  { %143 = vst [vmem:[#allocation2 + $0x14] sm:$0x1] %v142_v9  ;;  %v98_v20 = vsel %vm11406_vm2, 0, %v97_v15  ;;  %v10722_v23 = vld [vmem:[#allocation8 + $0x130] sm:$0xff]  ;;  %2377 = vmatpush.bf16.msra.mxu1 %v10692_v58  ;;  %v5084_v28 = vrot.slane %v5083_v13, 4  ;;  %v440_v31 = vshrl.u32 %v417_v18, 16  ;;  %v11107_v52 = vunpack.c.h.bf16 %v11480_v11 }
  0x2f   :  { %2457 = vmatpush.bf16.msrb.mxu0 %v10723_v59  ;;  %v10730_v24 = vld [vmem:[#allocation8 + $0x170] sm:$0xff]  ;;  %146 = vst [vmem:[#allocation2 + $0x1c] sm:$0x1] %v145_v19  ;;  %v443_v32 = vshll.u32 %v417_v18, 16  ;;  %v517_v39 = vld [vmem:[#allocation2 + $0x18] sm:$0xf]  ;;  %v329_v46 = vmax.f32 %v11090_v17, %v11106_v21 }
  0x30   :  { %v11489_v26 = vld [vmem:[#allocation5 + $0x90] sm:$0xff]   ;;  %99 = vst [vmem:[#allocation2 + $0x20] sm:$0x1] %v98_v20  ;;  %v815_v36 = vld [vmem:[#allocation2 + $0x8] sm:$0xf]  ;;  %v442_v45 = vrot.slane %v440_v31, 7  ;;  %v5089_v56 = vsel %vm11465_vm12, %v5084_v28, %v5088_v22 }
  0x31   :  { %v11122_v33 = vunpack.c.l.bf16 %v11489_v26  ;;  %v11492_v35 = vld [vmem:[#allocation5 + $0xd0] sm:$0xff]   ;;  %v979_v37 = vld [vmem:[#allocation2 + $0x8] sm:$0xe]  ;;  %823 = vst [vmem:[#allocation4 + $0x24] sm:$0xf] %v815_v36  ;;  %v448_v50 = vshrl.u32 %v418_v41, 16  ;;  %v11123_v58 = vunpack.c.h.bf16 %v11489_v26 }
  0x32   :  { %v1060_v38 = vld [vmem:[#allocation2 + $0x8] sm:$0xf]  ;;  %2486 = vmatpush.bf16.msrb.mxu1 %v10731_v7  ;;  %v11138_v42 = vunpack.c.l.bf16 %v11492_v35  ;;  %v980_v40 = vld [vmem:[#allocation2 + $0xc] sm:$0x1]  ;;  %v8825_v43 = vrot.slane %v979_v37, 9  ;;  %v445_v57 = vor.u32 %v443_v32, %v442_v45  ;;  %v11139_v59 = vunpack.c.h.bf16 %v11492_v35  ;;  %v10720_v37 = vld [vmem:[#allocation8 + $0x120] sm:$0xff] }
  0x33   :  { %v1018_v48 = vrot.slane %v980_v40, 5  ;;  %v1061_v49 = vld [vmem:[#allocation2 + $0x10] sm:$0xf]  ;;  %1068 = vst [vmem:[#allocation4 + $0xc] sm:$0xf] %v1060_v38  ;;  %2458 = vmatpush.bf16.msrb.mxu0 %v10722_v23  ;;  %v10721_v1 = vld [vmem:[#allocation8 + $0x128] sm:$0xff]  ;;  %v330_v32 = vmax.f32 %v11091_v47, %v11107_v52 }
  0x34   :  { %v379_v51 = vmax.f32 %v11122_v33, %v11138_v42  ;;  %1069 = vst [vmem:[#allocation4 + $0x30] sm:$0xf] %v1061_v49  ;;  %v832_v54 = vld [vmem:[#allocation2 + $0x8] sm:$0xf]  ;;  %v833_v55 = vld [vmem:[#allocation2 + $0xc] sm:$0x1]  ;;  %v518_v4 = vsel %vm11444_vm11, %v445_v57, %v517_v39  ;;  %v380_v33 = vmax.f32 %v11123_v58, %v11139_v59 }
  0x35   :  { %v1019_v60 = vsel %vm11420_vm8, %v8825_v43, %v1018_v48  ;;  %v864_v61 = vshrl.u32 %v832_v54, 16  ;;  %v867_v62 = vshll.u32 %v832_v54, 16  ;;  %v873_v63 = vshll.u32 %v833_v55, 16  ;;  %v11503_v0 = vld [vmem:[#allocation4 + $0x4] sm:$0xf]  ;;  %v10729_v30 = vld [vmem:[#allocation8 + $0x168] sm:$0xff] }
  0x36   :  { %2487 = vmatpush.bf16.msrb.mxu1 %v10730_v24  ;;  %v100_v2 = vld [vmem:[#allocation2 + $0x28] sm:$0x1]  ;;  %1053 = vst [vmem:[#allocation4 + $0x2c] sm:$0xf] %v1019_v60  ;;  %v446_v3 = vrot.slane %v442_v45, 4  ;;  %v11507_v7 = vrot.slane %v448_v50, 7  ;;  %v411_v8 = vmax.f32 %v329_v46, %v379_v51  ;;  %v412_v50 = vmax.f32 %v330_v32, %v380_v33 }
  0x37   :  { %v816_v6 = vld [vmem:[#allocation2 + $0x10] sm:$0xf]  ;;  %v866_v9 = vrot.slane %v864_v61, 4  ;;  %v869_v11 = vrot.slane %v867_v62, 5  ;;  %v875_v13 = vrot.slane %v873_v63, 5  ;;  %v451_v14 = vshll.u32 %v418_v41, 16  ;;  %2459 = vmatpush.bf16.msrb.mxu0 %v10721_v1 }
  0x38   :  { %5196 = vst [vmem:[#allocation4 + $0x4] sm:$0xf] %v5089_v56  ;;  %v514_v15 = vld [vmem:[#allocation2 + $0x14] sm:$0x1]  ;;  %v520_v16 = vld [vmem:[#allocation2 + $0x1c] sm:$0x1]  ;;  %v419_v17 = vpack.c.bf16 %v411_v8, %v411_v8 }
  0x39   :  { %519 = vst [vmem:[#allocation2 + $0x18] sm:$0xf] %v518_v4  ;;  %v10652_v18 = vld [vmem:[#allocation4 + $0x20] sm:$0xf0]  ;;  %v870_v19 = vor.u32 %v869_v11, %v866_v9  ;;  %v515_v20 = vsel %vm11406_vm2, %v438_v5, %v514_v15  ;;  %v521_v21 = vsel %vm11406_vm2, %v446_v3, %v520_v16  ;;  %v453_v22 = vor.u32 %v451_v14, %v11507_v7  ;;  %v981_v31 = vld [vmem:[#allocation2 + $0x10] sm:$0xe] }
  0x3a   :  { %824 = vst [vmem:[#allocation4 + $0x48] sm:$0xf] %v816_v6  ;;  %v8851_v23 = vor.u32 %v10652_v18, %v11434_v10  ;;  %v10649_v24 = vld [vmem:[#allocation4 + $0xc] sm:$0xf]  ;;  %v101_v25 = vsel %vm11406_vm2, 0, %v100_v2  ;;  %v456_v38 = vshrl.u32 %v419_v17, 16  ;;  %2488 = vmatpush.bf16.msrb.mxu1 %v10729_v30  ;;  %v11527_v3 = vpack.c.bf16 %v412_v50, %v412_v50 }
  0x3b   :  { %516 = vst [vmem:[#allocation2 + $0x14] sm:$0x1] %v515_v20  ;;  %v8860_v26 = vld [vmem:[#allocation4 + $0x2c] sm:$0xf0]  ;;  %v871_v28 = vrot.slane %v870_v19, 4  ;;  %2460 = vmatpush.bf16.msrb.mxu0 %v10720_v37  ;;  %v459_v46 = vshll.u32 %v419_v17, 16 }
  0x3c   :  { %522 = vst [vmem:[#allocation2 + $0x1c] sm:$0x1] %v521_v21  ;;  %2349 = vmatmul.bf16.vlgmr.msra.gmra.mxu0 %v8851_v23  ;;  %v8863_v5 = vor.u32 %v10649_v24, %v8860_v26  ;;  %v523_v35 = vld [vmem:[#allocation2 + $0x20] sm:$0xf]  ;;  %v834_v36 = vld [vmem:[#allocation2 + $0x10] sm:$0xf] }
  0x3d   :  { %v10653_v39 = vld [vmem:[#allocation4 + $0x28] sm:$0xf0]  ;;  %v876_v10 = vsel %vm11465_vm12, %v871_v28, %v875_v13  ;;  %v524_v41 = vsel %vm11444_vm11, %v453_v22, %v523_v35  ;;  %v878_v42 = vshrl.u32 %v834_v36, 16  ;;  %102 = vst [vmem:[#allocation2 + $0x28] sm:$0x1] %v101_v25  ;;  %v881_v43 = vshll.u32 %v834_v36, 16 }
  0x3e   :  { %v8859_v40 = vor.u32 %v10653_v39, %v11455_v44  ;;  %2436 = vmatmul.bf16.vlgmr.msra.gmra.mxu3 %v8863_v5  ;;  %970 = vst [vmem:[#allocation4 + $0x28] sm:$0xf] %v876_v10  ;;  %v11524_v45 = vrot.slane %v456_v38, 7  ;;  %v10728_v47 = vld [vmem:[#allocation8 + $0x160] sm:$0xff]  ;;  %v8826_v51 = vrot.slane %v981_v31, 9  ;;  %v464_v30 = vshrl.u32 %v11527_v3, 16 }
  0x3f   :  { %525 = vst [vmem:[#allocation2 + $0x20] sm:$0xf] %v524_v41  ;;  %v880_v54 = vrot.slane %v878_v42, 4  ;;  %2489 = vmatpush.bf16.msrb.mxu1 %v10728_v47  ;;  %v883_v60 = vrot.slane %v881_v43, 5  ;;  %v147_v13 = vld [vmem:[#allocation2 + $0x24] sm:$0x1] }
  0x40   :  { %v817_v48 = vld [vmem:[#allocation2 + $0x18] sm:$0xf]  ;;  %2407 = vmatmul.bf16.vlgmr.msra.gmra.mxu2 %v8859_v40  ;;  %v461_v57 = vor.u32 %v459_v46, %v11524_v45  ;;  %v148_v31 = vsel %vm11414_vm6, 0, %v147_v13  ;;  %v150_v33 = vld [vmem:[#allocation2 + $0x2c] sm:$0x1]  ;;  %v11545_v41 = vrot.slane %v464_v30, 7 }
  0x41   :  { %v983_v49 = vld [vmem:[#allocation2 + $0x18] sm:$0xe]  ;;  %825 = vst [vmem:[#allocation4 + $0x6c] sm:$0xf] %v817_v48  ;;  %v8886_v61 = vld [vmem:[#allocation4 + $0x48] sm:$0xf]  ;;  %v884_v6 = vor.u32 %v883_v60, %v880_v54 }
  0x42   :  { %v8827_v52 = vrot.slane %v983_v49, 9  ;;  %v982_v55 = vld [vmem:[#allocation2 + $0x14] sm:$0x1]  ;;  %v1062_v56 = vld [vmem:[#allocation2 + $0x18] sm:$0xf]  ;;  %v151_v35 = vsel %vm11414_vm6, 0, %v150_v33 }
  0x43   :  { %v835_v44 = vld [vmem:[#allocation2 + $0x14] sm:$0x1]  ;;  %v984_v58 = vld [vmem:[#allocation2 + $0x1c] sm:$0x1]  ;;  %v1022_v59 = vrot.slane %v982_v55, 5  ;;  %v885_v21 = vrot.slane %v884_v6, 4 }
  0x44   :  { %1070 = vst [vmem:[#allocation4 + $0x54] sm:$0xf] %v1062_v56  ;;  %v1026_v62 = vrot.slane %v984_v58, 5  ;;  %v836_v63 = vld [vmem:[#allocation2 + $0x18] sm:$0xf]  ;;  %v887_v2 = vshll.u32 %v835_v44, 16 }
  0x45   :  { %v837_v1 = vld [vmem:[#allocation2 + $0x1c] sm:$0x1]  ;;  %v1023_v4 = vsel %vm11420_vm8, %v8826_v51, %v1022_v59  ;;  %v892_v8 = vshrl.u32 %v836_v63, 16  ;;  %v895_v9 = vshll.u32 %v836_v63, 16  ;;  %v529_v11 = vld [vmem:[#allocation2 + $0x28] sm:$0xf] }
  0x46   :  { %v8852_v14 = vld [vmem:[#allocation4 + $0x24] sm:$0xf0]  ;;  %v1027_v15 = vsel %vm11420_vm8, %v8827_v52, %v1026_v62  ;;  %1054 = vst [vmem:[#allocation4 + $0x50] sm:$0xf] %v1023_v4  ;;  %v889_v16 = vrot.slane %v887_v2, 5  ;;  %v901_v17 = vshll.u32 %v837_v1, 16  ;;  %v530_v18 = vsel %vm11444_vm11, %v461_v57, %v529_v11 }
  0x47   :  { %v8855_v19 = vor.u32 %v11503_v0, %v8852_v14  ;;  %1055 = vst [vmem:[#allocation4 + $0x74] sm:$0xf] %v1027_v15  ;;  %v1063_v20 = vld [vmem:[#allocation2 + $0x20] sm:$0xf]  ;;  %v894_v22 = vrot.slane %v892_v8, 4  ;;  %v897_v24 = vrot.slane %v895_v9, 5 }
  0x48   :  { %v10661_v23 = vld [vmem:[#allocation4 + $0x68] sm:$0xf0]  ;;  %1071 = vst [vmem:[#allocation4 + $0x78] sm:$0xf] %v1063_v20  ;;  %v890_v26 = vsel %vm11465_vm12, %v885_v21, %v889_v16  ;;  %v818_v28 = vld [vmem:[#allocation2 + $0x20] sm:$0xf] }
  0x49   :  { %2378 = vmatmul.bf16.vlgmr.msra.gmra.mxu1 %v8855_v19  ;;  %v8887_v25 = vor.u32 %v10661_v23, %v8886_v61  ;;  %531 = vst [vmem:[#allocation2 + $0x28] sm:$0xf] %v530_v18  ;;  %v898_v0 = vor.u32 %v897_v24, %v894_v22  ;;  %v903_v32 = vrot.slane %v901_v17, 5  ;;  %v10739_v36 = vld [vmem:[#allocation8 + $0x1b8] sm:$0xff]  ;;  %v103_v38 = vld [vmem:[#allocation2 + $0x30] sm:$0x1] }
  0x4a   :  { %971 = vst [vmem:[#allocation4 + $0x4c] sm:$0xf] %v890_v26  ;;  %2515 = vmatpush.bf16.msrb.mxu2 %v10739_v36  ;;  %v104_v10 = vsel %vm11406_vm2, 0, %v103_v38  ;;  %v467_v43 = vshll.u32 %v11527_v3, 16  ;;  %v10747_v46 = vld [vmem:[#allocation8 + $0x1f8] sm:$0xff]  ;;  %v454_v50 = vrot.slane %v11507_v7, 4 }
  0x4b   :  { %v10658_v5 = vld [vmem:[#allocation4 + $0x54] sm:$0xf]  ;;  %826 = vst [vmem:[#allocation4 + $0x90] sm:$0xf] %v818_v28  ;;  %v899_v37 = vrot.slane %v898_v0, 4  ;;  %v10719_v49 = vld [vmem:[#allocation8 + $0x118] sm:$0xff]  ;;  %2544 = vmatpush.bf16.msrb.mxu3 %v10747_v46 }
  0x4c   :  { %149 = vst [vmem:[#allocation2 + $0x24] sm:$0x1] %v148_v31  ;;  %2354 = vmatmul.bf16.gmra.mxu0 %v8887_v25  ;;  %v462_v55 = vrot.slane %v11524_v45, 4  ;;  %v10738_v56 = vld [vmem:[#allocation8 + $0x1b0] sm:$0xff]  ;;  %v469_v57 = vor.u32 %v467_v43, %v11545_v41  ;;  %v838_v58 = vld [vmem:[#allocation2 + $0x20] sm:$0xf] }
  0x4d   :  { %v8894_v39 = vld [vmem:[#allocation4 + $0x50] sm:$0xf]  ;;  %152 = vst [vmem:[#allocation2 + $0x2c] sm:$0x1] %v151_v35  ;;  %v904_v40 = vsel %vm11465_vm12, %v899_v37, %v903_v32  ;;  %2461 = vmatpush.bf16.msrb.mxu0 %v10719_v49  ;;  %v11553_v60 = vld [vmem:[#allocation2 + $0x20] sm:$0xe] }
  0x4e   :  { %v10662_v42 = vld [vmem:[#allocation4 + $0x70] sm:$0xf0]  ;;  %105 = vst [vmem:[#allocation2 + $0x30] sm:$0x1] %v104_v10  ;;  %2516 = vmatpush.bf16.msrb.mxu2 %v10738_v56  ;;  %v906_v61 = vshrl.u32 %v838_v58, 16  ;;  %v909_v62 = vshll.u32 %v838_v58, 16 }
  0x4f   :  { %v8895_v47 = vor.u32 %v10662_v42, %v8894_v39  ;;  %v8896_v48 = vld [vmem:[#allocation4 + $0x74] sm:$0xf0]  ;;  %972 = vst [vmem:[#allocation4 + $0x70] sm:$0xf] %v904_v40  ;;  %v10746_v8 = vld [vmem:[#allocation8 + $0x1f0] sm:$0xff]  ;;  %v10737_v21 = vld [vmem:[#allocation8 + $0x1a8] sm:$0xff] }
  0x50   :  { %v8899_v51 = vor.u32 %v10658_v5, %v8896_v48  ;;  %v819_v52 = vld [vmem:[#allocation2 + $0x28] sm:$0xf]  ;;  %v10727_v6 = vld [vmem:[#allocation8 + $0x158] sm:$0xff]  ;;  %v908_v13 = vrot.slane %v906_v61, 4  ;;  %v911_v14 = vrot.slane %v909_v62, 5  ;;  %2545 = vmatpush.bf16.msrb.mxu3 %v10746_v8  ;;  %v10718_v23 = vld [vmem:[#allocation8 + $0x110] sm:$0xff] }
  0x51   :  { %v1064_v54 = vld [vmem:[#allocation2 + $0x28] sm:$0xf]  ;;  %2412 = vmatmul.bf16.gmra.mxu2 %v8895_v47  ;;  %827 = vst [vmem:[#allocation4 + $0xb4] sm:$0xf] %v819_v52  ;;  %v10657_v44 = vld [vmem:[#allocation4 + $0x4c] sm:$0xf]  ;;  %2490 = vmatpush.bf16.msrb.mxu1 %v10727_v6 }
  0x52   :  { %2441 = vmatmul.bf16.gmra.mxu3 %v8899_v51  ;;  %1072 = vst [vmem:[#allocation4 + $0x9c] sm:$0xf] %v1064_v54  ;;  %v840_v7 = vld [vmem:[#allocation2 + $0x28] sm:$0xf]  ;;  %v8922_v63 = vld [vmem:[#allocation4 + $0x90] sm:$0xf]  ;;  %v912_v20 = vor.u32 %v911_v14, %v908_v13  ;;  %2517 = vmatpush.bf16.msrb.mxu2 %v10737_v21 }
  0x53   :  { %v526_v59 = vld [vmem:[#allocation2 + $0x24] sm:$0x1]  ;;  %v11557_v2 = vld [vmem:[#allocation2 + $0x28] sm:$0xe]  ;;  %v920_v3 = vshrl.u32 %v840_v7, 16  ;;  %v923_v4 = vshll.u32 %v840_v7, 16  ;;  %2462 = vmatpush.bf16.msrb.mxu0 %v10718_v23 }
  0x54   :  { %v527_v45 = vsel %vm11406_vm2, %v454_v50, %v526_v59  ;;  %v532_v1 = vld [vmem:[#allocation2 + $0x2c] sm:$0x1]  ;;  %v8828_v25 = vrot.slane %v11553_v60, 9  ;;  %v106_v28 = vld [vmem:[#allocation2 + $0x38] sm:$0x1]  ;;  %v8829_v0 = vrot.slane %v11557_v2, 9 }
  0x55   :  { %528 = vst [vmem:[#allocation2 + $0x24] sm:$0x1] %v527_v45  ;;  %v533_v9 = vsel %vm11406_vm2, %v462_v55, %v532_v1  ;;  %v535_v11 = vld [vmem:[#allocation2 + $0x30] sm:$0xf]  ;;  %v922_v17 = vrot.slane %v920_v3, 4  ;;  %v925_v18 = vrot.slane %v923_v4, 5 }
  0x56   :  { %v8888_v15 = vld [vmem:[#allocation4 + $0x6c] sm:$0xf0]  ;;  %534 = vst [vmem:[#allocation2 + $0x2c] sm:$0x1] %v533_v9  ;;  %v536_v16 = vsel %vm11444_vm11, %v469_v57, %v535_v11  ;;  %v10745_v22 = vld [vmem:[#allocation8 + $0x1e8] sm:$0xff]  ;;  %v11210_v31 = vld [vmem:[#allocation5 + $0x18] sm:$0xff]  }
  0x57   :  { %v8891_v19 = vor.u32 %v10657_v44, %v8888_v15  ;;  %537 = vst [vmem:[#allocation2 + $0x30] sm:$0xf] %v536_v16  ;;  %v926_v26 = vor.u32 %v925_v18, %v922_v17  ;;  %v107_v32 = vsel %vm11406_vm2, 0, %v106_v28  ;;  %v11094_v33 = vunpack.c.l.bf16 %v11210_v31  ;;  %v11213_v5 = vld [vmem:[#allocation5 + $0x58] sm:$0xff]   ;;  %2546 = vmatpush.bf16.msrb.mxu3 %v10745_v22  ;;  %v10736_v10 = vld [vmem:[#allocation8 + $0x1a0] sm:$0xff]  ;;  %v10726_v52 = vld [vmem:[#allocation8 + $0x150] sm:$0xff] }
  0x58   :  { %v10670_v24 = vld [vmem:[#allocation4 + $0xb0] sm:$0xf0]  ;;  %v11216_v35 = vld [vmem:[#allocation5 + $0x98] sm:$0xff]   ;;  %v913_v36 = vrot.slane %v912_v20, 4  ;;  %108 = vst [vmem:[#allocation2 + $0x38] sm:$0x1] %v107_v32  ;;  %v11110_v37 = vunpack.c.l.bf16 %v11213_v5  ;;  %v11095_v42 = vunpack.c.h.bf16 %v11210_v31  ;;  %v11111_v43 = vunpack.c.h.bf16 %v11213_v5  ;;  %2518 = vmatpush.bf16.msrb.mxu2 %v10736_v10  ;;  %2491 = vmatpush.bf16.msrb.mxu1 %v10726_v52 }
  0x59   :  { %2383 = vmatmul.bf16.gmra.mxu1 %v8891_v19  ;;  %v8923_v30 = vor.u32 %v10670_v24, %v8922_v63  ;;  %v11126_v38 = vunpack.c.l.bf16 %v11216_v35  ;;  %v11219_v39 = vld [vmem:[#allocation5 + $0xd8] sm:$0xff]   ;;  %v11127_v46 = vunpack.c.h.bf16 %v11216_v35  ;;  %v927_v50 = vrot.slane %v926_v26, 4  ;;  %v153_v61 = vld [vmem:[#allocation2 + $0x34] sm:$0x1]  ;;  %v10744_v2 = vld [vmem:[#allocation8 + $0x1e0] sm:$0xff]  ;;  %s11355_s25 = smov 8  }
  0x5a   :  { %v11142_v40 = vunpack.c.l.bf16 %v11219_v39  ;;  %v11143_v47 = vunpack.c.h.bf16 %v11219_v39  ;;  %v331_v51 = vmax.f32 %v11094_v33, %v11110_v37  ;;  %v332_v58 = vmax.f32 %v11095_v42, %v11111_v43  ;;  %v156_v3 = vld [vmem:[#allocation2 + $0x3c] sm:$0x1]  ;;  %v109_v8 = vld [vmem:[#allocation2 + $0x40] sm:$0x1]  ;;  %v10734_v33 = vld [vmem:[#allocation8 + $0x190] sm:$0xff] }
  0x5b   :  { %v470_v11 = vrot.slane %v11545_v41, 4  ;;  %2547 = vmatpush.bf16.msrb.mxu3 %v10744_v2  ;;  %v10667_v16 = vld [vmem:[#allocation4 + $0x9c] sm:$0xf]  ;;  %v154_v18 = vsel %vm11414_vm6, 0, %v153_v61  ;;  %v157_v19 = vsel %vm11414_vm6, 0, %v156_v3  ;;  %v10725_v37 = vld [vmem:[#allocation8 + $0x148] sm:$0xff] }
  0x5c   :  { %v986_v48 = vld [vmem:[#allocation2 + $0x24] sm:$0x1]  ;;  %2359 = vmatmul.bf16.gmra.mxu0 %v8923_v30  ;;  %v381_v57 = vmax.f32 %v11126_v38, %v11142_v40  ;;  %v382_v62 = vmax.f32 %v11127_v46, %v11143_v47  ;;  %v10735_v24 = vld [vmem:[#allocation8 + $0x198] sm:$0xff]  ;;  %v10717_v30 = vld [vmem:[#allocation8 + $0x108] sm:$0xff]  ;;  %155 = vst [vmem:[#allocation2 + $0x34] sm:$0x1] %v154_v18  ;;  %2492 = vmatpush.bf16.msrb.mxu1 %v10725_v37 }
  0x5d   :  { %v839_v49 = vld [vmem:[#allocation2 + $0x24] sm:$0x1]  ;;  %v988_v54 = vld [vmem:[#allocation2 + $0x2c] sm:$0x1]  ;;  %v1030_v55 = vrot.slane %v986_v48, 5  ;;  %v10743_v31 = vld [vmem:[#allocation8 + $0x1d8] sm:$0xff]  ;;  %2519 = vmatpush.bf16.msrb.mxu2 %v10735_v24  ;;  %2463 = vmatpush.bf16.msrb.mxu0 %v10717_v30 }
  0x5e   :  { %v841_v56 = vld [vmem:[#allocation2 + $0x2c] sm:$0x1]  ;;  %v915_v44 = vshll.u32 %v839_v49, 16  ;;  %v1034_v59 = vrot.slane %v988_v54, 5  ;;  %v1065_v60 = vld [vmem:[#allocation2 + $0x30] sm:$0xf]  ;;  %v413_v1 = vmax.f32 %v331_v51, %v381_v57  ;;  %v414_v9 = vmax.f32 %v332_v58, %v382_v62 }
  0x5f   :  { %v929_v7 = vshll.u32 %v841_v56, 16  ;;  %v1031_v63 = vsel %vm11420_vm8, %v8828_v25, %v1030_v55  ;;  %1073 = vst [vmem:[#allocation4 + $0xc0] sm:$0xf] %v1065_v60  ;;  %v820_v15 = vld [vmem:[#allocation2 + $0x30] sm:$0xf]  ;;  %v110_v25 = vsel %vm11406_vm2, 0, %v109_v8  ;;  %2548 = vmatpush.bf16.msrb.mxu3 %v10743_v31 }
  0x60   :  { %v917_v45 = vrot.slane %v915_v44, 5  ;;  %v1035_v4 = vsel %vm11420_vm8, %v8829_v0, %v1034_v59  ;;  %1056 = vst [vmem:[#allocation4 + $0x98] sm:$0xf] %v1031_v63  ;;  %v421_v14 = vpack.c.bf16 %v413_v1, %v413_v1  ;;  %v422_v20 = vpack.c.bf16 %v414_v9, %v414_v9  ;;  %v842_v21 = vld [vmem:[#allocation2 + $0x30] sm:$0xf]  ;;  %v10733_v48 = vld [vmem:[#allocation8 + $0x188] sm:$0xff] }
  0x61   :  { %v931_v6 = vrot.slane %v929_v7, 5  ;;  %1057 = vst [vmem:[#allocation4 + $0xbc] sm:$0xf] %v1035_v4  ;;  %v541_v26 = vld [vmem:[#allocation2 + $0x38] sm:$0xf]  ;;  %v934_v0 = vshrl.u32 %v842_v21, 16  ;;  %2520 = vmatpush.bf16.msrb.mxu2 %v10734_v33 }
  0x62   :  { %v918_v13 = vsel %vm11465_vm12, %v913_v36, %v917_v45  ;;  %v472_v22 = vshrl.u32 %v421_v14, 16  ;;  %v475_v23 = vshll.u32 %v421_v14, 16  ;;  %828 = vst [vmem:[#allocation4 + $0xd8] sm:$0xf] %v820_v15  ;;  %v480_v28 = vshrl.u32 %v422_v20, 16  ;;  %v10742_v47 = vld [vmem:[#allocation8 + $0x1d0] sm:$0xff] }
  0x63   :  { %v932_v17 = vsel %vm11465_vm12, %v927_v50, %v931_v6  ;;  %973 = vst [vmem:[#allocation4 + $0x94] sm:$0xf] %v918_v13  ;;  %v1076_v5 = vld [vmem:[#allocation2 + $0x8] sm:$0xf]  ;;  %v483_v36 = vshll.u32 %v422_v20, 16  ;;  %v937_v40 = vshll.u32 %v842_v21, 16  ;;  %2549 = vmatpush.bf16.msrb.mxu3 %v10742_v47 }
  0x64   :  { %974 = vst [vmem:[#allocation4 + $0xb8] sm:$0xf] %v932_v17  ;;  %v474_v32 = vrot.slane %v472_v22, 7  ;;  %v11582_v42 = vrot.slane %v480_v28, 7  ;;  %v11584_v46 = vrot.slane %v934_v0, 4  ;;  %v1093_v49 = vshrl.u32 %v1076_v5, 16 }
  0x65   :  { %158 = vst [vmem:[#allocation2 + $0x3c] sm:$0x1] %v157_v19  ;;  %v10716_v55 = vld [vmem:[#allocation8 + $0x100] sm:$0xff]  ;;  %v10741_v56 = vld [vmem:[#allocation8 + $0x1c8] sm:$0xff]  ;;  %v1096_v44 = vshll.u32 %v1076_v5, 16  ;;  %v939_v7 = vrot.slane %v937_v40, 5  ;;  %2521 = vmatpush.bf16.msrb.mxu2 %v10733_v48 }
  0x66   :  { %v8932_v35 = vld [vmem:[#allocation4 + $0xbc] sm:$0xf0]  ;;  %v477_v10 = vor.u32 %v475_v23, %v474_v32  ;;  %111 = vst [vmem:[#allocation2 + $0x40] sm:$0x1] %v110_v25  ;;  %v478_v52 = vrot.slane %v474_v32, 4  ;;  %v485_v60 = vor.u32 %v483_v36, %v11582_v42  ;;  %2464 = vmatpush.bf16.msrb.mxu0 %v10716_v55  ;;  %v1095_v62 = vrot.slane %v1093_v49, 4 }
  0x67   :  { %v8930_v38 = vld [vmem:[#allocation4 + $0x98] sm:$0xf]  ;;  %v8935_v39 = vor.u32 %v10667_v16, %v8932_v35  ;;  %v1077_v58 = vld [vmem:[#allocation2 + $0xc] sm:$0x1]  ;;  %v1078_v61 = vld [vmem:[#allocation2 + $0x10] sm:$0xf]  ;;  %2550 = vmatpush.bf16.msrb.mxu3 %v10741_v56  ;;  %v940_v22 = vor.u32 %v939_v7, %v11584_v46 }
  0x68   :  { %v10671_v43 = vld [vmem:[#allocation4 + $0xb8] sm:$0xf0]  ;;  %v542_v54 = vsel %vm11444_vm11, %v477_v10, %v541_v26  ;;  %v538_v63 = vld [vmem:[#allocation2 + $0x34] sm:$0x1]  ;;  %v1098_v1 = vrot.slane %v1096_v44, 5  ;;  %v1102_v2 = vshll.u32 %v1077_v58, 16 }
  0x69   :  { %v8931_v50 = vor.u32 %v10671_v43, %v8930_v38  ;;  %2446 = vmatmul.bf16.gmra.mxu3 %v8935_v39  ;;  %543 = vst [vmem:[#allocation2 + $0x38] sm:$0xf] %v542_v54  ;;  %v1079_v45 = vld [vmem:[#allocation2 + $0x14] sm:$0x1]  ;;  %v539_v3 = vsel %vm11406_vm2, %v470_v11, %v538_v63  ;;  %v1107_v6 = vshrl.u32 %v1078_v61, 16  ;;  %v1110_v8 = vshll.u32 %v1078_v61, 16 }
  0x6a   :  { %v10666_v51 = vld [vmem:[#allocation4 + $0x94] sm:$0xf]  ;;  %v1116_v9 = vshll.u32 %v1079_v45, 16  ;;  %v10732_v13 = vld [vmem:[#allocation8 + $0x180] sm:$0xff]  ;;  %540 = vst [vmem:[#allocation2 + $0x34] sm:$0x1] %v539_v3  ;;  %v1099_v16 = vor.u32 %v1098_v1, %v1095_v62 }
  0x6b   :  { %v8924_v57 = vld [vmem:[#allocation4 + $0xb4] sm:$0xf0]  ;;  %2417 = vmatmul.bf16.gmra.mxu2 %v8931_v50  ;;  %v1104_v17 = vrot.slane %v1102_v2, 5  ;;  %v10724_v18 = vld [vmem:[#allocation8 + $0x140] sm:$0xff]  ;;  %v1109_v11 = vrot.slane %v1107_v6, 4  ;;  %v1112_v19 = vrot.slane %v1110_v8, 5 }
  0x6c   :  { %v8927_v59 = vor.u32 %v10666_v51, %v8924_v57  ;;  %v544_v4 = vld [vmem:[#allocation2 + $0x3c] sm:$0x1]  ;;  %v10740_v20 = vld [vmem:[#allocation8 + $0x1c0] sm:$0xff]  ;;  %v989_v21 = vld [vmem:[#allocation2 + $0x30] sm:$0xe]  ;;  %v1100_v23 = vrot.slane %v1099_v16, 4  ;;  %2493 = vmatpush.bf16.msrb.mxu1 %v10724_v18  ;;  %2522 = vmatpush.bf16.msrb.mxu2 %v10732_v13 }
  0x6d   :  { %v545_v14 = vsel %vm11406_vm2, %v478_v52, %v544_v4  ;;  %v547_v15 = vld [vmem:[#allocation2 + $0x40] sm:$0xf]  ;;  %v1118_v24 = vrot.slane %v1116_v9, 5  ;;  %v1113_v31 = vor.u32 %v1112_v19, %v1109_v11  ;;  %2551 = vmatpush.bf16.msrb.mxu3 %v10740_v20  ;;  %v8830_v32 = vrot.slane %v989_v21, 9  ;;  %v1317_v38 = vld [vmem:[#allocation2 + $0x10] sm:$0xf] }
  0x6e   :  { %2388 = vmatmul.bf16.gmra.mxu1 %v8927_v59  ;;  %546 = vst [vmem:[#allocation2 + $0x3c] sm:$0x1] %v545_v14  ;;  %v548_v41 = vsel %vm11444_vm11, %v485_v60, %v547_v15  ;;  %v1105_v0 = vsel %vm11465_vm12, %v1100_v23, %v1104_v17  ;;  %v941_v37 = vrot.slane %v940_v22, 4  ;;  %v8958_v39 = vld [vmem:[#allocation4 + $0xd8] sm:$0xf]  ;;  %v1334_v60 = vshrl.u32 %v1317_v38, 16 }
  0x6f   :  { %549 = vst [vmem:[#allocation2 + $0x40] sm:$0xf] %v548_v41  ;;  %v1114_v35 = vrot.slane %v1113_v31, 4  ;;  %v1301_v58 = vld [vmem:[#allocation2 + $0x10] sm:$0xf]  ;;  %v1337_v13 = vshll.u32 %v1317_v38, 16 }
  0x70   :  { %v821_v25 = vld [vmem:[#allocation2 + $0x38] sm:$0xf]  ;;  %1212 = vst [vmem:[#allocation4 + $0x10] sm:$0xf] %v1105_v0  ;;  %v1318_v59 = vld [vmem:[#allocation2 + $0x14] sm:$0x1] }
  0x71   :  { %v991_v26 = vld [vmem:[#allocation2 + $0x38] sm:$0xe]  ;;  %829 = vst [vmem:[#allocation4 + $0xfc] sm:$0xf] %v821_v25  ;;  %v990_v10 = vld [vmem:[#allocation2 + $0x34] sm:$0x1]  ;;  %v1119_v47 = vsel %vm11465_vm12, %v1114_v35, %v1118_v24 }
  0x72   :  { %v1066_v28 = vld [vmem:[#allocation2 + $0x38] sm:$0xf]  ;;  %v8831_v36 = vrot.slane %v991_v26, 9  ;;  %v843_v40 = vld [vmem:[#allocation2 + $0x34] sm:$0x1]  ;;  %v1038_v49 = vrot.slane %v990_v10, 5 }
  0x73   :  { %v844_v30 = vld [vmem:[#allocation2 + $0x38] sm:$0xf]  ;;  %1074 = vst [vmem:[#allocation4 + $0xe4] sm:$0xf] %v1066_v28  ;;  %v943_v51 = vshll.u32 %v843_v40, 16  ;;  %v1336_v9 = vrot.slane %v1334_v60, 4 }
  0x74   :  { %v948_v33 = vshrl.u32 %v844_v30, 16  ;;  %v951_v5 = vshll.u32 %v844_v30, 16  ;;  %1213 = vst [vmem:[#allocation4 + $0x34] sm:$0xf] %v1119_v47  ;;  %v1039_v44 = vsel %vm11420_vm8, %v8830_v32, %v1038_v49  ;;  %v1302_v2 = vld [vmem:[#allocation2 + $0x18] sm:$0xf] }
  0x75   :  { %v992_v48 = vld [vmem:[#allocation2 + $0x3c] sm:$0x1]  ;;  %v945_v57 = vrot.slane %v943_v51, 5  ;;  %1058 = vst [vmem:[#allocation4 + $0xe0] sm:$0xf] %v1039_v44  ;;  %v1343_v14 = vshll.u32 %v1318_v59, 16 }
  0x76   :  { %v950_v43 = vrot.slane %v948_v33, 4  ;;  %v953_v46 = vrot.slane %v951_v5, 5  ;;  %v845_v50 = vld [vmem:[#allocation2 + $0x3c] sm:$0x1]  ;;  %v1042_v52 = vrot.slane %v992_v48, 5  ;;  %v1339_v11 = vrot.slane %v1337_v13, 5 }
  0x77   :  { %v1067_v54 = vld [vmem:[#allocation2 + $0x40] sm:$0xf]  ;;  %v957_v56 = vshll.u32 %v845_v50, 16  ;;  %v946_v1 = vsel %vm11465_vm12, %v941_v37, %v945_v57  ;;  %v1319_v3 = vld [vmem:[#allocation2 + $0x18] sm:$0xf]  ;;  %v1345_v19 = vrot.slane %v1343_v14, 5 }
  0x78   :  { %v954_v55 = vor.u32 %v953_v46, %v950_v43  ;;  %1075 = vst [vmem:[#allocation4 + $0x108] sm:$0xf] %v1067_v54  ;;  %v10679_v7 = vld [vmem:[#allocation4 + $0xf8] sm:$0xf0]  ;;  %v1043_v61 = vsel %vm11420_vm8, %v8831_v36, %v1042_v52  ;;  %v1348_v15 = vshrl.u32 %v1319_v3, 16  ;;  %v1351_v16 = vshll.u32 %v1319_v3, 16 }
  0x79   :  { %v959_v63 = vrot.slane %v957_v56, 5  ;;  %v8959_v45 = vor.u32 %v10679_v7, %v8958_v39  ;;  %1059 = vst [vmem:[#allocation4 + $0x104] sm:$0xf] %v1043_v61  ;;  %v1320_v8 = vld [vmem:[#allocation2 + $0x1c] sm:$0x1]  ;;  %v10754_v24 = vld [vmem:[#allocation8 + $0x230] sm:$0xff]  ;;  %v1340_v28 = vor.u32 %v1339_v11, %v1336_v9 }
  0x7a   :  { %v955_v62 = vrot.slane %v954_v55, 4  ;;  %v10676_v4 = vld [vmem:[#allocation4 + $0xe4] sm:$0xf]  ;;  %975 = vst [vmem:[#allocation4 + $0xdc] sm:$0xf] %v946_v1  ;;  %v1357_v17 = vshll.u32 %v1320_v8, 16 }
  0x7b   :  { %2364 = vmatmul.bf16.gmra.mxu0 %v8959_v45  ;;  %1309 = vst [vmem:[#allocation4 + $0x18] sm:$0xf] %v1301_v58  ;;  %v10755_v18 = vld [vmem:[#allocation8 + $0x238] sm:$0xff]  ;;  %v1350_v21 = vrot.slane %v1348_v15, 4  ;;  %v1353_v22 = vrot.slane %v1351_v16, 5  ;;  %v1341_v37 = vrot.slane %v1340_v28, 4 }
  0x7c   :  { %v960_v6 = vsel %vm11465_vm12, %v955_v62, %v959_v63  ;;  %v10799_v41 = vld [vmem:[#allocation8 + $0x38] sm:$0xff]  ;;  %1310 = vst [vmem:[#allocation4 + $0x3c] sm:$0xf] %v1302_v2  ;;  %v1359_v23 = vrot.slane %v1357_v17, 5  ;;  %2573 = vmatpush.bf16.msra.mxu0 %v10755_v18  ;;  %v8966_v25 = vld [vmem:[#allocation4 + $0xe0] sm:$0xf] }
  0x7d   :  { %976 = vst [vmem:[#allocation4 + $0x100] sm:$0xf] %v960_v6  ;;  %4297 = vmatpush.bf16.msra.mxu1 %v10799_v41  ;;  %v1220_v31 = vld [vmem:[#allocation2 + $0x8] sm:$0xe]  ;;  %v1221_v30 = vld [vmem:[#allocation2 + $0xc] sm:$0x1]  ;;  %v1354_v32 = vor.u32 %v1353_v22, %v1350_v21  ;;  %v1346_v50 = vsel %vm11465_vm12, %v1341_v37, %v1345_v19 }
  0x7e   :  { %v1222_v33 = vld [vmem:[#allocation2 + $0x10] sm:$0xe]  ;;  %v1223_v5 = vld [vmem:[#allocation2 + $0x14] sm:$0x1]  ;;  %v8832_v38 = vrot.slane %v1220_v31, 9  ;;  %v1254_v39 = vrot.slane %v1221_v30, 5 }
  0x7f   :  { %v8968_v20 = vld [vmem:[#allocation4 + $0x104] sm:$0xf0]  ;;  %v10798_v10 = vld [vmem:[#allocation8 + $0x30] sm:$0xff]  ;;  %v1355_v43 = vrot.slane %v1354_v32, 4  ;;  %v8833_v46 = vrot.slane %v1222_v33, 9  ;;  %v1258_v47 = vrot.slane %v1223_v5, 5 }
  0x80   :  { %v8971_v26 = vor.u32 %v10676_v4, %v8968_v20  ;;  %v10680_v0 = vld [vmem:[#allocation4 + $0x100] sm:$0xf0]  ;;  %2574 = vmatpush.bf16.msra.mxu0 %v10754_v24  ;;  %v8866_v49 = vld [vmem:[#allocation4 + $0x10] sm:$0xf]  ;;  %v1255_v51 = vsel %vm11420_vm8, %v8832_v38, %v1254_v39  ;;  %v1080_v52 = vld [vmem:[#allocation2 + $0x18] sm:$0xf] }
  0x81   :  { %v8967_v35 = vor.u32 %v10680_v0, %v8966_v25  ;;  %v10675_v36 = vld [vmem:[#allocation4 + $0xdc] sm:$0xf]  ;;  %4298 = vmatpush.bf16.msra.mxu1 %v10798_v10  ;;  %v10654_v55 = vld [vmem:[#allocation4 + $0x30] sm:$0xf0]  ;;  %v1360_v56 = vsel %vm11465_vm12, %v1355_v43, %v1359_v23  ;;  %1453 = vst [vmem:[#allocation4 + $0x1c] sm:$0xf] %v1346_v50  ;;  %v1259_v44 = vsel %vm11420_vm8, %v8833_v46, %v1258_v47 }
  0x82   :  { %2451 = vmatmul.bf16.gmra.mxu3 %v8971_v26  ;;  %v1081_v54 = vld [vmem:[#allocation2 + $0x1c] sm:$0x1]  ;;  %v1082_v57 = vld [vmem:[#allocation2 + $0x20] sm:$0xf]  ;;  %1454 = vst [vmem:[#allocation4 + $0x40] sm:$0xf] %v1360_v56  ;;  %v8867_v45 = vor.u32 %v10654_v55, %v8866_v49 }
  0x83   :  { %2422 = vmatmul.bf16.gmra.mxu2 %v8967_v35  ;;  %v1083_v58 = vld [vmem:[#allocation2 + $0x24] sm:$0x1]  ;;  %v1121_v59 = vshrl.u32 %v1080_v52, 16  ;;  %v1124_v60 = vshll.u32 %v1080_v52, 16  ;;  %1292 = vst [vmem:[#allocation4 + $0x14] sm:$0xf] %v1255_v51 }
  0x84   :  { %v8960_v40 = vld [vmem:[#allocation4 + $0xfc] sm:$0xf0]  ;;  %v1130_v7 = vshll.u32 %v1081_v54, 16  ;;  %v1135_v61 = vshrl.u32 %v1082_v57, 16  ;;  %v1138_v62 = vshll.u32 %v1082_v57, 16  ;;  %v1144_v63 = vshll.u32 %v1083_v58, 16 }
  0x85   :  { %v8963_v48 = vor.u32 %v10675_v36, %v8960_v40  ;;  %1293 = vst [vmem:[#allocation4 + $0x38] sm:$0xf] %v1259_v44  ;;  %v1123_v1 = vrot.slane %v1121_v59, 4  ;;  %v1126_v2 = vrot.slane %v1124_v60, 5  ;;  %v1303_v3 = vld [vmem:[#allocation2 + $0x20] sm:$0xf] }
  0x86   :  { %v1132_v4 = vrot.slane %v1130_v7, 5  ;;  %v1137_v6 = vrot.slane %v1135_v61, 4  ;;  %v1140_v8 = vrot.slane %v1138_v62, 5  ;;  %v1146_v9 = vrot.slane %v1144_v63, 5  ;;  %v1304_v13 = vld [vmem:[#allocation2 + $0x28] sm:$0xf] }
  0x87   :  { %2393 = vmatmul.bf16.gmra.mxu1 %v8963_v48  ;;  %v1127_v14 = vor.u32 %v1126_v2, %v1123_v1  ;;  %1311 = vst [vmem:[#allocation4 + $0x60] sm:$0xf] %v1303_v3  ;;  %v1321_v15 = vld [vmem:[#allocation2 + $0x20] sm:$0xf]  ;;  %v1322_v16 = vld [vmem:[#allocation2 + $0x24] sm:$0x1] }
  0x88   :  { %v8874_v17 = vld [vmem:[#allocation4 + $0x18] sm:$0xf]  ;;  %v10655_v18 = vld [vmem:[#allocation4 + $0x38] sm:$0xf0]  ;;  %v1141_v41 = vor.u32 %v1140_v8, %v1137_v6  ;;  %1312 = vst [vmem:[#allocation4 + $0x84] sm:$0xf] %v1304_v13 }
  0x89   :  { %v1323_v11 = vld [vmem:[#allocation2 + $0x28] sm:$0xf]  ;;  %v1324_v19 = vld [vmem:[#allocation2 + $0x2c] sm:$0x1]  ;;  %v10651_v20 = vld [vmem:[#allocation4 + $0x1c] sm:$0xf]  ;;  %v8875_v40 = vor.u32 %v10655_v18, %v8874_v17 }
  0x8a   :  { %v1128_v21 = vrot.slane %v1127_v14, 4  ;;  %v1362_v22 = vshrl.u32 %v1321_v15, 16  ;;  %v1365_v23 = vshll.u32 %v1321_v15, 16  ;;  %v1371_v24 = vshll.u32 %v1322_v16, 16  ;;  %v8876_v25 = vld [vmem:[#allocation4 + $0x3c] sm:$0xf0] }
  0x8b   :  { %2465 = vmatmul.bf16.vlgmr.msrb.gmra.mxu0 %v8867_v45  ;;  %v1142_v26 = vrot.slane %v1141_v41, 4  ;;  %v1376_v28 = vshrl.u32 %v1323_v11, 16  ;;  %v1379_v31 = vshll.u32 %v1323_v11, 16  ;;  %v1385_v30 = vshll.u32 %v1324_v19, 16  ;;  %v10650_v32 = vld [vmem:[#allocation4 + $0x14] sm:$0xf] }
  0x8c   :  { %v8879_v0 = vor.u32 %v10651_v20, %v8876_v25  ;;  %v1133_v33 = vsel %vm11465_vm12, %v1128_v21, %v1132_v4  ;;  %v1364_v5 = vrot.slane %v1362_v22, 4  ;;  %v1367_v35 = vrot.slane %v1365_v23, 5  ;;  %v10753_v36 = vld [vmem:[#allocation8 + $0x228] sm:$0xff]  ;;  %v8868_v38 = vld [vmem:[#allocation4 + $0x34] sm:$0xf0]  ;;  %v10752_v60 = vld [vmem:[#allocation8 + $0x220] sm:$0xff] }
  0x8d   :  { %v10797_v37 = vld [vmem:[#allocation8 + $0x28] sm:$0xff]  ;;  %v1147_v39 = vsel %vm11465_vm12, %v1142_v26, %v1146_v9  ;;  %1214 = vst [vmem:[#allocation4 + $0x58] sm:$0xf] %v1133_v33  ;;  %v1378_v10 = vrot.slane %v1376_v28, 4  ;;  %v1373_v46 = vrot.slane %v1371_v24, 5  ;;  %v1381_v47 = vrot.slane %v1379_v31, 5  ;;  %2575 = vmatpush.bf16.msra.mxu0 %v10753_v36 }
  0x8e   :  { %1215 = vst [vmem:[#allocation4 + $0x7c] sm:$0xf] %v1147_v39  ;;  %v1368_v43 = vor.u32 %v1367_v35, %v1364_v5  ;;  %v1224_v48 = vld [vmem:[#allocation2 + $0x18] sm:$0xe]  ;;  %4299 = vmatpush.bf16.msra.mxu1 %v10797_v37  ;;  %v8871_v49 = vor.u32 %v10650_v32, %v8868_v38  ;;  %v1225_v50 = vld [vmem:[#allocation2 + $0x1c] sm:$0x1] }
  0x8f   :  { %v1226_v51 = vld [vmem:[#allocation2 + $0x20] sm:$0xe]  ;;  %v1382_v54 = vor.u32 %v1381_v47, %v1378_v10  ;;  %v1387_v55 = vrot.slane %v1385_v30, 5  ;;  %v1227_v56 = vld [vmem:[#allocation2 + $0x24] sm:$0x1]  ;;  %v8834_v44 = vrot.slane %v1224_v48, 9 }
  0x90   :  { %v1369_v52 = vrot.slane %v1368_v43, 4  ;;  %v1262_v57 = vrot.slane %v1225_v50, 5  ;;  %v8835_v58 = vrot.slane %v1226_v51, 9  ;;  %v1266_v59 = vrot.slane %v1227_v56, 5  ;;  %v1084_v7 = vld [vmem:[#allocation2 + $0x28] sm:$0xf] }
  0x91   :  { %v1383_v62 = vrot.slane %v1382_v54, 4  ;;  %v1085_v63 = vld [vmem:[#allocation2 + $0x2c] sm:$0x1]  ;;  %v1086_v45 = vld [vmem:[#allocation2 + $0x30] sm:$0xf]  ;;  %v1149_v1 = vshrl.u32 %v1084_v7, 16  ;;  %2576 = vmatpush.bf16.msra.mxu0 %v10752_v60 }
  0x92   :  { %2552 = vmatmul.bf16.vlgmr.msrb.gmra.mxu3 %v8879_v0  ;;  %v1374_v61 = vsel %vm11465_vm12, %v1369_v52, %v1373_v46  ;;  %v1263_v2 = vsel %vm11420_vm8, %v8834_v44, %v1262_v57  ;;  %v1267_v3 = vsel %vm11420_vm8, %v8835_v58, %v1266_v59  ;;  %v1087_v4 = vld [vmem:[#allocation2 + $0x34] sm:$0x1]  ;;  %v1152_v6 = vshll.u32 %v1084_v7, 16  ;;  %v10796_v20 = vld [vmem:[#allocation8 + $0x20] sm:$0xff]  ;;  %v1305_v23 = vld [vmem:[#allocation2 + $0x30] sm:$0xf] }
  0x93   :  { %2523 = vmatmul.bf16.vlgmr.msrb.gmra.mxu2 %v8875_v40  ;;  %1455 = vst [vmem:[#allocation4 + $0x64] sm:$0xf] %v1374_v61  ;;  %v1158_v8 = vshll.u32 %v1085_v63, 16  ;;  %v1388_v13 = vsel %vm11465_vm12, %v1383_v62, %v1387_v55  ;;  %v1151_v14 = vrot.slane %v1149_v1, 4  ;;  %v1163_v15 = vshrl.u32 %v1086_v45, 16  ;;  %v10807_v25 = vld [vmem:[#allocation8 + $0x78] sm:$0xff]  ;;  %4300 = vmatpush.bf16.msra.mxu1 %v10796_v20 }
  0x94   :  { %v8902_v9 = vld [vmem:[#allocation4 + $0x58] sm:$0xf]  ;;  %1294 = vst [vmem:[#allocation4 + $0x5c] sm:$0xf] %v1263_v2  ;;  %v1154_v17 = vrot.slane %v1152_v6, 5  ;;  %v1166_v11 = vshll.u32 %v1086_v45, 16  ;;  %4326 = vmatpush.bf16.msra.mxu2 %v10807_v25 }
  0x95   :  { %v10663_v16 = vld [vmem:[#allocation4 + $0x78] sm:$0xf0]  ;;  %1456 = vst [vmem:[#allocation4 + $0x88] sm:$0xf] %v1388_v13  ;;  %v1165_v41 = vrot.slane %v1163_v15, 4  ;;  %v1172_v19 = vshll.u32 %v1087_v4, 16 }
  0x96   :  { %v8903_v18 = vor.u32 %v10663_v16, %v8902_v9  ;;  %1295 = vst [vmem:[#allocation4 + $0x80] sm:$0xf] %v1267_v3  ;;  %v1155_v21 = vor.u32 %v1154_v17, %v1151_v14  ;;  %v1160_v22 = vrot.slane %v1158_v8, 5  ;;  %v1306_v24 = vld [vmem:[#allocation2 + $0x38] sm:$0xf]  ;;  %v1168_v26 = vrot.slane %v1166_v11, 5 }
  0x97   :  { %2494 = vmatmul.bf16.vlgmr.msrb.gmra.mxu1 %v8871_v49  ;;  %v1174_v28 = vrot.slane %v1172_v19, 5  ;;  %1313 = vst [vmem:[#allocation4 + $0xa8] sm:$0xf] %v1305_v23  ;;  %v1325_v31 = vld [vmem:[#allocation2 + $0x30] sm:$0xf]  ;;  %v10815_v47 = vld [vmem:[#allocation8 + $0xb8] sm:$0xff] }
  0x98   :  { %v8910_v30 = vld [vmem:[#allocation4 + $0x60] sm:$0xf]  ;;  %v10664_v0 = vld [vmem:[#allocation4 + $0x80] sm:$0xf0]  ;;  %v1156_v32 = vrot.slane %v1155_v21, 4  ;;  %v1390_v5 = vshrl.u32 %v1325_v31, 16  ;;  %v1169_v36 = vor.u32 %v1168_v26, %v1165_v41  ;;  %4355 = vmatpush.bf16.msra.mxu3 %v10815_v47 }
  0x99   :  { %1314 = vst [vmem:[#allocation4 + $0xcc] sm:$0xf] %v1306_v24  ;;  %v1326_v33 = vld [vmem:[#allocation2 + $0x34] sm:$0x1]  ;;  %v1327_v37 = vld [vmem:[#allocation2 + $0x38] sm:$0xf]  ;;  %v8911_v44 = vor.u32 %v10664_v0, %v8910_v30 }
  0x9a   :  { %v10660_v35 = vld [vmem:[#allocation4 + $0x64] sm:$0xf]  ;;  %v1328_v38 = vld [vmem:[#allocation2 + $0x3c] sm:$0x1]  ;;  %v1161_v10 = vsel %vm11465_vm12, %v1156_v32, %v1160_v22  ;;  %v1392_v40 = vrot.slane %v1390_v5, 4  ;;  %v1393_v43 = vshll.u32 %v1325_v31, 16 }
  0x9b   :  { %2470 = vmatmul.bf16.gmra.mxu0 %v8903_v18  ;;  %v10659_v39 = vld [vmem:[#allocation4 + $0x5c] sm:$0xf]  ;;  %v1399_v46 = vshll.u32 %v1326_v33, 16  ;;  %v1170_v49 = vrot.slane %v1169_v36, 4  ;;  %1216 = vst [vmem:[#allocation4 + $0xa0] sm:$0xf] %v1161_v10 }
  0x9c   :  { %v8912_v48 = vld [vmem:[#allocation4 + $0x84] sm:$0xf0]  ;;  %v1404_v50 = vshrl.u32 %v1327_v37, 16  ;;  %v1395_v54 = vrot.slane %v1393_v43, 5  ;;  %v1407_v55 = vshll.u32 %v1327_v37, 16  ;;  %v10751_v56 = vld [vmem:[#allocation8 + $0x218] sm:$0xff] }
  0x9d   :  { %v8915_v51 = vor.u32 %v10660_v35, %v8912_v48  ;;  %v8904_v52 = vld [vmem:[#allocation4 + $0x7c] sm:$0xf0]  ;;  %v1175_v57 = vsel %vm11465_vm12, %v1170_v49, %v1174_v28  ;;  %v1413_v59 = vshll.u32 %v1328_v38, 16  ;;  %v10806_v60 = vld [vmem:[#allocation8 + $0x70] sm:$0xff]  ;;  %v1228_v7 = vld [vmem:[#allocation2 + $0x28] sm:$0xe]  ;;  %2577 = vmatpush.bf16.msra.mxu0 %v10751_v56 }
  0x9e   :  { %v1406_v58 = vrot.slane %v1404_v50, 4  ;;  %v10795_v61 = vld [vmem:[#allocation8 + $0x18] sm:$0xff]  ;;  %1217 = vst [vmem:[#allocation4 + $0xc4] sm:$0xf] %v1175_v57  ;;  %v1396_v62 = vor.u32 %v1395_v54, %v1392_v40  ;;  %v1401_v63 = vrot.slane %v1399_v46, 5  ;;  %v1409_v45 = vrot.slane %v1407_v55, 5  ;;  %4327 = vmatpush.bf16.msra.mxu2 %v10806_v60 }
  0x9f   :  { %v8836_v1 = vrot.slane %v1228_v7, 9  ;;  %v8907_v2 = vor.u32 %v10659_v39, %v8904_v52  ;;  %v1415_v3 = vrot.slane %v1413_v59, 5  ;;  %v1229_v4 = vld [vmem:[#allocation2 + $0x2c] sm:$0x1]  ;;  %v10814_v6 = vld [vmem:[#allocation8 + $0xb0] sm:$0xff]  ;;  %4301 = vmatpush.bf16.msra.mxu1 %v10795_v61  ;;  %v486_v5 = vrot.slane %v11582_v42, 4 }
  0xa0   :  { %v1397_v8 = vrot.slane %v1396_v62, 4  ;;  %v1410_v9 = vor.u32 %v1409_v45, %v1406_v58  ;;  %v1230_v13 = vld [vmem:[#allocation2 + $0x30] sm:$0xe]  ;;  %v1231_v14 = vld [vmem:[#allocation2 + $0x34] sm:$0x1]  ;;  %v1270_v15 = vrot.slane %v1229_v4, 5  ;;  %4356 = vmatpush.bf16.msra.mxu3 %v10814_v6 }
  0xa1   :  { %v8837_v16 = vrot.slane %v1230_v13, 9  ;;  %v1274_v17 = vrot.slane %v1231_v14, 5  ;;  %v10805_v18 = vld [vmem:[#allocation8 + $0x68] sm:$0xff]  ;;  %v10750_v11 = vld [vmem:[#allocation8 + $0x210] sm:$0xff]  ;;  %v159_v23 = vld [vmem:[#allocation2 + $0x44] sm:$0x1] }
  0xa2   :  { %2557 = vmatmul.bf16.gmra.mxu3 %v8915_v51  ;;  %v10813_v41 = vld [vmem:[#allocation8 + $0xa8] sm:$0xff]  ;;  %v8938_v19 = vld [vmem:[#allocation4 + $0xa0] sm:$0xf]  ;;  %v1402_v20 = vsel %vm11465_vm12, %v1397_v8, %v1401_v63  ;;  %v1411_v21 = vrot.slane %v1410_v9, 4  ;;  %v1271_v22 = vsel %vm11420_vm8, %v8836_v1, %v1270_v15  ;;  %4328 = vmatpush.bf16.msra.mxu2 %v10805_v18  ;;  %v160_v25 = vsel %vm11414_vm6, 0, %v159_v23  ;;  %v10794_v43 = vld [vmem:[#allocation8 + $0x10] sm:$0xff] }
  0xa3   :  { %2528 = vmatmul.bf16.gmra.mxu2 %v8911_v44  ;;  %1457 = vst [vmem:[#allocation4 + $0xac] sm:$0xf] %v1402_v20  ;;  %v1275_v24 = vsel %vm11420_vm8, %v8837_v16, %v1274_v17  ;;  %v1088_v26 = vld [vmem:[#allocation2 + $0x38] sm:$0xf]  ;;  %2578 = vmatpush.bf16.msra.mxu0 %v10750_v11  ;;  %v1089_v31 = vld [vmem:[#allocation2 + $0x3c] sm:$0x1] }
  0xa4   :  { %v1416_v28 = vsel %vm11465_vm12, %v1411_v21, %v1415_v3  ;;  %1296 = vst [vmem:[#allocation4 + $0xa4] sm:$0xf] %v1271_v22  ;;  %v1090_v30 = vld [vmem:[#allocation2 + $0x40] sm:$0xf]  ;;  %4357 = vmatpush.bf16.msra.mxu3 %v10813_v41  ;;  %v1177_v32 = vshrl.u32 %v1088_v26, 16  ;;  %v1180_v33 = vshll.u32 %v1088_v26, 16  ;;  %4302 = vmatpush.bf16.msra.mxu1 %v10794_v43 }
  0xa5   :  { %v10672_v0 = vld [vmem:[#allocation4 + $0xc0] sm:$0xf0]  ;;  %1458 = vst [vmem:[#allocation4 + $0xd0] sm:$0xf] %v1416_v28  ;;  %v1186_v36 = vshll.u32 %v1089_v31, 16  ;;  %v1191_v37 = vshrl.u32 %v1090_v30, 16 }
  0xa6   :  { %v8939_v35 = vor.u32 %v10672_v0, %v8938_v19  ;;  %1297 = vst [vmem:[#allocation4 + $0xc8] sm:$0xf] %v1275_v24  ;;  %v10804_v38 = vld [vmem:[#allocation8 + $0x60] sm:$0xff]  ;;  %v8946_v39 = vld [vmem:[#allocation4 + $0xa8] sm:$0xf]  ;;  %v1179_v10 = vrot.slane %v1177_v32, 4 }
  0xa7   :  { %2499 = vmatmul.bf16.gmra.mxu1 %v8907_v2  ;;  %161 = vst [vmem:[#allocation2 + $0x44] sm:$0x1] %v160_v25  ;;  %v1182_v40 = vrot.slane %v1180_v33, 5  ;;  %v10812_v46 = vld [vmem:[#allocation8 + $0xa0] sm:$0xff]  ;;  %v10673_v47 = vld [vmem:[#allocation4 + $0xc8] sm:$0xf0]  ;;  %4329 = vmatpush.bf16.msra.mxu2 %v10804_v38 }
  0xa8   :  { %v1194_v48 = vshll.u32 %v1090_v30, 16  ;;  %v1307_v49 = vld [vmem:[#allocation2 + $0x40] sm:$0xf]  ;;  %v10803_v50 = vld [vmem:[#allocation8 + $0x58] sm:$0xff]  ;;  %v1188_v52 = vrot.slane %v1186_v36, 5  ;;  %v11645_v42 = vrot.slane %v1191_v37, 4  ;;  %4358 = vmatpush.bf16.msra.mxu3 %v10812_v46  ;;  %v8947_v60 = vor.u32 %v10673_v47, %v8946_v39 }
  0xa9   :  { %v1183_v51 = vor.u32 %v1182_v40, %v1179_v10  ;;  %v1308_v54 = vld [vmem:[#allocation2 + $0x48] sm:$0xf]  ;;  %1315 = vst [vmem:[#allocation4 + $0xf0] sm:$0xf] %v1307_v49  ;;  %v1329_v56 = vld [vmem:[#allocation2 + $0x40] sm:$0xf] }
  0xaa   :  { %v10669_v55 = vld [vmem:[#allocation4 + $0xac] sm:$0xf]  ;;  %1316 = vst [vmem:[#allocation4 + $0x114] sm:$0xf] %v1308_v54  ;;  %v1331_v58 = vld [vmem:[#allocation2 + $0x48] sm:$0xf] }
  0xab   :  { %2475 = vmatmul.bf16.gmra.mxu0 %v8939_v35  ;;  %v10668_v44 = vld [vmem:[#allocation4 + $0xa4] sm:$0xf]  ;;  %v1184_v57 = vrot.slane %v1183_v51, 4  ;;  %v1418_v59 = vshrl.u32 %v1329_v56, 16  ;;  %v1196_v61 = vrot.slane %v1194_v48, 5  ;;  %4330 = vmatpush.bf16.msra.mxu2 %v10803_v50  ;;  %v1421_v63 = vshll.u32 %v1329_v56, 16 }
  0xac   :  { %v8948_v7 = vld [vmem:[#allocation4 + $0xcc] sm:$0xf0]  ;;  %v1332_v62 = vld [vmem:[#allocation2 + $0x4c] sm:$0x1]  ;;  %v5532_v3 = vld [vmem:[#allocation3 + $0x48] sm:$0xf] }
  0xad   :  { %v8951_v45 = vor.u32 %v10669_v55, %v8948_v7  ;;  %v8940_v1 = vld [vmem:[#allocation4 + $0xc4] sm:$0xf0]  ;;  %v1189_v2 = vsel %vm11465_vm12, %v1184_v57, %v1188_v52  ;;  %v1420_v4 = vrot.slane %v1418_v59, 4  ;;  %v1432_v6 = vshrl.u32 %v1331_v58, 16  ;;  %v5556_v41 = vld [vmem:[#allocation3 + $0x4c] sm:$0x1] }
  0xae   :  { %v5555_v8 = vld [vmem:[#allocation3 + $0x48] sm:$0xf]  ;;  %v8943_v9 = vor.u32 %v10668_v44, %v8940_v1  ;;  %v550_v13 = vld [vmem:[#allocation2 + $0x44] sm:$0x1]  ;;  %1218 = vst [vmem:[#allocation4 + $0xe8] sm:$0xf] %v1189_v2  ;;  %v1197_v22 = vor.u32 %v1196_v61, %v11645_v42 }
  0xaf   :  { %v1423_v14 = vrot.slane %v1421_v63, 5  ;;  %v1435_v15 = vshll.u32 %v1331_v58, 16  ;;  %v551_v16 = vsel %vm11406_vm2, %v486_v5, %v550_v13  ;;  %v1434_v17 = vrot.slane %v1432_v6, 4  ;;  %v10811_v19 = vld [vmem:[#allocation8 + $0x98] sm:$0xff]  ;;  %v10749_v28 = vld [vmem:[#allocation8 + $0x208] sm:$0xff]  ;;  %v10802_v32 = vld [vmem:[#allocation8 + $0x50] sm:$0xff] }
  0xb0   :  { %v1441_v18 = vshll.u32 %v1332_v62, 16  ;;  %v5656_v11 = vshrl.u32 %v5555_v8, 16  ;;  %552 = vst [vmem:[#allocation2 + $0x44] sm:$0x1] %v551_v16  ;;  %v5659_v21 = vshll.u32 %v5555_v8, 16  ;;  %v5665_v26 = vshll.u32 %v5556_v41, 16  ;;  %4359 = vmatpush.bf16.msra.mxu3 %v10811_v19  ;;  %2579 = vmatpush.bf16.msra.mxu0 %v10749_v28 }
  0xb1   :  { %v1437_v20 = vrot.slane %v1435_v15, 5  ;;  %v11652_v23 = vld [vmem:[#allocation4 + $0x110] sm:$0xf0]  ;;  %v1424_v24 = vor.u32 %v1423_v14, %v1420_v4  ;;  %v10793_v33 = vld [vmem:[#allocation8 + $0x8] sm:$0xff]  ;;  %v11654_v5 = vld [vmem:[#allocation5 + $0x20] sm:$0xff]   ;;  %4331 = vmatpush.bf16.msra.mxu2 %v10802_v32  ;;  %v1198_v48 = vrot.slane %v1197_v22, 4 }
  0xb2   :  { %2562 = vmatmul.bf16.gmra.mxu3 %v8951_v45  ;;  %v5658_v25 = vrot.slane %v5656_v11, 4  ;;  %5540 = vst [vmem:[#allocation4 + $0x114] sm:$0xf] %v5532_v3  ;;  %v1443_v30 = vrot.slane %v1441_v18, 5  ;;  %v5661_v0 = vrot.slane %v5659_v21, 5  ;;  %v11656_v35 = vld [vmem:[#allocation5 + $0x60] sm:$0xff]   ;;  %4303 = vmatpush.bf16.msra.mxu1 %v10793_v33  ;;  %v11146_v61 = vunpack.c.l.bf16 %v11654_v5 }
  0xb3   :  { %2533 = vmatmul.bf16.gmra.mxu2 %v8947_v60  ;;  %v1438_v31 = vor.u32 %v1437_v20, %v1434_v17  ;;  %v1232_v36 = vld [vmem:[#allocation2 + $0x38] sm:$0xe]  ;;  %v1233_v37 = vld [vmem:[#allocation2 + $0x3c] sm:$0x1]  ;;  %v10810_v38 = vld [vmem:[#allocation8 + $0x90] sm:$0xff]  ;;  %v1425_v49 = vrot.slane %v1424_v24, 4  ;;  %v11162_v62 = vunpack.c.l.bf16 %v11656_v35 }
  0xb4   :  { %v5662_v10 = vor.u32 %v5661_v0, %v5658_v25  ;;  %v1234_v40 = vld [vmem:[#allocation2 + $0x40] sm:$0xe]  ;;  %v8838_v43 = vrot.slane %v1232_v36, 9  ;;  %v1278_v46 = vrot.slane %v1233_v37, 5  ;;  %v10801_v47 = vld [vmem:[#allocation8 + $0x48] sm:$0xff]  ;;  %v11658_v50 = vrot.slane %v5665_v26, 5  ;;  %4360 = vmatpush.bf16.msra.mxu3 %v10810_v38 }
  0xb5   :  { %v1439_v39 = vrot.slane %v1438_v31, 4  ;;  %v8839_v51 = vrot.slane %v1234_v40, 9  ;;  %v10748_v52 = vld [vmem:[#allocation8 + $0x200] sm:$0xff]  ;;  %v10809_v42 = vld [vmem:[#allocation8 + $0x88] sm:$0xff]  ;;  %v11660_v54 = vld [vmem:[#allocation4 + $0xf0] sm:$0xf]  ;;  %4332 = vmatpush.bf16.msra.mxu2 %v10801_v47  ;;  %v587_v20 = vmax.f32 %v11146_v61, %v11162_v62  ;;  %v11163_v47 = vunpack.c.h.bf16 %v11656_v35 }
  0xb6   :  { %v5663_v56 = vrot.slane %v5662_v10, 4  ;;  %v1279_v44 = vsel %vm11420_vm8, %v8838_v43, %v1278_v46  ;;  %v1461_v57 = vld [vmem:[#allocation2 + $0x10] sm:$0xe]  ;;  %v1462_v58 = vld [vmem:[#allocation2 + $0x14] sm:$0x1]  ;;  %v10800_v59 = vld [vmem:[#allocation8 + $0x40] sm:$0xff]  ;;  %2580 = vmatpush.bf16.msra.mxu0 %v10748_v52  ;;  %v8983_v17 = vor.u32 %v11652_v23, %v11660_v54  ;;  %v11147_v46 = vunpack.c.h.bf16 %v11654_v5 }
  0xb7   :  { %2504 = vmatmul.bf16.gmra.mxu1 %v8943_v9  ;;  %v1444_v55 = vsel %vm11465_vm12, %v1439_v39, %v1443_v30  ;;  %v1091_v60 = vld [vmem:[#allocation2 + $0x44] sm:$0x1]  ;;  %1298 = vst [vmem:[#allocation4 + $0xec] sm:$0xf] %v1279_v44  ;;  %v1463_v3 = vld [vmem:[#allocation2 + $0x18] sm:$0xe] }
  0xb8   :  { %v1330_v7 = vld [vmem:[#allocation2 + $0x44] sm:$0x1]  ;;  %1460 = vst [vmem:[#allocation4 + $0x118] sm:$0xf] %v1444_v55  ;;  %v1200_v63 = vshll.u32 %v1091_v60, 16  ;;  %4361 = vmatpush.bf16.msra.mxu3 %v10809_v42  ;;  %v8840_v6 = vrot.slane %v1461_v57, 9  ;;  %v5668_v25 = vsel %vm11465_vm12, %v5663_v56, %v11658_v50 }
  0xb9   :  { %v1427_v45 = vshll.u32 %v1330_v7, 16  ;;  %v1235_v1 = vld [vmem:[#allocation2 + $0x44] sm:$0x1]  ;;  %v1464_v4 = vld [vmem:[#allocation2 + $0x1c] sm:$0x1]  ;;  %v1495_v13 = vrot.slane %v1462_v58, 5  ;;  %4333 = vmatpush.bf16.msra.mxu2 %v10800_v59 }
  0xba   :  { %v1282_v2 = vrot.slane %v1235_v1, 5  ;;  %v1202_v8 = vrot.slane %v1200_v63, 5  ;;  %v8841_v14 = vrot.slane %v1463_v3, 9  ;;  %v10792_v15 = vld [vmem:[#allocation8] sm:$0xff]  ;;  %v1499_v41 = vrot.slane %v1464_v4, 5  ;;  %v11690_v10 = vld [vmem:[#allocation5 + $0x28] sm:$0xff]  }
  0xbb   :  { %v1429_v9 = vrot.slane %v1427_v45, 5  ;;  %v10808_v16 = vld [vmem:[#allocation8 + $0x80] sm:$0xff]  ;;  %v112_v11 = vld [vmem:[#allocation2 + $0x58] sm:$0x1]  ;;  %v162_v19 = vld [vmem:[#allocation2 + $0x5c] sm:$0x1]  ;;  %4304 = vmatpush.bf16.msra.mxu1 %v10792_v15  ;;  %v1496_v28 = vsel %vm11420_vm8, %v8840_v6, %v1495_v13  ;;  %v11150_v62 = vunpack.c.l.bf16 %v11690_v10  ;;  %v588_v45 = vmax.f32 %v11147_v46, %v11163_v47 }
  0xbc   :  { %v1283_v18 = vsel %vm11420_vm8, %v8839_v51, %v1282_v2  ;;  %v11672_v21 = vld [vmem:[#allocation5 + $0xa0] sm:$0xff]   ;;  %v1203_v22 = vsel %vm11465_vm12, %v1198_v48, %v1202_v8  ;;  %v2792_v26 = vld [vmem:[#allocation2 + $0x50] sm:$0xf]  ;;  %4362 = vmatpush.bf16.msra.mxu3 %v10808_v16  ;;  %v113_v31 = vsel %vm11406_vm2, 0, %v112_v11  ;;  %v163_v30 = vsel %vm11414_vm6, 0, %v162_v19  ;;  %v11694_v48 = vld [vmem:[#allocation5 + $0x68] sm:$0xff]  }
  0xbd   :  { %v1430_v24 = vsel %vm11465_vm12, %v1425_v49, %v1429_v9  ;;  %1299 = vst [vmem:[#allocation4 + $0x110] sm:$0xf] %v1283_v18  ;;  %v11193_v23 = vld [vmem:[#allocation5 + $0xe0] sm:$0xff]   ;;  %v11178_v0 = vunpack.c.l.bf16 %v11672_v21  ;;  %v2793_v32 = vld [vmem:[#allocation2 + $0x54] sm:$0x1]  ;;  %v1500_v36 = vsel %vm11420_vm8, %v8841_v14, %v1499_v41  ;;  %v2809_v38 = vshrl.u32 %v2792_v26, 16  ;;  %v2350_v41 = vpop.f32.mrf.mxu0 }
  0xbe   :  { %1219 = vst [vmem:[#allocation4 + $0x10c] sm:$0xf] %v1203_v22  ;;  %v11194_v37 = vunpack.c.l.bf16 %v11193_v23  ;;  %v2812_v39 = vshll.u32 %v2792_v26, 16  ;;  %v10677_v40 = vld [vmem:[#allocation4 + $0xec] sm:$0xf]  ;;  %v2818_v43 = vshll.u32 %v2793_v32, 16  ;;  %v11179_v44 = vunpack.c.h.bf16 %v11672_v21 }
  0xbf   :  { %1459 = vst [vmem:[#allocation4 + $0xf4] sm:$0xf] %v1430_v24  ;;  %v8984_v33 = vld [vmem:[#allocation4 + $0x114] sm:$0xf0]  ;;  %v8974_v49 = vld [vmem:[#allocation4 + $0xe8] sm:$0xf]  ;;  %v11195_v57 = vunpack.c.h.bf16 %v11193_v23  ;;  %v11166_v63 = vunpack.c.l.bf16 %v11694_v48 }
  0xc0   :  { %5684 = vst [vmem:[#allocation4 + $0x118] sm:$0xf] %v5668_v25  ;;  %v637_v50 = vmax.f32 %v11178_v0, %v11194_v37  ;;  %v2811_v51 = vrot.slane %v2809_v38, 4  ;;  %v2814_v52 = vrot.slane %v2812_v39, 5  ;;  %v2936_v42 = vld [vmem:[#allocation2 + $0x50] sm:$0xe] }
  0xc1   :  { %1533 = vst [vmem:[#allocation4 + $0x20] sm:$0xf] %v1496_v28  ;;  %v2820_v54 = vrot.slane %v2818_v43, 5  ;;  %v2937_v55 = vld [vmem:[#allocation2 + $0x54] sm:$0x1]  ;;  %v9280_v56 = vrot.slane %v2936_v42, 9  ;;  %v589_v21 = vmax.f32 %v11150_v62, %v11166_v63 }
  0xc2   :  { %1534 = vst [vmem:[#allocation4 + $0x44] sm:$0xf] %v1500_v36  ;;  %v669_v5 = vmax.f32 %v587_v20, %v637_v50  ;;  %v2815_v58 = vor.u32 %v2814_v52, %v2811_v51  ;;  %v2970_v35 = vrot.slane %v2937_v55, 5  ;;  %v115_v59 = vld [vmem:[#allocation2 + $0x60] sm:$0x1]  ;;  %v11697_v60 = vld [vmem:[#allocation5 + $0xa8] sm:$0xff]  }
  0xc3   :  { %2538 = vmatmul.bf16.gmra.mxu2 %v8983_v17  ;;  %114 = vst [vmem:[#allocation2 + $0x58] sm:$0x1] %v113_v31  ;;  %v2775_v61 = vld [vmem:[#allocation2 + $0x50] sm:$0xf]  ;;  %v11182_v1 = vunpack.c.l.bf16 %v11697_v60  ;;  %v11704_v9 = vld [vmem:[#allocation5 + $0xe8] sm:$0xff]   ;;  %v116_v15 = vsel %vm11406_vm2, 0, %v115_v59  ;;  %v638_v17 = vmax.f32 %v11179_v44, %v11195_v57 }
  0xc4   :  { %v8976_v7 = vld [vmem:[#allocation4 + $0x10c] sm:$0xf0]  ;;  %164 = vst [vmem:[#allocation2 + $0x5c] sm:$0x1] %v163_v30  ;;  %v677_v4 = vpack.c.bf16 %v669_v5, %v669_v5  ;;  %v2816_v6 = vrot.slane %v2815_v58, 4  ;;  %v2971_v8 = vsel %vm11420_vm8, %v9280_v56, %v2970_v35  ;;  %v11198_v16 = vunpack.c.l.bf16 %v11704_v9  ;;  %v10823_v26 = vld [vmem:[#allocation8 + $0xf8] sm:$0xff] }
  0xc5   :  { %v10681_v2 = vld [vmem:[#allocation4 + $0x108] sm:$0xf0]  ;;  %v8979_v3 = vor.u32 %v10677_v40, %v8976_v7  ;;  %2784 = vst [vmem:[#allocation4 + $0x120] sm:$0xf] %v2775_v61  ;;  %v6887_v25 = vld [vmem:[#allocation3 + $0x50] sm:$0xf]  ;;  %4384 = vmatpush.bf16.msrb.mxu0 %v10823_v26  ;;  %v670_v43 = vmax.f32 %v588_v45, %v638_v17  ;;  %v11183_v26 = vunpack.c.h.bf16 %v11697_v60 }
  0xc6   :  { %v8975_v13 = vor.u32 %v10681_v2, %v8974_v49  ;;  %v10678_v14 = vld [vmem:[#allocation4 + $0xf4] sm:$0xf]  ;;  %3008 = vst [vmem:[#allocation4 + $0x128] sm:$0xf] %v2971_v8  ;;  %v686_v11 = vshrl.u32 %v677_v4, 16  ;;  %v689_v19 = vshll.u32 %v677_v4, 16  ;;  %v2821_v20 = vsel %vm11465_vm12, %v2816_v6, %v2820_v54  ;;  %v2379_v23 = vpop.f32.mrf.mxu1 }
  0xc7   :  { %v8987_v18 = vor.u32 %v10678_v14, %v8984_v33  ;;  %2509 = vmatmul.bf16.gmra.mxu1 %v8979_v3  ;;  %117 = vst [vmem:[#allocation2 + $0x60] sm:$0x1] %v116_v15  ;;  %v639_v22 = vmax.f32 %v11182_v1, %v11198_v16  ;;  %v1465_v28 = vld [vmem:[#allocation2 + $0x20] sm:$0xe]  ;;  %v6888_v30 = vld [vmem:[#allocation3 + $0x54] sm:$0x1]  ;;  %v11711_v33 = vadd.f32 %v2379_v23, %v2350_v41  ;;  %v11733_v14 = vpop.f32.mrf.mxu0 }
  0xc8   :  { %2480 = vmatmul.bf16.gmra.mxu0 %v8975_v13  ;;  %2928 = vst [vmem:[#allocation4 + $0x124] sm:$0xf] %v2821_v20  ;;  %v688_v24 = vrot.slane %v686_v11, 7  ;;  %v6904_v0 = vshrl.u32 %v6887_v25, 16  ;;  %v6907_v32 = vshll.u32 %v6887_v25, 16  ;;  %v6913_v39 = vshll.u32 %v6888_v30, 16  ;;  %v11738_v11 = vpop.f32.mrf.mxu2 }
  0xc9   :  { %2567 = vmatmul.bf16.gmra.mxu3 %v8987_v18  ;;  %v7031_v40 = vld [vmem:[#allocation3 + $0x50] sm:$0xe]  ;;  %v11713_v46 = vld [vmem:[#allocation4 + $0x20] sm:$0xf]  ;;  %v7032_v50 = vld [vmem:[#allocation3 + $0x54] sm:$0x1]  ;;  %v671_v42 = vmax.f32 %v589_v21, %v639_v22  ;;  %v678_v1 = vpack.c.bf16 %v670_v43, %v670_v43  ;;  %v11151_v18 = vunpack.c.h.bf16 %v11690_v10 }
  0xca   :  { %v766_v31 = vld [vmem:[#allocation2 + $0x58] sm:$0xf]  ;;  %v691_v36 = vor.u32 %v689_v19, %v688_v24  ;;  %v692_v37 = vrot.slane %v688_v24, 4  ;;  %v6906_v47 = vrot.slane %v6904_v0, 4  ;;  %v6909_v49 = vrot.slane %v6907_v32, 5  ;;  %v10822_v59 = vld [vmem:[#allocation8 + $0xf0] sm:$0xff] }
  0xcb   :  { %v769_v38 = vld [vmem:[#allocation2 + $0x5c] sm:$0x1]  ;;  %v10192_v51 = vrot.slane %v7031_v40, 9  ;;  %v11715_v54 = vld [vmem:[#allocation4 + $0x40] sm:$0xf0]  ;;  %v6915_v44 = vrot.slane %v6913_v39, 5  ;;  %4385 = vmatpush.bf16.msrb.mxu0 %v10822_v59  ;;  %v11729_v8 = vpack.c.bf16 %v671_v42, %v671_v42  ;;  %v11167_v24 = vunpack.c.h.bf16 %v11694_v48 }
  0xcc   :  { %v10831_v52 = vld [vmem:[#allocation8 + $0x138] sm:$0xff]  ;;  %v767_v55 = vsel %vm11444_vm11, %v691_v36, %v766_v31  ;;  %v770_v56 = vsel %vm11406_vm2, %v692_v37, %v769_v38  ;;  %v7065_v5 = vrot.slane %v7032_v50, 5  ;;  %v6910_v58 = vor.u32 %v6909_v49, %v6906_v47  ;;  %v6871_v35 = vld [vmem:[#allocation3 + $0x50] sm:$0xf]  ;;  %v118_v61 = vld [vmem:[#allocation2 + $0x68] sm:$0x1]  ;;  %v11749_v31 = vpop.f32.mrf.mxu3 }
  0xcd   :  { %v11721_v57 = vld [vmem:[#allocation4 + $0x128] sm:$0xf]  ;;  %768 = vst [vmem:[#allocation2 + $0x58] sm:$0xf] %v767_v55  ;;  %4413 = vmatpush.bf16.msrb.mxu1 %v10831_v52  ;;  %v8842_v7 = vrot.slane %v1465_v28, 9  ;;  %v8883_v13 = vor.u32 %v11715_v54, %v11713_v46  ;;  %v10830_v17 = vld [vmem:[#allocation8 + $0x130] sm:$0xff]  ;;  %v11199_v28 = vunpack.c.h.bf16 %v11704_v9  ;;  %v590_v54 = vmax.f32 %v11151_v18, %v11167_v24 }
  0xce   :  { %771 = vst [vmem:[#allocation2 + $0x5c] sm:$0x1] %v770_v56  ;;  %v7066_v62 = vsel %vm11420_vm8, %v10192_v51, %v7065_v5  ;;  %v11725_v63 = vld [vmem:[#allocation4 + $0x120] sm:$0xf]  ;;  %v1466_v45 = vld [vmem:[#allocation2 + $0x24] sm:$0x1]  ;;  %v11743_v25 = vpop.f32.mrf.mxu1 }
  0xcf   :  { %v11727_v2 = vld [vmem:[#allocation4 + $0x124] sm:$0xf]  ;;  %v6911_v3 = vrot.slane %v6910_v58, 4  ;;  %7103 = vst [vmem:[#allocation4 + $0x128] sm:$0xf] %v7066_v62  ;;  %v1503_v6 = vrot.slane %v1466_v45, 5  ;;  %v640_v55 = vmax.f32 %v11183_v26, %v11199_v28  ;;  %v2355_v62 = vpop.f32.mrf.mxu0 }
  0xd0   :  { %v1467_v4 = vld [vmem:[#allocation2 + $0x28] sm:$0xe]  ;;  %6879 = vst [vmem:[#allocation4 + $0x120] sm:$0xf] %v6871_v35  ;;  %v1468_v15 = vld [vmem:[#allocation2 + $0x2c] sm:$0x1] }
  0xd1   :  { %v8843_v16 = vrot.slane %v1467_v4, 9  ;;  %v6916_v41 = vsel %vm11465_vm12, %v6911_v3, %v6915_v44  ;;  %v1504_v19 = vsel %vm11420_vm8, %v8842_v7, %v1503_v6  ;;  %v1507_v20 = vrot.slane %v1468_v15, 5  ;;  %v165_v21 = vld [vmem:[#allocation2 + $0x64] sm:$0x1]  ;;  %v168_v22 = vld [vmem:[#allocation2 + $0x6c] sm:$0x1]  ;;  %4414 = vmatpush.bf16.msrb.mxu1 %v10830_v17 }
  0xd2   :  { %7023 = vst [vmem:[#allocation4 + $0x124] sm:$0xf] %v6916_v41  ;;  %v119_v10 = vsel %vm11406_vm2, 0, %v118_v61  ;;  %v694_v23 = vshrl.u32 %v678_v1, 16  ;;  %v166_v30 = vsel %vm11414_vm6, 0, %v165_v21  ;;  %v169_v48 = vsel %vm11414_vm6, 0, %v168_v22 }
  0xd3   :  { %1535 = vst [vmem:[#allocation4 + $0x68] sm:$0xf] %v1504_v19  ;;  %v697_v0 = vshll.u32 %v678_v1, 16  ;;  %v702_v32 = vshrl.u32 %v11729_v8, 16  ;;  %v1508_v60 = vsel %vm11420_vm8, %v8843_v16, %v1507_v20  ;;  %v772_v42 = vld [vmem:[#allocation2 + $0x60] sm:$0xf]  ;;  %v672_v17 = vmax.f32 %v590_v54, %v640_v55 }
  0xd4   :  { %v2794_v36 = vld [vmem:[#allocation2 + $0x58] sm:$0xf]  ;;  %v11758_v50 = vrot.slane %v694_v23, 7  ;;  %1536 = vst [vmem:[#allocation4 + $0x8c] sm:$0xf] %v1508_v60  ;;  %v705_v58 = vshll.u32 %v11729_v8, 16  ;;  %v11783_v23 = vpop.f32.mrf.mxu3 }
  0xd5   :  { %v2938_v37 = vld [vmem:[#allocation2 + $0x58] sm:$0xe]  ;;  %v2795_v39 = vld [vmem:[#allocation2 + $0x5c] sm:$0x1]  ;;  %v2823_v9 = vshrl.u32 %v2794_v36, 16  ;;  %v2826_v40 = vshll.u32 %v2794_v36, 16 }
  0xd6   :  { %v2776_v38 = vld [vmem:[#allocation2 + $0x58] sm:$0xf]  ;;  %v2939_v43 = vld [vmem:[#allocation2 + $0x5c] sm:$0x1]  ;;  %v2832_v46 = vshll.u32 %v2795_v39, 16  ;;  %v9281_v47 = vrot.slane %v2938_v37, 9  ;;  %v699_v44 = vor.u32 %v697_v0, %v11758_v50  ;;  %v2384_v41 = vpop.f32.mrf.mxu1 }
  0xd7   :  { %v2974_v49 = vrot.slane %v2939_v43, 5  ;;  %2785 = vst [vmem:[#allocation4 + $0x144] sm:$0xf] %v2776_v38  ;;  %v2825_v51 = vrot.slane %v2823_v9, 4  ;;  %v2828_v52 = vrot.slane %v2826_v40, 5  ;;  %v11763_v5 = vrot.slane %v702_v32, 7 }
  0xd8   :  { %2581 = vmatmul.bf16.vlgmr.msra.gmra.mxu0 %v8883_v13  ;;  %120 = vst [vmem:[#allocation2 + $0x68] sm:$0x1] %v119_v10  ;;  %v121_v35 = vld [vmem:[#allocation2 + $0x70] sm:$0x1]  ;;  %v2834_v7 = vrot.slane %v2832_v46, 5  ;;  %v700_v45 = vrot.slane %v11758_v50, 4  ;;  %v773_v3 = vsel %vm11444_vm11, %v699_v44, %v772_v42  ;;  %v11776_v13 = vpop.f32.mrf.mxu2  ;;  %v11785_v26 = vadd.f32 %v2384_v41, %v2355_v62 }
  0xd9   :  { %v2975_v56 = vsel %vm11420_vm8, %v9281_v47, %v2974_v49  ;;  %v2829_v59 = vor.u32 %v2828_v52, %v2825_v51  ;;  %v11766_v61 = vld [vmem:[#allocation5 + $0x30] sm:$0xff]   ;;  %167 = vst [vmem:[#allocation2 + $0x64] sm:$0x1] %v166_v30  ;;  %v708_v1 = vrot.slane %v11763_v5, 4  ;;  %v122_v4 = vsel %vm11406_vm2, 0, %v121_v35  ;;  %v10821_v19 = vld [vmem:[#allocation8 + $0xe8] sm:$0xff] }
  0xda   :  { %3009 = vst [vmem:[#allocation4 + $0x14c] sm:$0xf] %v2975_v56  ;;  %v11774_v6 = vld [vmem:[#allocation5 + $0x70] sm:$0xff]   ;;  %v707_v18 = vor.u32 %v705_v58, %v11763_v5  ;;  %v10829_v20 = vld [vmem:[#allocation8 + $0x128] sm:$0xff]  ;;  %v10820_v21 = vld [vmem:[#allocation8 + $0xe0] sm:$0xff]  ;;  %4386 = vmatpush.bf16.msrb.mxu0 %v10821_v19  ;;  %v11793_v49 = vpack.c.bf16 %v672_v17, %v672_v17 }
  0xdb   :  { %v2830_v8 = vrot.slane %v2829_v59, 4  ;;  %170 = vst [vmem:[#allocation2 + $0x6c] sm:$0x1] %v169_v48  ;;  %v1469_v15 = vld [vmem:[#allocation2 + $0x30] sm:$0xe]  ;;  %v11154_v48 = vunpack.c.l.bf16 %v11766_v61  ;;  %v11170_v0 = vunpack.c.l.bf16 %v11774_v6  ;;  %4415 = vmatpush.bf16.msrb.mxu1 %v10829_v20  ;;  %v10828_v40 = vld [vmem:[#allocation8 + $0x120] sm:$0xff] }
  0xdc   :  { %v11778_v16 = vld [vmem:[#allocation5 + $0xb0] sm:$0xff]   ;;  %774 = vst [vmem:[#allocation2 + $0x60] sm:$0xf] %v773_v3  ;;  %v8844_v22 = vrot.slane %v1469_v15, 9  ;;  %v1471_v30 = vld [vmem:[#allocation2 + $0x38] sm:$0xe] }
  0xdd   :  { %v2835_v24 = vsel %vm11465_vm12, %v2830_v8, %v2834_v7  ;;  %v1470_v28 = vld [vmem:[#allocation2 + $0x34] sm:$0x1]  ;;  %v8918_v36 = vld [vmem:[#allocation4 + $0x68] sm:$0xf]  ;;  %v10665_v37 = vld [vmem:[#allocation4 + $0x88] sm:$0xf0]  ;;  %v11186_v46 = vunpack.c.l.bf16 %v11778_v16  ;;  %v591_v44 = vmax.f32 %v11154_v48, %v11170_v0  ;;  %v11810_v8 = vpop.f32.mrf.mxu0 }
  0xde   :  { %v10760_v10 = vld [vmem:[#allocation4 + $0x140] sm:$0xf0]  ;;  %2929 = vst [vmem:[#allocation4 + $0x148] sm:$0xf] %v2835_v24  ;;  %v1472_v38 = vld [vmem:[#allocation2 + $0x3c] sm:$0x1]  ;;  %4387 = vmatpush.bf16.msrb.mxu0 %v10820_v21 }
  0xdf   :  { %v9307_v32 = vor.u32 %v10760_v10, %v11725_v63  ;;  %v778_v60 = vld [vmem:[#allocation2 + $0x68] sm:$0xf]  ;;  %v1511_v39 = vrot.slane %v1470_v28, 5  ;;  %v8845_v9 = vrot.slane %v1471_v30, 9  ;;  %v124_v43 = vld [vmem:[#allocation2 + $0x78] sm:$0x1]  ;;  %4416 = vmatpush.bf16.msrb.mxu1 %v10828_v40  ;;  %v11820_v10 = vpop.f32.mrf.mxu3  ;;  %v11827_v40 = vpop.f32.mrf.mxu1 }
  0xe0   :  { %v11791_v47 = vld [vmem:[#allocation5 + $0xf0] sm:$0xff]   ;;  %v779_v63 = vsel %vm11444_vm11, %v707_v18, %v778_v60  ;;  %v1515_v51 = vrot.slane %v1472_v38, 5  ;;  %123 = vst [vmem:[#allocation2 + $0x70] sm:$0x1] %v122_v4  ;;  %v775_v54 = vld [vmem:[#allocation2 + $0x64] sm:$0x1]  ;;  %v11817_v41 = vpop.f32.mrf.mxu2 }
  0xe1   :  { %v10761_v50 = vld [vmem:[#allocation4 + $0x148] sm:$0xf0]  ;;  %4305 = vmatmul.bf16.vlgmr.msra.gmra.mxu1 %v9307_v32  ;;  %v11202_v52 = vunpack.c.l.bf16 %v11791_v47  ;;  %780 = vst [vmem:[#allocation2 + $0x68] sm:$0xf] %v779_v63  ;;  %v1512_v55 = vsel %vm11420_vm8, %v8844_v22, %v1511_v39  ;;  %v11801_v56 = vld [vmem:[#allocation2 + $0x74] sm:$0x1]  ;;  %v776_v5 = vsel %vm11406_vm2, %v700_v45, %v775_v54 }
  0xe2   :  { %v9315_v42 = vor.u32 %v10761_v50, %v11721_v57  ;;  %v781_v58 = vld [vmem:[#allocation2 + $0x6c] sm:$0x1]  ;;  %v1516_v35 = vsel %vm11420_vm8, %v8845_v9, %v1515_v51  ;;  %1537 = vst [vmem:[#allocation4 + $0xb0] sm:$0xf] %v1512_v55  ;;  %v8919_v57 = vor.u32 %v10665_v37, %v8918_v36  ;;  %v710_v3 = vshrl.u32 %v11793_v49, 16 }
  0xe3   :  { %777 = vst [vmem:[#allocation2 + $0x64] sm:$0x1] %v776_v5  ;;  %v782_v59 = vsel %vm11406_vm2, %v708_v1, %v781_v58  ;;  %v2796_v7 = vld [vmem:[#allocation2 + $0x60] sm:$0xf]  ;;  %v641_v62 = vmax.f32 %v11186_v46, %v11202_v52  ;;  %v125_v15 = vsel %vm11406_vm2, 0, %v124_v43  ;;  %v172_v17 = vsel %vm11414_vm6, 0, %v11801_v56 }
  0xe4   :  { %4363 = vmatmul.bf16.vlgmr.msra.gmra.mxu3 %v9315_v42  ;;  %783 = vst [vmem:[#allocation2 + $0x6c] sm:$0x1] %v782_v59  ;;  %v2837_v4 = vshrl.u32 %v2796_v7, 16  ;;  %v2840_v45 = vshll.u32 %v2796_v7, 16  ;;  %v2777_v1 = vld [vmem:[#allocation2 + $0x60] sm:$0xf]  ;;  %v11155_v51 = vunpack.c.h.bf16 %v11766_v61 }
  0xe5   :  { %v9308_v18 = vld [vmem:[#allocation4 + $0x144] sm:$0xf0]  ;;  %1538 = vst [vmem:[#allocation4 + $0xd4] sm:$0xf] %v1516_v35  ;;  %v673_v19 = vmax.f32 %v591_v44, %v641_v62  ;;  %v2940_v24 = vld [vmem:[#allocation2 + $0x60] sm:$0xe] }
  0xe6   :  { %v9311_v20 = vor.u32 %v11727_v2, %v9308_v18  ;;  %v2839_v21 = vrot.slane %v2837_v4, 4  ;;  %v2842_v22 = vrot.slane %v2840_v45, 5  ;;  %2786 = vst [vmem:[#allocation4 + $0x168] sm:$0xf] %v2777_v1  ;;  %v11822_v28 = vld [vmem:[#allocation2 + $0x7c] sm:$0x1]  ;;  %v2360_v45 = vpop.f32.mrf.mxu0  ;;  %v11171_v1 = vunpack.c.h.bf16 %v11774_v6 }
  0xe7   :  { %126 = vst [vmem:[#allocation2 + $0x78] sm:$0x1] %v125_v15  ;;  %v681_v30 = vpack.c.bf16 %v673_v19, %v673_v19  ;;  %v11824_v48 = vrot.slane %v710_v3, 7  ;;  %v713_v0 = vshll.u32 %v11793_v49, 16  ;;  %v9282_v39 = vrot.slane %v2940_v24, 9 }
  0xe8   :  { %2586 = vmatmul.bf16.gmra.mxu0 %v8919_v57  ;;  %4334 = vmatmul.bf16.vlgmr.msra.gmra.mxu2 %v9311_v20  ;;  %v2798_v32 = vld [vmem:[#allocation2 + $0x68] sm:$0xf]  ;;  %v2843_v36 = vor.u32 %v2842_v22, %v2839_v21  ;;  %v175_v5 = vsel %vm11414_vm6, 0, %v11822_v28  ;;  %v784_v62 = vld [vmem:[#allocation2 + $0x70] sm:$0xf]  ;;  %v11187_v19 = vunpack.c.h.bf16 %v11778_v16  ;;  %v11844_v24 = vpop.f32.mrf.mxu2 }
  0xe9   :  { %v2942_v37 = vld [vmem:[#allocation2 + $0x68] sm:$0xe]  ;;  %v2851_v38 = vshrl.u32 %v2798_v32, 16  ;;  %v2854_v60 = vshll.u32 %v2798_v32, 16  ;;  %v718_v63 = vshrl.u32 %v681_v30, 16  ;;  %v715_v58 = vor.u32 %v713_v0, %v11824_v48  ;;  %v11846_v0 = vld [vmem:[#allocation5 + $0x38] sm:$0xff]  }
  0xea   :  { %v2778_v2 = vld [vmem:[#allocation2 + $0x68] sm:$0xf]  ;;  %v9283_v9 = vrot.slane %v2942_v37, 9  ;;  %v2797_v43 = vld [vmem:[#allocation2 + $0x64] sm:$0x1]  ;;  %v2844_v46 = vrot.slane %v2843_v36, 4  ;;  %v11203_v32 = vunpack.c.h.bf16 %v11791_v47 }
  0xeb   :  { %2787 = vst [vmem:[#allocation4 + $0x18c] sm:$0xf] %v2778_v2  ;;  %v2941_v50 = vld [vmem:[#allocation2 + $0x64] sm:$0x1]  ;;  %v2799_v52 = vld [vmem:[#allocation2 + $0x6c] sm:$0x1]  ;;  %v11852_v2 = vpop.f32.mrf.mxu3 }
  0xec   :  { %v2846_v49 = vshll.u32 %v2797_v43, 16  ;;  %v2853_v42 = vrot.slane %v2851_v38, 4  ;;  %v2856_v54 = vrot.slane %v2854_v60, 5  ;;  %v2978_v55 = vrot.slane %v2941_v50, 5  ;;  %v2943_v44 = vld [vmem:[#allocation2 + $0x6c] sm:$0x1] }
  0xed   :  { %v2860_v56 = vshll.u32 %v2799_v52, 16  ;;  %v11834_v35 = vrot.slane %v718_v63, 7  ;;  %v2982_v7 = vrot.slane %v2943_v44, 5  ;;  %v9342_v4 = vld [vmem:[#allocation4 + $0x168] sm:$0xf]  ;;  %v721_v18 = vshll.u32 %v681_v30, 16 }
  0xee   :  { %v2848_v57 = vrot.slane %v2846_v49, 5  ;;  %v2857_v59 = vor.u32 %v2856_v54, %v2853_v42  ;;  %v2979_v61 = vsel %vm11420_vm8, %v9282_v39, %v2978_v55  ;;  %v8954_v15 = vld [vmem:[#allocation4 + $0xb0] sm:$0xf]  ;;  %173 = vst [vmem:[#allocation2 + $0x74] sm:$0x1] %v172_v17  ;;  %v716_v38 = vrot.slane %v11824_v48, 4  ;;  %v2389_v48 = vpop.f32.mrf.mxu1 }
  0xef   :  { %v2862_v3 = vrot.slane %v2860_v56, 5  ;;  %3010 = vst [vmem:[#allocation4 + $0x170] sm:$0xf] %v2979_v61  ;;  %v2983_v22 = vsel %vm11420_vm8, %v9283_v9, %v2982_v7  ;;  %v790_v28 = vld [vmem:[#allocation2 + $0x78] sm:$0xf]  ;;  %v723_v16 = vor.u32 %v721_v18, %v11834_v35  ;;  %v785_v17 = vsel %vm11444_vm11, %v715_v58, %v784_v62  ;;  %v10818_v62 = vld [vmem:[#allocation8 + $0xd0] sm:$0xff] }
  0xf0   :  { %v2849_v20 = vsel %vm11465_vm12, %v2844_v46, %v2848_v57  ;;  %v2858_v21 = vrot.slane %v2857_v59, 4  ;;  %v10674_v6 = vld [vmem:[#allocation4 + $0xd0] sm:$0xf0]  ;;  %3011 = vst [vmem:[#allocation4 + $0x194] sm:$0xf] %v2983_v22  ;;  %v11857_v60 = vld [vmem:[#allocation5 + $0x78] sm:$0xff]   ;;  %v592_v50 = vmax.f32 %v11155_v51, %v11171_v1  ;;  %v11158_v55 = vunpack.c.l.bf16 %v11846_v0 }
  0xf1   :  { %2930 = vst [vmem:[#allocation4 + $0x16c] sm:$0xf] %v2849_v20  ;;  %v11859_v47 = vld [vmem:[#allocation5 + $0xb8] sm:$0xff]   ;;  %v791_v9 = vsel %vm11444_vm11, %v723_v16, %v790_v28  ;;  %v1473_v43 = vld [vmem:[#allocation2 + $0x40] sm:$0xe]  ;;  %v8955_v63 = vor.u32 %v10674_v6, %v8954_v15  ;;  %v642_v56 = vmax.f32 %v11187_v19, %v11203_v32  ;;  %v724_v44 = vrot.slane %v11834_v35, 4  ;;  %v11876_v32 = vpop.f32.mrf.mxu0 }
  0xf2   :  { %v10769_v30 = vld [vmem:[#allocation4 + $0x188] sm:$0xf0]  ;;  %v2863_v36 = vsel %vm11465_vm12, %v2858_v21, %v2862_v3  ;;  %v11861_v39 = vld [vmem:[#allocation5 + $0xf8] sm:$0xff]   ;;  %v1474_v46 = vld [vmem:[#allocation2 + $0x44] sm:$0x1]  ;;  %v8846_v54 = vrot.slane %v1473_v43, 9  ;;  %v11867_v58 = vadd.f32 %v2389_v48, %v2360_v45  ;;  %v11174_v51 = vunpack.c.l.bf16 %v11857_v60 }
  0xf3   :  { %v9343_v37 = vor.u32 %v10769_v30, %v9342_v4  ;;  %2931 = vst [vmem:[#allocation4 + $0x190] sm:$0xf] %v2863_v36  ;;  %v10839_v52 = vld [vmem:[#allocation8 + $0x178] sm:$0xff]  ;;  %v10838_v59 = vld [vmem:[#allocation8 + $0x170] sm:$0xff]  ;;  %v1519_v61 = vrot.slane %v1474_v46, 5  ;;  %v11190_v3 = vunpack.c.l.bf16 %v11859_v47  ;;  %v11206_v4 = vunpack.c.l.bf16 %v11861_v39  ;;  %v10837_v20 = vld [vmem:[#allocation8 + $0x168] sm:$0xff] }
  0xf4   :  { %176 = vst [vmem:[#allocation2 + $0x7c] sm:$0x1] %v175_v5  ;;  %v10819_v49 = vld [vmem:[#allocation8 + $0xd8] sm:$0xff]  ;;  %4442 = vmatpush.bf16.msrb.mxu2 %v10839_v52  ;;  %v10846_v5 = vld [vmem:[#allocation8 + $0x1b0] sm:$0xff]  ;;  %v1475_v35 = vld [vmem:[#allocation2 + $0x48] sm:$0xe]  ;;  %v593_v6 = vmax.f32 %v11158_v55, %v11174_v51  ;;  %v674_v16 = vmax.f32 %v592_v50, %v642_v56  ;;  %v11884_v56 = vpop.f32.mrf.mxu3 }
  0xf5   :  { %4310 = vmatmul.bf16.gmra.mxu1 %v9343_v37  ;;  %v10847_v42 = vld [vmem:[#allocation8 + $0x1b8] sm:$0xff]  ;;  %786 = vst [vmem:[#allocation2 + $0x70] sm:$0xf] %v785_v17  ;;  %4388 = vmatpush.bf16.msrb.mxu0 %v10819_v49  ;;  %v787_v15 = vld [vmem:[#allocation2 + $0x74] sm:$0x1]  ;;  %v1520_v18 = vsel %vm11420_vm8, %v8846_v54, %v1519_v61  ;;  %v8847_v21 = vrot.slane %v1475_v35, 9  ;;  %v11878_v17 = vpop.f32.mrf.mxu2 }
  0xf6   :  { %v10827_v57 = vld [vmem:[#allocation8 + $0x118] sm:$0xff]  ;;  %v9350_v7 = vld [vmem:[#allocation4 + $0x170] sm:$0xf]  ;;  %792 = vst [vmem:[#allocation2 + $0x78] sm:$0xf] %v791_v9  ;;  %4471 = vmatpush.bf16.msrb.mxu3 %v10847_v42  ;;  %v788_v19 = vsel %vm11406_vm2, %v716_v38, %v787_v15  ;;  %v10845_v46 = vld [vmem:[#allocation8 + $0x1a8] sm:$0xff]  ;;  %v11886_v15 = vpack.c.bf16 %v674_v16, %v674_v16 }
  0xf7   :  { %4417 = vmatpush.bf16.msrb.mxu1 %v10827_v57  ;;  %v1476_v45 = vld [vmem:[#allocation2 + $0x4c] sm:$0x1]  ;;  %1539 = vst [vmem:[#allocation4 + $0xf8] sm:$0xf] %v1520_v18  ;;  %v10770_v28 = vld [vmem:[#allocation4 + $0x190] sm:$0xf0] }
  0xf8   :  { %v10765_v1 = vld [vmem:[#allocation4 + $0x16c] sm:$0xf]  ;;  %2591 = vmatmul.bf16.gmra.mxu0 %v8955_v63  ;;  %v1523_v22 = vrot.slane %v1476_v45, 5  ;;  %789 = vst [vmem:[#allocation2 + $0x74] sm:$0x1] %v788_v19  ;;  %v9351_v37 = vor.u32 %v10770_v28, %v9350_v7  ;;  %4443 = vmatpush.bf16.msrb.mxu2 %v10838_v59  ;;  %v643_v63 = vmax.f32 %v11190_v3, %v11206_v4  ;;  %v10826_v42 = vld [vmem:[#allocation8 + $0x110] sm:$0xff] }
  0xf9   :  { %v5699_v30 = vld [vmem:[#allocation3 + $0x48] sm:$0xe]  ;;  %4389 = vmatpush.bf16.msrb.mxu0 %v10818_v62  ;;  %v5700_v9 = vld [vmem:[#allocation3 + $0x4c] sm:$0x1]  ;;  %v10836_v3 = vld [vmem:[#allocation8 + $0x160] sm:$0xff] }
  0xfa   :  { %v9344_v36 = vld [vmem:[#allocation4 + $0x18c] sm:$0xf0]  ;;  %v1524_v38 = vsel %vm11420_vm8, %v8847_v21, %v1523_v22  ;;  %v9759_v43 = vrot.slane %v5699_v30, 9  ;;  %4472 = vmatpush.bf16.msrb.mxu3 %v10846_v5  ;;  %v5747_v49 = vrot.slane %v5700_v9, 5  ;;  %v675_v4 = vmax.f32 %v593_v6, %v643_v63  ;;  %v130_v16 = vld [vmem:[#allocation2 + $0x88] sm:$0x1] }
  0xfb   :  { %v9347_v48 = vor.u32 %v10765_v1, %v9344_v36  ;;  %v793_v52 = vld [vmem:[#allocation2 + $0x7c] sm:$0x1]  ;;  %1540 = vst [vmem:[#allocation4 + $0x11c] sm:$0xf] %v1524_v38  ;;  %4368 = vmatmul.bf16.gmra.mxu3 %v9351_v37  ;;  %4418 = vmatpush.bf16.msrb.mxu1 %v10826_v42  ;;  %v127_v1 = vld [vmem:[#allocation2 + $0x80] sm:$0x1] }
  0xfc   :  { %v794_v50 = vsel %vm11406_vm2, %v724_v44, %v793_v52  ;;  %v2800_v54 = vld [vmem:[#allocation2 + $0x70] sm:$0xf]  ;;  %4444 = vmatpush.bf16.msrb.mxu2 %v10837_v20  ;;  %v5748_v30 = vsel %vm11420_vm8, %v9759_v43, %v5747_v49  ;;  %v2365_v43 = vpop.f32.mrf.mxu0  ;;  %v11893_v49 = vpop.f32.mrf.mxu1 }
  0xfd   :  { %v2944_v55 = vld [vmem:[#allocation2 + $0x70] sm:$0xe]  ;;  %4339 = vmatmul.bf16.gmra.mxu2 %v9347_v48  ;;  %795 = vst [vmem:[#allocation2 + $0x7c] sm:$0x1] %v794_v50  ;;  %v2802_v59 = vld [vmem:[#allocation2 + $0x78] sm:$0xf] }
  0xfe   :  { %v2779_v57 = vld [vmem:[#allocation2 + $0x70] sm:$0xf]  ;;  %v2865_v61 = vshrl.u32 %v2800_v54, 16  ;;  %v2868_v51 = vshll.u32 %v2800_v54, 16  ;;  %v2879_v7 = vshrl.u32 %v2802_v59, 16  ;;  %v2882_v5 = vshll.u32 %v2802_v59, 16  ;;  %4473 = vmatpush.bf16.msrb.mxu3 %v10845_v46 }
  0xff   :  { %v2946_v62 = vld [vmem:[#allocation2 + $0x78] sm:$0xe]  ;;  %v9284_v45 = vrot.slane %v2944_v55, 9  ;;  %v2801_v19 = vld [vmem:[#allocation2 + $0x74] sm:$0x1]  ;;  %v683_v46 = vpack.c.bf16 %v675_v4, %v675_v4  ;;  %v726_v48 = vshrl.u32 %v11886_v15, 16 }
 0x100   :  { %v2867_v44 = vrot.slane %v2865_v61, 4  ;;  %v2870_v35 = vrot.slane %v2868_v51, 5  ;;  %v2780_v18 = vld [vmem:[#allocation2 + $0x78] sm:$0xf]  ;;  %v2881_v21 = vrot.slane %v2879_v7, 4  ;;  %v2884_v22 = vrot.slane %v2882_v5, 5  ;;  %4445 = vmatpush.bf16.msrb.mxu2 %v10836_v3  ;;  %v11895_v61 = vpop.f32.mrf.mxu2 }
 0x101   :  { %v2945_v28 = vld [vmem:[#allocation2 + $0x74] sm:$0x1]  ;;  %v2874_v37 = vshll.u32 %v2801_v19, 16  ;;  %2788 = vst [vmem:[#allocation4 + $0x1b0] sm:$0xf] %v2779_v57  ;;  %v9285_v9 = vrot.slane %v2946_v62, 9 }
 0x102   :  { %v2871_v36 = vor.u32 %v2870_v35, %v2867_v44  ;;  %v2986_v20 = vrot.slane %v2945_v28, 5  ;;  %v8990_v6 = vld [vmem:[#allocation4 + $0xf8] sm:$0xf]  ;;  %v2885_v38 = vor.u32 %v2884_v22, %v2881_v21  ;;  %2789 = vst [vmem:[#allocation4 + $0x1d4] sm:$0xf] %v2780_v18  ;;  %v128_v7 = vsel %vm11406_vm2, 0, %v127_v1  ;;  %v11901_v44 = vpop.f32.mrf.mxu3 }
 0x103   :  { %v10683_v63 = vld [vmem:[#allocation4 + $0x118] sm:$0xf0]  ;;  %v2876_v42 = vrot.slane %v2874_v37, 5  ;;  %v177_v54 = vld [vmem:[#allocation2 + $0x84] sm:$0x1]  ;;  %v131_v35 = vsel %vm11406_vm2, 0, %v130_v16 }
 0x104   :  { %v2872_v52 = vrot.slane %v2871_v36, 4  ;;  %v2987_v50 = vsel %vm11420_vm8, %v9284_v45, %v2986_v20  ;;  %5764 = vst [vmem:[#allocation4 + $0x11c] sm:$0xf] %v5748_v30  ;;  %v2803_v55 = vld [vmem:[#allocation2 + $0x7c] sm:$0x1]  ;;  %v2886_v57 = vrot.slane %v2885_v38, 4  ;;  %v8991_v51 = vor.u32 %v10683_v63, %v8990_v6 }
 0x105   :  { %v2947_v59 = vld [vmem:[#allocation2 + $0x7c] sm:$0x1]  ;;  %v2888_v62 = vshll.u32 %v2803_v55, 16  ;;  %3012 = vst [vmem:[#allocation4 + $0x1b8] sm:$0xf] %v2987_v50  ;;  %v734_v45 = vshrl.u32 %v683_v46, 16 }
 0x106   :  { %v2877_v5 = vsel %vm11465_vm12, %v2872_v52, %v2876_v42  ;;  %v2990_v3 = vrot.slane %v2947_v59, 5  ;;  %v180_v4 = vld [vmem:[#allocation2 + $0x8c] sm:$0x1]  ;;  %129 = vst [vmem:[#allocation2 + $0x80] sm:$0x1] %v128_v7  ;;  %v728_v1 = vrot.slane %v726_v48, 7  ;;  %v2367_v48 = vpop.f32.mrf.mxu0  ;;  %v2394_v52 = vpop.f32.mrf.mxu1 }
 0x107   :  { %2932 = vst [vmem:[#allocation4 + $0x1b4] sm:$0xf] %v2877_v5  ;;  %v2890_v18 = vrot.slane %v2888_v62, 5  ;;  %v729_v21 = vshll.u32 %v11886_v15, 16  ;;  %v178_v28 = vsel %vm11414_vm6, 0, %v177_v54  ;;  %v181_v30 = vsel %vm11414_vm6, 0, %v180_v4 }
 0x108   :  { %v2991_v19 = vsel %vm11420_vm8, %v9285_v9, %v2990_v3  ;;  %v9378_v22 = vld [vmem:[#allocation4 + $0x1b0] sm:$0xf]  ;;  %2596 = vmatmul.bf16.gmra.mxu0 %v8991_v51  ;;  %132 = vst [vmem:[#allocation2 + $0x88] sm:$0x1] %v131_v35  ;;  %v736_v20 = vrot.slane %v734_v45, 7  ;;  %v737_v6 = vshll.u32 %v683_v46, 16  ;;  %v11916_v59 = vpop.f32.mrf.mxu2 }
 0x109   :  { %3013 = vst [vmem:[#allocation4 + $0x1dc] sm:$0xf] %v2991_v19  ;;  %v2891_v36 = vsel %vm11465_vm12, %v2886_v57, %v2890_v18  ;;  %v10778_v37 = vld [vmem:[#allocation4 + $0x1d0] sm:$0xf0]  ;;  %v731_v15 = vor.u32 %v729_v21, %v728_v1  ;;  %v10844_v38 = vld [vmem:[#allocation8 + $0x1a0] sm:$0xff]  ;;  %v10835_v42 = vld [vmem:[#allocation8 + $0x158] sm:$0xff]  ;;  %v11914_v57 = vadd.f32 %v2394_v52, %v2365_v43 }
 0x10a   :  { %2933 = vst [vmem:[#allocation4 + $0x1d8] sm:$0xf] %v2891_v36  ;;  %v9379_v16 = vor.u32 %v10778_v37, %v9378_v22  ;;  %v739_v63 = vor.u32 %v737_v6, %v736_v20  ;;  %v10817_v50 = vld [vmem:[#allocation8 + $0xc8] sm:$0xff]  ;;  %4474 = vmatpush.bf16.msrb.mxu3 %v10844_v38  ;;  %v732_v7 = vrot.slane %v728_v1, 4  ;;  %4446 = vmatpush.bf16.msrb.mxu2 %v10835_v42  ;;  %v10843_v62 = vld [vmem:[#allocation8 + $0x198] sm:$0xff]  ;;  %v10834_v3 = vld [vmem:[#allocation8 + $0x150] sm:$0xff]  ;;  %v11920_v18 = vpop.f32.mrf.mxu3 }
 0x10b   :  { %179 = vst [vmem:[#allocation2 + $0x84] sm:$0x1] %v178_v28  ;;  %v10825_v46 = vld [vmem:[#allocation8 + $0x108] sm:$0xff]  ;;  %4390 = vmatpush.bf16.msrb.mxu0 %v10817_v50  ;;  %v740_v35 = vrot.slane %v736_v20, 4  ;;  %v10816_v43 = vld [vmem:[#allocation8 + $0xc0] sm:$0xff]  ;;  %v10842_v1 = vld [vmem:[#allocation8 + $0x190] sm:$0xff] }
 0x10c   :  { %4315 = vmatmul.bf16.gmra.mxu1 %v9379_v16  ;;  %182 = vst [vmem:[#allocation2 + $0x8c] sm:$0x1] %v181_v30  ;;  %v9386_v9 = vld [vmem:[#allocation4 + $0x1b8] sm:$0xf]  ;;  %v10833_v36 = vld [vmem:[#allocation8 + $0x148] sm:$0xff]  ;;  %v10824_v37 = vld [vmem:[#allocation8 + $0x100] sm:$0xff] }
 0x10d   :  { %v796_v55 = vld [vmem:[#allocation2 + $0x80] sm:$0xf]  ;;  %13228 = vst [vmem:[#allocation15_spill] sm:$0xff] %v11914_v57  ;;  %4419 = vmatpush.bf16.msrb.mxu1 %v10825_v46  ;;  %v3016_v22 = vld [vmem:[#allocation2 + $0x58] sm:$0xf]  ;;  %v10841_v42 = vld [vmem:[#allocation8 + $0x188] sm:$0xff] }
 0x10e   :  { %v10774_v54 = vld [vmem:[#allocation4 + $0x1b4] sm:$0xf]  ;;  %13229 = vst [vmem:[#allocation16_spill] sm:$0xff] %v11916_v59  ;;  %v797_v5 = vsel %vm11444_vm11, %v731_v15, %v796_v55  ;;  %4475 = vmatpush.bf16.msrb.mxu3 %v10843_v62  ;;  %4447 = vmatpush.bf16.msrb.mxu2 %v10834_v3  ;;  %v3017_v16 = vld [vmem:[#allocation2 + $0x60] sm:$0xf]  ;;  %v2396_v52 = vpop.f32.mrf.mxu1 }
 0x10f   :  { %798 = vst [vmem:[#allocation2 + $0x80] sm:$0xf] %v797_v5  ;;  %v802_v45 = vld [vmem:[#allocation2 + $0x88] sm:$0xf]  ;;  %4391 = vmatpush.bf16.msrb.mxu0 %v10816_v43  ;;  %v3176_v38 = vld [vmem:[#allocation2 + $0x58] sm:$0xe] }
 0x110   :  { %v10779_v51 = vld [vmem:[#allocation4 + $0x1d8] sm:$0xf0]  ;;  %13230 = vst [vmem:[#allocation17_spill] sm:$0xff] %v11920_v18  ;;  %v803_v21 = vsel %vm11444_vm11, %v739_v63, %v802_v45  ;;  %v11928_v63 = vpop.f32.mrf.mxu0  ;;  %v10832_v50 = vld [vmem:[#allocation8 + $0x140] sm:$0xff]  ;;  %v9288_v46 = vrot.slane %v3176_v38, 9  ;;  %v2425_v3 = vpop.f32.mrf.mxu2 }
 0x111   :  { %v9387_v4 = vor.u32 %v10779_v51, %v9386_v9  ;;  %v9380_v19 = vld [vmem:[#allocation4 + $0x1d4] sm:$0xf0]  ;;  %804 = vst [vmem:[#allocation2 + $0x88] sm:$0xf] %v803_v21  ;;  %v3177_v9 = vld [vmem:[#allocation2 + $0x5c] sm:$0x1]  ;;  %4420 = vmatpush.bf16.msrb.mxu1 %v10824_v37 }
 0x112   :  { %v9383_v28 = vor.u32 %v10774_v54, %v9380_v19  ;;  %v799_v30 = vld [vmem:[#allocation2 + $0x84] sm:$0x1]  ;;  %3024 = vst [vmem:[#allocation4 + $0x12c] sm:$0xf] %v3016_v22  ;;  %v2397_v54 = vadd.f32 %v2396_v52, %v2367_v48  ;;  %v11930_v55 = vld [vmem:[#allocation2 + $0x60] sm:$0xe]  ;;  %4476 = vmatpush.bf16.msrb.mxu3 %v10842_v1  ;;  %4448 = vmatpush.bf16.msrb.mxu2 %v10833_v36 }
 0x113   :  { %4373 = vmatmul.bf16.gmra.mxu3 %v9387_v4  ;;  %v800_v20 = vsel %vm11406_vm2, %v732_v7, %v799_v30  ;;  %v805_v6 = vld [vmem:[#allocation2 + $0x8c] sm:$0x1]  ;;  %3025 = vst [vmem:[#allocation4 + $0x150] sm:$0xf] %v3017_v16  ;;  %v3210_v51 = vrot.slane %v3177_v9, 5  ;;  %v10840_v48 = vld [vmem:[#allocation8 + $0x180] sm:$0xff] }
 0x114   :  { %4344 = vmatmul.bf16.gmra.mxu2 %v9383_v28  ;;  %801 = vst [vmem:[#allocation2 + $0x84] sm:$0x1] %v800_v20  ;;  %v806_v15 = vsel %vm11406_vm2, %v740_v35, %v805_v6  ;;  %v2426_v43 = vadd.f32 %v2425_v3, %v2397_v54  ;;  %v2454_v6 = vpop.f32.mrf.mxu3  ;;  %v3179_v36 = vld [vmem:[#allocation2 + $0x64] sm:$0x1]  ;;  %v9289_v52 = vrot.slane %v11930_v55, 9 }
 0x115   :  { %807 = vst [vmem:[#allocation2 + $0x8c] sm:$0x1] %v806_v15  ;;  %v3211_v9 = vsel %vm11420_vm8, %v9288_v46, %v3210_v51  ;;  %v10855_v51 = vld [vmem:[#allocation8 + $0x1f8] sm:$0xff] }
 0x116   :  { %v2804_v7 = vld [vmem:[#allocation2 + $0x80] sm:$0xf]  ;;  %v11932_v38 = vadd.f32 %v2454_v6, %v2426_v43  ;;  %4477 = vmatpush.bf16.msrb.mxu3 %v10841_v42  ;;  %4449 = vmatpush.bf16.msrb.mxu2 %v10832_v50  ;;  %v11939_v43 = vpop.f32.mrf.mxu1  ;;  %3248 = vst [vmem:[#allocation4 + $0x134] sm:$0xf] %v3211_v9 }
 0x117   :  { %v2948_v5 = vld [vmem:[#allocation2 + $0x80] sm:$0xe]  ;;  %v2893_v4 = vshrl.u32 %v2804_v7, 16  ;;  %v2896_v35 = vshll.u32 %v2804_v7, 16  ;;  %4500 = vmatpush.bf16.msra.mxu0 %v10855_v51 }
 0x118   :  { %v2781_v62 = vld [vmem:[#allocation2 + $0x80] sm:$0xf]  ;;  %v9286_v45 = vrot.slane %v2948_v5, 9  ;;  %v2806_v19 = vld [vmem:[#allocation2 + $0x88] sm:$0xf]  ;;  %13231 = vst [vmem:[#allocation18_spill] sm:$0xff] %v11932_v38 }
 0x119   :  { %2790 = vst [vmem:[#allocation4 + $0x1f8] sm:$0xf] %v2781_v62  ;;  %v2950_v21 = vld [vmem:[#allocation2 + $0x88] sm:$0xe]  ;;  %v2895_v28 = vrot.slane %v2893_v4, 4  ;;  %v2898_v30 = vrot.slane %v2896_v35, 5 }
 0x11a   :  { %v2782_v22 = vld [vmem:[#allocation2 + $0x88] sm:$0xf]  ;;  %v2907_v37 = vshrl.u32 %v2806_v19, 16  ;;  %v2910_v20 = vshll.u32 %v2806_v19, 16  ;;  %v9287_v1 = vrot.slane %v2950_v21, 9  ;;  %v11937_v21 = vpop.f32.mrf.mxu0  ;;  %4478 = vmatpush.bf16.msrb.mxu3 %v10840_v48 }
 0x11b   :  { %2791 = vst [vmem:[#allocation4 + $0x21c] sm:$0xf] %v2782_v22  ;;  %v2805_v16 = vld [vmem:[#allocation2 + $0x84] sm:$0x1]  ;;  %v2899_v7 = vor.u32 %v2898_v30, %v2895_v28  ;;  %v10757_v22 = vld [vmem:[#allocation4 + $0x12c] sm:$0xf] }
 0x11c   :  { %v2949_v15 = vld [vmem:[#allocation2 + $0x84] sm:$0x1]  ;;  %v2807_v54 = vld [vmem:[#allocation2 + $0x8c] sm:$0x1]  ;;  %v2902_v5 = vshll.u32 %v2805_v16, 16  ;;  %v2909_v62 = vrot.slane %v2907_v37, 4 }
 0x11d   :  { %v2912_v3 = vrot.slane %v2910_v20, 5  ;;  %v2916_v4 = vshll.u32 %v2807_v54, 16  ;;  %v2951_v35 = vld [vmem:[#allocation2 + $0x8c] sm:$0x1]  ;;  %v2994_v19 = vrot.slane %v2949_v15, 5  ;;  %v2900_v42 = vrot.slane %v2899_v7, 4 }
 0x11e   :  { %v2904_v50 = vrot.slane %v2902_v5, 5  ;;  %v2998_v38 = vrot.slane %v2951_v35, 5  ;;  %v9316_v46 = vld [vmem:[#allocation4 + $0x14c] sm:$0xf0]  ;;  %v10863_v20 = vld [vmem:[#allocation8 + $0x238] sm:$0xff]  ;;  %v3214_v7 = vrot.slane %v3179_v36, 5 }
 0x11f   :  { %v2913_v6 = vor.u32 %v2912_v3, %v2909_v62  ;;  %v2918_v55 = vrot.slane %v2916_v4, 5  ;;  %v2995_v28 = vsel %vm11420_vm8, %v9286_v45, %v2994_v19  ;;  %v9319_v37 = vor.u32 %v10757_v22, %v9316_v46  ;;  %v3257_v5 = vld [vmem:[#allocation2 + $0x60] sm:$0xf]  ;;  %v3258_v45 = vld [vmem:[#allocation2 + $0x68] sm:$0xf]  ;;  %4529 = vmatpush.bf16.msra.mxu1 %v10863_v20  ;;  %v11951_v22 = vpop.f32.mrf.mxu2  ;;  %v10862_v20 = vld [vmem:[#allocation8 + $0x230] sm:$0xff] }
 0x120   :  { %v9414_v30 = vld [vmem:[#allocation4 + $0x1f8] sm:$0xf]  ;;  %v2905_v16 = vsel %vm11465_vm12, %v2900_v42, %v2904_v50  ;;  %v2999_v54 = vsel %vm11420_vm8, %v9287_v1, %v2998_v38  ;;  %3014 = vst [vmem:[#allocation4 + $0x200] sm:$0xf] %v2995_v28  ;;  %v3215_v4 = vsel %vm11420_vm8, %v9289_v52, %v3214_v7  ;;  %v3033_v35 = vld [vmem:[#allocation2 + $0x5c] sm:$0x1]  ;;  %v11953_v42 = vpop.f32.mrf.mxu3 }
 0x121   :  { %v2914_v15 = vrot.slane %v2913_v6, 4  ;;  %2934 = vst [vmem:[#allocation4 + $0x1fc] sm:$0xf] %v2905_v16  ;;  %4392 = vmatmul.bf16.vlgmr.msrb.gmra.mxu0 %v9319_v37  ;;  %v3032_v3 = vld [vmem:[#allocation2 + $0x58] sm:$0xf]  ;;  %v3058_v50 = vshll.u32 %v3033_v35, 16 }
 0x122   :  { %v10787_v62 = vld [vmem:[#allocation4 + $0x218] sm:$0xf0]  ;;  %3015 = vst [vmem:[#allocation4 + $0x224] sm:$0xf] %v2999_v54  ;;  %v3034_v1 = vld [vmem:[#allocation2 + $0x60] sm:$0xf]  ;;  %v11955_v52 = vpop.f32.mrf.mxu0 }
 0x123   :  { %v2919_v48 = vsel %vm11465_vm12, %v2914_v15, %v2918_v55  ;;  %v9415_v9 = vor.u32 %v10787_v62, %v9414_v30  ;;  %v3035_v38 = vld [vmem:[#allocation2 + $0x64] sm:$0x1]  ;;  %v3049_v36 = vshrl.u32 %v3032_v3, 16  ;;  %v3052_v19 = vshll.u32 %v3032_v3, 16  ;;  %3249 = vst [vmem:[#allocation4 + $0x158] sm:$0xf] %v3215_v4  ;;  %v11957_v30 = vpop.f32.mrf.mxu1  ;;  %4530 = vmatpush.bf16.msra.mxu1 %v10862_v20 }
 0x124   :  { %2935 = vst [vmem:[#allocation4 + $0x220] sm:$0xf] %v2919_v48  ;;  %v3063_v6 = vshrl.u32 %v3034_v1, 16  ;;  %v3066_v46 = vshll.u32 %v3034_v1, 16  ;;  %v3072_v51 = vshll.u32 %v3035_v38, 16  ;;  %v10854_v37 = vld [vmem:[#allocation8 + $0x1f0] sm:$0xff]  ;;  %v11159_v38 = vunpack.c.h.bf16 %v11846_v0 }
 0x125   :  { %4320 = vmatmul.bf16.gmra.mxu1 %v9415_v9  ;;  %3265 = vst [vmem:[#allocation4 + $0x138] sm:$0xf] %v3257_v5  ;;  %v3051_v55 = vrot.slane %v3049_v36, 4  ;;  %v3054_v28 = vrot.slane %v3052_v19, 5  ;;  %v3060_v7 = vrot.slane %v3058_v50, 5  ;;  %4501 = vmatpush.bf16.msra.mxu0 %v10854_v37  ;;  %v11175_v50 = vunpack.c.h.bf16 %v11857_v60 }
 0x126   :  { %3266 = vst [vmem:[#allocation4 + $0x15c] sm:$0xf] %v3258_v45  ;;  %v3065_v16 = vrot.slane %v3063_v6, 4  ;;  %v3068_v62 = vrot.slane %v3066_v46, 5  ;;  %v3018_v3 = vld [vmem:[#allocation2 + $0x68] sm:$0xf]  ;;  %v11191_v46 = vunpack.c.h.bf16 %v11859_v47 }
 0x127   :  { %v9422_v15 = vld [vmem:[#allocation4 + $0x200] sm:$0xf]  ;;  %v3055_v54 = vor.u32 %v3054_v28, %v3051_v55  ;;  %v3019_v9 = vld [vmem:[#allocation2 + $0x70] sm:$0xf]  ;;  %3026 = vst [vmem:[#allocation4 + $0x174] sm:$0xf] %v3018_v3  ;;  %v11207_v55 = vunpack.c.h.bf16 %v11861_v39 }
 0x128   :  { %v10783_v48 = vld [vmem:[#allocation4 + $0x1fc] sm:$0xf]  ;;  %v3069_v35 = vor.u32 %v3068_v62, %v3065_v16  ;;  %v3074_v1 = vrot.slane %v3072_v51, 5  ;;  %3027 = vst [vmem:[#allocation4 + $0x198] sm:$0xf] %v3019_v9  ;;  %v10853_v3 = vld [vmem:[#allocation8 + $0x1e8] sm:$0xff] }
 0x129   :  { %v10788_v5 = vld [vmem:[#allocation4 + $0x220] sm:$0xf0]  ;;  %v3056_v4 = vrot.slane %v3055_v54, 4  ;;  %v3180_v19 = vld [vmem:[#allocation2 + $0x68] sm:$0xe]  ;;  %4502 = vmatpush.bf16.msra.mxu0 %v10853_v3 }
 0x12a   :  { %v9423_v45 = vor.u32 %v10788_v5, %v9422_v15  ;;  %v3181_v6 = vld [vmem:[#allocation2 + $0x6c] sm:$0x1]  ;;  %v3070_v20 = vrot.slane %v3069_v35, 4  ;;  %v3182_v16 = vld [vmem:[#allocation2 + $0x70] sm:$0xe]  ;;  %v9290_v51 = vrot.slane %v3180_v19, 9  ;;  %v11967_v54 = vpop.f32.mrf.mxu0  ;;  %v644_v19 = vmax.f32 %v11191_v46, %v11207_v55 }
 0x12b   :  { %v9416_v36 = vld [vmem:[#allocation4 + $0x21c] sm:$0xf0]  ;;  %v3061_v37 = vsel %vm11465_vm12, %v3056_v4, %v3060_v7  ;;  %v3183_v0 = vld [vmem:[#allocation2 + $0x74] sm:$0x1]  ;;  %13232 = vst [vmem:[#allocation19_spill] sm:$0xff] %v11967_v54  ;;  %v3218_v60 = vrot.slane %v3181_v6, 5  ;;  %v11969_v39 = vpop.f32.mrf.mxu1  ;;  %v11971_v7 = vpop.f32.mrf.mxu2  ;;  %v594_v4 = vmax.f32 %v11159_v38, %v11175_v50 }
 0x12c   :  { %v9419_v28 = vor.u32 %v10783_v48, %v9416_v36  ;;  %4378 = vmatmul.bf16.gmra.mxu3 %v9423_v45  ;;  %3168 = vst [vmem:[#allocation4 + $0x130] sm:$0xf] %v3061_v37  ;;  %v3075_v15 = vsel %vm11465_vm12, %v3070_v20, %v3074_v1  ;;  %v9291_v47 = vrot.slane %v3182_v16, 9  ;;  %v3222_v62 = vrot.slane %v3183_v0, 5  ;;  %v11973_v48 = vpop.f32.mrf.mxu3  ;;  %v3259_v9 = vld [vmem:[#allocation2 + $0x70] sm:$0xf] }
 0x12d   :  { %13233 = vst [vmem:[#allocation20_spill] sm:$0xff] %v11969_v39  ;;  %v3260_v5 = vld [vmem:[#allocation2 + $0x78] sm:$0xf]  ;;  %v3219_v1 = vsel %vm11420_vm8, %v9290_v51, %v3218_v60  ;;  %v3036_v45 = vld [vmem:[#allocation2 + $0x68] sm:$0xf]  ;;  %v676_v46 = vmax.f32 %v594_v4, %v644_v19 }
 0x12e   :  { %4349 = vmatmul.bf16.gmra.mxu2 %v9419_v28  ;;  %3169 = vst [vmem:[#allocation4 + $0x154] sm:$0xf] %v3075_v15  ;;  %v10766_v35 = vld [vmem:[#allocation4 + $0x174] sm:$0xf]  ;;  %v3223_v36 = vsel %vm11420_vm8, %v9291_v47, %v3222_v62  ;;  %v3037_v28 = vld [vmem:[#allocation2 + $0x6c] sm:$0x1] }
 0x12f   :  { %3267 = vst [vmem:[#allocation4 + $0x180] sm:$0xf] %v3259_v9  ;;  %v9352_v6 = vld [vmem:[#allocation4 + $0x194] sm:$0xf0]  ;;  %v3038_v20 = vld [vmem:[#allocation2 + $0x70] sm:$0xf] }
 0x130   :  { %3250 = vst [vmem:[#allocation4 + $0x17c] sm:$0xf] %v3219_v1  ;;  %v9355_v37 = vor.u32 %v10766_v35, %v9352_v6  ;;  %v3039_v16 = vld [vmem:[#allocation2 + $0x74] sm:$0x1]  ;;  %v3077_v38 = vshrl.u32 %v3036_v45, 16  ;;  %v3080_v50 = vshll.u32 %v3036_v45, 16 }
 0x131   :  { %3251 = vst [vmem:[#allocation4 + $0x1a0] sm:$0xf] %v3223_v36  ;;  %v3086_v0 = vshll.u32 %v3037_v28, 16  ;;  %v10861_v15 = vld [vmem:[#allocation8 + $0x228] sm:$0xff]  ;;  %v9330_v51 = vld [vmem:[#allocation4 + $0x138] sm:$0xf] }
 0x132   :  { %3268 = vst [vmem:[#allocation4 + $0x1a4] sm:$0xf] %v3260_v5  ;;  %4397 = vmatmul.bf16.gmra.mxu0 %v9355_v37  ;;  %v3091_v47 = vshrl.u32 %v3038_v20, 16  ;;  %v3094_v62 = vshll.u32 %v3038_v20, 16  ;;  %v3100_v3 = vshll.u32 %v3039_v16, 16  ;;  %v10852_v9 = vld [vmem:[#allocation8 + $0x1e0] sm:$0xff]  ;;  %4531 = vmatpush.bf16.msra.mxu1 %v10861_v15  ;;  %v11979_v28 = vpop.f32.mrf.mxu0 }
 0x133   :  { %v9322_v60 = vld [vmem:[#allocation4 + $0x130] sm:$0xf]  ;;  %v10758_v55 = vld [vmem:[#allocation4 + $0x134] sm:$0xf]  ;;  %v9324_v1 = vld [vmem:[#allocation4 + $0x154] sm:$0xf0]  ;;  %v11981_v57 = vpop.f32.mrf.mxu1  ;;  %4503 = vmatpush.bf16.msra.mxu0 %v10852_v9 }
 0x134   :  { %v10763_v18 = vld [vmem:[#allocation4 + $0x158] sm:$0xf0]  ;;  %v3079_v35 = vrot.slane %v3077_v38, 4  ;;  %v3082_v36 = vrot.slane %v3080_v50, 5  ;;  %v3020_v6 = vld [vmem:[#allocation2 + $0x78] sm:$0xf]  ;;  %v11983_v50 = vpack.c.bf16 %v676_v46, %v676_v46 }
 0x135   :  { %v10762_v5 = vld [vmem:[#allocation4 + $0x150] sm:$0xf0]  ;;  %v3093_v59 = vrot.slane %v3091_v47, 4  ;;  %v3096_v45 = vrot.slane %v3094_v62, 5  ;;  %13234 = vst [vmem:[#allocation21_spill] sm:$0xff] %v11979_v28  ;;  %v10860_v37 = vld [vmem:[#allocation8 + $0x220] sm:$0xff]  ;;  %v9331_v15 = vor.u32 %v10763_v18, %v9330_v51  ;;  %v11985_v47 = vpop.f32.mrf.mxu2  ;;  %v11987_v62 = vpop.f32.mrf.mxu3 }
 0x136   :  { %13235 = vst [vmem:[#allocation22_spill] sm:$0xff] %v11981_v57  ;;  %v9323_v20 = vor.u32 %v10762_v5, %v9322_v60  ;;  %v3083_v16 = vor.u32 %v3082_v36, %v3079_v35  ;;  %v3088_v39 = vrot.slane %v3086_v0, 5  ;;  %v3021_v4 = vld [vmem:[#allocation2 + $0x80] sm:$0xf]  ;;  %v3102_v54 = vrot.slane %v3100_v3, 5  ;;  %4532 = vmatpush.bf16.msra.mxu1 %v10860_v37 }
 0x137   :  { %3028 = vst [vmem:[#allocation4 + $0x1bc] sm:$0xf] %v3020_v6  ;;  %v3097_v19 = vor.u32 %v3096_v45, %v3093_v59  ;;  %v3184_v38 = vld [vmem:[#allocation2 + $0x78] sm:$0xe]  ;;  %v3185_v9 = vld [vmem:[#allocation2 + $0x7c] sm:$0x1]  ;;  %v9327_v60 = vor.u32 %v10758_v55, %v9324_v1 }
 0x138   :  { %3029 = vst [vmem:[#allocation4 + $0x1e0] sm:$0xf] %v3021_v4  ;;  %4421 = vmatmul.bf16.vlgmr.msrb.gmra.mxu1 %v9323_v20  ;;  %v3084_v28 = vrot.slane %v3083_v16, 4  ;;  %v9292_v57 = vrot.slane %v3184_v38, 9  ;;  %v3186_v0 = vld [vmem:[#allocation2 + $0x80] sm:$0xe] }
 0x139   :  { %v3098_v35 = vrot.slane %v3097_v19, 4  ;;  %v3226_v36 = vrot.slane %v3185_v9, 5  ;;  %v3187_v3 = vld [vmem:[#allocation2 + $0x84] sm:$0x1]  ;;  %v9293_v46 = vrot.slane %v3186_v0, 9  ;;  %v742_v55 = vshrl.u32 %v11983_v50, 16 }
 0x13a   :  { %v3089_v59 = vsel %vm11465_vm12, %v3084_v28, %v3088_v39  ;;  %v3261_v6 = vld [vmem:[#allocation2 + $0x80] sm:$0xf]  ;;  %v3230_v5 = vrot.slane %v3187_v3, 5  ;;  %v3262_v45 = vld [vmem:[#allocation2 + $0x88] sm:$0xf]  ;;  %v11996_v28 = vpop.f32.mrf.mxu0  ;;  %v10851_v16 = vld [vmem:[#allocation8 + $0x1d8] sm:$0xff] }
 0x13b   :  { %v3103_v18 = vsel %vm11465_vm12, %v3098_v35, %v3102_v54  ;;  %3170 = vst [vmem:[#allocation4 + $0x178] sm:$0xf] %v3089_v59  ;;  %v3227_v51 = vsel %vm11420_vm8, %v9292_v57, %v3226_v36  ;;  %v3040_v1 = vld [vmem:[#allocation2 + $0x78] sm:$0xf]  ;;  %v3041_v37 = vld [vmem:[#allocation2 + $0x7c] sm:$0x1]  ;;  %v12000_v54 = vpop.f32.mrf.mxu1  ;;  %4504 = vmatpush.bf16.msra.mxu0 %v10851_v16 }
 0x13c   :  { %4479 = vmatmul.bf16.vlgmr.msrb.gmra.mxu3 %v9331_v15  ;;  %3171 = vst [vmem:[#allocation4 + $0x19c] sm:$0xf] %v3103_v18  ;;  %v3231_v20 = vsel %vm11420_vm8, %v9293_v46, %v3230_v5  ;;  %v3105_v57 = vshrl.u32 %v3040_v1, 16  ;;  %v3042_v19 = vld [vmem:[#allocation2 + $0x80] sm:$0xf]  ;;  %v3114_v35 = vshll.u32 %v3041_v37, 16  ;;  %v2382_v5 = vadd.f32 %v11743_v25, %v11733_v14 }
 0x13d   :  { %13236 = vst [vmem:[#allocation23_spill] sm:$0xff] %v11996_v28  ;;  %v3043_v15 = vld [vmem:[#allocation2 + $0x84] sm:$0x1]  ;;  %v3119_v0 = vshrl.u32 %v3042_v19, 16  ;;  %v3122_v36 = vshll.u32 %v3042_v19, 16  ;;  %v10859_v59 = vld [vmem:[#allocation8 + $0x218] sm:$0xff]  ;;  %v12004_v28 = vpop.f32.mrf.mxu2  ;;  %v2409_v37 = vadd.f32 %v11738_v11, %v11711_v33 }
 0x13e   :  { %4450 = vmatmul.bf16.vlgmr.msrb.gmra.mxu2 %v9327_v60  ;;  %v10775_v39 = vld [vmem:[#allocation4 + $0x1bc] sm:$0xf]  ;;  %3252 = vst [vmem:[#allocation4 + $0x1c4] sm:$0xf] %v3227_v51  ;;  %v3107_v9 = vrot.slane %v3105_v57, 4  ;;  %v3108_v60 = vshll.u32 %v3040_v1, 16  ;;  %4533 = vmatpush.bf16.msra.mxu1 %v10859_v59  ;;  %v2411_v11 = vadd.f32 %v11776_v13, %v2382_v5 }
 0x13f   :  { %13237 = vst [vmem:[#allocation24_spill] sm:$0xff] %v12000_v54  ;;  %v9388_v4 = vld [vmem:[#allocation4 + $0x1dc] sm:$0xf0]  ;;  %v3128_v46 = vshll.u32 %v3043_v15, 16  ;;  %v10850_v18 = vld [vmem:[#allocation8 + $0x1d0] sm:$0xff]  ;;  %v3124_v16 = vrot.slane %v3122_v36, 5 }
 0x140   :  { %3253 = vst [vmem:[#allocation4 + $0x1e8] sm:$0xf] %v3231_v20  ;;  %v9391_v38 = vor.u32 %v10775_v39, %v9388_v4  ;;  %v3110_v3 = vrot.slane %v3108_v60, 5  ;;  %v133_v51 = vld [vmem:[#allocation2 + $0x90] sm:$0x1]  ;;  %v3121_v39 = vrot.slane %v3119_v0, 4  ;;  %4505 = vmatpush.bf16.msra.mxu0 %v10850_v18 }
 0x141   :  { %3269 = vst [vmem:[#allocation4 + $0x1c8] sm:$0xf] %v3261_v6  ;;  %v12006_v6 = vpop.f32.mrf.mxu3  ;;  %v10858_v1 = vld [vmem:[#allocation8 + $0x210] sm:$0xff]  ;;  %v9366_v57 = vld [vmem:[#allocation4 + $0x180] sm:$0xf]  ;;  %v3116_v15 = vrot.slane %v3114_v35, 5 }
 0x142   :  { %3270 = vst [vmem:[#allocation4 + $0x1ec] sm:$0xf] %v3262_v45  ;;  %v9358_v20 = vld [vmem:[#allocation4 + $0x178] sm:$0xf]  ;;  %v12008_v45 = vrot.slane %v742_v55, 7  ;;  %4402 = vmatmul.bf16.gmra.mxu0 %v9391_v38  ;;  %v3111_v19 = vor.u32 %v3110_v3, %v3107_v9  ;;  %v134_v14 = vsel %vm11406_vm2, 0, %v133_v51  ;;  %v3125_v0 = vor.u32 %v3124_v16, %v3121_v39  ;;  %4534 = vmatpush.bf16.msra.mxu1 %v10858_v1 }
 0x143   :  { %13238 = vst [vmem:[#allocation25_spill] sm:$0xff] %v12006_v6  ;;  %v10771_v4 = vld [vmem:[#allocation4 + $0x198] sm:$0xf0]  ;;  %v3022_v25 = vld [vmem:[#allocation2 + $0x88] sm:$0xf]  ;;  %v3130_v36 = vrot.slane %v3128_v46, 5  ;;  %v2438_v3 = vadd.f32 %v11749_v31, %v2409_v37  ;;  %v12021_v18 = vpop.f32.mrf.mxu1  ;;  %v2440_v37 = vadd.f32 %v11783_v23, %v2411_v11 }
 0x144   :  { %v10767_v60 = vld [vmem:[#allocation4 + $0x17c] sm:$0xf]  ;;  %v9359_v6 = vor.u32 %v10771_v4, %v9358_v20  ;;  %135 = vst [vmem:[#allocation2 + $0x90] sm:$0x1] %v134_v14  ;;  %v745_v55 = vshll.u32 %v11983_v50, 16  ;;  %v3112_v54 = vrot.slane %v3111_v19, 4 }
 0x145   :  { %v10772_v59 = vld [vmem:[#allocation4 + $0x1a0] sm:$0xf0]  ;;  %v12015_v33 = vpop.f32.mrf.mxu0  ;;  %3030 = vst [vmem:[#allocation4 + $0x204] sm:$0xf] %v3022_v25  ;;  %v9360_v38 = vld [vmem:[#allocation4 + $0x19c] sm:$0xf0]  ;;  %v2467_v4 = vadd.f32 %v11928_v63, %v2438_v3  ;;  %v12036_v23 = vpop.f32.mrf.mxu2 }
 0x146   :  { %v3126_v9 = vrot.slane %v3125_v0, 4  ;;  %v183_v35 = vld [vmem:[#allocation2 + $0x94] sm:$0x1]  ;;  %v3117_v46 = vsel %vm11465_vm12, %v3112_v54, %v3116_v15  ;;  %v3188_v51 = vld [vmem:[#allocation2 + $0x88] sm:$0xe]  ;;  %v9367_v20 = vor.u32 %v10772_v59, %v9366_v57  ;;  %v747_v5 = vor.u32 %v745_v55, %v12008_v45 }
 0x147   :  { %v184_v50 = vsel %vm11414_vm6, 0, %v183_v35  ;;  %3172 = vst [vmem:[#allocation4 + $0x1c0] sm:$0xf] %v3117_v46  ;;  %v3189_v39 = vld [vmem:[#allocation2 + $0x8c] sm:$0x1]  ;;  %v9294_v16 = vrot.slane %v3188_v51, 9  ;;  %v9363_v31 = vor.u32 %v10767_v60, %v9360_v38  ;;  %v2469_v0 = vadd.f32 %v11937_v21, %v2440_v37 }
 0x148   :  { %4426 = vmatmul.bf16.gmra.mxu1 %v9359_v6  ;;  %v3131_v13 = vsel %vm11465_vm12, %v3126_v9, %v3130_v36  ;;  %v3234_v1 = vrot.slane %v3189_v39, 5  ;;  %v3264_v54 = vld [vmem:[#allocation2 + $0x98] sm:$0xf]  ;;  %185 = vst [vmem:[#allocation2 + $0x94] sm:$0x1] %v184_v50  ;;  %v2387_v6 = vadd.f32 %v11827_v40, %v11810_v8  ;;  %v2496_v36 = vadd.f32 %v11939_v43, %v2467_v4  ;;  %v10849_v21 = vld [vmem:[#allocation8 + $0x1c8] sm:$0xff] }
 0x149   :  { %3173 = vst [vmem:[#allocation4 + $0x1e4] sm:$0xf] %v3131_v13  ;;  %v3044_v19 = vld [vmem:[#allocation2 + $0x88] sm:$0xf]  ;;  %v3045_v57 = vld [vmem:[#allocation2 + $0x8c] sm:$0x1]  ;;  %v12038_v63 = vpop.f32.mrf.mxu3  ;;  %v2392_v40 = vadd.f32 %v11893_v49, %v11876_v32  ;;  %v2498_v43 = vadd.f32 %v11957_v30, %v2469_v0  ;;  %v2414_v50 = vadd.f32 %v11817_v41, %v11785_v26  ;;  %4506 = vmatpush.bf16.msra.mxu0 %v10849_v21 }
 0x14a   :  { %v3235_v14 = vsel %vm11420_vm8, %v9294_v16, %v3234_v1  ;;  %3272 = vst [vmem:[#allocation4 + $0x234] sm:$0xf] %v3264_v54  ;;  %v3133_v25 = vshrl.u32 %v3044_v19, 16  ;;  %v3136_v60 = vshll.u32 %v3044_v19, 16  ;;  %v3142_v8 = vshll.u32 %v3045_v57, 16  ;;  %v10857_v3 = vld [vmem:[#allocation8 + $0x208] sm:$0xff] }
 0x14b   :  { %v808_v15 = vld [vmem:[#allocation2 + $0x90] sm:$0xf]  ;;  %3254 = vst [vmem:[#allocation4 + $0x20c] sm:$0xf] %v3235_v14  ;;  %v748_v38 = vrot.slane %v12008_v45, 4  ;;  %v2416_v13 = vadd.f32 %v11844_v24, %v2387_v6  ;;  %v2525_v30 = vadd.f32 %v11951_v22, %v2496_v36  ;;  %4535 = vmatpush.bf16.msra.mxu1 %v10857_v3  ;;  %v10856_v16 = vld [vmem:[#allocation8 + $0x200] sm:$0xff]  ;;  %v2419_v26 = vadd.f32 %v11878_v17, %v11867_v58  ;;  %v12061_v1 = vpop.f32.mrf.mxu1 }
 0x14c   :  { %4484 = vmatmul.bf16.gmra.mxu3 %v9367_v20  ;;  %v809_v55 = vsel %vm11444_vm11, %v747_v5, %v808_v15  ;;  %v3135_v11 = vrot.slane %v3133_v25, 4  ;;  %v3138_v9 = vrot.slane %v3136_v60, 5  ;;  %v12048_v35 = vrot.slane %v3142_v8, 5  ;;  %v196_v46 = vld [vmem:[#allocation3 + $0x8] sm:$0x1]  ;;  %v10848_v20 = vld [vmem:[#allocation8 + $0x1c0] sm:$0xff] }
 0x14d   :  { %810 = vst [vmem:[#allocation2 + $0x90] sm:$0xf] %v809_v55  ;;  %v12044_v59 = vpop.f32.mrf.mxu0  ;;  %v197_v32 = vsel %vm11406_vm2, 0, %v196_v46  ;;  %v244_v49 = vld [vmem:[#allocation3 + $0xc] sm:$0x1]  ;;  %v2421_v41 = vadd.f32 %v11895_v61, %v2392_v40  ;;  %v2527_v22 = vadd.f32 %v11971_v7, %v2498_v43  ;;  %v2443_v4 = vadd.f32 %v11820_v10, %v2414_v50  ;;  %4507 = vmatpush.bf16.msra.mxu0 %v10848_v20  ;;  %v12086_v43 = vpop.f32.mrf.mxu2  ;;  %v13239_v3 = vld [vmem:[#allocation19_spill] sm:$0xff] }
 0x14e   :  { %4455 = vmatmul.bf16.gmra.mxu2 %v9363_v31  ;;  %v9394_v51 = vld [vmem:[#allocation4 + $0x1c0] sm:$0xf]  ;;  %v3139_v5 = vor.u32 %v3138_v9, %v3135_v11  ;;  %198 = vst [vmem:[#allocation3 + $0x8] sm:$0x1] %v197_v32  ;;  %v245_v39 = vsel %vm11414_vm6, 0, %v244_v49  ;;  %v2445_v61 = vadd.f32 %v11852_v2, %v2416_v13  ;;  %v2554_v6 = vadd.f32 %v11953_v42, %v2525_v30 }
 0x14f   :  { %v811_v31 = vld [vmem:[#allocation2 + $0x94] sm:$0x1]  ;;  %246 = vst [vmem:[#allocation3 + $0xc] sm:$0x1] %v245_v39  ;;  %v3273_v24 = vld [vmem:[#allocation2 + $0x60] sm:$0xf]  ;;  %4536 = vmatpush.bf16.msra.mxu1 %v10856_v16  ;;  %v12074_v10 = vadd.f32 %v11884_v56, %v2419_v26  ;;  %v12077_v55 = vadd.f32 %v11901_v44, %v2421_v41  ;;  %v2472_v8 = vadd.f32 %v11955_v52, %v2443_v4 }
 0x150   :  { %v10780_v45 = vld [vmem:[#allocation4 + $0x1e0] sm:$0xf0]  ;;  %v812_v54 = vsel %vm11406_vm2, %v748_v38, %v811_v31  ;;  %v3140_v37 = vrot.slane %v3139_v5, 4  ;;  %v12067_v19 = vld [vmem:[#allocation4 + $0x1c8] sm:$0xf]  ;;  %v3290_v17 = vshrl.u32 %v3273_v24, 16  ;;  %v12084_v11 = vadd.f32 %v11973_v48, %v2527_v22 }
 0x151   :  { %v10781_v57 = vld [vmem:[#allocation4 + $0x1e8] sm:$0xf0]  ;;  %813 = vst [vmem:[#allocation2 + $0x94] sm:$0x1] %v812_v54  ;;  %v7359_v58 = vld [vmem:[#allocation3 + $0x98] sm:$0xf]  ;;  %v9395_v7 = vor.u32 %v10780_v45, %v9394_v51  ;;  %v12088_v56 = vpop.f32.mrf.mxu3  ;;  %v2474_v46 = vadd.f32 %v13239_v3, %v2445_v61 }
 0x152   :  { %v10776_v15 = vld [vmem:[#allocation4 + $0x1c4] sm:$0xf]  ;;  %v9396_v14 = vld [vmem:[#allocation4 + $0x1e4] sm:$0xf0]  ;;  %v12071_v0 = vld [vmem:[#allocation4 + $0x230] sm:$0xf0]  ;;  %v3145_v42 = vsel %vm11465_vm12, %v3140_v37, %v12048_v35  ;;  %v9403_v32 = vor.u32 %v10781_v57, %v12067_v19 }
 0x153   :  { %v3274_v36 = vld [vmem:[#allocation2 + $0x64] sm:$0x1]  ;;  %v3275_v21 = vld [vmem:[#allocation2 + $0x68] sm:$0xf]  ;;  %7367 = vst [vmem:[#allocation4 + $0x234] sm:$0xf] %v7359_v58  ;;  %v9399_v13 = vor.u32 %v10776_v15, %v9396_v14  ;;  %v12097_v61 = vpop.f32.mrf.mxu1 }
 0x154   :  { %v3023_v25 = vld [vmem:[#allocation2 + $0x90] sm:$0xf]  ;;  %v3292_v50 = vrot.slane %v3290_v17, 4  ;;  %v3293_v35 = vshll.u32 %v3273_v24, 16  ;;  %v3299_v51 = vshll.u32 %v3274_v36, 16  ;;  %v3304_v39 = vshrl.u32 %v3275_v21, 16 }
 0x155   :  { %v3263_v60 = vld [vmem:[#allocation2 + $0x90] sm:$0xf]  ;;  %3031 = vst [vmem:[#allocation4 + $0x228] sm:$0xf] %v3023_v25  ;;  %v2582_v40 = vpop.f32.mrf.mxu0  ;;  %v10784_v30 = vld [vmem:[#allocation4 + $0x204] sm:$0xf] }
 0x156   :  { %v3046_v2 = vld [vmem:[#allocation2 + $0x90] sm:$0xf]  ;;  %3271 = vst [vmem:[#allocation4 + $0x210] sm:$0xf] %v3263_v60  ;;  %v12090_v52 = vadd.f32 %v2582_v40, %v2554_v6  ;;  %v3295_v5 = vrot.slane %v3293_v35, 5  ;;  %v13240_v16 = vld [vmem:[#allocation20_spill] sm:$0xff] }
 0x157   :  { %v3190_v38 = vld [vmem:[#allocation2 + $0x90] sm:$0xe]  ;;  %v3147_v44 = vshrl.u32 %v3046_v2, 16  ;;  %v3150_v9 = vshll.u32 %v3046_v2, 16  ;;  %3174 = vst [vmem:[#allocation4 + $0x208] sm:$0xf] %v3145_v42  ;;  %v2501_v26 = vadd.f32 %v13240_v16, %v2472_v8 }
 0x158   :  { %4431 = vmatmul.bf16.gmra.mxu1 %v9395_v7  ;;  %v2638_v20 = vpack.c.bf16 %v12090_v52, %v12090_v52  ;;  %v9295_v45 = vrot.slane %v3190_v38, 9  ;;  %v3191_v41 = vld [vmem:[#allocation2 + $0x94] sm:$0x1]  ;;  %v3276_v54 = vld [vmem:[#allocation2 + $0x6c] sm:$0x1]  ;;  %v3301_v37 = vrot.slane %v3299_v51, 5  ;;  %v3296_v6 = vor.u32 %v3295_v5, %v3292_v50  ;;  %v12107_v5 = vpop.f32.mrf.mxu2 }
 0x159   :  { %v3149_v48 = vrot.slane %v3147_v44, 4  ;;  %v3152_v49 = vrot.slane %v3150_v9, 5  ;;  %v3047_v31 = vld [vmem:[#allocation2 + $0x94] sm:$0x1]  ;;  %v3238_v4 = vrot.slane %v3191_v41, 5  ;;  %v3306_v60 = vrot.slane %v3304_v39, 4 }
 0x15a   :  { %v2647_v22 = vshrl.u32 %v2638_v20, 16  ;;  %v3156_v19 = vshll.u32 %v3047_v31, 16  ;;  %v2650_v57 = vshll.u32 %v2638_v20, 16  ;;  %v2726_v58 = vld [vmem:[#allocation3 + $0x8] sm:$0xf]  ;;  %v3307_v36 = vshll.u32 %v3275_v21, 16 }
 0x15b   :  { %v3153_v24 = vor.u32 %v3152_v49, %v3149_v48  ;;  %v2729_v17 = vld [vmem:[#allocation3 + $0xc] sm:$0x1]  ;;  %v199_v15 = vld [vmem:[#allocation3 + $0x10] sm:$0x1]  ;;  %v3239_v2 = vsel %vm11420_vm8, %v9295_v45, %v3238_v4  ;;  %v3297_v40 = vrot.slane %v3296_v6, 4  ;;  %v2530_v3 = vadd.f32 %v11985_v47, %v2501_v26  ;;  %v13241_v48 = vld [vmem:[#allocation22_spill] sm:$0xff]  ;;  %v12109_v47 = vpop.f32.mrf.mxu3 }
 0x15c   :  { %4489 = vmatmul.bf16.gmra.mxu3 %v9403_v32  ;;  %v9424_v14 = vld [vmem:[#allocation4 + $0x224] sm:$0xf0]  ;;  %v2649_v25 = vrot.slane %v2647_v22, 7  ;;  %v3158_v42 = vrot.slane %v3156_v19, 5  ;;  %v247_v38 = vld [vmem:[#allocation3 + $0x14] sm:$0x1]  ;;  %v2503_v49 = vadd.f32 %v13241_v48, %v2474_v46 }
 0x15d   :  { %v3154_v7 = vrot.slane %v3153_v24, 4  ;;  %v9427_v8 = vor.u32 %v10784_v30, %v9424_v14  ;;  %v2584_v44 = vpop.f32.mrf.mxu0  ;;  %v3417_v9 = vld [vmem:[#allocation2 + $0x60] sm:$0xe]  ;;  %3255 = vst [vmem:[#allocation4 + $0x230] sm:$0xf] %v3239_v2  ;;  %v3309_v51 = vrot.slane %v3307_v36, 5  ;;  %v3302_v20 = vsel %vm11465_vm12, %v3297_v40, %v3301_v37 }
 0x15e   :  { %4460 = vmatmul.bf16.gmra.mxu2 %v9399_v13  ;;  %v2652_v50 = vor.u32 %v2650_v57, %v2649_v25  ;;  %v2653_v35 = vrot.slane %v2649_v25, 4  ;;  %v3418_v32 = vld [vmem:[#allocation2 + $0x64] sm:$0x1]  ;;  %v3313_v13 = vshll.u32 %v3276_v54, 16  ;;  %v3419_v30 = vld [vmem:[#allocation2 + $0x68] sm:$0xe]  ;;  %v2585_v31 = vadd.f32 %v2584_v44, %v12084_v11 }
 0x15f   :  { %4407 = vmatmul.bf16.gmra.mxu0 %v9427_v8  ;;  %v3159_v21 = vsel %vm11465_vm12, %v3154_v7, %v3158_v42  ;;  %v3420_v45 = vld [vmem:[#allocation2 + $0x6c] sm:$0x1]  ;;  %v3310_v16 = vor.u32 %v3309_v51, %v3306_v60  ;;  %v200_v26 = vsel %vm11406_vm2, 0, %v199_v15  ;;  %v9296_v24 = vrot.slane %v3417_v9, 9  ;;  %v202_v54 = vld [vmem:[#allocation3 + $0x18] sm:$0x1]  ;;  %v12132_v9 = vpop.f32.mrf.mxu1 }
 0x160   :  { %3175 = vst [vmem:[#allocation4 + $0x22c] sm:$0xf] %v3159_v21  ;;  %v2727_v39 = vsel %vm11444_vm11, %v2652_v50, %v2726_v58  ;;  %v2730_v46 = vsel %vm11406_vm2, %v2653_v35, %v2729_v17  ;;  %v3315_v41 = vrot.slane %v3313_v13, 5  ;;  %v3451_v22 = vrot.slane %v3418_v32, 5  ;;  %v12118_v37 = vld [vmem:[#allocation4 + $0x20c] sm:$0xf] }
 0x161   :  { %2728 = vst [vmem:[#allocation3 + $0x8] sm:$0xf] %v2727_v39  ;;  %v3311_v4 = vrot.slane %v3310_v16, 4  ;;  %v248_v19 = vsel %vm11414_vm6, 0, %v247_v38  ;;  %v9297_v57 = vrot.slane %v3419_v30, 9  ;;  %v3455_v58 = vrot.slane %v3420_v45, 5 }
 0x162   :  { %2731 = vst [vmem:[#allocation3 + $0xc] sm:$0x1] %v2730_v46  ;;  %v2616_v17 = vmul.f32 %v12090_v52, %v12090_v52  ;;  %v2602_v6 = vadd.f32 %v2585_v31, %v12090_v52  ;;  %v2617_v15 = vmul.f32 %v2585_v31, %v2585_v31  ;;  %v2639_v11 = vpack.c.bf16 %v2585_v31, %v2585_v31  ;;  %v250_v14 = vld [vmem:[#allocation3 + $0x1c] sm:$0x1]  ;;  %v3277_v7 = vld [vmem:[#allocation2 + $0x70] sm:$0xf] }
 0x163   :  { %3409 = vst [vmem:[#allocation4 + $0x13c] sm:$0xf] %v3302_v20  ;;  %v2559_v25 = vadd.f32 %v11987_v62, %v2530_v3  ;;  %v13242_v60 = vld [vmem:[#allocation21_spill] sm:$0xff]  ;;  %v9430_v2 = vld [vmem:[#allocation4 + $0x208] sm:$0xf]  ;;  %v3316_v42 = vsel %vm11465_vm12, %v3311_v4, %v3315_v41  ;;  %v3452_v40 = vsel %vm11420_vm8, %v9296_v24, %v3451_v22  ;;  %v3456_v62 = vsel %vm11420_vm8, %v9297_v57, %v3455_v58 }
 0x164   :  { %v2477_v36 = vadd.f32 %v13242_v60, %v12074_v10  ;;  %v9438_v8 = vld [vmem:[#allocation4 + $0x210] sm:$0xf]  ;;  %201 = vst [vmem:[#allocation3 + $0x10] sm:$0x1] %v200_v26  ;;  %v2624_v52 = vadd.f32 %v2617_v15, %v2616_v17  ;;  %v2655_v44 = vshrl.u32 %v2639_v11, 16  ;;  %v3318_v10 = vshrl.u32 %v3277_v7, 16 }
 0x165   :  { %v9432_v38 = vld [vmem:[#allocation4 + $0x22c] sm:$0xf0]  ;;  %3410 = vst [vmem:[#allocation4 + $0x160] sm:$0xf] %v3316_v42  ;;  %v2587_v3 = vpop.f32.mrf.mxu0  ;;  %v2532_v50 = vadd.f32 %v12004_v28, %v2503_v49  ;;  %v203_v35 = vsel %vm11406_vm2, 0, %v202_v54  ;;  %v251_v51 = vsel %vm11414_vm6, 0, %v250_v14  ;;  %v9439_v21 = vor.u32 %v12071_v0, %v9438_v8  ;;  %v12146_v0 = vpop.f32.mrf.mxu3 }
 0x166   :  { %249 = vst [vmem:[#allocation3 + $0x14] sm:$0x1] %v248_v19  ;;  %v2588_v32 = vadd.f32 %v2587_v3, %v2559_v25  ;;  %v9435_v48 = vor.u32 %v12118_v37, %v9432_v38  ;;  %v2657_v13 = vrot.slane %v2655_v44, 7  ;;  %v2658_v30 = vshll.u32 %v2639_v11, 16  ;;  %v3278_v46 = vld [vmem:[#allocation2 + $0x74] sm:$0x1]  ;;  %v12144_v37 = vpop.f32.mrf.mxu2 }
 0x167   :  { %v10789_v20 = vld [vmem:[#allocation4 + $0x228] sm:$0xf0]  ;;  %3489 = vst [vmem:[#allocation4 + $0x140] sm:$0xf] %v3452_v40  ;;  %v3279_v41 = vld [vmem:[#allocation2 + $0x78] sm:$0xf] }
 0x168   :  { %v9431_v45 = vor.u32 %v10789_v20, %v9430_v2  ;;  %3490 = vst [vmem:[#allocation4 + $0x164] sm:$0xf] %v3456_v62  ;;  %v2603_v39 = vadd.f32 %v2602_v6, %v2588_v32  ;;  %v2618_v28 = vmul.f32 %v2588_v32, %v2588_v32  ;;  %v2640_v49 = vpack.c.bf16 %v2588_v32, %v2588_v32  ;;  %v13243_v22 = vld [vmem:[#allocation24_spill] sm:$0xff]  ;;  %v13244_v17 = vld [vmem:[#allocation15_spill] sm:$0xff]  ;;  %v13246_v11 = vld [vmem:[#allocation25_spill] sm:$0xff] }
 0x169   :  { %v2660_v16 = vor.u32 %v2658_v30, %v2657_v13  ;;  %v2661_v26 = vrot.slane %v2657_v13, 4  ;;  %v3320_v31 = vrot.slane %v3318_v10, 4  ;;  %v3321_v24 = vshll.u32 %v3277_v7, 16  ;;  %204 = vst [vmem:[#allocation3 + $0x18] sm:$0x1] %v203_v35  ;;  %v13245_v6 = vld [vmem:[#allocation16_spill] sm:$0xff] }
 0x16a   :  { %v2506_v54 = vadd.f32 %v13243_v22, %v2477_v36  ;;  %4436 = vmatmul.bf16.gmra.mxu1 %v9431_v45  ;;  %v10759_v4 = vld [vmem:[#allocation4 + $0x13c] sm:$0xf]  ;;  %v2625_v19 = vadd.f32 %v2624_v52, %v2618_v28  ;;  %v2663_v57 = vshrl.u32 %v2640_v49, 16  ;;  %v2666_v58 = vshll.u32 %v2640_v49, 16  ;;  %252 = vst [vmem:[#allocation3 + $0x1c] sm:$0x1] %v251_v51  ;;  %v12160_v28 = vpop.f32.mrf.mxu1 }
 0x16b   :  { %v12150_v15 = vadd.f32 %v13245_v6, %v13244_v17  ;;  %v2561_v14 = vadd.f32 %v13246_v11, %v2532_v50  ;;  %v2732_v25 = vld [vmem:[#allocation3 + $0x10] sm:$0xf]  ;;  %v3280_v7 = vld [vmem:[#allocation2 + $0x7c] sm:$0x1]  ;;  %v3323_v60 = vrot.slane %v3321_v24, 5  ;;  %v3327_v36 = vshll.u32 %v3278_v46, 16 }
 0x16c   :  { %v205_v8 = vld [vmem:[#allocation3 + $0x20] sm:$0x1]  ;;  %4494 = vmatmul.bf16.gmra.mxu3 %v9439_v21  ;;  %v2733_v42 = vsel %vm11444_vm11, %v2660_v16, %v2732_v25  ;;  %v2665_v40 = vrot.slane %v2663_v57, 7  ;;  %v3332_v38 = vshrl.u32 %v3279_v41, 16  ;;  %v3335_v52 = vshll.u32 %v3279_v41, 16 }
 0x16d   :  { %v9332_v2 = vld [vmem:[#allocation4 + $0x15c] sm:$0xf0]  ;;  %2734 = vst [vmem:[#allocation3 + $0x10] sm:$0xf] %v2733_v42  ;;  %v2735_v10 = vld [vmem:[#allocation3 + $0x14] sm:$0x1]  ;;  %v3324_v50 = vor.u32 %v3323_v60, %v3320_v31  ;;  %v2589_v51 = vpop.f32.mrf.mxu0  ;;  %v2535_v32 = vadd.f32 %v12036_v23, %v2506_v54  ;;  %v12176_v42 = vpop.f32.mrf.mxu3 }
 0x16e   :  { %v13247_v44 = vld [vmem:[#allocation23_spill] sm:$0xff]  ;;  %4465 = vmatmul.bf16.gmra.mxu2 %v9435_v48  ;;  %v9335_v3 = vor.u32 %v10759_v4, %v9332_v2  ;;  %v3329_v35 = vrot.slane %v3327_v36, 5  ;;  %v2736_v21 = vsel %vm11406_vm2, %v2661_v26, %v2735_v10  ;;  %v2668_v20 = vor.u32 %v2666_v58, %v2665_v40  ;;  %v3421_v41 = vld [vmem:[#allocation2 + $0x70] sm:$0xe]  ;;  %v3422_v58 = vld [vmem:[#allocation2 + $0x74] sm:$0x1]  ;;  %v12174_v2 = vpop.f32.mrf.mxu2 }
 0x16f   :  { %v2479_v62 = vadd.f32 %v13247_v44, %v12077_v55  ;;  %v3334_v13 = vrot.slane %v3332_v38, 4  ;;  %v253_v30 = vld [vmem:[#allocation3 + $0x24] sm:$0x1]  ;;  %2737 = vst [vmem:[#allocation3 + $0x14] sm:$0x1] %v2736_v21  ;;  %v2669_v45 = vrot.slane %v2665_v40, 4  ;;  %v2590_v49 = vadd.f32 %v2589_v51, %v2561_v14 }
 0x170   :  { %4508 = vmatmul.bf16.vlgmr.msra.gmra.mxu0 %v9335_v3  ;;  %v3325_v55 = vrot.slane %v3324_v50, 4  ;;  %v3337_v48 = vrot.slane %v3335_v52, 5  ;;  %v3341_v16 = vshll.u32 %v3280_v7, 16  ;;  %v206_v23 = vsel %vm11406_vm2, 0, %v205_v8  ;;  %v9338_v31 = vld [vmem:[#allocation4 + $0x140] sm:$0xf] }
 0x171   :  { %v2508_v46 = vadd.f32 %v12021_v18, %v2479_v62  ;;  %v254_v26 = vsel %vm11414_vm6, 0, %v253_v30  ;;  %v2738_v24 = vld [vmem:[#allocation3 + $0x18] sm:$0xf]  ;;  %207 = vst [vmem:[#allocation3 + $0x20] sm:$0x1] %v206_v23  ;;  %v2604_v4 = vadd.f32 %v2603_v39, %v2590_v49  ;;  %v2619_v57 = vmul.f32 %v2590_v49, %v2590_v49  ;;  %v13248_v38 = vld [vmem:[#allocation17_spill] sm:$0xff] }
 0x172   :  { %v3330_v22 = vsel %vm11465_vm12, %v3325_v55, %v3329_v35  ;;  %v3338_v54 = vor.u32 %v3337_v48, %v3334_v13  ;;  %v2739_v18 = vsel %vm11444_vm11, %v2668_v20, %v2738_v24  ;;  %v2741_v17 = vld [vmem:[#allocation3 + $0x1c] sm:$0x1]  ;;  %v3343_v6 = vrot.slane %v3341_v16, 5  ;;  %v10764_v25 = vld [vmem:[#allocation4 + $0x160] sm:$0xf0]  ;;  %v12188_v16 = vpop.f32.mrf.mxu1 }
 0x173   :  { %3411 = vst [vmem:[#allocation4 + $0x184] sm:$0xf] %v3330_v22  ;;  %v2641_v11 = vpack.c.bf16 %v2590_v49, %v2590_v49  ;;  %v9298_v14 = vrot.slane %v3421_v41, 9  ;;  %v2742_v7 = vsel %vm11406_vm2, %v2669_v45, %v2741_v17  ;;  %v2626_v36 = vadd.f32 %v2625_v19, %v2619_v57  ;;  %v3423_v40 = vld [vmem:[#allocation2 + $0x78] sm:$0xe] }
 0x174   :  { %2740 = vst [vmem:[#allocation3 + $0x18] sm:$0xf] %v2739_v18  ;;  %v3339_v60 = vrot.slane %v3338_v54, 4  ;;  %v3459_v8 = vrot.slane %v3422_v58, 5  ;;  %v2564_v39 = vadd.f32 %v12038_v63, %v2535_v32  ;;  %v2453_v52 = vadd.f32 %v13248_v38, %v12150_v15  ;;  %v3424_v3 = vld [vmem:[#allocation2 + $0x7c] sm:$0x1] }
 0x175   :  { %2743 = vst [vmem:[#allocation3 + $0x1c] sm:$0x1] %v2742_v7  ;;  %v2671_v62 = vshrl.u32 %v2641_v11, 16  ;;  %v2592_v10 = vpop.f32.mrf.mxu0  ;;  %v9339_v19 = vor.u32 %v10764_v25, %v9338_v31  ;;  %v2537_v51 = vadd.f32 %v12086_v43, %v2508_v46  ;;  %v2674_v21 = vshll.u32 %v2641_v11, 16  ;;  %v208_v15 = vld [vmem:[#allocation3 + $0x28] sm:$0x1] }
 0x176   :  { %v3344_v44 = vsel %vm11465_vm12, %v3339_v60, %v3343_v6  ;;  %255 = vst [vmem:[#allocation3 + $0x24] sm:$0x1] %v254_v26  ;;  %v3460_v63 = vsel %vm11420_vm8, %v9298_v14, %v3459_v8  ;;  %v2593_v50 = vadd.f32 %v2592_v10, %v2564_v39  ;;  %v2482_v35 = vadd.f32 %v12015_v33, %v2453_v52  ;;  %v256_v46 = vld [vmem:[#allocation3 + $0x2c] sm:$0x1]  ;;  %v12200_v17 = vpop.f32.mrf.mxu2  ;;  %v12202_v6 = vpop.f32.mrf.mxu3  ;;  %v3281_v60 = vld [vmem:[#allocation2 + $0x80] sm:$0xf] }
 0x177   :  { %3412 = vst [vmem:[#allocation4 + $0x1a8] sm:$0xf] %v3344_v44  ;;  %v2673_v32 = vrot.slane %v2671_v62, 7  ;;  %v9299_v13 = vrot.slane %v3423_v40, 9  ;;  %v3463_v30 = vrot.slane %v3424_v3, 5  ;;  %v209_v45 = vsel %vm11406_vm2, 0, %v208_v15 }
 0x178   :  { %3491 = vst [vmem:[#allocation4 + $0x188] sm:$0xf] %v3460_v63  ;;  %v2744_v20 = vld [vmem:[#allocation3 + $0x20] sm:$0xf]  ;;  %v2605_v55 = vadd.f32 %v2604_v4, %v2593_v50  ;;  %v2620_v23 = vmul.f32 %v2593_v50, %v2593_v50  ;;  %v2642_v33 = vpack.c.bf16 %v2593_v50, %v2593_v50  ;;  %v2511_v26 = vadd.f32 %v12061_v1, %v2482_v35  ;;  %v3283_v8 = vld [vmem:[#allocation2 + $0x88] sm:$0xf] }
 0x179   :  { %v2676_v48 = vor.u32 %v2674_v21, %v2673_v32  ;;  %v2677_v49 = vrot.slane %v2673_v32, 4  ;;  %210 = vst [vmem:[#allocation3 + $0x28] sm:$0x1] %v209_v45  ;;  %v3464_v43 = vsel %vm11420_vm8, %v9299_v13, %v3463_v30  ;;  %v2566_v22 = vadd.f32 %v12088_v56, %v2537_v51  ;;  %v13249_v39 = vld [vmem:[#allocation18_spill] sm:$0xff]  ;;  %v3284_v44 = vld [vmem:[#allocation2 + $0x8c] sm:$0x1] }
 0x17a   :  { %4537 = vmatmul.bf16.vlgmr.msra.gmra.mxu1 %v9339_v19  ;;  %v10768_v41 = vld [vmem:[#allocation4 + $0x184] sm:$0xf]  ;;  %3492 = vst [vmem:[#allocation4 + $0x1ac] sm:$0xf] %v3464_v43  ;;  %v2627_v24 = vadd.f32 %v2626_v36, %v2620_v23  ;;  %v257_v4 = vsel %vm11414_vm6, 0, %v256_v46  ;;  %v2679_v57 = vshrl.u32 %v2642_v33, 16  ;;  %v2540_v7 = vadd.f32 %v12107_v5, %v2511_v26 }
 0x17b   :  { %v2745_v31 = vsel %vm11444_vm11, %v2676_v48, %v2744_v20  ;;  %258 = vst [vmem:[#allocation3 + $0x2c] sm:$0x1] %v257_v4  ;;  %v2682_v56 = vshll.u32 %v2642_v33, 16  ;;  %v3282_v36 = vld [vmem:[#allocation2 + $0x84] sm:$0x1]  ;;  %v2484_v40 = vadd.f32 %v12044_v59, %v13249_v39  ;;  %v3346_v62 = vshrl.u32 %v3281_v60, 16  ;;  %v12210_v20 = vpop.f32.mrf.mxu1 }
 0x17c   :  { %2746 = vst [vmem:[#allocation3 + $0x20] sm:$0xf] %v2745_v31  ;;  %v2681_v14 = vrot.slane %v2679_v57, 7  ;;  %v3349_v19 = vshll.u32 %v3281_v60, 16  ;;  %v3355_v63 = vshll.u32 %v3282_v36, 16  ;;  %v3360_v50 = vshrl.u32 %v3283_v8, 16 }
 0x17d   :  { %v2747_v54 = vld [vmem:[#allocation3 + $0x24] sm:$0x1]  ;;  %v2594_v1 = vpop.f32.mrf.mxu0  ;;  %v3348_v51 = vrot.slane %v3346_v62, 4  ;;  %v3363_v32 = vshll.u32 %v3283_v8, 16  ;;  %v3369_v21 = vshll.u32 %v3284_v44, 16  ;;  %v2569_v15 = vadd.f32 %v12109_v47, %v2540_v7 }
 0x17e   :  { %v9368_v58 = vld [vmem:[#allocation4 + $0x1a4] sm:$0xf0]  ;;  %v2748_v18 = vsel %vm11406_vm2, %v2677_v49, %v2747_v54  ;;  %v2595_v25 = vadd.f32 %v2594_v1, %v2566_v22  ;;  %v2684_v38 = vor.u32 %v2682_v56, %v2681_v14  ;;  %v2685_v10 = vrot.slane %v2681_v14, 4  ;;  %v211_v13 = vld [vmem:[#allocation3 + $0x30] sm:$0x1] }
 0x17f   :  { %v9371_v11 = vor.u32 %v10768_v41, %v9368_v58  ;;  %2749 = vst [vmem:[#allocation3 + $0x24] sm:$0x1] %v2748_v18  ;;  %v9374_v35 = vld [vmem:[#allocation4 + $0x188] sm:$0xf]  ;;  %v3351_v49 = vrot.slane %v3349_v19, 5  ;;  %v3357_v23 = vrot.slane %v3355_v63, 5 }
 0x180   :  { %v2750_v52 = vld [vmem:[#allocation3 + $0x28] sm:$0xf]  ;;  %v2606_v3 = vadd.f32 %v2605_v55, %v2595_v25  ;;  %v2621_v30 = vmul.f32 %v2595_v25, %v2595_v25  ;;  %v2643_v45 = vpack.c.bf16 %v2595_v25, %v2595_v25  ;;  %v2513_v55 = vadd.f32 %v12097_v61, %v2484_v40  ;;  %v259_v4 = vld [vmem:[#allocation3 + $0x34] sm:$0x1]  ;;  %v3425_v1 = vld [vmem:[#allocation2 + $0x80] sm:$0xe]  ;;  %v12219_v14 = vpop.f32.mrf.mxu2 }
 0x181   :  { %4513 = vmatmul.bf16.gmra.mxu0 %v9371_v11  ;;  %v2751_v5 = vsel %vm11444_vm11, %v2684_v38, %v2750_v52  ;;  %v10773_v59 = vld [vmem:[#allocation4 + $0x1a8] sm:$0xf0]  ;;  %v3362_v33 = vrot.slane %v3360_v50, 4  ;;  %v3365_v46 = vrot.slane %v3363_v32, 5  ;;  %v3371_v26 = vrot.slane %v3369_v21, 5 }
 0x182   :  { %2752 = vst [vmem:[#allocation3 + $0x28] sm:$0xf] %v2751_v5  ;;  %v2753_v48 = vld [vmem:[#allocation3 + $0x2c] sm:$0x1]  ;;  %v2628_v41 = vadd.f32 %v2627_v24, %v2621_v30  ;;  %v9375_v31 = vor.u32 %v10773_v59, %v9374_v35  ;;  %v3352_v22 = vor.u32 %v3351_v49, %v3348_v51  ;;  %v212_v54 = vsel %vm11406_vm2, 0, %v211_v13  ;;  %v12221_v24 = vpop.f32.mrf.mxu3 }
 0x183   :  { %v2754_v43 = vsel %vm11406_vm2, %v2685_v10, %v2753_v48  ;;  %v2687_v57 = vshrl.u32 %v2643_v45, 16  ;;  %v3366_v61 = vor.u32 %v3365_v46, %v3362_v33  ;;  %213 = vst [vmem:[#allocation3 + $0x30] sm:$0x1] %v212_v54  ;;  %v260_v58 = vsel %vm11414_vm6, 0, %v259_v4  ;;  %v3426_v7 = vld [vmem:[#allocation2 + $0x84] sm:$0x1] }
 0x184   :  { %2755 = vst [vmem:[#allocation3 + $0x2c] sm:$0x1] %v2754_v43  ;;  %v2690_v18 = vshll.u32 %v2643_v45, 16  ;;  %v3353_v56 = vrot.slane %v3352_v22, 4  ;;  %v2542_v60 = vadd.f32 %v12144_v37, %v2513_v55  ;;  %v3427_v8 = vld [vmem:[#allocation2 + $0x88] sm:$0xe] }
 0x185   :  { %v2597_v47 = vpop.f32.mrf.mxu0  ;;  %261 = vst [vmem:[#allocation3 + $0x34] sm:$0x1] %v260_v58  ;;  %v2689_v25 = vrot.slane %v2687_v57, 7  ;;  %v3367_v36 = vrot.slane %v3366_v61, 4  ;;  %v3428_v39 = vld [vmem:[#allocation2 + $0x8c] sm:$0x1] }
 0x186   :  { %v2598_v11 = vadd.f32 %v2597_v47, %v2569_v15  ;;  %v9300_v40 = vrot.slane %v3425_v1, 9  ;;  %v3358_v52 = vsel %vm11465_vm12, %v3353_v56, %v3357_v23  ;;  %v3467_v44 = vrot.slane %v3426_v7, 5  ;;  %v214_v50 = vld [vmem:[#allocation3 + $0x38] sm:$0x1]  ;;  %v262_v5 = vld [vmem:[#allocation3 + $0x3c] sm:$0x1] }
 0x187   :  { %v3372_v62 = vsel %vm11465_vm12, %v3367_v36, %v3371_v26  ;;  %3413 = vst [vmem:[#allocation4 + $0x1cc] sm:$0xf] %v3358_v52  ;;  %v2692_v10 = vor.u32 %v2690_v18, %v2689_v25  ;;  %v2693_v19 = vrot.slane %v2689_v25, 4  ;;  %v9301_v63 = vrot.slane %v3427_v8, 9  ;;  %v3285_v46 = vld [vmem:[#allocation2 + $0x90] sm:$0xf] }
 0x188   :  { %v2607_v38 = vadd.f32 %v2606_v3, %v2598_v11  ;;  %3414 = vst [vmem:[#allocation4 + $0x1f0] sm:$0xf] %v3372_v62  ;;  %v3468_v37 = vsel %vm11420_vm8, %v9300_v40, %v3467_v44  ;;  %v3471_v35 = vrot.slane %v3428_v39, 5  ;;  %v215_v3 = vsel %vm11406_vm2, 0, %v214_v50  ;;  %v3286_v26 = vld [vmem:[#allocation2 + $0x94] sm:$0x1]  ;;  %v12245_v4 = vpop.f32.mrf.mxu2 }
 0x189   :  { %v2622_v51 = vmul.f32 %v2598_v11, %v2598_v11  ;;  %v2571_v32 = vadd.f32 %v12146_v0, %v2542_v60  ;;  %v12233_v21 = vpop.f32.mrf.mxu1  ;;  %3493 = vst [vmem:[#allocation4 + $0x1d0] sm:$0xf] %v3468_v37  ;;  %v2644_v15 = vpack.c.bf16 %v2598_v11, %v2598_v11  ;;  %v263_v45 = vsel %vm11414_vm6, 0, %v262_v5  ;;  %v3288_v58 = vld [vmem:[#allocation2 + $0x9c] sm:$0x1] }
 0x18a   :  { %4542 = vmatmul.bf16.gmra.mxu1 %v9375_v31  ;;  %v2756_v13 = vld [vmem:[#allocation3 + $0x30] sm:$0xf]  ;;  %v3472_v30 = vsel %vm11420_vm8, %v9301_v63, %v3471_v35  ;;  %216 = vst [vmem:[#allocation3 + $0x38] sm:$0x1] %v215_v3  ;;  %v3287_v31 = vld [vmem:[#allocation2 + $0x98] sm:$0xf]  ;;  %v12247_v57 = vpop.f32.mrf.mxu3 }
 0x18b   :  { %v2629_v55 = vadd.f32 %v2628_v41, %v2622_v51  ;;  %v2757_v48 = vsel %vm11444_vm11, %v2692_v10, %v2756_v13  ;;  %3494 = vst [vmem:[#allocation4 + $0x1f4] sm:$0xf] %v3472_v30  ;;  %v2695_v0 = vshrl.u32 %v2644_v15, 16  ;;  %v2698_v23 = vshll.u32 %v2644_v15, 16  ;;  %v7382_v50 = vld [vmem:[#allocation3 + $0x98] sm:$0xf] }
 0x18c   :  { %v2759_v49 = vld [vmem:[#allocation3 + $0x34] sm:$0x1]  ;;  %2758 = vst [vmem:[#allocation3 + $0x30] sm:$0xf] %v2757_v48  ;;  %v3374_v22 = vshrl.u32 %v3285_v46, 16  ;;  %v3377_v56 = vshll.u32 %v3285_v46, 16 }
 0x18d   :  { %v2599_v59 = vpop.f32.mrf.mxu0  ;;  %v2760_v43 = vsel %vm11406_vm2, %v2693_v19, %v2759_v49  ;;  %v2697_v47 = vrot.slane %v2695_v0, 7  ;;  %264 = vst [vmem:[#allocation3 + $0x3c] sm:$0x1] %v263_v45  ;;  %v3383_v60 = vshll.u32 %v3286_v26, 16  ;;  %v3388_v36 = vshrl.u32 %v3287_v31, 16 }
 0x18e   :  { %v2600_v33 = vadd.f32 %v2599_v59, %v2571_v32  ;;  %2761 = vst [vmem:[#allocation3 + $0x34] sm:$0x1] %v2760_v43  ;;  %v10777_v61 = vld [vmem:[#allocation4 + $0x1cc] sm:$0xf]  ;;  %v3376_v11 = vrot.slane %v3374_v22, 4  ;;  %v3391_v8 = vshll.u32 %v3287_v31, 16 }
 0x18f   :  { %v9404_v18 = vld [vmem:[#allocation4 + $0x1ec] sm:$0xf0]  ;;  %v2700_v1 = vor.u32 %v2698_v23, %v2697_v47  ;;  %v2701_v39 = vrot.slane %v2697_v47, 4  ;;  %v3397_v52 = vshll.u32 %v3288_v58, 16  ;;  %v3390_v19 = vrot.slane %v3388_v36, 4 }
 0x190   :  { %v12243_v54 = vadd.f32 %v2607_v38, %v2600_v33  ;;  %v2623_v41 = vmul.f32 %v2600_v33, %v2600_v33  ;;  %v9407_v25 = vor.u32 %v10777_v61, %v9404_v18  ;;  %v9410_v7 = vld [vmem:[#allocation4 + $0x1d0] sm:$0xf]  ;;  %v3379_v38 = vrot.slane %v3377_v56, 5  ;;  %v7383_v13 = vld [vmem:[#allocation3 + $0x9c] sm:$0x1] }
 0x191   :  { %v2762_v40 = vld [vmem:[#allocation3 + $0x38] sm:$0xf]  ;;  %v3393_v63 = vrot.slane %v3391_v8, 5  ;;  %v12253_v35 = vpop.f32.mrf.mxu1  ;;  %v3385_v5 = vrot.slane %v3383_v60, 5  ;;  %v3399_v32 = vrot.slane %v3397_v52, 5  ;;  %v7483_v30 = vshrl.u32 %v7382_v50, 16 }
 0x192   :  { %v12249_v44 = vadd.f32 %v2629_v55, %v2623_v41  ;;  %4518 = vmatmul.bf16.gmra.mxu0 %v9407_v25  ;;  %v10782_v62 = vld [vmem:[#allocation4 + $0x1f0] sm:$0xf0]  ;;  %v2763_v10 = vsel %vm11444_vm11, %v2700_v1, %v2762_v40  ;;  %v3380_v3 = vor.u32 %v3379_v38, %v3376_v11  ;;  %v2645_v45 = vpack.c.bf16 %v2600_v33, %v2600_v33  ;;  %v217_v0 = vld [vmem:[#allocation3 + $0x40] sm:$0x1]  ;;  %v265_v23 = vld [vmem:[#allocation3 + $0x44] sm:$0x1] }
 0x193   :  { %v9411_v37 = vor.u32 %v10782_v62, %v9410_v7  ;;  %2764 = vst [vmem:[#allocation3 + $0x38] sm:$0xf] %v2763_v10  ;;  %v3394_v51 = vor.u32 %v3393_v63, %v3390_v19  ;;  %v7486_v49 = vshll.u32 %v7382_v50, 16  ;;  %v7485_v46 = vrot.slane %v7483_v30, 4  ;;  %v3429_v56 = vld [vmem:[#allocation2 + $0x90] sm:$0xe] }
 0x194   :  { %v2765_v15 = vld [vmem:[#allocation3 + $0x3c] sm:$0x1]  ;;  %v3381_v59 = vrot.slane %v3380_v3, 4  ;;  %v7492_v26 = vshll.u32 %v7383_v13, 16  ;;  %v218_v47 = vsel %vm11406_vm2, 0, %v217_v0  ;;  %v266_v61 = vsel %vm11414_vm6, 0, %v265_v23 }
 0x195   :  { %v2766_v55 = vsel %vm11406_vm2, %v2701_v39, %v2765_v15  ;;  %v3395_v48 = vrot.slane %v3394_v51, 4  ;;  %v7488_v41 = vrot.slane %v7486_v49, 5  ;;  %v2703_v58 = vshrl.u32 %v2645_v45, 16  ;;  %219 = vst [vmem:[#allocation3 + $0x40] sm:$0x1] %v218_v47 }
 0x196   :  { %2767 = vst [vmem:[#allocation3 + $0x3c] sm:$0x1] %v2766_v55  ;;  %v3386_v43 = vsel %vm11465_vm12, %v3381_v59, %v3385_v5  ;;  %v12263_v33 = vpop.f32.mrf.mxu3  ;;  %v7494_v1 = vrot.slane %v7492_v26, 5  ;;  %v2706_v7 = vshll.u32 %v2645_v45, 16  ;;  %v3430_v60 = vld [vmem:[#allocation2 + $0x94] sm:$0x1] }
 0x197   :  { %v12261_v31 = vpop.f32.mrf.mxu2  ;;  %v3400_v22 = vsel %vm11465_vm12, %v3395_v48, %v3399_v32  ;;  %3415 = vst [vmem:[#allocation4 + $0x214] sm:$0xf] %v3386_v43  ;;  %v7489_v18 = vor.u32 %v7488_v41, %v7485_v46  ;;  %v2705_v11 = vrot.slane %v2703_v58, 7  ;;  %v3431_v36 = vld [vmem:[#allocation2 + $0x98] sm:$0xe]  ;;  %v9302_v38 = vrot.slane %v3429_v56, 9 }
 0x198   :  { %3416 = vst [vmem:[#allocation4 + $0x238] sm:$0xf] %v3400_v22  ;;  %v3432_v40 = vld [vmem:[#allocation2 + $0x9c] sm:$0x1]  ;;  %v3475_v10 = vrot.slane %v3430_v60, 5  ;;  %v9303_v50 = vrot.slane %v3431_v36, 9 }
 0x199   :  { %267 = vst [vmem:[#allocation3 + $0x44] sm:$0x1] %v266_v61  ;;  %v7490_v25 = vrot.slane %v7489_v18, 4  ;;  %v2708_v62 = vor.u32 %v2706_v7, %v2705_v11  ;;  %v2709_v63 = vrot.slane %v2705_v11, 4  ;;  %v7526_v48 = vld [vmem:[#allocation3 + $0x98] sm:$0xe] }
 0x19a   :  { %4547 = vmatmul.bf16.gmra.mxu1 %v9411_v37  ;;  %v3479_v37 = vrot.slane %v3432_v40, 5  ;;  %v3476_v5 = vsel %vm11420_vm8, %v9302_v38, %v3475_v10  ;;  %v7527_v49 = vld [vmem:[#allocation3 + $0x9c] sm:$0x1]  ;;  %v10215_v0 = vrot.slane %v7526_v48, 9 }
 0x19b   :  { %v7495_v52 = vsel %vm11465_vm12, %v7490_v25, %v7494_v1  ;;  %3495 = vst [vmem:[#allocation4 + $0x218] sm:$0xf] %v3476_v5  ;;  %v7574_v23 = vrot.slane %v7527_v49, 5  ;;  %v268_v10 = vld [vmem:[#allocation3 + $0x5c] sm:$0x1] }
 0x19c   :  { %v2768_v32 = vld [vmem:[#allocation3 + $0x40] sm:$0xf]  ;;  %v3480_v45 = vsel %vm11420_vm8, %v9303_v50, %v3479_v37  ;;  %v269_v50 = vsel %vm11414_vm6, 0, %v268_v10 }
 0x19d   :  { %v2769_v13 = vsel %vm11444_vm11, %v2708_v62, %v2768_v32  ;;  %3496 = vst [vmem:[#allocation4 + $0x23c] sm:$0xf] %v3480_v45  ;;  %v7575_v47 = vsel %vm11420_vm8, %v10215_v0, %v7574_v23  ;;  %v220_v62 = vld [vmem:[#allocation3 + $0x58] sm:$0x1]  ;;  %v4336_v32 = vadd.f32 %v12174_v2, %v12132_v9  ;;  %v223_v49 = vld [vmem:[#allocation3 + $0x60] sm:$0x1]  ;;  %v4338_v9 = vadd.f32 %v12200_v17, %v12160_v28 }
 0x19e   :  { %v12269_v8 = vpop.f32.mrf.mxu0  ;;  %v10786_v19 = vld [vmem:[#allocation4 + $0x214] sm:$0xf]  ;;  %v12277_v59 = vpop.f32.mrf.mxu3  ;;  %2770 = vst [vmem:[#allocation3 + $0x40] sm:$0xf] %v2769_v13  ;;  %v271_v0 = vld [vmem:[#allocation3 + $0x64] sm:$0x1]  ;;  %v4341_v28 = vadd.f32 %v12219_v14, %v12188_v16  ;;  %v4343_v14 = vadd.f32 %v12245_v4, %v12210_v20 }
 0x19f   :  { %v9440_v3 = vld [vmem:[#allocation4 + $0x234] sm:$0xf0]  ;;  %v12275_v15 = vpop.f32.mrf.mxu2  ;;  %270 = vst [vmem:[#allocation3 + $0x5c] sm:$0x1] %v269_v50 }
 0x1a0   :  { %v9443_v51 = vor.u32 %v10786_v19, %v9440_v3  ;;  %7511 = vst [vmem:[#allocation4 + $0x238] sm:$0xf] %v7495_v52  ;;  %v2771_v30 = vld [vmem:[#allocation3 + $0x44] sm:$0x1] }
 0x1a1   :  { %v2772_v55 = vsel %vm11406_vm2, %v2709_v63, %v2771_v30  ;;  %v221_v63 = vsel %vm11406_vm2, 0, %v220_v62 }
 0x1a2   :  { %v4321_v39 = vpop.f32.mrf.mxu1  ;;  %4523 = vmatmul.bf16.gmra.mxu0 %v9443_v51  ;;  %2773 = vst [vmem:[#allocation3 + $0x44] sm:$0x1] %v2772_v55  ;;  %v9446_v26 = vld [vmem:[#allocation4 + $0x218] sm:$0xf]  ;;  %v4365_v55 = vadd.f32 %v12176_v42, %v4336_v32 }
 0x1a3   :  { %222 = vst [vmem:[#allocation3 + $0x58] sm:$0x1] %v221_v63 }
 0x1a4   :  { %v10791_v61 = vld [vmem:[#allocation4 + $0x238] sm:$0xf0]  ;;  %v4394_v23 = vadd.f32 %v12269_v8, %v4365_v55  ;;  %v277_v55 = vld [vmem:[#allocation3 + $0x74] sm:$0x1] }
 0x1a5   :  { %v9447_v18 = vor.u32 %v10791_v61, %v9446_v26  ;;  %7591 = vst [vmem:[#allocation4 + $0x23c] sm:$0xf] %v7575_v47  ;;  %v224_v26 = vsel %vm11406_vm2, 0, %v223_v49  ;;  %v272_v47 = vsel %vm11414_vm6, 0, %v271_v0  ;;  %v4367_v61 = vadd.f32 %v12202_v6, %v4338_v9 }
 0x1a6   :  { %v4395_v43 = vpop.f32.mrf.mxu0  ;;  %225 = vst [vmem:[#allocation3 + $0x60] sm:$0x1] %v224_v26  ;;  %v278_v16 = vsel %vm11414_vm6, 0, %v277_v55 }
 0x1a7   :  { %273 = vst [vmem:[#allocation3 + $0x64] sm:$0x1] %v272_v47  ;;  %v4396_v62 = vadd.f32 %v4395_v43, %v4367_v61 }
 0x1a8   :  { %279 = vst [vmem:[#allocation3 + $0x74] sm:$0x1] %v278_v16 }
 0x1aa   :  { %v12285_v46 = vpop.f32.mrf.mxu1  ;;  %4552 = vmatmul.bf16.gmra.mxu1 %v9447_v18  ;;  %v226_v18 = vld [vmem:[#allocation3 + $0x68] sm:$0x1] }
 0x1ab   :  { %v227_v10 = vsel %vm11406_vm2, 0, %v226_v18 }
 0x1ac   :  { %228 = vst [vmem:[#allocation3 + $0x68] sm:$0x1] %v227_v10  ;;  %v232_v10 = vld [vmem:[#allocation3 + $0x78] sm:$0x1] }
 0x1ad   :  { %v4689_v16 = vld [vmem:[#allocation3 + $0x60] sm:$0xf] }
 0x1af   :  { %v4379_v41 = vpop.f32.mrf.mxu3  ;;  %v4398_v11 = vpop.f32.mrf.mxu0 }
 0x1b1   :  { %v4350_v22 = vpop.f32.mrf.mxu2 }
 0x1b2   :  { %v4351_v58 = vadd.f32 %v4350_v22, %v4321_v39 }
 0x1b4   :  { %v4380_v1 = vadd.f32 %v4379_v41, %v4351_v58 }
 0x1b5   :  { %v4422_v56 = vpop.f32.mrf.mxu1 }
 0x1b6   :  { %v4423_v2 = vadd.f32 %v4422_v56, %v4394_v23 }
 0x1b7   :  { %v12289_v7 = vpop.f32.mrf.mxu0  ;;  %v12309_v5 = vpop.f32.mrf.mxu3 }
 0x1b9   :  { %v12301_v39 = vpop.f32.mrf.mxu2 }
 0x1bd   :  { %v4424_v25 = vpop.f32.mrf.mxu1 }
 0x1be   :  { %v4425_v56 = vadd.f32 %v4424_v25, %v4396_v62 }
 0x1bf   :  { %v12293_v36 = vpop.f32.mrf.mxu0  ;;  %v4480_v30 = vpop.f32.mrf.mxu3 }
 0x1c1   :  { %v4451_v51 = vpop.f32.mrf.mxu2 }
 0x1c2   :  { %v4452_v58 = vadd.f32 %v4451_v51, %v4423_v2  ;;  %v4370_v51 = vadd.f32 %v12221_v24, %v4341_v28  ;;  %v4372_v2 = vadd.f32 %v12247_v57, %v4343_v14  ;;  %v4346_v57 = vadd.f32 %v12261_v31, %v12233_v21  ;;  %v4692_v14 = vld [vmem:[#allocation3 + $0x64] sm:$0x1] }
 0x1c4   :  { %v4481_v17 = vadd.f32 %v4480_v30, %v4452_v58  ;;  %v4399_v49 = vadd.f32 %v4398_v11, %v4370_v51  ;;  %v4375_v21 = vadd.f32 %v12263_v33, %v4346_v57 }
 0x1c5   :  { %v12291_v60 = vpop.f32.mrf.mxu1 }
 0x1c6   :  { %v4428_v24 = vadd.f32 %v12291_v60, %v4399_v49  ;;  %v4401_v60 = vadd.f32 %v12289_v7, %v4372_v2 }
 0x1c7   :  { %v12297_v38 = vpop.f32.mrf.mxu0  ;;  %v4482_v8 = vpop.f32.mrf.mxu3 }
 0x1c9   :  { %v4453_v42 = vpop.f32.mrf.mxu2 }
 0x1ca   :  { %v4454_v43 = vadd.f32 %v4453_v42, %v4425_v56  ;;  %v4686_v42 = vld [vmem:[#allocation3 + $0x5c] sm:$0x1]  ;;  %v233_v56 = vsel %vm11406_vm2, 0, %v232_v10 }
 0x1cb   :  { %234 = vst [vmem:[#allocation3 + $0x78] sm:$0x1] %v233_v56 }
 0x1cc   :  { %v4483_v30 = vadd.f32 %v4482_v8, %v4454_v43  ;;  %v280_v8 = vld [vmem:[#allocation3 + $0x7c] sm:$0x1] }
 0x1cd   :  { %v12295_v40 = vpop.f32.mrf.mxu1 }
 0x1ce   :  { %v4430_v7 = vadd.f32 %v12295_v40, %v4401_v60  ;;  %v4404_v40 = vadd.f32 %v12293_v36, %v4375_v21 }
 0x1cf   :  { %v4485_v25 = vpop.f32.mrf.mxu3 }
 0x1d1   :  { %v4456_v50 = vpop.f32.mrf.mxu2 }
 0x1d2   :  { %v4457_v18 = vadd.f32 %v4456_v50, %v4428_v24 }
 0x1d5   :  { %v12299_v52 = vpop.f32.mrf.mxu1 }
 0x1d7   :  { %v4487_v50 = vpop.f32.mrf.mxu3 }
 0x1d9   :  { %v4458_v4 = vpop.f32.mrf.mxu2 }
 0x1dc   :  { %v4408_v19 = vpop.f32.mrf.mxu0 }
 0x1dd   :  { %v4409_v37 = vadd.f32 %v4408_v19, %v4380_v1  ;;  %v12307_v3 = vpop.f32.mrf.mxu1  ;;  %v274_v1 = vld [vmem:[#allocation3 + $0x6c] sm:$0x1] }
 0x1de   :  { %v275_v19 = vsel %vm11414_vm6, 0, %v274_v1 }
 0x1df   :  { %276 = vst [vmem:[#allocation3 + $0x6c] sm:$0x1] %v275_v19  ;;  %v4490_v60 = vpop.f32.mrf.mxu3 }
 0x1e4   :  { %v12313_v13 = vpop.f32.mrf.mxu0 }
 0x1e7   :  { %v4437_v45 = vpop.f32.mrf.mxu1 }
 0x1e8   :  { %v12316_v48 = vadd.f32 %v4437_v45, %v4409_v37  ;;  %v229_v45 = vld [vmem:[#allocation3 + $0x70] sm:$0x1] }
 0x1e9   :  { %v230_v23 = vsel %vm11406_vm2, 0, %v229_v45 }
 0x1ea   :  { %231 = vst [vmem:[#allocation3 + $0x70] sm:$0x1] %v230_v23 }
 0x1ed   :  { %v4509_v22 = vpop.f32.mrf.mxu0 }
 0x1ee   :  { %v4510_v6 = vadd.f32 %v4509_v22, %v4481_v17  ;;  %v4683_v22 = vld [vmem:[#allocation3 + $0x58] sm:$0xf] }
 0x1ef   :  { %v12325_v41 = vpop.f32.mrf.mxu1 }
 0x1f5   :  { %v4511_v63 = vpop.f32.mrf.mxu0 }
 0x1f6   :  { %v4512_v47 = vadd.f32 %v4511_v63, %v4483_v30  ;;  %v281_v63 = vsel %vm11414_vm6, 0, %v280_v8 }
 0x1f7   :  { %v4538_v37 = vpop.f32.mrf.mxu1  ;;  %282 = vst [vmem:[#allocation3 + $0x7c] sm:$0x1] %v281_v63 }
 0x1f8   :  { %v4539_v32 = vadd.f32 %v4538_v37, %v4510_v6  ;;  %v4486_v6 = vadd.f32 %v4485_v25, %v4457_v18 }
 0x1fa   :  { %v4594_v0 = vpack.c.bf16 %v4539_v32, %v4539_v32  ;;  %v4572_v31 = vmul.f32 %v4539_v32, %v4539_v32 }
 0x1fc   :  { %v4603_v26 = vshrl.u32 %v4594_v0, 16  ;;  %v4606_v11 = vshll.u32 %v4594_v0, 16  ;;  %v4459_v0 = vadd.f32 %v4458_v4, %v4430_v7 }
 0x1fe   :  { %v4605_v9 = vrot.slane %v4603_v26, 7  ;;  %v4514_v61 = vpop.f32.mrf.mxu0  ;;  %v4488_v18 = vadd.f32 %v4487_v50, %v4459_v0 }
 0x1ff   :  { %v4540_v58 = vpop.f32.mrf.mxu1  ;;  %v4515_v43 = vadd.f32 %v4514_v61, %v4486_v6  ;;  %v4461_v61 = vpop.f32.mrf.mxu2 }
 0x200   :  { %v4608_v1 = vor.u32 %v4606_v11, %v4605_v9  ;;  %v4609_v62 = vrot.slane %v4605_v9, 4  ;;  %v4541_v20 = vadd.f32 %v4540_v58, %v4512_v47  ;;  %v235_v9 = vld [vmem:[#allocation3 + $0x80] sm:$0x1] }
 0x201   :  { %v236_v33 = vsel %vm11406_vm2, 0, %v235_v9 }
 0x202   :  { %v4684_v19 = vsel %vm11444_vm11, %v4608_v1, %v4683_v22  ;;  %v4687_v28 = vsel %vm11406_vm2, %v4609_v62, %v4686_v42  ;;  %v4595_v17 = vpack.c.bf16 %v4541_v20, %v4541_v20  ;;  %v4573_v37 = vmul.f32 %v4541_v20, %v4541_v20  ;;  %v283_v42 = vld [vmem:[#allocation3 + $0x84] sm:$0x1]  ;;  %237 = vst [vmem:[#allocation3 + $0x80] sm:$0x1] %v236_v33 }
 0x203   :  { %4685 = vst [vmem:[#allocation3 + $0x58] sm:$0xf] %v4684_v19  ;;  %v4558_v23 = vadd.f32 %v4541_v20, %v4539_v32  ;;  %v4348_v32 = vadd.f32 %v12275_v15, %v12253_v35  ;;  %v4433_v1 = vadd.f32 %v12299_v52, %v4404_v40  ;;  %v284_v4 = vsel %vm11414_vm6, 0, %v283_v42  ;;  %v4695_v19 = vld [vmem:[#allocation3 + $0x68] sm:$0xf] }
 0x204   :  { %4688 = vst [vmem:[#allocation3 + $0x5c] sm:$0x1] %v4687_v28  ;;  %v4611_v51 = vshrl.u32 %v4595_v17, 16  ;;  %v4614_v55 = vshll.u32 %v4595_v17, 16  ;;  %v4580_v30 = vadd.f32 %v4573_v37, %v4572_v31  ;;  %v4698_v28 = vld [vmem:[#allocation3 + $0x6c] sm:$0x1] }
 0x205   :  { %285 = vst [vmem:[#allocation3 + $0x84] sm:$0x1] %v284_v4  ;;  %v4377_v8 = vadd.f32 %v12277_v59, %v4348_v32  ;;  %v4462_v17 = vadd.f32 %v4461_v61, %v4433_v1  ;;  %v238_v37 = vld [vmem:[#allocation3 + $0x88] sm:$0x1]  ;;  %v241_v61 = vld [vmem:[#allocation3 + $0x90] sm:$0x1] }
 0x206   :  { %v4613_v45 = vrot.slane %v4611_v51, 7  ;;  %v4516_v47 = vpop.f32.mrf.mxu0 }
 0x207   :  { %v4543_v49 = vpop.f32.mrf.mxu1  ;;  %v4517_v10 = vadd.f32 %v4516_v47, %v4488_v18  ;;  %v4406_v6 = vadd.f32 %v12297_v38, %v4377_v8  ;;  %v4491_v21 = vadd.f32 %v4490_v60, %v4462_v17  ;;  %v239_v38 = vsel %vm11406_vm2, 0, %v238_v37  ;;  %v4492_v47 = vpop.f32.mrf.mxu3  ;;  %v4707_v60 = vld [vmem:[#allocation3 + $0x78] sm:$0xf] }
 0x208   :  { %v4544_v25 = vadd.f32 %v4543_v49, %v4515_v43  ;;  %v4616_v24 = vor.u32 %v4614_v55, %v4613_v45  ;;  %v4617_v26 = vrot.slane %v4613_v45, 4  ;;  %v286_v43 = vld [vmem:[#allocation3 + $0x8c] sm:$0x1]  ;;  %v4463_v45 = vpop.f32.mrf.mxu2  ;;  %240 = vst [vmem:[#allocation3 + $0x88] sm:$0x1] %v239_v38 }
 0x209   :  { %v4435_v31 = vadd.f32 %v12307_v3, %v4406_v6  ;;  %v4704_v3 = vld [vmem:[#allocation3 + $0x74] sm:$0x1] }
 0x20a   :  { %v4559_v11 = vadd.f32 %v4558_v23, %v4544_v25  ;;  %v4574_v2 = vmul.f32 %v4544_v25, %v4544_v25  ;;  %v4596_v22 = vpack.c.bf16 %v4544_v25, %v4544_v25  ;;  %v4690_v58 = vsel %vm11444_vm11, %v4616_v24, %v4689_v16  ;;  %v4701_v24 = vld [vmem:[#allocation3 + $0x70] sm:$0xf] }
 0x20b   :  { %v4693_v36 = vsel %vm11406_vm2, %v4617_v26, %v4692_v14  ;;  %4691 = vst [vmem:[#allocation3 + $0x60] sm:$0xf] %v4690_v58  ;;  %v287_v23 = vsel %vm11414_vm6, 0, %v286_v43  ;;  %v4464_v40 = vadd.f32 %v4463_v45, %v4435_v31  ;;  %v4713_v43 = vld [vmem:[#allocation3 + $0x80] sm:$0xf] }
 0x20c   :  { %v4581_v62 = vadd.f32 %v4580_v30, %v4574_v2  ;;  %v4619_v20 = vshrl.u32 %v4596_v22, 16  ;;  %4694 = vst [vmem:[#allocation3 + $0x64] sm:$0x1] %v4693_v36  ;;  %v4622_v15 = vshll.u32 %v4596_v22, 16 }
 0x20d   :  { %288 = vst [vmem:[#allocation3 + $0x8c] sm:$0x1] %v287_v23  ;;  %v4493_v1 = vadd.f32 %v4492_v47, %v4464_v40 }
 0x20e   :  { %v4621_v35 = vrot.slane %v4619_v20, 7 }
 0x20f   :  { %v4545_v57 = vpop.f32.mrf.mxu1  ;;  %v4519_v51 = vpop.f32.mrf.mxu0 }
 0x210   :  { %v4624_v56 = vor.u32 %v4622_v15, %v4621_v35  ;;  %v4625_v52 = vrot.slane %v4621_v35, 4  ;;  %v4546_v63 = vadd.f32 %v4545_v57, %v4517_v10  ;;  %v4520_v49 = vadd.f32 %v4519_v51, %v4491_v21  ;;  %v289_v10 = vld [vmem:[#allocation3 + $0x94] sm:$0x1]  ;;  %v4466_v6 = vpop.f32.mrf.mxu2  ;;  %v4716_v21 = vld [vmem:[#allocation3 + $0x84] sm:$0x1] }
 0x211   :  { %v4467_v45 = vadd.f32 %v4466_v6, %v12316_v48 }
 0x212   :  { %v4696_v7 = vsel %vm11444_vm11, %v4624_v56, %v4695_v19  ;;  %v4699_v50 = vsel %vm11406_vm2, %v4625_v52, %v4698_v28  ;;  %v4597_v59 = vpack.c.bf16 %v4546_v63, %v4546_v63  ;;  %v4575_v0 = vmul.f32 %v4546_v63, %v4546_v63  ;;  %v4710_v19 = vld [vmem:[#allocation3 + $0x7c] sm:$0x1] }
 0x213   :  { %4697 = vst [vmem:[#allocation3 + $0x68] sm:$0xf] %v4696_v7  ;;  %v4560_v30 = vadd.f32 %v4559_v11, %v4546_v63  ;;  %v242_v11 = vsel %vm11406_vm2, 0, %v241_v61  ;;  %v4353_v7 = vadd.f32 %v12301_v39, %v12285_v46 }
 0x214   :  { %4700 = vst [vmem:[#allocation3 + $0x6c] sm:$0x1] %v4699_v50  ;;  %v4627_v55 = vshrl.u32 %v4597_v59, 16  ;;  %v4630_v14 = vshll.u32 %v4597_v59, 16  ;;  %v4582_v22 = vadd.f32 %v4581_v62, %v4575_v0  ;;  %v290_v62 = vsel %vm11414_vm6, 0, %v289_v10  ;;  %v4495_v59 = vpop.f32.mrf.mxu3 }
 0x215   :  { %243 = vst [vmem:[#allocation3 + $0x90] sm:$0x1] %v242_v11  ;;  %v4382_v31 = vadd.f32 %v12309_v5, %v4353_v7  ;;  %v4496_v39 = vadd.f32 %v4495_v59, %v4467_v45 }
 0x216   :  { %v4629_v16 = vrot.slane %v4627_v55, 7  ;;  %291 = vst [vmem:[#allocation3 + $0x94] sm:$0x1] %v290_v62 }
 0x217   :  { %v4548_v25 = vpop.f32.mrf.mxu1  ;;  %v4521_v18 = vpop.f32.mrf.mxu0  ;;  %v4411_v0 = vadd.f32 %v12313_v13, %v4382_v31  ;;  %v2609_v13 = vrot.slane %v12243_v54, 4 }
 0x218   :  { %v4549_v26 = vadd.f32 %v4548_v25, %v4520_v49  ;;  %v4632_v9 = vor.u32 %v4630_v14, %v4629_v16  ;;  %v4633_v2 = vrot.slane %v4629_v16, 4  ;;  %v4522_v35 = vadd.f32 %v4521_v18, %v4493_v1  ;;  %v4468_v14 = vpop.f32.mrf.mxu2  ;;  %v4722_v1 = vld [vmem:[#allocation3 + $0x8c] sm:$0x1] }
 0x219   :  { %v4440_v16 = vadd.f32 %v12325_v41, %v4411_v0 }
 0x21a   :  { %v4561_v33 = vadd.f32 %v4560_v30, %v4549_v26  ;;  %v4576_v42 = vmul.f32 %v4549_v26, %v4549_v26  ;;  %v4598_v32 = vpack.c.bf16 %v4549_v26, %v4549_v26  ;;  %v4702_v58 = vsel %vm11444_vm11, %v4632_v9, %v4701_v24 }
 0x21b   :  { %v4705_v36 = vsel %vm11406_vm2, %v4633_v2, %v4704_v3  ;;  %4703 = vst [vmem:[#allocation3 + $0x70] sm:$0xf] %v4702_v58  ;;  %v4469_v40 = vadd.f32 %v4468_v14, %v4440_v16  ;;  %v2610_v58 = vadd.f32 %v2609_v13, %v12243_v54 }
 0x21c   :  { %v4583_v20 = vadd.f32 %v4582_v22, %v4576_v42  ;;  %v4635_v4 = vshrl.u32 %v4598_v32, 16  ;;  %4706 = vst [vmem:[#allocation3 + $0x74] sm:$0x1] %v4705_v36  ;;  %v4638_v8 = vshll.u32 %v4598_v32, 16  ;;  %v4497_v3 = vpop.f32.mrf.mxu3  ;;  %v2631_v42 = vrot.slane %v12249_v44, 4 }
 0x21d   :  { %v4498_v32 = vadd.f32 %v4497_v3, %v4469_v40  ;;  %v4725_v59 = vld [vmem:[#allocation3 + $0x90] sm:$0xf] }
 0x21e   :  { %v4637_v15 = vrot.slane %v4635_v4, 7  ;;  %v2632_v10 = vadd.f32 %v2631_v42, %v12249_v44  ;;  %v12417_v42 = vld [vmem:[#allocation3 + $0x8] sm:$0xf] }
 0x21f   :  { %v4550_v28 = vpop.f32.mrf.mxu1  ;;  %v4524_v49 = vpop.f32.mrf.mxu0 }
 0x220   :  { %v4640_v57 = vor.u32 %v4638_v8, %v4637_v15  ;;  %v4641_v17 = vrot.slane %v4637_v15, 4  ;;  %v4551_v56 = vadd.f32 %v4550_v28, %v4522_v35  ;;  %v4525_v5 = vadd.f32 %v4524_v49, %v4496_v39 }
 0x221   :  { %v2611_v15 = vrot.slane %v2610_v58, 2 }
 0x222   :  { %v4708_v52 = vsel %vm11444_vm11, %v4640_v57, %v4707_v60  ;;  %v4711_v63 = vsel %vm11406_vm2, %v4641_v17, %v4710_v19  ;;  %v4599_v29 = vpack.c.bf16 %v4551_v56, %v4551_v56  ;;  %v4577_v25 = vmul.f32 %v4551_v56, %v4551_v56 }
 0x223   :  { %4709 = vst [vmem:[#allocation3 + $0x78] sm:$0xf] %v4708_v52  ;;  %v4562_v30 = vadd.f32 %v4561_v33, %v4551_v56  ;;  %v4719_v33 = vld [vmem:[#allocation3 + $0x88] sm:$0xf]  ;;  %v2633_v57 = vrot.slane %v2632_v10, 2  ;;  %v2612_v44 = vadd.f32 %v2611_v15, %v2610_v58 }
 0x224   :  { %4712 = vst [vmem:[#allocation3 + $0x7c] sm:$0x1] %v4711_v63  ;;  %v4643_v50 = vshrl.u32 %v4599_v29, 16  ;;  %v4646_v51 = vshll.u32 %v4599_v29, 16  ;;  %v4584_v26 = vadd.f32 %v4583_v20, %v4577_v25  ;;  %v12423_v58 = vld [vmem:[#allocation3 + $0x14] sm:$0x1] }
 0x225   :  { %v2613_v45 = vrot.slane %v2612_v44, 1  ;;  %v12443_v15 = vld [vmem:[#allocation3 + $0x3c] sm:$0x1] }
 0x226   :  { %v4645_v37 = vrot.slane %v4643_v50, 7  ;;  %v2634_v50 = vadd.f32 %v2633_v57, %v2632_v10  ;;  %v12435_v10 = vld [vmem:[#allocation3 + $0x2c] sm:$0x1]  ;;  %v12450_v57 = vld [vmem:[#allocation3 + $0x44] sm:$0x1] }
 0x227   :  { %v4553_v48 = vpop.f32.mrf.mxu1  ;;  %v4526_v22 = vpop.f32.mrf.mxu0  ;;  %v2614_v16 = vadd.f32 %v2613_v45, %v2612_v44 }
 0x228   :  { %v4648_v55 = vor.u32 %v4646_v51, %v4645_v37  ;;  %v4649_v38 = vrot.slane %v4645_v37, 4  ;;  %v4554_v24 = vadd.f32 %v4553_v48, %v4525_v5  ;;  %v4527_v36 = vadd.f32 %v4526_v22, %v4498_v32  ;;  %v12419_v32 = vld [vmem:[#allocation3 + $0xc] sm:$0x1] }
 0x22a   :  { %v4714_v23 = vsel %vm11444_vm11, %v4648_v55, %v4713_v43  ;;  %v4717_v46 = vsel %vm11406_vm2, %v4649_v38, %v4716_v21  ;;  %v4563_v47 = vadd.f32 %v4562_v30, %v4554_v24  ;;  %v4578_v9 = vmul.f32 %v4554_v24, %v4554_v24  ;;  %v4728_v43 = vld [vmem:[#allocation3 + $0x94] sm:$0x1] }
 0x22b   :  { %4715 = vst [vmem:[#allocation3 + $0x80] sm:$0xf] %v4714_v23  ;;  %v4600_v2 = vpack.c.bf16 %v4554_v24, %v4554_v24  ;;  %v2635_v23 = vrot.slane %v2634_v50, 1 }
 0x22c   :  { %4718 = vst [vmem:[#allocation3 + $0x84] sm:$0x1] %v4717_v46  ;;  %v4585_v41 = vadd.f32 %v4584_v26, %v4578_v9 }
 0x22d   :  { %v4651_v61 = vshrl.u32 %v4600_v2, 16  ;;  %v4654_v11 = vshll.u32 %v4600_v2, 16  ;;  %v2636_v25 = vadd.f32 %v2635_v23, %v2634_v50 }
 0x22f   :  { %v4653_v18 = vrot.slane %v4651_v61, 7  ;;  %v4555_v4 = vpop.f32.mrf.mxu1  ;;  %v12421_v61 = vld [vmem:[#allocation3 + $0x10] sm:$0xf] }
 0x230   :  { %v4556_v35 = vadd.f32 %v4555_v4, %v4527_v36  ;;  %v12425_v36 = vld [vmem:[#allocation3 + $0x18] sm:$0xf] }
 0x231   :  { %v4656_v20 = vor.u32 %v4654_v11, %v4653_v18  ;;  %v4657_v62 = vrot.slane %v4653_v18, 4  ;;  %v12427_v18 = vld [vmem:[#allocation3 + $0x1c] sm:$0x1]  ;;  %v12429_v11 = vld [vmem:[#allocation3 + $0x20] sm:$0xf]  ;;  %v4772_v44 = vunpack.c.l.bf16 %v12425_v36 }
 0x232   :  { %v4564_v19 = vadd.f32 %v4563_v47, %v4556_v35  ;;  %v4579_v54 = vmul.f32 %v4556_v35, %v4556_v35  ;;  %v4601_v28 = vpack.c.bf16 %v4556_v35, %v4556_v35  ;;  %v12441_v35 = vld [vmem:[#allocation3 + $0x38] sm:$0xf]  ;;  %v4773_v50 = vunpack.c.l.bf16 %v12427_v18 }
 0x233   :  { %v4720_v8 = vsel %vm11444_vm11, %v4656_v20, %v4719_v33  ;;  %v4723_v60 = vsel %vm11406_vm2, %v4657_v62, %v4722_v1  ;;  %v12431_v33 = vld [vmem:[#allocation3 + $0x24] sm:$0x1]  ;;  %v12433_v1 = vld [vmem:[#allocation3 + $0x28] sm:$0xf]  ;;  %v12437_v20 = vld [vmem:[#allocation3 + $0x30] sm:$0xf] }
 0x234   :  { %4721 = vst [vmem:[#allocation3 + $0x88] sm:$0xf] %v4720_v8  ;;  %v4565_v17 = vrot.slane %v4564_v19, 4  ;;  %v4586_v56 = vadd.f32 %v4585_v41, %v4579_v54  ;;  %v4659_v52 = vshrl.u32 %v4601_v28, 16  ;;  %v4662_v7 = vshll.u32 %v4601_v28, 16 }
 0x235   :  { %4724 = vst [vmem:[#allocation3 + $0x8c] sm:$0x1] %v4723_v60  ;;  %v12439_v62 = vld [vmem:[#allocation3 + $0x34] sm:$0x1]  ;;  %v12445_v8 = vld [vmem:[#allocation3 + $0x40] sm:$0xf]  ;;  %v4769_v54 = vunpack.c.l.bf16 %v12419_v32  ;;  %v4770_v28 = vunpack.c.l.bf16 %v12421_v61  ;;  %v4778_v45 = vunpack.c.l.bf16 %v12437_v20 }
 0x236   :  { %v4566_v63 = vadd.f32 %v4565_v17, %v4564_v19  ;;  %v4587_v29 = vrot.slane %v4586_v56, 4  ;;  %v4661_v6 = vrot.slane %v4659_v52, 7  ;;  %v4768_v19 = vunpack.c.l.bf16 %v12417_v42  ;;  %v12452_v17 = vld [vmem:[#allocation3 + $0x58] sm:$0xf] }
 0x237   :  { %v4771_v52 = vunpack.c.l.bf16 %v12423_v58 }
 0x238   :  { %v4567_v37 = vrot.slane %v4566_v63, 2  ;;  %v4588_v51 = vadd.f32 %v4587_v29, %v4586_v56  ;;  %v4664_v21 = vor.u32 %v4662_v7, %v4661_v6  ;;  %v4665_v31 = vrot.slane %v4661_v6, 4  ;;  %v12454_v56 = vld [vmem:[#allocation3 + $0x5c] sm:$0x1]  ;;  %v12460_v29 = vld [vmem:[#allocation3 + $0x64] sm:$0x1] }
 0x239   :  { %v4731_v6 = vld [vmem:[%s13211_s2] sm:$0x1] }
 0x23a   :  { %v4568_v55 = vadd.f32 %v4567_v37, %v4566_v63  ;;  %v4589_v38 = vrot.slane %v4588_v51, 2  ;;  %v4726_v49 = vsel %vm11444_vm11, %v4664_v21, %v4725_v59  ;;  %v4729_v0 = vsel %vm11406_vm2, %v4665_v31, %v4728_v43  ;;  %v12458_v63 = vld [vmem:[#allocation3 + $0x60] sm:$0xf]  ;;  %v12469_v43 = vld [vmem:[#allocation3 + $0x68] sm:$0xf] }
 0x23b   :  { %4727 = vst [vmem:[#allocation3 + $0x90] sm:$0xf] %v4726_v49  ;;  %v4774_v37 = vunpack.c.l.bf16 %v12429_v11  ;;  %v4776_v59 = vunpack.c.l.bf16 %v12433_v1  ;;  %v12471_v21 = vld [vmem:[#allocation3 + $0x6c] sm:$0x1]  ;;  %v4777_v31 = vunpack.c.l.bf16 %v12435_v10  ;;  %v12479_v49 = vld [vmem:[#allocation3 + $0x74] sm:$0x1] }
 0x23c   :  { %v4569_v46 = vrot.slane %v4568_v55, 1  ;;  %v4590_v39 = vadd.f32 %v4589_v38, %v4588_v51  ;;  %4730 = vst [vmem:[#allocation3 + $0x94] sm:$0x1] %v4729_v0  ;;  %v4775_v51 = vunpack.c.l.bf16 %v12431_v33  ;;  %v12477_v38 = vld [vmem:[#allocation3 + $0x70] sm:$0xf]  ;;  %v4922_v36 = vunpack.c.l.bf16 %v12471_v21 }
 0x23d   :  { %v12481_v0 = vld [vmem:[#allocation3 + $0x78] sm:$0xf]  ;;  %v12501_v32 = vld [vmem:[#allocation3 + $0x88] sm:$0xf]  ;;  %v4923_v18 = vunpack.c.l.bf16 %v12477_v38  ;;  %v4924_v11 = vunpack.c.l.bf16 %v12479_v49 }
 0x23e   :  { %v4570_v14 = vadd.f32 %v4569_v46, %v4568_v55  ;;  %v4591_v5 = vrot.slane %v4590_v39, 1  ;;  %v4779_v55 = vunpack.c.l.bf16 %v12439_v62  ;;  %v4780_v46 = vunpack.c.l.bf16 %v12441_v35 }
 0x23f   :  { %v4925_v33 = vunpack.c.l.bf16 %v12481_v0 }
 0x240   :  { %v4571_v48 = vadd.f32 %v4570_v14, %v2614_v16  ;;  %v4592_v40 = vadd.f32 %v4591_v5, %v4590_v39  ;;  %v4781_v39 = vunpack.c.l.bf16 %v12443_v15  ;;  %v4782_v16 = vunpack.c.l.bf16 %v12445_v8  ;;  %v12486_v14 = vld [vmem:[#allocation3 + $0x7c] sm:$0x1]  ;;  %v12488_v5 = vld [vmem:[#allocation3 + $0x80] sm:$0xf] }
 0x241   :  { %v4926_v1 = vunpack.c.l.bf16 %v12486_v14  ;;  %v4927_v62 = vunpack.c.l.bf16 %v12488_v5  ;;  %v10904_v5 = vld [vmem:[#allocation10 + $0x20] sm:$0xff] }
 0x242   :  { %v4593_v30 = vadd.f32 %v4592_v40, %v2636_v25  ;;  %v12413_v24 = vmul.f32 0.0078125, %v4571_v48  ;;  %v4732_v25 = vld [vmem:[%s13212_s3] sm:$0x1]  ;;  %v4783_v40 = vunpack.c.l.bf16 %v12450_v57 }
 0x244   :  { %v4734_v13 = vmul.f32 0.0078125, %v4593_v30  ;;  %v4735_v3 = vmul.f32 %v12413_v24, %v12413_v24  ;;  %v4917_v30 = vunpack.c.l.bf16 %v12452_v17 }
 0x246   :  { %v4736_v26 = vsub.f32 %v4734_v13, %v4735_v3  ;;  %v4918_v13 = vunpack.c.l.bf16 %v12454_v56  ;;  %v4919_v3 = vunpack.c.l.bf16 %v12458_v63 }
 0x248   :  { %v4737_v47 = vmax.f32 %v4736_v26, 0.0  ;;  %v12497_v26 = vld [vmem:[#allocation3 + $0x84] sm:$0x1] }
 0x249   :  { %v4928_v35 = vunpack.c.l.bf16 %v12497_v26  ;;  %v10914_v26 = vld [vmem:[#allocation10 + $0x70] sm:$0xff] }
 0x24a   :  { %v4738_v9 = vadd.f32 1e-05, %v4737_v47  ;;  %v4915_v47 = vld [vmem:[#allocation3 + $0x90] sm:$0xf] }
 0x24b   :  { %v4931_v10 = vunpack.c.l.bf16 %v4915_v47 }
 0x24c   :  { %11241 = vrsqrt.f32 %v4738_v9  ;;  %vm4745_vm14 = vweird.f32 %v4738_v9 }
 0x252   :  { %v11242_v2 = vpop.eup %11241 }
 0x253   :  { %v4740_v22 = vmul.f32 %v11242_v2, %v4738_v9  ;;  %vm4746_vm13 = vweird.f32 %v11242_v2  ;;  %v4916_v9 = vld [vmem:[#allocation3 + $0x94] sm:$0x1] }
 0x254   :  { %vm4747_vm15 = vmor %vm4745_vm14, %vm4746_vm13  ;;  %v4932_v20 = vunpack.c.l.bf16 %v4916_v9 }
 0x255   :  { %v4741_v41 = vmul.f32 %v11242_v2, %v4740_v22  ;;  %v4921_v22 = vunpack.c.l.bf16 %v12469_v43 }
 0x257   :  { %v4742_v4 = vmul.f32 0.5, %v4741_v41  ;;  %v12503_v41 = vld [vmem:[#allocation3 + $0x8c] sm:$0x1] }
 0x258   :  { %v4930_v15 = vunpack.c.l.bf16 %v12503_v41 }
 0x259   :  { %v4743_v60 = vsub.f32 1.5, %v4742_v4 }
 0x25b   :  { %v4744_v7 = vmul.f32 %v11242_v2, %v4743_v60 }
 0x25d   :  { %v4748_v23 = vsel %vm4747_vm15, %v11242_v2, %v4744_v7  ;;  %v4920_v2 = vunpack.c.l.bf16 %v12460_v29 }
 0x25e   :  { %v4749_v48 = vmul.f32 %v4748_v23, %v4731_v6 }
 0x260   :  { %v4750_v61 = vmul.f32 %v4749_v48, %v12413_v24  ;;  %v12506_v58 = vperm.slane %v4749_v48, 0  ;;  %v4929_v24 = vunpack.c.l.bf16 %v12501_v32  ;;  %v10907_v48 = vld [vmem:[#allocation10 + $0x38] sm:$0xff] }
 0x261   :  { %6565 = vmatpush.bf16.msra.mxu2 %v10907_v48 }
 0x262   :  { %v4751_v4 = vsub.f32 %v4732_v25, %v4750_v61  ;;  %v4947_v60 = vmul.f32 %v4931_v10, %v12506_v58  ;;  %v4948_v57 = vmul.f32 %v4932_v20, %v12506_v58  ;;  %v4787_v56 = vmul.f32 %v12506_v58, %v4768_v19 }
 0x263   :  { %v4788_v63 = vmul.f32 %v12506_v58, %v4769_v54  ;;  %v4789_v29 = vmul.f32 %v12506_v58, %v4770_v28  ;;  %v4790_v6 = vmul.f32 %v12506_v58, %v4771_v52  ;;  %v4791_v7 = vmul.f32 %v12506_v58, %v4772_v44  ;;  %v10931_v52 = vld [vmem:[#allocation10 + $0xf8] sm:$0xff] }
 0x264   :  { %v12517_v8 = vperm.slane %v4751_v4, 0  ;;  %v4792_v38 = vmul.f32 %v12506_v58, %v4773_v50  ;;  %v4793_v23 = vmul.f32 %v12506_v58, %v4774_v37  ;;  %v4794_v25 = vmul.f32 %v12506_v58, %v4775_v51  ;;  %6652 = vmatpush.bf16.msrb.mxu1 %v10931_v52 }
 0x265   :  { %v4795_v19 = vmul.f32 %v12506_v58, %v4776_v59  ;;  %v4796_v54 = vmul.f32 %v12506_v58, %v4777_v31  ;;  %v4797_v28 = vmul.f32 %v12506_v58, %v4778_v45  ;;  %v4798_v9 = vmul.f32 %v12506_v58, %v4779_v55  ;;  %v10923_v55 = vld [vmem:[#allocation10 + $0xb8] sm:$0xff] }
 0x266   :  { %v4963_v43 = vadd.f32 %v4947_v60, %v12517_v8  ;;  %v4964_v21 = vadd.f32 %v4948_v57, %v12517_v8  ;;  %v4799_v61 = vmul.f32 %v12506_v58, %v4780_v46  ;;  %v4800_v50 = vmul.f32 %v12506_v58, %v4781_v39  ;;  %v5038_v46 = vld [vmem:[#allocation3 + $0x90] sm:$0xf]  ;;  %v5041_v39 = vld [vmem:[#allocation3 + $0x94] sm:$0x1]  ;;  %6623 = vmatpush.bf16.msrb.mxu0 %v10923_v55 }
 0x267   :  { %v4801_v37 = vmul.f32 %v12506_v58, %v4782_v16  ;;  %v4802_v51 = vmul.f32 %v12506_v58, %v4783_v40  ;;  %v12540_v59 = vmul.f32 %v4917_v30, %v12506_v58  ;;  %v12543_v4 = vmul.f32 %v4918_v13, %v12506_v58  ;;  %v10906_v13 = vld [vmem:[#allocation10 + $0x30] sm:$0xff] }
 0x268   :  { %v4979_v47 = vmax.f32 %v4963_v43, 0.0  ;;  %v4980_v44 = vmax.f32 %v4964_v21, 0.0  ;;  %v12546_v10 = vmul.f32 %v4919_v3, %v12506_v58  ;;  %v12549_v16 = vmul.f32 %v4920_v2, %v12506_v58  ;;  %6566 = vmatpush.bf16.msra.mxu2 %v10906_v13 }
 0x269   :  { %v12552_v40 = vmul.f32 %v4921_v22, %v12506_v58  ;;  %v12555_v30 = vmul.f32 %v4922_v36, %v12506_v58  ;;  %v12558_v20 = vmul.f32 %v4923_v18, %v12506_v58  ;;  %v4806_v57 = vadd.f32 %v12517_v8, %v4787_v56  ;;  %v10930_v22 = vld [vmem:[#allocation10 + $0xf0] sm:$0xff] }
 0x26a   :  { %v4995_v31 = vpack.c.bf16 %v4979_v47, %v4979_v47  ;;  %v4996_v45 = vpack.c.bf16 %v4980_v44, %v4980_v44  ;;  %v4807_v2 = vadd.f32 %v12517_v8, %v4788_v63  ;;  %v4808_v36 = vadd.f32 %v12517_v8, %v4789_v29  ;;  %v10922_v47 = vld [vmem:[#allocation10 + $0xb0] sm:$0xff]  ;;  %6653 = vmatpush.bf16.msrb.mxu1 %v10930_v22 }
 0x26b   :  { %v4809_v43 = vadd.f32 %v12517_v8, %v4790_v6  ;;  %v4810_v18 = vadd.f32 %v12517_v8, %v4791_v7  ;;  %v4811_v21 = vadd.f32 %v12517_v8, %v4792_v38  ;;  %v4812_v48 = vadd.f32 %v12517_v8, %v4793_v23  ;;  %v10905_v38 = vld [vmem:[#allocation10 + $0x28] sm:$0xff]  ;;  %6624 = vmatpush.bf16.msrb.mxu0 %v10922_v47 }
 0x26c   :  { %v5039_v3 = vsel %vm11444_vm11, %v4995_v31, %v5038_v46  ;;  %v5042_v60 = vsel %vm11406_vm2, %v4996_v45, %v5041_v39  ;;  %v4813_v52 = vadd.f32 %v12517_v8, %v4794_v25  ;;  %v4814_v56 = vadd.f32 %v12517_v8, %v4795_v19  ;;  %6567 = vmatpush.bf16.msra.mxu2 %v10905_v38 }
 0x26d   :  { %5040 = vst [vmem:[#allocation3 + $0x90] sm:$0xf] %v5039_v3  ;;  %v4815_v63 = vadd.f32 %v12517_v8, %v4796_v54  ;;  %v12575_v44 = vadd.f32 %v12517_v8, %v4797_v28  ;;  %v12578_v29 = vadd.f32 %v12517_v8, %v4798_v9  ;;  %v12581_v6 = vadd.f32 %v12517_v8, %v4799_v61  ;;  %v10915_v28 = vld [vmem:[#allocation10 + $0x78] sm:$0xff]  ;;  %v10929_v9 = vld [vmem:[#allocation10 + $0xe8] sm:$0xff] }
 0x26e   :  { %5043 = vst [vmem:[#allocation3 + $0x94] sm:$0x1] %v5042_v60  ;;  %v12584_v7 = vadd.f32 %v12517_v8, %v4800_v50  ;;  %v12587_v23 = vadd.f32 %v12517_v8, %v4801_v37  ;;  %v12590_v25 = vadd.f32 %v12517_v8, %v4802_v51  ;;  %v4822_v19 = vmax.f32 %v4806_v57, 0.0  ;;  %6594 = vmatpush.bf16.msra.mxu3 %v10915_v28 }
 0x26f   :  { %v4823_v54 = vmax.f32 %v4807_v2, 0.0  ;;  %v12595_v61 = vmul.f32 %v4924_v11, %v12506_v58  ;;  %v12600_v50 = vmul.f32 %v4925_v33, %v12506_v58  ;;  %v4824_v37 = vmax.f32 %v4808_v36, 0.0  ;;  %v10921_v11 = vld [vmem:[#allocation10 + $0xa8] sm:$0xff]  ;;  %6654 = vmatpush.bf16.msrb.mxu1 %v10929_v9 }
 0x270   :  { %v4825_v31 = vmax.f32 %v4809_v43, 0.0  ;;  %v12605_v51 = vmul.f32 %v4926_v1, %v12506_v58  ;;  %v12610_v45 = vmul.f32 %v4927_v62, %v12506_v58  ;;  %v12615_v49 = vmul.f32 %v4928_v35, %v12506_v58  ;;  %6625 = vmatpush.bf16.msrb.mxu0 %v10921_v11  ;;  %v10928_v35 = vld [vmem:[#allocation10 + $0xe0] sm:$0xff]  ;;  %v4856_v43 = vld [vmem:[#allocation3 + $0xc] sm:$0x1]  ;;  %6568 = vmatpush.bf16.msra.mxu2 %v10904_v5 }
 0x271   :  { %v4826_v0 = vmax.f32 %v4810_v18, 0.0  ;;  %v12620_v33 = vmul.f32 %v4929_v24, %v12506_v58  ;;  %v4827_v14 = vmax.f32 %v4811_v21, 0.0  ;;  %v4828_v1 = vmax.f32 %v4812_v48, 0.0 }
 0x272   :  { %v4829_v55 = vmax.f32 %v4813_v52, 0.0  ;;  %v4830_v62 = vmax.f32 %v4814_v56, 0.0  ;;  %v4831_v46 = vmax.f32 %v4815_v63, 0.0  ;;  %v4838_v39 = vpack.c.bf16 %v4822_v19, %v4822_v19  ;;  %6595 = vmatpush.bf16.msra.mxu3 %v10914_v26  ;;  %v4865_v52 = vld [vmem:[#allocation3 + $0x18] sm:$0xf] }
 0x273   :  { %v4839_v13 = vpack.c.bf16 %v4823_v54, %v4823_v54  ;;  %v12625_v3 = vmul.f32 %v4930_v15, %v12506_v58  ;;  %v4832_v32 = vmax.f32 %v12575_v44, 0.0  ;;  %v4840_v24 = vpack.c.bf16 %v4824_v37, %v4824_v37  ;;  %v4859_v58 = vld [vmem:[#allocation3 + $0x10] sm:$0xf]  ;;  %v4862_v15 = vld [vmem:[#allocation3 + $0x14] sm:$0x1]  ;;  %6655 = vmatpush.bf16.msrb.mxu1 %v10928_v35 }
 0x274   :  { %v4841_v60 = vpack.c.bf16 %v4825_v31, %v4825_v31  ;;  %v4833_v57 = vmax.f32 %v12578_v29, 0.0  ;;  %v4834_v2 = vmax.f32 %v12581_v6, 0.0  ;;  %v4835_v22 = vmax.f32 %v12584_v7, 0.0  ;;  %v4868_v29 = vld [vmem:[#allocation3 + $0x1c] sm:$0x1] }
 0x275   :  { %v4842_v36 = vpack.c.bf16 %v4826_v0, %v4826_v0  ;;  %v4836_v18 = vmax.f32 %v12587_v23, 0.0  ;;  %v4843_v21 = vpack.c.bf16 %v4827_v14, %v4827_v14  ;;  %v4844_v48 = vpack.c.bf16 %v4828_v1, %v4828_v1  ;;  %v4871_v19 = vld [vmem:[#allocation3 + $0x20] sm:$0xf]  ;;  %v4874_v54 = vld [vmem:[#allocation3 + $0x24] sm:$0x1] }
 0x276   :  { %v4845_v41 = vpack.c.bf16 %v4829_v55, %v4829_v55  ;;  %v4846_v56 = vpack.c.bf16 %v4830_v62, %v4830_v62  ;;  %v12632_v63 = vpack.c.bf16 %v4831_v46, %v4831_v46  ;;  %v4854_v47 = vsel %vm11444_vm11, %v4838_v39, %v12417_v42  ;;  %v4877_v37 = vld [vmem:[#allocation3 + $0x28] sm:$0xf]  ;;  %v4880_v31 = vld [vmem:[#allocation3 + $0x2c] sm:$0x1] }
 0x277   :  { %v4857_v44 = vsel %vm11406_vm2, %v4839_v13, %v4856_v43  ;;  %v4837_v6 = vmax.f32 %v12590_v25, 0.0  ;;  %v12640_v7 = vpack.c.bf16 %v4832_v32, %v4832_v32  ;;  %4855 = vst [vmem:[#allocation3 + $0x8] sm:$0xf] %v4854_v47  ;;  %v4860_v38 = vsel %vm11444_vm11, %v4840_v24, %v4859_v58  ;;  %v10913_v39 = vld [vmem:[#allocation10 + $0x68] sm:$0xff]  ;;  %v10903_v13 = vld [vmem:[#allocation10 + $0x18] sm:$0xff] }
 0x278   :  { %v4863_v23 = vsel %vm11406_vm2, %v4841_v60, %v4862_v15  ;;  %v12646_v28 = vpack.c.bf16 %v4833_v57, %v4833_v57  ;;  %v12648_v42 = vpack.c.bf16 %v4834_v2, %v4834_v2  ;;  %v12650_v9 = vpack.c.bf16 %v4835_v22, %v4835_v22  ;;  %4858 = vst [vmem:[#allocation3 + $0xc] sm:$0x1] %v4857_v44  ;;  %v10920_v60 = vld [vmem:[#allocation10 + $0xa0] sm:$0xff]  ;;  %v4883_v57 = vld [vmem:[#allocation3 + $0x30] sm:$0xf] }
 0x279   :  { %v4866_v25 = vsel %vm11444_vm11, %v4842_v36, %v4865_v52  ;;  %v12654_v0 = vpack.c.bf16 %v4836_v18, %v4836_v18  ;;  %4861 = vst [vmem:[#allocation3 + $0x10] sm:$0xf] %v4860_v38  ;;  %v4869_v11 = vsel %vm11406_vm2, %v4843_v21, %v4868_v29  ;;  %v4872_v14 = vsel %vm11444_vm11, %v4844_v48, %v4871_v19  ;;  %v4889_v2 = vld [vmem:[#allocation3 + $0x38] sm:$0xf]  ;;  %v5005_v19 = vld [vmem:[#allocation3 + $0x64] sm:$0x1] }
 0x27a   :  { %v4875_v1 = vsel %vm11406_vm2, %v4845_v41, %v4874_v54  ;;  %4864 = vst [vmem:[#allocation3 + $0x14] sm:$0x1] %v4863_v23  ;;  %v4878_v55 = vsel %vm11444_vm11, %v4846_v56, %v4877_v37  ;;  %v4881_v5 = vsel %vm11406_vm2, %v12632_v63, %v4880_v31  ;;  %v4949_v62 = vadd.f32 %v12540_v59, %v12517_v8  ;;  %v10927_v59 = vld [vmem:[#allocation10 + $0xd8] sm:$0xff]  ;;  %v4898_v41 = vld [vmem:[#allocation3 + $0x44] sm:$0x1] }
 0x27b   :  { %v4950_v46 = vadd.f32 %v12543_v4, %v12517_v8  ;;  %4867 = vst [vmem:[#allocation3 + $0x18] sm:$0xf] %v4866_v25  ;;  %v4951_v26 = vadd.f32 %v12546_v10, %v12517_v8  ;;  %v4952_v35 = vadd.f32 %v12549_v16, %v12517_v8  ;;  %v4953_v32 = vadd.f32 %v12552_v40, %v12517_v8  ;;  %v4999_v63 = vld [vmem:[#allocation3 + $0x5c] sm:$0x1]  ;;  %v5008_v25 = vld [vmem:[#allocation3 + $0x68] sm:$0xf] }
 0x27c   :  { %v4954_v24 = vadd.f32 %v12555_v30, %v12517_v8  ;;  %4870 = vst [vmem:[#allocation3 + $0x1c] sm:$0x1] %v4869_v11  ;;  %v12681_v4 = vadd.f32 %v12558_v20, %v12517_v8  ;;  %v12685_v10 = vadd.f32 %v12595_v61, %v12517_v8  ;;  %v12689_v16 = vadd.f32 %v12600_v50, %v12517_v8  ;;  %v4886_v30 = vld [vmem:[#allocation3 + $0x34] sm:$0x1] }
 0x27d   :  { %v12693_v40 = vadd.f32 %v12605_v51, %v12517_v8  ;;  %4873 = vst [vmem:[#allocation3 + $0x20] sm:$0xf] %v4872_v14  ;;  %v12697_v22 = vadd.f32 %v12610_v45, %v12517_v8  ;;  %v12701_v20 = vadd.f32 %v12615_v49, %v12517_v8  ;;  %v12705_v61 = vadd.f32 %v12620_v33, %v12517_v8  ;;  %v4892_v49 = vld [vmem:[#allocation3 + $0x3c] sm:$0x1] }
 0x27e   :  { %v12709_v50 = vadd.f32 %v12625_v3, %v12517_v8  ;;  %4876 = vst [vmem:[#allocation3 + $0x24] sm:$0x1] %v4875_v1  ;;  %v4884_v51 = vsel %vm11444_vm11, %v12640_v7, %v4883_v57  ;;  %v4965_v36 = vmax.f32 %v4949_v62, 0.0  ;;  %v4966_v45 = vmax.f32 %v4950_v46, 0.0  ;;  %6596 = vmatpush.bf16.msra.mxu3 %v10913_v39  ;;  %6569 = vmatpush.bf16.msra.mxu2 %v10903_v13  ;;  %v4895_v8 = vld [vmem:[#allocation3 + $0x40] sm:$0xf] }
 0x27f   :  { %v4967_v43 = vmax.f32 %v4951_v26, 0.0  ;;  %v4853_v18 = vpack.c.bf16 %v4837_v6, %v4837_v6  ;;  %4879 = vst [vmem:[#allocation3 + $0x28] sm:$0xf] %v4878_v55  ;;  %v4887_v33 = vsel %vm11406_vm2, %v12646_v28, %v4886_v30  ;;  %v4968_v21 = vmax.f32 %v4952_v35, 0.0  ;;  %6626 = vmatpush.bf16.msrb.mxu0 %v10920_v60  ;;  %6656 = vmatpush.bf16.msrb.mxu1 %v10927_v59  ;;  %v5002_v6 = vld [vmem:[#allocation3 + $0x60] sm:$0xf] }
 0x280   :  { %4882 = vst [vmem:[#allocation3 + $0x2c] sm:$0x1] %v4881_v5  ;;  %v4890_v3 = vsel %vm11444_vm11, %v12648_v42, %v4889_v2  ;;  %v4969_v48 = vmax.f32 %v4953_v32, 0.0  ;;  %v4893_v58 = vsel %vm11406_vm2, %v12650_v9, %v4892_v49  ;;  %v4970_v15 = vmax.f32 %v4954_v24, 0.0  ;;  %v10912_v42 = vld [vmem:[#allocation10 + $0x60] sm:$0xff]  ;;  %v10902_v9 = vld [vmem:[#allocation10 + $0x10] sm:$0xff] }
 0x281   :  { %4885 = vst [vmem:[#allocation3 + $0x30] sm:$0xf] %v4884_v51  ;;  %v4981_v52 = vpack.c.bf16 %v4965_v36, %v4965_v36  ;;  %v4982_v56 = vpack.c.bf16 %v4966_v45, %v4966_v45  ;;  %v4896_v47 = vsel %vm11444_vm11, %v12654_v0, %v4895_v8  ;;  %v4971_v44 = vmax.f32 %v12681_v4, 0.0  ;;  %v10919_v14 = vld [vmem:[#allocation10 + $0x98] sm:$0xff]  ;;  %v10926_v1 = vld [vmem:[#allocation10 + $0xd0] sm:$0xff]  ;;  %v10925_v2 = vld [vmem:[#allocation10 + $0xc8] sm:$0xff] }
 0x282   :  { %4888 = vst [vmem:[#allocation3 + $0x34] sm:$0x1] %v4887_v33  ;;  %v4983_v29 = vpack.c.bf16 %v4967_v43, %v4967_v43  ;;  %v4899_v7 = vsel %vm11406_vm2, %v4853_v18, %v4898_v41  ;;  %v4972_v38 = vmax.f32 %v12685_v10, 0.0  ;;  %v4984_v23 = vpack.c.bf16 %v4968_v21, %v4968_v21  ;;  %v5011_v55 = vld [vmem:[#allocation3 + $0x6c] sm:$0x1]  ;;  %6597 = vmatpush.bf16.msra.mxu3 %v10912_v42  ;;  %v10911_v4 = vld [vmem:[#allocation10 + $0x58] sm:$0xff] }
 0x283   :  { %4891 = vst [vmem:[#allocation3 + $0x38] sm:$0xf] %v4890_v3  ;;  %v4973_v54 = vmax.f32 %v12689_v16, 0.0  ;;  %v4985_v28 = vpack.c.bf16 %v4969_v48, %v4969_v48  ;;  %v4974_v37 = vmax.f32 %v12693_v40, 0.0  ;;  %v4986_v31 = vpack.c.bf16 %v4970_v15, %v4970_v15  ;;  %v5062_v39 = vld [vmem:[#allocation3 + $0x8] sm:$0xf]  ;;  %6570 = vmatpush.bf16.msra.mxu2 %v10902_v9  ;;  %6627 = vmatpush.bf16.msrb.mxu0 %v10919_v14 }
 0x284   :  { %4894 = vst [vmem:[#allocation3 + $0x3c] sm:$0x1] %v4893_v58  ;;  %v4997_v0 = vsel %vm11444_vm11, %v4981_v52, %v12452_v17  ;;  %v5000_v11 = vsel %vm11406_vm2, %v4982_v56, %v4999_v63  ;;  %v4975_v5 = vmax.f32 %v12697_v22, 0.0  ;;  %v4987_v62 = vpack.c.bf16 %v4971_v44, %v4971_v44  ;;  %v5014_v13 = vld [vmem:[#allocation3 + $0x70] sm:$0xf]  ;;  %v10901_v10 = vld [vmem:[#allocation10 + $0x8] sm:$0xff]  ;;  %6657 = vmatpush.bf16.msrb.mxu1 %v10926_v1 }
 0x285   :  { %4897 = vst [vmem:[#allocation3 + $0x40] sm:$0xf] %v4896_v47  ;;  %v5003_v46 = vsel %vm11444_vm11, %v4983_v29, %v5002_v6  ;;  %v4976_v26 = vmax.f32 %v12701_v20, 0.0  ;;  %v4988_v35 = vpack.c.bf16 %v4972_v38, %v4972_v38  ;;  %v5006_v17 = vsel %vm11406_vm2, %v4984_v23, %v5005_v19  ;;  %v5017_v32 = vld [vmem:[#allocation3 + $0x74] sm:$0x1]  ;;  %v10917_v41 = vld [vmem:[#allocation10 + $0x88] sm:$0xff] }
 0x286   :  { %4900 = vst [vmem:[#allocation3 + $0x44] sm:$0x1] %v4899_v7  ;;  %v4977_v24 = vmax.f32 %v12705_v61, 0.0  ;;  %v4978_v60 = vmax.f32 %v12709_v50, 0.0  ;;  %v4989_v59 = vpack.c.bf16 %v4973_v54, %v4973_v54  ;;  %v5009_v57 = vsel %vm11444_vm11, %v4985_v28, %v5008_v25  ;;  %v10918_v30 = vld [vmem:[#allocation10 + $0x90] sm:$0xff]  ;;  %6598 = vmatpush.bf16.msra.mxu3 %v10911_v4  ;;  %v10900_v58 = vld [vmem:[#allocation10] sm:$0xff] }
 0x287   :  { %4998 = vst [vmem:[#allocation3 + $0x58] sm:$0xf] %v4997_v0  ;;  %v4990_v16 = vpack.c.bf16 %v4974_v37, %v4974_v37  ;;  %v5012_v40 = vsel %vm11406_vm2, %v4986_v31, %v5011_v55  ;;  %v5091_v22 = vshrl.u32 %v5062_v39, 16  ;;  %v5094_v20 = vshll.u32 %v5062_v39, 16  ;;  %v5020_v61 = vld [vmem:[#allocation3 + $0x78] sm:$0xf]  ;;  %6571 = vmatpush.bf16.msra.mxu2 %v10901_v10  ;;  %6628 = vmatpush.bf16.msrb.mxu0 %v10918_v30 }
 0x288   :  { %5001 = vst [vmem:[#allocation3 + $0x5c] sm:$0x1] %v5000_v11  ;;  %v5023_v50 = vld [vmem:[#allocation3 + $0x7c] sm:$0x1]  ;;  %v4991_v51 = vpack.c.bf16 %v4975_v5, %v4975_v5  ;;  %v5015_v36 = vsel %vm11444_vm11, %v4987_v62, %v5014_v13  ;;  %v5026_v45 = vld [vmem:[#allocation3 + $0x80] sm:$0xf]  ;;  %v4992_v43 = vpack.c.bf16 %v4976_v26, %v4976_v26  ;;  %v5018_v49 = vsel %vm11406_vm2, %v4988_v35, %v5017_v32 }
 0x289   :  { %5004 = vst [vmem:[#allocation3 + $0x60] sm:$0xf] %v5003_v46  ;;  %v10910_v18 = vld [vmem:[#allocation10 + $0x50] sm:$0xff]  ;;  %v5093_v33 = vrot.slane %v5091_v22, 4  ;;  %v5096_v21 = vrot.slane %v5094_v20, 5  ;;  %v4993_v3 = vpack.c.bf16 %v4977_v24, %v4977_v24  ;;  %v5021_v48 = vsel %vm11444_vm11, %v4989_v59, %v5020_v61  ;;  %v10924_v15 = vld [vmem:[#allocation10 + $0xc0] sm:$0xff]  ;;  %6658 = vmatpush.bf16.msrb.mxu1 %v10925_v2 }
 0x28a   :  { %5007 = vst [vmem:[#allocation3 + $0x64] sm:$0x1] %v5006_v17  ;;  %v5029_v8 = vld [vmem:[#allocation3 + $0x84] sm:$0x1]  ;;  %v4994_v52 = vpack.c.bf16 %v4978_v60, %v4978_v60  ;;  %v5024_v56 = vsel %vm11406_vm2, %v4990_v16, %v5023_v50  ;;  %v5206_v63 = vld [vmem:[#allocation3 + $0x8] sm:$0xe]  ;;  %v5027_v44 = vsel %vm11444_vm11, %v4991_v51, %v5026_v45  ;;  %6599 = vmatpush.bf16.msra.mxu3 %v10910_v18 }
 0x28b   :  { %5010 = vst [vmem:[#allocation3 + $0x68] sm:$0xf] %v5009_v57  ;;  %v5063_v47 = vld [vmem:[#allocation3 + $0xc] sm:$0x1]  ;;  %v10939_v6 = vld [vmem:[#allocation10 + $0x138] sm:$0xff]  ;;  %v5097_v7 = vor.u32 %v5096_v21, %v5093_v33  ;;  %v5030_v19 = vsel %vm11406_vm2, %v4992_v43, %v5029_v8  ;;  %6572 = vmatpush.bf16.msra.mxu2 %v10900_v58  ;;  %v10916_v9 = vld [vmem:[#allocation10 + $0x80] sm:$0xff]  ;;  %6629 = vmatpush.bf16.msrb.mxu0 %v10917_v41 }
 0x28c   :  { %5013 = vst [vmem:[#allocation3 + $0x6c] sm:$0x1] %v5012_v40  ;;  %v5207_v29 = vld [vmem:[#allocation3 + $0xc] sm:$0x1]  ;;  %v5032_v38 = vld [vmem:[#allocation3 + $0x88] sm:$0xf] }
 0x28d   :  { %5016 = vst [vmem:[#allocation3 + $0x70] sm:$0xf] %v5015_v36  ;;  %v5035_v23 = vld [vmem:[#allocation3 + $0x8c] sm:$0x1]  ;;  %v5033_v54 = vsel %vm11444_vm11, %v4993_v3, %v5032_v38  ;;  %v5045_v42 = vld [vmem:[#allocation3 + $0x8] sm:$0xf]  ;;  %6659 = vmatpush.bf16.msrb.mxu1 %v10924_v15 }
 0x28e   :  { %5019 = vst [vmem:[#allocation3 + $0x74] sm:$0x1] %v5018_v49  ;;  %v10909_v28 = vld [vmem:[#allocation10 + $0x48] sm:$0xff]  ;;  %v5100_v25 = vshll.u32 %v5063_v47, 16  ;;  %v10938_v37 = vld [vmem:[#allocation10 + $0x130] sm:$0xff]  ;;  %v5036_v31 = vsel %vm11406_vm2, %v4994_v52, %v5035_v23  ;;  %v9737_v11 = vrot.slane %v5206_v63, 9 }
 0x28f   :  { %5022 = vst [vmem:[#allocation3 + $0x78] sm:$0xf] %v5021_v48  ;;  %v5284_v0 = vld [vmem:[#allocation3 + $0x8] sm:$0xf]  ;;  %v5242_v14 = vrot.slane %v5207_v29, 5  ;;  %v10908_v55 = vld [vmem:[#allocation10 + $0x40] sm:$0xff]  ;;  %6681 = vmatpush.bf16.msrb.mxu2 %v10939_v6  ;;  %6600 = vmatpush.bf16.msra.mxu3 %v10909_v28 }
 0x290   :  { %5025 = vst [vmem:[#allocation3 + $0x7c] sm:$0x1] %v5024_v56  ;;  %v5064_v1 = vld [vmem:[#allocation3 + $0x10] sm:$0xf]  ;;  %v5098_v5 = vrot.slane %v5097_v7, 4  ;;  %v5102_v17 = vrot.slane %v5100_v25, 5  ;;  %6630 = vmatpush.bf16.msrb.mxu0 %v10916_v9 }
 0x291   :  { %5028 = vst [vmem:[#allocation3 + $0x80] sm:$0xf] %v5027_v44  ;;  %v5285_v27 = vld [vmem:[#allocation3 + $0x10] sm:$0xf]  ;;  %v5209_v46 = vld [vmem:[#allocation3 + $0x14] sm:$0x1]  ;;  %v5243_v59 = vsel %vm11420_vm8, %v9737_v11, %v5242_v14 }
 0x292   :  { %5031 = vst [vmem:[#allocation3 + $0x84] sm:$0x1] %v5030_v19  ;;  %v5208_v62 = vld [vmem:[#allocation3 + $0x10] sm:$0xe]  ;;  %v5065_v39 = vld [vmem:[#allocation3 + $0x14] sm:$0x1]  ;;  %v5103_v40 = vsel %vm11465_vm12, %v5098_v5, %v5102_v17 }
 0x293   :  { %v5105_v13 = vshrl.u32 %v5064_v1, 16  ;;  %5034 = vst [vmem:[#allocation3 + $0x88] sm:$0xf] %v5033_v54  ;;  %v5210_v26 = vld [vmem:[#allocation3 + $0x18] sm:$0xe]  ;;  %v5108_v24 = vshll.u32 %v5064_v1, 16  ;;  %6682 = vmatpush.bf16.msrb.mxu2 %v10938_v37  ;;  %6601 = vmatpush.bf16.msra.mxu3 %v10908_v55 }
 0x294   :  { %v5066_v35 = vld [vmem:[#allocation3 + $0x18] sm:$0xf]  ;;  %v5067_v12 = vld [vmem:[#allocation3 + $0x1c] sm:$0x1]  ;;  %5037 = vst [vmem:[#allocation3 + $0x8c] sm:$0x1] %v5036_v31 }
 0x295   :  { %v5107_v32 = vrot.slane %v5105_v13, 4  ;;  %v5119_v60 = vshrl.u32 %v5066_v35, 16  ;;  %5053 = vst [vmem:[#allocation4 + $0x24] sm:$0xf] %v5045_v42  ;;  %v10947_v57 = vld [vmem:[#allocation10 + $0x178] sm:$0xff]  ;;  %v5122_v16 = vshll.u32 %v5066_v35, 16 }
 0x296   :  { %v5046_v4 = vld [vmem:[#allocation3 + $0x10] sm:$0xf]  ;;  %v5211_v10 = vld [vmem:[#allocation3 + $0x1c] sm:$0x1]  ;;  %5292 = vst [vmem:[#allocation4 + $0xc] sm:$0xf] %v5284_v0 }
 0x297   :  { %v5047_v30 = vld [vmem:[#allocation3 + $0x18] sm:$0xf]  ;;  %v10937_v2 = vld [vmem:[#allocation10 + $0x128] sm:$0xff]  ;;  %v5110_v22 = vrot.slane %v5108_v24, 5  ;;  %v5114_v20 = vshll.u32 %v5065_v39, 16  ;;  %v5121_v61 = vrot.slane %v5119_v60, 4  ;;  %6710 = vmatpush.bf16.msrb.mxu3 %v10947_v57 }
 0x298   :  { %5293 = vst [vmem:[#allocation4 + $0x30] sm:$0xf] %v5285_v27  ;;  %v9738_v50 = vrot.slane %v5208_v62, 9  ;;  %v5246_v51 = vrot.slane %v5209_v46, 5  ;;  %v5124_v36 = vrot.slane %v5122_v16, 5  ;;  %v5128_v45 = vshll.u32 %v5067_v12, 16  ;;  %6683 = vmatpush.bf16.msrb.mxu2 %v10937_v2 }
 0x299   :  { %v9762_v43 = vld [vmem:[#allocation4] sm:$0xf]  ;;  %5277 = vst [vmem:[#allocation4 + $0x2c] sm:$0xf] %v5243_v59  ;;  %v5286_v49 = vld [vmem:[#allocation3 + $0x18] sm:$0xf]  ;;  %v5111_v21 = vor.u32 %v5110_v22, %v5107_v32 }
 0x29a   :  { %v9739_v18 = vrot.slane %v5210_v26, 9  ;;  %v5250_v33 = vrot.slane %v5211_v10, 5  ;;  %5197 = vst [vmem:[#allocation4 + $0x28] sm:$0xf] %v5103_v40  ;;  %v5287_v8 = vld [vmem:[#allocation3 + $0x20] sm:$0xf]  ;;  %v5125_v48 = vor.u32 %v5124_v36, %v5121_v61  ;;  %v5247_v63 = vsel %vm11420_vm8, %v9738_v50, %v5246_v51 }
 0x29b   :  { %v10946_v3 = vld [vmem:[#allocation10 + $0x170] sm:$0xff]  ;;  %v10936_v41 = vld [vmem:[#allocation10 + $0x120] sm:$0xff]  ;;  %5054 = vst [vmem:[#allocation4 + $0x48] sm:$0xf] %v5046_v4  ;;  %v5112_v58 = vrot.slane %v5111_v21, 4  ;;  %v5116_v15 = vrot.slane %v5114_v20, 5 }
 0x29c   :  { %v5212_v52 = vld [vmem:[#allocation3 + $0x20] sm:$0xe]  ;;  %v9770_v56 = vld [vmem:[#allocation4 + $0x8] sm:$0xf]  ;;  %5055 = vst [vmem:[#allocation4 + $0x6c] sm:$0xf] %v5047_v30  ;;  %v5251_v23 = vsel %vm11420_vm8, %v9739_v18, %v5250_v33  ;;  %6711 = vmatpush.bf16.msrb.mxu3 %v10946_v3  ;;  %6684 = vmatpush.bf16.msrb.mxu2 %v10936_v41 }
 0x29d   :  { %v5126_v47 = vrot.slane %v5125_v48, 4  ;;  %v5130_v44 = vrot.slane %v5128_v45, 5  ;;  %v10945_v29 = vld [vmem:[#allocation10 + $0x168] sm:$0xff]  ;;  %v5213_v6 = vld [vmem:[#allocation3 + $0x24] sm:$0x1]  ;;  %v5117_v42 = vsel %vm11465_vm12, %v5112_v58, %v5116_v15  ;;  %v9740_v1 = vrot.slane %v5212_v52, 9 }
 0x29e   :  { %v10868_v7 = vld [vmem:[#allocation4 + $0x20] sm:$0xf0]  ;;  %5294 = vst [vmem:[#allocation4 + $0x54] sm:$0xf] %v5286_v49  ;;  %v5214_v19 = vld [vmem:[#allocation3 + $0x28] sm:$0xe] }
 0x29f   :  { %v10864_v38 = vld [vmem:[#allocation4 + $0x4] sm:$0xf]  ;;  %v9763_v54 = vor.u32 %v10868_v7, %v9762_v43  ;;  %v10865_v28 = vld [vmem:[#allocation4 + $0xc] sm:$0xf]  ;;  %5295 = vst [vmem:[#allocation4 + $0x78] sm:$0xf] %v5287_v8  ;;  %v5131_v31 = vsel %vm11465_vm12, %v5126_v47, %v5130_v44 }
 0x2a0   :  { %v5048_v9 = vld [vmem:[#allocation3 + $0x20] sm:$0xf]  ;;  %v5215_v25 = vld [vmem:[#allocation3 + $0x2c] sm:$0x1]  ;;  %v9772_v37 = vld [vmem:[#allocation4 + $0x2c] sm:$0xf0]  ;;  %6712 = vmatpush.bf16.msrb.mxu3 %v10945_v29 }
 0x2a1   :  { %5278 = vst [vmem:[#allocation4 + $0x50] sm:$0xf] %v5247_v63  ;;  %v5049_v0 = vld [vmem:[#allocation3 + $0x28] sm:$0xf]  ;;  %6573 = vmatmul.bf16.vlgmr.msra.gmra.mxu2 %v9763_v54  ;;  %v9775_v11 = vor.u32 %v10865_v28, %v9772_v37  ;;  %v10869_v14 = vld [vmem:[#allocation4 + $0x28] sm:$0xf0] }
 0x2a2   :  { %5279 = vst [vmem:[#allocation4 + $0x74] sm:$0xf] %v5251_v23  ;;  %v5254_v27 = vrot.slane %v5213_v6, 5  ;;  %v9771_v55 = vor.u32 %v10869_v14, %v9770_v56  ;;  %v9764_v5 = vld [vmem:[#allocation4 + $0x24] sm:$0xf0]  ;;  %v9741_v62 = vrot.slane %v5214_v19, 9 }
 0x2a3   :  { %5198 = vst [vmem:[#allocation4 + $0x4c] sm:$0xf] %v5117_v42  ;;  %v5258_v46 = vrot.slane %v5215_v25, 5  ;;  %6660 = vmatmul.bf16.vlgmr.msrb.gmra.mxu1 %v9775_v11  ;;  %v9767_v39 = vor.u32 %v10864_v38, %v9764_v5  ;;  %v5288_v13 = vld [vmem:[#allocation3 + $0x28] sm:$0xf]  ;;  %v10944_v26 = vld [vmem:[#allocation10 + $0x160] sm:$0xff] }
 0x2a4   :  { %5199 = vst [vmem:[#allocation4 + $0x70] sm:$0xf] %v5131_v31  ;;  %v10963_v35 = vld [vmem:[#allocation10 + $0x1f8] sm:$0xff]  ;;  %6631 = vmatmul.bf16.vlgmr.msrb.gmra.mxu0 %v9771_v55  ;;  %v5289_v12 = vld [vmem:[#allocation3 + $0x30] sm:$0xf]  ;;  %v5255_v32 = vsel %vm11420_vm8, %v9740_v1, %v5254_v27  ;;  %6713 = vmatpush.bf16.msrb.mxu3 %v10944_v26  ;;  %v10961_v33 = vld [vmem:[#allocation10 + $0x1e8] sm:$0xff] }
 0x2a5   :  { %5056 = vst [vmem:[#allocation4 + $0x90] sm:$0xf] %v5048_v9  ;;  %v10955_v17 = vld [vmem:[#allocation10 + $0x1b8] sm:$0xff]  ;;  %6602 = vmatmul.bf16.vlgmr.msra.gmra.mxu3 %v9767_v39  ;;  %6768 = vmatpush.bf16.msra.mxu1 %v10963_v35  ;;  %v10962_v24 = vld [vmem:[#allocation10 + $0x1f0] sm:$0xff]  ;;  %v5068_v59 = vld [vmem:[#allocation3 + $0x20] sm:$0xf]  ;;  %v5259_v57 = vsel %vm11420_vm8, %v9741_v62, %v5258_v46 }
 0x2a6   :  { %5057 = vst [vmem:[#allocation4 + $0xb4] sm:$0xf] %v5049_v0  ;;  %v10935_v60 = vld [vmem:[#allocation10 + $0x118] sm:$0xff]  ;;  %6739 = vmatpush.bf16.msra.mxu0 %v10955_v17  ;;  %v10954_v4 = vld [vmem:[#allocation10 + $0x1b0] sm:$0xff]  ;;  %v5070_v10 = vld [vmem:[#allocation3 + $0x28] sm:$0xf] }
 0x2a7   :  { %5296 = vst [vmem:[#allocation4 + $0x9c] sm:$0xf] %v5288_v13  ;;  %6685 = vmatpush.bf16.msrb.mxu2 %v10935_v60  ;;  %v5069_v16 = vld [vmem:[#allocation3 + $0x24] sm:$0x1]  ;;  %v12781_v40 = vld [vmem:[#allocation3 + $0x8] sm:$0xf] }
 0x2a8   :  { %5297 = vst [vmem:[#allocation4 + $0xc0] sm:$0xf] %v5289_v12  ;;  %v5133_v30 = vshrl.u32 %v5068_v59, 16  ;;  %v5136_v2 = vshll.u32 %v5068_v59, 16  ;;  %v5071_v22 = vld [vmem:[#allocation3 + $0x2c] sm:$0x1] }
 0x2a9   :  { %5280 = vst [vmem:[#allocation4 + $0x98] sm:$0xf] %v5255_v32  ;;  %6769 = vmatpush.bf16.msra.mxu1 %v10962_v24  ;;  %v5147_v20 = vshrl.u32 %v5070_v10, 16  ;;  %v9798_v61 = vld [vmem:[#allocation4 + $0x48] sm:$0xf]  ;;  %v5142_v36 = vshll.u32 %v5069_v16, 16 }
 0x2aa   :  { %5281 = vst [vmem:[#allocation4 + $0xbc] sm:$0xf] %v5259_v57  ;;  %6740 = vmatpush.bf16.msra.mxu0 %v10954_v4  ;;  %v5135_v50 = vrot.slane %v5133_v30, 4  ;;  %v5138_v51 = vrot.slane %v5136_v2, 5  ;;  %v5150_v45 = vshll.u32 %v5070_v10, 16  ;;  %v10943_v18 = vld [vmem:[#allocation10 + $0x158] sm:$0xff] }
 0x2ab   :  { %v10877_v43 = vld [vmem:[#allocation4 + $0x68] sm:$0xf0]  ;;  %v5149_v49 = vrot.slane %v5147_v20, 4  ;;  %v10874_v21 = vld [vmem:[#allocation4 + $0x54] sm:$0xf]  ;;  %v5156_v41 = vshll.u32 %v5071_v22, 16  ;;  %6714 = vmatpush.bf16.msrb.mxu3 %v10943_v18 }
 0x2ac   :  { %v9808_v8 = vld [vmem:[#allocation4 + $0x74] sm:$0xf0]  ;;  %v5139_v3 = vor.u32 %v5138_v51, %v5135_v50  ;;  %v5152_v48 = vrot.slane %v5150_v45, 5  ;;  %v10953_v58 = vld [vmem:[#allocation10 + $0x1a8] sm:$0xff]  ;;  %v9806_v15 = vld [vmem:[#allocation4 + $0x50] sm:$0xf]  ;;  %v9799_v19 = vor.u32 %v10877_v43, %v9798_v61 }
 0x2ad   :  { %v10878_v52 = vld [vmem:[#allocation4 + $0x70] sm:$0xf0]  ;;  %6770 = vmatpush.bf16.msra.mxu1 %v10961_v33  ;;  %v10960_v56 = vld [vmem:[#allocation10 + $0x1e0] sm:$0xff]  ;;  %v5050_v47 = vld [vmem:[#allocation3 + $0x30] sm:$0xf]  ;;  %v5317_v44 = vshrl.u32 %v12781_v40, 16  ;;  %v9811_v31 = vor.u32 %v10874_v21, %v9808_v8 }
 0x2ae   :  { %v10934_v63 = vld [vmem:[#allocation10 + $0x110] sm:$0xff]  ;;  %v10873_v29 = vld [vmem:[#allocation4 + $0x4c] sm:$0xf]  ;;  %v5140_v6 = vrot.slane %v5139_v3, 4  ;;  %v5144_v7 = vrot.slane %v5142_v36, 5  ;;  %v5153_v38 = vor.u32 %v5152_v48, %v5149_v49  ;;  %6741 = vmatpush.bf16.msra.mxu0 %v10953_v58  ;;  %v5158_v25 = vrot.slane %v5156_v41, 5 }
 0x2af   :  { %v5051_v23 = vld [vmem:[#allocation3 + $0x38] sm:$0xf]  ;;  %v9800_v54 = vld [vmem:[#allocation4 + $0x6c] sm:$0xf0]  ;;  %6686 = vmatpush.bf16.msrb.mxu2 %v10934_v63  ;;  %5058 = vst [vmem:[#allocation4 + $0xd8] sm:$0xf] %v5050_v47  ;;  %v9807_v14 = vor.u32 %v10878_v52, %v9806_v15 }
 0x2b0   :  { %v5290_v28 = vld [vmem:[#allocation3 + $0x38] sm:$0xf]  ;;  %v5145_v42 = vsel %vm11465_vm12, %v5140_v6, %v5144_v7  ;;  %v5154_v9 = vrot.slane %v5153_v38, 4  ;;  %5059 = vst [vmem:[#allocation4 + $0xfc] sm:$0xf] %v5051_v23  ;;  %v5320_v37 = vshll.u32 %v12781_v40, 16  ;;  %v9803_v5 = vor.u32 %v10873_v29, %v9800_v54 }
 0x2b1   :  { %6578 = vmatmul.bf16.gmra.mxu2 %v9799_v19  ;;  %5200 = vst [vmem:[#allocation4 + $0x94] sm:$0xf] %v5145_v42  ;;  %6771 = vmatpush.bf16.msra.mxu1 %v10960_v56  ;;  %v5291_v0 = vld [vmem:[#allocation3 + $0x40] sm:$0xf]  ;;  %v5216_v11 = vld [vmem:[#allocation3 + $0x30] sm:$0xe] }
 0x2b2   :  { %v5159_v1 = vsel %vm11465_vm12, %v5154_v9, %v5158_v25  ;;  %5298 = vst [vmem:[#allocation4 + $0xe4] sm:$0xf] %v5290_v28  ;;  %v5217_v27 = vld [vmem:[#allocation3 + $0x34] sm:$0x1]  ;;  %v5218_v55 = vld [vmem:[#allocation3 + $0x38] sm:$0xe] }
 0x2b3   :  { %6665 = vmatmul.bf16.gmra.mxu1 %v9811_v31  ;;  %5201 = vst [vmem:[#allocation4 + $0xb8] sm:$0xf] %v5159_v1  ;;  %v10952_v62 = vld [vmem:[#allocation10 + $0x1a0] sm:$0xff]  ;;  %v10942_v46 = vld [vmem:[#allocation10 + $0x150] sm:$0xff]  ;;  %v10959_v39 = vld [vmem:[#allocation10 + $0x1d8] sm:$0xff]  ;;  %v9742_v13 = vrot.slane %v5216_v11, 9 }
 0x2b4   :  { %6636 = vmatmul.bf16.gmra.mxu0 %v9807_v14  ;;  %5299 = vst [vmem:[#allocation4 + $0x108] sm:$0xf] %v5291_v0  ;;  %v5219_v26 = vld [vmem:[#allocation3 + $0x3c] sm:$0x1]  ;;  %v5262_v35 = vrot.slane %v5217_v27, 5  ;;  %v9743_v12 = vrot.slane %v5218_v55, 9  ;;  %6715 = vmatpush.bf16.msrb.mxu3 %v10942_v46 }
 0x2b5   :  { %6607 = vmatmul.bf16.gmra.mxu3 %v9803_v5  ;;  %6742 = vmatpush.bf16.msra.mxu0 %v10952_v62  ;;  %v5266_v17 = vrot.slane %v5219_v26, 5  ;;  %v10951_v32 = vld [vmem:[#allocation10 + $0x198] sm:$0xff]  ;;  %v10933_v24 = vld [vmem:[#allocation10 + $0x108] sm:$0xff]  ;;  %v10958_v59 = vld [vmem:[#allocation10 + $0x1d0] sm:$0xff]  ;;  %v5319_v4 = vrot.slane %v5317_v44, 4  ;;  %v5322_v10 = vrot.slane %v5320_v37, 5 }
 0x2b6   :  { %6772 = vmatpush.bf16.msra.mxu1 %v10959_v39  ;;  %v5263_v60 = vsel %vm11420_vm8, %v9742_v13, %v5262_v35  ;;  %v5072_v57 = vld [vmem:[#allocation3 + $0x30] sm:$0xf]  ;;  %6687 = vmatpush.bf16.msrb.mxu2 %v10933_v24  ;;  %v10886_v30 = vld [vmem:[#allocation4 + $0xb0] sm:$0xf0]  ;;  %v5074_v22 = vld [vmem:[#allocation3 + $0x38] sm:$0xf] }
 0x2b7   :  { %v5267_v16 = vsel %vm11420_vm8, %v9743_v12, %v5266_v17  ;;  %5282 = vst [vmem:[#allocation4 + $0xe0] sm:$0xf] %v5263_v60  ;;  %v9834_v40 = vld [vmem:[#allocation4 + $0x90] sm:$0xf]  ;;  %v5073_v2 = vld [vmem:[#allocation3 + $0x34] sm:$0x1]  ;;  %v5323_v18 = vor.u32 %v5322_v10, %v5319_v4 }
 0x2b8   :  { %5283 = vst [vmem:[#allocation4 + $0x104] sm:$0xf] %v5267_v16  ;;  %v10950_v20 = vld [vmem:[#allocation10 + $0x190] sm:$0xff]  ;;  %v5075_v61 = vld [vmem:[#allocation3 + $0x3c] sm:$0x1]  ;;  %v5161_v50 = vshrl.u32 %v5072_v57, 16  ;;  %v9835_v47 = vor.u32 %v10886_v30, %v9834_v40 }
 0x2b9   :  { %6743 = vmatpush.bf16.msra.mxu0 %v10951_v32  ;;  %v5164_v51 = vshll.u32 %v5072_v57, 16  ;;  %v10883_v36 = vld [vmem:[#allocation4 + $0x9c] sm:$0xf]  ;;  %v9844_v45 = vld [vmem:[#allocation4 + $0xbc] sm:$0xf0]  ;;  %v5175_v43 = vshrl.u32 %v5074_v22, 16 }
 0x2ba   :  { %6773 = vmatpush.bf16.msra.mxu1 %v10958_v59  ;;  %v5178_v49 = vshll.u32 %v5074_v22, 16  ;;  %v5163_v33 = vrot.slane %v5161_v50, 4  ;;  %v5170_v8 = vshll.u32 %v5073_v2, 16  ;;  %v10941_v3 = vld [vmem:[#allocation10 + $0x148] sm:$0xff]  ;;  %v9842_v41 = vld [vmem:[#allocation4 + $0x98] sm:$0xf]  ;;  %v9847_v44 = vor.u32 %v10883_v36, %v9844_v45 }
 0x2bb   :  { %v5166_v21 = vrot.slane %v5164_v51, 5  ;;  %v10957_v48 = vld [vmem:[#allocation10 + $0x1c8] sm:$0xff]  ;;  %v10887_v58 = vld [vmem:[#allocation4 + $0xb8] sm:$0xf0]  ;;  %v5177_v15 = vrot.slane %v5175_v43, 4  ;;  %v5184_v56 = vshll.u32 %v5075_v61, 16  ;;  %6716 = vmatpush.bf16.msrb.mxu3 %v10941_v3 }
 0x2bc   :  { %v5180_v52 = vrot.slane %v5178_v49, 5  ;;  %v10932_v63 = vld [vmem:[#allocation10 + $0x100] sm:$0xff]  ;;  %v10882_v29 = vld [vmem:[#allocation4 + $0x94] sm:$0xf]  ;;  %v10949_v7 = vld [vmem:[#allocation10 + $0x188] sm:$0xff]  ;;  %v5324_v42 = vrot.slane %v5323_v18, 4  ;;  %v9843_v46 = vor.u32 %v10887_v58, %v9842_v41 }
 0x2bd   :  { %6744 = vmatpush.bf16.msra.mxu0 %v10950_v20  ;;  %v5167_v6 = vor.u32 %v5166_v21, %v5163_v33  ;;  %v5301_v38 = vld [vmem:[#allocation3 + $0xc] sm:$0x1]  ;;  %v5302_v23 = vld [vmem:[#allocation3 + $0x10] sm:$0xf]  ;;  %6688 = vmatpush.bf16.msrb.mxu2 %v10932_v63  ;;  %v10956_v54 = vld [vmem:[#allocation10 + $0x1c0] sm:$0xff]  ;;  %v5172_v0 = vrot.slane %v5170_v8, 5 }
 0x2be   :  { %v5181_v19 = vor.u32 %v5180_v52, %v5177_v15  ;;  %6774 = vmatpush.bf16.msra.mxu1 %v10957_v48  ;;  %v5303_v28 = vld [vmem:[#allocation3 + $0x14] sm:$0x1]  ;;  %v5326_v9 = vshll.u32 %v5301_v38, 16  ;;  %v5331_v25 = vshrl.u32 %v5302_v23, 16  ;;  %v9836_v37 = vld [vmem:[#allocation4 + $0xb4] sm:$0xf0] }
 0x2bf   :  { %v5168_v31 = vrot.slane %v5167_v6, 4  ;;  %v5334_v11 = vshll.u32 %v5302_v23, 16  ;;  %v5340_v14 = vshll.u32 %v5303_v28, 16  ;;  %v5186_v27 = vrot.slane %v5184_v56, 5  ;;  %v5541_v62 = vld [vmem:[#allocation3 + $0x10] sm:$0xf] }
 0x2c0   :  { %v5182_v1 = vrot.slane %v5181_v19, 4  ;;  %v5328_v55 = vrot.slane %v5326_v9, 5  ;;  %v5333_v5 = vrot.slane %v5331_v25, 4  ;;  %v10948_v26 = vld [vmem:[#allocation10 + $0x180] sm:$0xff]  ;;  %v5542_v35 = vld [vmem:[#allocation3 + $0x14] sm:$0x1]  ;;  %v9839_v17 = vor.u32 %v10882_v29, %v9836_v37 }
 0x2c1   :  { %6583 = vmatmul.bf16.gmra.mxu2 %v9835_v47  ;;  %v5173_v39 = vsel %vm11465_vm12, %v5168_v31, %v5172_v0  ;;  %6745 = vmatpush.bf16.msra.mxu0 %v10949_v7  ;;  %v5336_v13 = vrot.slane %v5334_v11, 5  ;;  %v5558_v12 = vshrl.u32 %v5541_v62, 16  ;;  %v5543_v60 = vld [vmem:[#allocation3 + $0x18] sm:$0xf]  ;;  %v5544_v59 = vld [vmem:[#allocation3 + $0x1c] sm:$0x1] }
 0x2c2   :  { %v5187_v32 = vsel %vm11465_vm12, %v5182_v1, %v5186_v27  ;;  %5202 = vst [vmem:[#allocation4 + $0xdc] sm:$0xf] %v5173_v39  ;;  %6775 = vmatpush.bf16.msra.mxu1 %v10956_v54  ;;  %v5329_v24 = vsel %vm11465_vm12, %v5324_v42, %v5328_v55  ;;  %v5342_v4 = vrot.slane %v5340_v14, 5  ;;  %v5561_v16 = vshll.u32 %v5541_v62, 16  ;;  %v10940_v40 = vld [vmem:[#allocation10 + $0x140] sm:$0xff]  ;;  %v10971_v20 = vld [vmem:[#allocation10 + $0x238] sm:$0xff] }
 0x2c3   :  { %6670 = vmatmul.bf16.gmra.mxu1 %v9847_v44  ;;  %5203 = vst [vmem:[#allocation4 + $0x100] sm:$0xf] %v5187_v32  ;;  %v5337_v57 = vor.u32 %v5336_v13, %v5333_v5  ;;  %v5560_v10 = vrot.slane %v5558_v12, 4  ;;  %v5567_v30 = vshll.u32 %v5542_v35, 16  ;;  %v5572_v2 = vshrl.u32 %v5543_v60, 16  ;;  %v11015_v45 = vld [vmem:[#allocation10 + $0x38] sm:$0xff]  ;;  %6717 = vmatpush.bf16.msrb.mxu3 %v10940_v40 }
 0x2c4   :  { %6641 = vmatmul.bf16.gmra.mxu0 %v9843_v46  ;;  %5436 = vst [vmem:[#allocation4 + $0x10] sm:$0xf] %v5329_v24  ;;  %v5575_v22 = vshll.u32 %v5543_v60, 16  ;;  %v5563_v50 = vrot.slane %v5561_v16, 5  ;;  %v5581_v51 = vshll.u32 %v5544_v59, 16  ;;  %6797 = vmatpush.bf16.msra.mxu2 %v10971_v20  ;;  %v10970_v33 = vld [vmem:[#allocation10 + $0x230] sm:$0xff] }
 0x2c5   :  { %6612 = vmatmul.bf16.gmra.mxu3 %v9839_v17  ;;  %v5338_v61 = vrot.slane %v5337_v57, 4  ;;  %6746 = vmatpush.bf16.msra.mxu0 %v10948_v26  ;;  %v5525_v36 = vld [vmem:[#allocation3 + $0x10] sm:$0xf]  ;;  %v5574_v43 = vrot.slane %v5572_v2, 4  ;;  %v5526_v18 = vld [vmem:[#allocation3 + $0x18] sm:$0xf] }
 0x2c6   :  { %v5577_v49 = vrot.slane %v5575_v22, 5  ;;  %v5564_v8 = vor.u32 %v5563_v50, %v5560_v10  ;;  %5533 = vst [vmem:[#allocation4 + $0x18] sm:$0xf] %v5525_v36  ;;  %v5444_v3 = vld [vmem:[#allocation3 + $0x8] sm:$0xe]  ;;  %v5569_v56 = vrot.slane %v5567_v30, 5 }
 0x2c7   :  { %v5343_v21 = vsel %vm11465_vm12, %v5338_v61, %v5342_v4  ;;  %v5445_v48 = vld [vmem:[#allocation3 + $0xc] sm:$0x1]  ;;  %8392 = vmatpush.bf16.msra.mxu3 %v11015_v45  ;;  %v5446_v58 = vld [vmem:[#allocation3 + $0x10] sm:$0xe]  ;;  %v5447_v15 = vld [vmem:[#allocation3 + $0x14] sm:$0x1] }
 0x2c8   :  { %5437 = vst [vmem:[#allocation4 + $0x34] sm:$0xf] %v5343_v21  ;;  %v5578_v41 = vor.u32 %v5577_v49, %v5574_v43  ;;  %v5565_v52 = vrot.slane %v5564_v8, 4  ;;  %v5583_v63 = vrot.slane %v5581_v51, 5  ;;  %v9744_v47 = vrot.slane %v5444_v3, 9  ;;  %6798 = vmatpush.bf16.msra.mxu2 %v10970_v33 }
 0x2c9   :  { %5534 = vst [vmem:[#allocation4 + $0x3c] sm:$0xf] %v5526_v18  ;;  %v9870_v44 = vld [vmem:[#allocation4 + $0xd8] sm:$0xf]  ;;  %v10895_v29 = vld [vmem:[#allocation4 + $0xf8] sm:$0xf0] }
 0x2ca   :  { %v5579_v6 = vrot.slane %v5578_v41, 4  ;;  %v5478_v7 = vrot.slane %v5445_v48, 5  ;;  %v9745_v38 = vrot.slane %v5446_v58, 9  ;;  %v5482_v23 = vrot.slane %v5447_v15, 5  ;;  %v10892_v19 = vld [vmem:[#allocation4 + $0xe4] sm:$0xf] }
 0x2cb   :  { %v9880_v54 = vld [vmem:[#allocation4 + $0x104] sm:$0xf0]  ;;  %v5570_v28 = vsel %vm11465_vm12, %v5565_v52, %v5569_v56  ;;  %v5304_v42 = vld [vmem:[#allocation3 + $0x18] sm:$0xf]  ;;  %v5305_v9 = vld [vmem:[#allocation3 + $0x1c] sm:$0x1]  ;;  %v9871_v26 = vor.u32 %v10895_v29, %v9870_v44 }
 0x2cc   :  { %v9878_v25 = vld [vmem:[#allocation4 + $0xe0] sm:$0xf]  ;;  %v10896_v37 = vld [vmem:[#allocation4 + $0x100] sm:$0xf0]  ;;  %v5584_v31 = vsel %vm11465_vm12, %v5579_v6, %v5583_v63  ;;  %5677 = vst [vmem:[#allocation4 + $0x1c] sm:$0xf] %v5570_v28  ;;  %v5479_v0 = vsel %vm11420_vm8, %v9744_v47, %v5478_v7  ;;  %v5483_v11 = vsel %vm11420_vm8, %v9745_v38, %v5482_v23  ;;  %v9883_v32 = vor.u32 %v10892_v19, %v9880_v54 }
 0x2cd   :  { %v5306_v14 = vld [vmem:[#allocation3 + $0x20] sm:$0xf]  ;;  %v5307_v1 = vld [vmem:[#allocation3 + $0x24] sm:$0x1]  ;;  %5678 = vst [vmem:[#allocation4 + $0x40] sm:$0xf] %v5584_v31  ;;  %v9879_v59 = vor.u32 %v10896_v37, %v9878_v25 }
 0x2ce   :  { %v5345_v27 = vshrl.u32 %v5304_v42, 16  ;;  %v5348_v55 = vshll.u32 %v5304_v42, 16  ;;  %v5354_v5 = vshll.u32 %v5305_v9, 16  ;;  %v5359_v62 = vshrl.u32 %v5306_v14, 16  ;;  %v10891_v46 = vld [vmem:[#allocation4 + $0xdc] sm:$0xf] }
 0x2cf   :  { %5516 = vst [vmem:[#allocation4 + $0x14] sm:$0xf] %v5479_v0  ;;  %v5362_v39 = vshll.u32 %v5306_v14, 16  ;;  %v5368_v13 = vshll.u32 %v5307_v1, 16  ;;  %v9872_v35 = vld [vmem:[#allocation4 + $0xfc] sm:$0xf0] }
 0x2d0   :  { %5517 = vst [vmem:[#allocation4 + $0x38] sm:$0xf] %v5483_v11  ;;  %v5347_v12 = vrot.slane %v5345_v27, 4  ;;  %v5350_v17 = vrot.slane %v5348_v55, 5  ;;  %v5361_v24 = vrot.slane %v5359_v62, 4  ;;  %v5356_v4 = vrot.slane %v5354_v5, 5 }
 0x2d1   :  { %v5364_v60 = vrot.slane %v5362_v39, 5  ;;  %6588 = vmatmul.bf16.gmra.mxu2 %v9871_v26  ;;  %v5370_v10 = vrot.slane %v5368_v13, 5  ;;  %v5545_v16 = vld [vmem:[#allocation3 + $0x20] sm:$0xf]  ;;  %v5546_v40 = vld [vmem:[#allocation3 + $0x24] sm:$0x1]  ;;  %v9875_v30 = vor.u32 %v10891_v46, %v9872_v35 }
 0x2d2   :  { %v5351_v57 = vor.u32 %v5350_v17, %v5347_v12  ;;  %v5547_v22 = vld [vmem:[#allocation3 + $0x28] sm:$0xf]  ;;  %v5548_v20 = vld [vmem:[#allocation3 + $0x2c] sm:$0x1]  ;;  %v5586_v61 = vshrl.u32 %v5545_v16, 16  ;;  %v5589_v50 = vshll.u32 %v5545_v16, 16 }
 0x2d3   :  { %v5365_v2 = vor.u32 %v5364_v60, %v5361_v24  ;;  %6675 = vmatmul.bf16.gmra.mxu1 %v9883_v32  ;;  %v5595_v36 = vshll.u32 %v5546_v40, 16  ;;  %v5600_v45 = vshrl.u32 %v5547_v22, 16  ;;  %v5603_v43 = vshll.u32 %v5547_v22, 16  ;;  %v11014_v41 = vld [vmem:[#allocation10 + $0x30] sm:$0xff]  ;;  %v10969_v58 = vld [vmem:[#allocation10 + $0x228] sm:$0xff]  ;;  %v10968_v0 = vld [vmem:[#allocation10 + $0x220] sm:$0xff] }
 0x2d4   :  { %v5352_v51 = vrot.slane %v5351_v57, 4  ;;  %6646 = vmatmul.bf16.gmra.mxu0 %v9879_v59  ;;  %v5588_v18 = vrot.slane %v5586_v61, 4  ;;  %v5591_v33 = vrot.slane %v5589_v50, 5  ;;  %v5609_v21 = vshll.u32 %v5548_v20, 16  ;;  %8393 = vmatpush.bf16.msra.mxu3 %v11014_v41  ;;  %v5527_v47 = vld [vmem:[#allocation3 + $0x20] sm:$0xf] }
 0x2d5   :  { %v5366_v49 = vrot.slane %v5365_v2, 4  ;;  %6617 = vmatmul.bf16.gmra.mxu3 %v9875_v30  ;;  %v5597_v3 = vrot.slane %v5595_v36, 5  ;;  %v5602_v48 = vrot.slane %v5600_v45, 4  ;;  %v5605_v56 = vrot.slane %v5603_v43, 5  ;;  %v5528_v44 = vld [vmem:[#allocation3 + $0x28] sm:$0xf]  ;;  %6799 = vmatpush.bf16.msra.mxu2 %v10969_v58 }
 0x2d6   :  { %v5357_v8 = vsel %vm11465_vm12, %v5352_v51, %v5356_v4  ;;  %v5592_v52 = vor.u32 %v5591_v33, %v5588_v18  ;;  %v5611_v63 = vrot.slane %v5609_v21, 5  ;;  %5535 = vst [vmem:[#allocation4 + $0x60] sm:$0xf] %v5527_v47  ;;  %v5448_v7 = vld [vmem:[#allocation3 + $0x18] sm:$0xe]  ;;  %v11013_v38 = vld [vmem:[#allocation10 + $0x28] sm:$0xff] }
 0x2d7   :  { %v5371_v15 = vsel %vm11465_vm12, %v5366_v49, %v5370_v10  ;;  %5438 = vst [vmem:[#allocation4 + $0x58] sm:$0xf] %v5357_v8  ;;  %v5606_v6 = vor.u32 %v5605_v56, %v5602_v48  ;;  %v5449_v23 = vld [vmem:[#allocation3 + $0x1c] sm:$0x1]  ;;  %v5450_v19 = vld [vmem:[#allocation3 + $0x20] sm:$0xe] }
 0x2d8   :  { %5439 = vst [vmem:[#allocation4 + $0x7c] sm:$0xf] %v5371_v15  ;;  %v5593_v29 = vrot.slane %v5592_v52, 4  ;;  %v9778_v54 = vld [vmem:[#allocation4 + $0x10] sm:$0xf]  ;;  %v9746_v37 = vrot.slane %v5448_v7, 9  ;;  %8394 = vmatpush.bf16.msra.mxu3 %v11013_v38 }
 0x2d9   :  { %5536 = vst [vmem:[#allocation4 + $0x84] sm:$0xf] %v5528_v44  ;;  %v10870_v28 = vld [vmem:[#allocation4 + $0x30] sm:$0xf0]  ;;  %v5607_v9 = vrot.slane %v5606_v6, 4  ;;  %v5486_v31 = vrot.slane %v5449_v23, 5  ;;  %6800 = vmatpush.bf16.msra.mxu2 %v10968_v0 }
 0x2da   :  { %v5598_v42 = vsel %vm11465_vm12, %v5593_v29, %v5597_v3  ;;  %v5451_v25 = vld [vmem:[#allocation3 + $0x24] sm:$0x1]  ;;  %v9747_v11 = vrot.slane %v5450_v19, 9  ;;  %v5308_v1 = vld [vmem:[#allocation3 + $0x28] sm:$0xf]  ;;  %v9779_v57 = vor.u32 %v10870_v28, %v9778_v54  ;;  %v11031_v41 = vld [vmem:[#allocation10 + $0xb8] sm:$0xff] }
 0x2db   :  { %5679 = vst [vmem:[#allocation4 + $0x64] sm:$0xf] %v5598_v42  ;;  %v5490_v14 = vrot.slane %v5451_v25, 5  ;;  %v10867_v27 = vld [vmem:[#allocation4 + $0x1c] sm:$0xf]  ;;  %v5612_v46 = vsel %vm11465_vm12, %v5607_v9, %v5611_v63  ;;  %v5487_v39 = vsel %vm11420_vm8, %v9746_v37, %v5486_v31  ;;  %v5373_v17 = vshrl.u32 %v5308_v1, 16  ;;  %8450 = vmatpush.bf16.msrb.mxu1 %v11031_v41 }
 0x2dc   :  { %v9788_v55 = vld [vmem:[#allocation4 + $0x3c] sm:$0xf0]  ;;  %v9786_v5 = vld [vmem:[#allocation4 + $0x18] sm:$0xf]  ;;  %v10871_v62 = vld [vmem:[#allocation4 + $0x38] sm:$0xf0] }
 0x2dd   :  { %v5309_v13 = vld [vmem:[#allocation3 + $0x2c] sm:$0x1]  ;;  %v5310_v26 = vld [vmem:[#allocation3 + $0x30] sm:$0xf]  ;;  %v10866_v35 = vld [vmem:[#allocation4 + $0x14] sm:$0xf]  ;;  %v5491_v12 = vsel %vm11420_vm8, %v9747_v11, %v5490_v14  ;;  %v9791_v2 = vor.u32 %v10867_v27, %v9788_v55  ;;  %v9787_v22 = vor.u32 %v10871_v62, %v9786_v5 }
 0x2de   :  { %5680 = vst [vmem:[#allocation4 + $0x88] sm:$0xf] %v5612_v46  ;;  %v5376_v32 = vshll.u32 %v5308_v1, 16  ;;  %v9780_v24 = vld [vmem:[#allocation4 + $0x34] sm:$0xf0]  ;;  %v5382_v60 = vshll.u32 %v5309_v13, 16 }
 0x2df   :  { %5518 = vst [vmem:[#allocation4 + $0x5c] sm:$0xf] %v5487_v39  ;;  %v5387_v59 = vshrl.u32 %v5310_v26, 16  ;;  %v5311_v4 = vld [vmem:[#allocation3 + $0x34] sm:$0x1]  ;;  %v5375_v10 = vrot.slane %v5373_v17, 4  ;;  %v9783_v36 = vor.u32 %v10866_v35, %v9780_v24 }
 0x2e0   :  { %5519 = vst [vmem:[#allocation4 + $0x80] sm:$0xf] %v5491_v12  ;;  %v5378_v16 = vrot.slane %v5376_v32, 5  ;;  %v5390_v30 = vshll.u32 %v5310_v26, 16  ;;  %v5549_v61 = vld [vmem:[#allocation3 + $0x30] sm:$0xf] }
 0x2e1   :  { %v5389_v40 = vrot.slane %v5387_v59, 4  ;;  %6689 = vmatmul.bf16.vlgmr.msrb.gmra.mxu2 %v9779_v57  ;;  %v5550_v50 = vld [vmem:[#allocation3 + $0x34] sm:$0x1]  ;;  %v5551_v51 = vld [vmem:[#allocation3 + $0x38] sm:$0xf]  ;;  %v5384_v45 = vrot.slane %v5382_v60, 5 }
 0x2e2   :  { %v5379_v20 = vor.u32 %v5378_v16, %v5375_v10  ;;  %v5392_v43 = vrot.slane %v5390_v30, 5  ;;  %v5396_v49 = vshll.u32 %v5311_v4, 16  ;;  %v5552_v18 = vld [vmem:[#allocation3 + $0x3c] sm:$0x1]  ;;  %v5614_v21 = vshrl.u32 %v5549_v61, 16  ;;  %v11012_v48 = vld [vmem:[#allocation10 + $0x20] sm:$0xff] }
 0x2e3   :  { %6776 = vmatmul.bf16.vlgmr.msra.gmra.mxu1 %v9791_v2  ;;  %v5617_v8 = vshll.u32 %v5549_v61, 16  ;;  %v5623_v3 = vshll.u32 %v5550_v50, 16  ;;  %v5628_v15 = vshrl.u32 %v5551_v51, 16  ;;  %v5631_v52 = vshll.u32 %v5551_v51, 16  ;;  %v11023_v63 = vld [vmem:[#allocation10 + $0x78] sm:$0xff]  ;;  %8395 = vmatpush.bf16.msra.mxu3 %v11012_v48  ;;  %v11030_v37 = vld [vmem:[#allocation10 + $0xb0] sm:$0xff] }
 0x2e4   :  { %v5380_v33 = vrot.slane %v5379_v20, 4  ;;  %6747 = vmatmul.bf16.vlgmr.msra.gmra.mxu0 %v9787_v22  ;;  %v5393_v58 = vor.u32 %v5392_v43, %v5389_v40  ;;  %v5637_v56 = vshll.u32 %v5552_v18, 16  ;;  %v5616_v44 = vrot.slane %v5614_v21, 4  ;;  %v5529_v6 = vld [vmem:[#allocation3 + $0x30] sm:$0xf]  ;;  %v10967_v31 = vld [vmem:[#allocation10 + $0x218] sm:$0xff]  ;;  %8451 = vmatpush.bf16.msrb.mxu1 %v11030_v37 }
 0x2e5   :  { %6718 = vmatmul.bf16.vlgmr.msrb.gmra.mxu3 %v9783_v36  ;;  %v5619_v29 = vrot.slane %v5617_v8, 5  ;;  %v5398_v38 = vrot.slane %v5396_v49, 5  ;;  %v5625_v23 = vrot.slane %v5623_v3, 5  ;;  %8421 = vmatpush.bf16.msrb.mxu0 %v11023_v63  ;;  %v5630_v54 = vrot.slane %v5628_v15, 4  ;;  %v5530_v42 = vld [vmem:[#allocation3 + $0x38] sm:$0xf] }
 0x2e6   :  { %v5385_v47 = vsel %vm11465_vm12, %v5380_v33, %v5384_v45  ;;  %v5394_v7 = vrot.slane %v5393_v58, 4  ;;  %v5633_v28 = vrot.slane %v5631_v52, 5  ;;  %5537 = vst [vmem:[#allocation4 + $0xa8] sm:$0xf] %v5529_v6  ;;  %v5639_v25 = vrot.slane %v5637_v56, 5  ;;  %v11022_v0 = vld [vmem:[#allocation10 + $0x70] sm:$0xff]  ;;  %6801 = vmatpush.bf16.msra.mxu2 %v10967_v31 }
 0x2e7   :  { %5440 = vst [vmem:[#allocation4 + $0xa0] sm:$0xf] %v5385_v47  ;;  %v5620_v19 = vor.u32 %v5619_v29, %v5616_v44  ;;  %v5452_v1 = vld [vmem:[#allocation3 + $0x28] sm:$0xe]  ;;  %v11011_v27 = vld [vmem:[#allocation10 + $0x18] sm:$0xff]  ;;  %v10966_v16 = vld [vmem:[#allocation10 + $0x210] sm:$0xff] }
 0x2e8   :  { %v5399_v9 = vsel %vm11465_vm12, %v5394_v7, %v5398_v38  ;;  %5538 = vst [vmem:[#allocation4 + $0xcc] sm:$0xf] %v5530_v42  ;;  %v5634_v14 = vor.u32 %v5633_v28, %v5630_v54  ;;  %v9814_v55 = vld [vmem:[#allocation4 + $0x58] sm:$0xf]  ;;  %v10879_v5 = vld [vmem:[#allocation4 + $0x78] sm:$0xf0]  ;;  %8396 = vmatpush.bf16.msra.mxu3 %v11011_v27 }
 0x2e9   :  { %5441 = vst [vmem:[#allocation4 + $0xc4] sm:$0xf] %v5399_v9  ;;  %v5621_v11 = vrot.slane %v5620_v19, 4  ;;  %v5453_v62 = vld [vmem:[#allocation3 + $0x2c] sm:$0x1]  ;;  %8422 = vmatpush.bf16.msrb.mxu0 %v11022_v0  ;;  %v9748_v17 = vrot.slane %v5452_v1, 9  ;;  %v9815_v36 = vor.u32 %v10879_v5, %v9814_v55 }
 0x2ea   :  { %v5454_v46 = vld [vmem:[#allocation3 + $0x30] sm:$0xe]  ;;  %v5455_v39 = vld [vmem:[#allocation3 + $0x34] sm:$0x1]  ;;  %v9822_v13 = vld [vmem:[#allocation4 + $0x60] sm:$0xf]  ;;  %6802 = vmatpush.bf16.msra.mxu2 %v10966_v16 }
 0x2eb   :  { %v10880_v26 = vld [vmem:[#allocation4 + $0x80] sm:$0xf0]  ;;  %v5626_v35 = vsel %vm11465_vm12, %v5621_v11, %v5625_v23  ;;  %v5635_v12 = vrot.slane %v5634_v14, 4  ;;  %v5494_v32 = vrot.slane %v5453_v62, 5  ;;  %v11029_v24 = vld [vmem:[#allocation10 + $0xa8] sm:$0xff]  ;;  %v9749_v4 = vrot.slane %v5454_v46, 9 }
 0x2ec   :  { %v11021_v60 = vld [vmem:[#allocation10 + $0x68] sm:$0xff]  ;;  %v10876_v59 = vld [vmem:[#allocation4 + $0x64] sm:$0xf]  ;;  %5681 = vst [vmem:[#allocation4 + $0xac] sm:$0xf] %v5626_v35  ;;  %v5498_v10 = vrot.slane %v5455_v39, 5  ;;  %8452 = vmatpush.bf16.msrb.mxu1 %v11029_v24  ;;  %v9823_v43 = vor.u32 %v10880_v26, %v9822_v13 }
 0x2ed   :  { %v9824_v57 = vld [vmem:[#allocation4 + $0x84] sm:$0xf0]  ;;  %v10875_v40 = vld [vmem:[#allocation4 + $0x5c] sm:$0xf]  ;;  %v9816_v30 = vld [vmem:[#allocation4 + $0x7c] sm:$0xf0]  ;;  %v5640_v2 = vsel %vm11465_vm12, %v5635_v12, %v5639_v25  ;;  %v5495_v22 = vsel %vm11420_vm8, %v9748_v17, %v5494_v32  ;;  %8423 = vmatpush.bf16.msrb.mxu0 %v11021_v60 }
 0x2ee   :  { %v5312_v20 = vld [vmem:[#allocation3 + $0x38] sm:$0xf]  ;;  %5682 = vst [vmem:[#allocation4 + $0xd0] sm:$0xf] %v5640_v2  ;;  %v5499_v61 = vsel %vm11420_vm8, %v9749_v4, %v5498_v10  ;;  %v11028_v50 = vld [vmem:[#allocation10 + $0xa0] sm:$0xff]  ;;  %v9827_v21 = vor.u32 %v10876_v59, %v9824_v57  ;;  %v9819_v8 = vor.u32 %v10875_v40, %v9816_v30  ;;  %v11010_v9 = vld [vmem:[#allocation10 + $0x10] sm:$0xff] }
 0x2ef   :  { %v5314_v51 = vld [vmem:[#allocation3 + $0x40] sm:$0xf]  ;;  %5520 = vst [vmem:[#allocation4 + $0xa4] sm:$0xf] %v5495_v22  ;;  %v5313_v45 = vld [vmem:[#allocation3 + $0x3c] sm:$0x1]  ;;  %8397 = vmatpush.bf16.msra.mxu3 %v11010_v9 }
 0x2f0   :  { %5521 = vst [vmem:[#allocation4 + $0xc8] sm:$0xf] %v5499_v61  ;;  %v5315_v49 = vld [vmem:[#allocation3 + $0x44] sm:$0x1]  ;;  %v5401_v18 = vshrl.u32 %v5312_v20, 16  ;;  %v5404_v33 = vshll.u32 %v5312_v20, 16  ;;  %8453 = vmatpush.bf16.msrb.mxu1 %v11028_v50 }
 0x2f1   :  { %6694 = vmatmul.bf16.gmra.mxu2 %v9815_v36  ;;  %v5415_v3 = vshrl.u32 %v5314_v51, 16  ;;  %v5418_v48 = vshll.u32 %v5314_v51, 16  ;;  %v5553_v41 = vld [vmem:[#allocation3 + $0x40] sm:$0xf]  ;;  %v5410_v52 = vshll.u32 %v5313_v45, 16  ;;  %v5424_v29 = vshll.u32 %v5315_v49, 16 }
 0x2f2   :  { %v5403_v58 = vrot.slane %v5401_v18, 4  ;;  %v5406_v15 = vrot.slane %v5404_v33, 5  ;;  %v5554_v56 = vld [vmem:[#allocation3 + $0x44] sm:$0x1]  ;;  %v5642_v63 = vshrl.u32 %v5553_v41, 16  ;;  %v5645_v6 = vshll.u32 %v5553_v41, 16 }
 0x2f3   :  { %6781 = vmatmul.bf16.gmra.mxu1 %v9827_v21  ;;  %v5417_v47 = vrot.slane %v5415_v3, 4  ;;  %v5420_v44 = vrot.slane %v5418_v48, 5  ;;  %v5651_v23 = vshll.u32 %v5554_v56, 16  ;;  %v11020_v19 = vld [vmem:[#allocation10 + $0x60] sm:$0xff]  ;;  %v6889_v54 = vld [vmem:[#allocation3 + $0x58] sm:$0xf] }
 0x2f4   :  { %6752 = vmatmul.bf16.gmra.mxu0 %v9823_v43  ;;  %v5407_v7 = vor.u32 %v5406_v15, %v5403_v58  ;;  %v5644_v38 = vrot.slane %v5642_v63, 4  ;;  %v5647_v42 = vrot.slane %v5645_v6, 5  ;;  %v11027_v25 = vld [vmem:[#allocation10 + $0x98] sm:$0xff]  ;;  %v5412_v31 = vrot.slane %v5410_v52, 5  ;;  %v5531_v0 = vld [vmem:[#allocation3 + $0x40] sm:$0xf] }
 0x2f5   :  { %6723 = vmatmul.bf16.gmra.mxu3 %v9819_v8  ;;  %v5421_v28 = vor.u32 %v5420_v44, %v5417_v47  ;;  %8424 = vmatpush.bf16.msrb.mxu0 %v11020_v19  ;;  %v5426_v14 = vrot.slane %v5424_v29, 5  ;;  %5539 = vst [vmem:[#allocation4 + $0xf0] sm:$0xf] %v5531_v0  ;;  %v11019_v27 = vld [vmem:[#allocation10 + $0x58] sm:$0xff]  ;;  %v5653_v5 = vrot.slane %v5651_v23, 5  ;;  %v11026_v62 = vld [vmem:[#allocation10 + $0x90] sm:$0xff] }
 0x2f6   :  { %v5408_v37 = vrot.slane %v5407_v7, 4  ;;  %v5648_v1 = vor.u32 %v5647_v42, %v5644_v38  ;;  %8454 = vmatpush.bf16.msrb.mxu1 %v11027_v25  ;;  %v10965_v46 = vld [vmem:[#allocation10 + $0x208] sm:$0xff]  ;;  %v6918_v39 = vshrl.u32 %v6889_v54, 16  ;;  %v6921_v13 = vshll.u32 %v6889_v54, 16  ;;  %v11018_v12 = vld [vmem:[#allocation10 + $0x50] sm:$0xff]  ;;  %v10964_v63 = vld [vmem:[#allocation10 + $0x200] sm:$0xff] }
 0x2f7   :  { %v5422_v11 = vrot.slane %v5421_v28, 4  ;;  %v5456_v17 = vld [vmem:[#allocation3 + $0x38] sm:$0xe]  ;;  %v9850_v32 = vld [vmem:[#allocation4 + $0xa0] sm:$0xf]  ;;  %6803 = vmatpush.bf16.msra.mxu2 %v10965_v46  ;;  %v11009_v30 = vld [vmem:[#allocation10 + $0x8] sm:$0xff] }
 0x2f8   :  { %v5413_v55 = vsel %vm11465_vm12, %v5408_v37, %v5412_v31  ;;  %v5649_v35 = vrot.slane %v5648_v1, 4  ;;  %v10888_v24 = vld [vmem:[#allocation4 + $0xc0] sm:$0xf0]  ;;  %v5457_v60 = vld [vmem:[#allocation3 + $0x3c] sm:$0x1]  ;;  %v9750_v10 = vrot.slane %v5456_v17, 9  ;;  %8398 = vmatpush.bf16.msra.mxu3 %v11009_v30 }
 0x2f9   :  { %v5427_v26 = vsel %vm11465_vm12, %v5422_v11, %v5426_v14  ;;  %5442 = vst [vmem:[#allocation4 + $0xe8] sm:$0xf] %v5413_v55  ;;  %8425 = vmatpush.bf16.msrb.mxu0 %v11019_v27  ;;  %v5458_v59 = vld [vmem:[#allocation3 + $0x40] sm:$0xe]  ;;  %v5459_v4 = vld [vmem:[#allocation3 + $0x44] sm:$0x1]  ;;  %v9851_v41 = vor.u32 %v10888_v24, %v9850_v32 }
 0x2fa   :  { %5443 = vst [vmem:[#allocation4 + $0x10c] sm:$0xf] %v5427_v26  ;;  %v5654_v57 = vsel %vm11465_vm12, %v5649_v35, %v5653_v5  ;;  %8455 = vmatpush.bf16.msrb.mxu1 %v11026_v62  ;;  %v5502_v16 = vrot.slane %v5457_v60, 5  ;;  %v9751_v40 = vrot.slane %v5458_v59, 9  ;;  %v10885_v2 = vld [vmem:[#allocation4 + $0xac] sm:$0xf] }
 0x2fb   :  { %v9860_v22 = vld [vmem:[#allocation4 + $0xcc] sm:$0xf0]  ;;  %5683 = vst [vmem:[#allocation4 + $0xf4] sm:$0xf] %v5654_v57  ;;  %v5506_v20 = vrot.slane %v5459_v4, 5  ;;  %v11025_v61 = vld [vmem:[#allocation10 + $0x88] sm:$0xff]  ;;  %6804 = vmatpush.bf16.msra.mxu2 %v10964_v63 }
 0x2fc   :  { %v6920_v50 = vrot.slane %v6918_v39, 4  ;;  %v6923_v51 = vrot.slane %v6921_v13, 5  ;;  %v9858_v36 = vld [vmem:[#allocation4 + $0xa8] sm:$0xf]  ;;  %v10889_v45 = vld [vmem:[#allocation4 + $0xc8] sm:$0xf0]  ;;  %v5503_v43 = vsel %vm11420_vm8, %v9750_v10, %v5502_v16  ;;  %v9863_v29 = vor.u32 %v10885_v2, %v9860_v22 }
 0x2fd   :  { %v5685_v49 = vld [vmem:[#allocation3 + $0x10] sm:$0xe]  ;;  %v5686_v18 = vld [vmem:[#allocation3 + $0x14] sm:$0x1]  ;;  %v5687_v33 = vld [vmem:[#allocation3 + $0x18] sm:$0xe]  ;;  %8426 = vmatpush.bf16.msrb.mxu0 %v11018_v12  ;;  %v5507_v8 = vsel %vm11420_vm8, %v9751_v40, %v5506_v20  ;;  %v9859_v23 = vor.u32 %v10889_v45, %v9858_v36 }
 0x2fe   :  { %v10884_v21 = vld [vmem:[#allocation4 + $0xa4] sm:$0xf]  ;;  %5522 = vst [vmem:[#allocation4 + $0xec] sm:$0xf] %v5503_v43  ;;  %v11017_v3 = vld [vmem:[#allocation10 + $0x48] sm:$0xff]  ;;  %8456 = vmatpush.bf16.msrb.mxu1 %v11025_v61  ;;  %v9752_v58 = vrot.slane %v5685_v49, 9  ;;  %v6924_v38 = vor.u32 %v6923_v51, %v6920_v50 }
 0x2ff   :  { %v5688_v48 = vld [vmem:[#allocation3 + $0x1c] sm:$0x1]  ;;  %5523 = vst [vmem:[#allocation4 + $0x110] sm:$0xf] %v5507_v8  ;;  %v5719_v15 = vrot.slane %v5686_v18, 5  ;;  %v9753_v52 = vrot.slane %v5687_v33, 9 }
 0x300   :  { %v9852_v56 = vld [vmem:[#allocation4 + $0xc4] sm:$0xf0]  ;;  %v11024_v47 = vld [vmem:[#allocation10 + $0x80] sm:$0xff]  ;;  %v5723_v44 = vrot.slane %v5688_v48, 5  ;;  %v7033_v7 = vld [vmem:[#allocation3 + $0x58] sm:$0xe] }
 0x301   :  { %6699 = vmatmul.bf16.gmra.mxu2 %v9851_v41  ;;  %v5720_v6 = vsel %vm11420_vm8, %v9752_v58, %v5719_v15  ;;  %8427 = vmatpush.bf16.msrb.mxu0 %v11017_v3  ;;  %v11016_v54 = vld [vmem:[#allocation10 + $0x40] sm:$0xff]  ;;  %v7034_v28 = vld [vmem:[#allocation3 + $0x5c] sm:$0x1]  ;;  %v10193_v42 = vrot.slane %v7033_v7, 9  ;;  %v9855_v9 = vor.u32 %v10884_v21, %v9852_v56  ;;  %v6925_v11 = vrot.slane %v6924_v38, 4  ;;  %v11038_v41 = vld [vmem:[#allocation10 + $0xf0] sm:$0xff] }
 0x302   :  { %v5724_v19 = vsel %vm11420_vm8, %v9753_v52, %v5723_v44  ;;  %5757 = vst [vmem:[#allocation4 + $0x20] sm:$0xf] %v5720_v6  ;;  %v7069_v25 = vrot.slane %v7034_v28, 5  ;;  %v11008_v37 = vld [vmem:[#allocation10] sm:$0xff]  ;;  %8457 = vmatpush.bf16.msrb.mxu1 %v11024_v47  ;;  %v6890_v31 = vld [vmem:[#allocation3 + $0x5c] sm:$0x1] }
 0x303   :  { %6786 = vmatmul.bf16.gmra.mxu1 %v9863_v29  ;;  %5758 = vst [vmem:[#allocation4 + $0x44] sm:$0xf] %v5724_v19  ;;  %v6927_v14 = vshll.u32 %v6890_v31, 16  ;;  %v6872_v1 = vld [vmem:[#allocation3 + $0x58] sm:$0xf]  ;;  %8399 = vmatpush.bf16.msra.mxu3 %v11008_v37 }
 0x304   :  { %6757 = vmatmul.bf16.gmra.mxu0 %v9859_v23  ;;  %v7070_v0 = vsel %vm11420_vm8, %v10193_v42, %v7069_v25  ;;  %6880 = vst [vmem:[#allocation4 + $0x144] sm:$0xf] %v6872_v1  ;;  %v5689_v55 = vld [vmem:[#allocation3 + $0x20] sm:$0xe]  ;;  %v11039_v5 = vld [vmem:[#allocation10 + $0xf8] sm:$0xff]  ;;  %v11046_v23 = vld [vmem:[#allocation10 + $0x130] sm:$0xff] }
 0x305   :  { %6728 = vmatmul.bf16.gmra.mxu3 %v9855_v9  ;;  %8428 = vmatpush.bf16.msrb.mxu0 %v11016_v54  ;;  %7104 = vst [vmem:[#allocation4 + $0x14c] sm:$0xf] %v7070_v0  ;;  %v6929_v27 = vrot.slane %v6927_v14, 5  ;;  %v5690_v62 = vld [vmem:[#allocation3 + $0x24] sm:$0x1]  ;;  %v9754_v39 = vrot.slane %v5689_v55, 9 }
 0x306   :  { %v5691_v46 = vld [vmem:[#allocation3 + $0x28] sm:$0xe]  ;;  %v11047_v26 = vld [vmem:[#allocation10 + $0x138] sm:$0xff]  ;;  %v5692_v35 = vld [vmem:[#allocation3 + $0x2c] sm:$0x1]  ;;  %v5727_v12 = vrot.slane %v5690_v62, 5  ;;  %8479 = vmatpush.bf16.msrb.mxu2 %v11039_v5 }
 0x307   :  { %v6930_v13 = vsel %vm11465_vm12, %v6925_v11, %v6929_v27  ;;  %v9886_v17 = vld [vmem:[#allocation4 + $0xe8] sm:$0xf]  ;;  %v10897_v32 = vld [vmem:[#allocation4 + $0x108] sm:$0xf0]  ;;  %v9755_v24 = vrot.slane %v5691_v46, 9  ;;  %v5731_v60 = vrot.slane %v5692_v35, 5  ;;  %8508 = vmatpush.bf16.msrb.mxu3 %v11047_v26 }
 0x308   :  { %7024 = vst [vmem:[#allocation4 + $0x148] sm:$0xf] %v6930_v13  ;;  %v5728_v59 = vsel %vm11420_vm8, %v9754_v39, %v5727_v12  ;;  %v7035_v57 = vld [vmem:[#allocation3 + $0x60] sm:$0xe]  ;;  %v7036_v4 = vld [vmem:[#allocation3 + $0x64] sm:$0x1]  ;;  %v9887_v21 = vor.u32 %v10897_v32, %v9886_v17 }
 0x309   :  { %v7037_v10 = vld [vmem:[#allocation3 + $0x68] sm:$0xe]  ;;  %v9896_v16 = vld [vmem:[#allocation4 + $0x114] sm:$0xf0]  ;;  %v5732_v40 = vsel %vm11420_vm8, %v9755_v24, %v5731_v60  ;;  %5759 = vst [vmem:[#allocation4 + $0x68] sm:$0xf] %v5728_v59 }
 0x30a   :  { %v7038_v30 = vld [vmem:[#allocation3 + $0x6c] sm:$0x1]  ;;  %v10194_v2 = vrot.slane %v7035_v57, 9  ;;  %v7073_v22 = vrot.slane %v7036_v4, 5  ;;  %v10894_v20 = vld [vmem:[#allocation4 + $0xf4] sm:$0xf]  ;;  %8480 = vmatpush.bf16.msrb.mxu2 %v11038_v41 }
 0x30b   :  { %v9894_v61 = vld [vmem:[#allocation4 + $0xf0] sm:$0xf]  ;;  %v10898_v50 = vld [vmem:[#allocation4 + $0x110] sm:$0xf0]  ;;  %5760 = vst [vmem:[#allocation4 + $0x8c] sm:$0xf] %v5732_v40  ;;  %v9899_v52 = vor.u32 %v10894_v20, %v9896_v16  ;;  %8509 = vmatpush.bf16.msrb.mxu3 %v11046_v23 }
 0x30c   :  { %v10195_v51 = vrot.slane %v7037_v10, 9  ;;  %v7077_v36 = vrot.slane %v7038_v30, 5  ;;  %v10893_v45 = vld [vmem:[#allocation4 + $0xec] sm:$0xf]  ;;  %v9888_v43 = vld [vmem:[#allocation4 + $0x10c] sm:$0xf0]  ;;  %v7074_v49 = vsel %vm11420_vm8, %v10194_v2, %v7073_v22  ;;  %v9895_v47 = vor.u32 %v10898_v50, %v9894_v61 }
 0x30d   :  { %v6891_v18 = vld [vmem:[#allocation3 + $0x60] sm:$0xf]  ;;  %v6892_v33 = vld [vmem:[#allocation3 + $0x64] sm:$0x1]  ;;  %7105 = vst [vmem:[#allocation4 + $0x170] sm:$0xf] %v7074_v49  ;;  %v9891_v38 = vor.u32 %v10893_v45, %v9888_v43 }
 0x30e   :  { %v7078_v8 = vsel %vm11420_vm8, %v10195_v51, %v7077_v36  ;;  %v6893_v3 = vld [vmem:[#allocation3 + $0x68] sm:$0xf]  ;;  %v6894_v48 = vld [vmem:[#allocation3 + $0x6c] sm:$0x1]  ;;  %v6932_v58 = vshrl.u32 %v6891_v18, 16  ;;  %v6935_v15 = vshll.u32 %v6891_v18, 16 }
 0x30f   :  { %7106 = vst [vmem:[#allocation4 + $0x194] sm:$0xf] %v7078_v8  ;;  %v6946_v56 = vshrl.u32 %v6893_v3, 16  ;;  %v6949_v63 = vshll.u32 %v6893_v3, 16  ;;  %v6941_v6 = vshll.u32 %v6892_v33, 16  ;;  %v6955_v28 = vshll.u32 %v6894_v48, 16 }
 0x310   :  { %v6934_v44 = vrot.slane %v6932_v58, 4  ;;  %v6937_v29 = vrot.slane %v6935_v15, 5  ;;  %v6873_v7 = vld [vmem:[#allocation3 + $0x60] sm:$0xf]  ;;  %v6874_v9 = vld [vmem:[#allocation3 + $0x68] sm:$0xf] }
 0x311   :  { %6704 = vmatmul.bf16.gmra.mxu2 %v9887_v21  ;;  %v6948_v19 = vrot.slane %v6946_v56, 4  ;;  %v6951_v54 = vrot.slane %v6949_v63, 5  ;;  %6881 = vst [vmem:[#allocation4 + $0x168] sm:$0xf] %v6873_v7  ;;  %v5693_v37 = vld [vmem:[#allocation3 + $0x30] sm:$0xe] }
 0x312   :  { %v6938_v42 = vor.u32 %v6937_v29, %v6934_v44  ;;  %6882 = vst [vmem:[#allocation4 + $0x18c] sm:$0xf] %v6874_v9  ;;  %v5694_v31 = vld [vmem:[#allocation3 + $0x34] sm:$0x1]  ;;  %v6943_v11 = vrot.slane %v6941_v6, 5  ;;  %v9756_v1 = vrot.slane %v5693_v37, 9 }
 0x313   :  { %6791 = vmatmul.bf16.gmra.mxu1 %v9899_v52  ;;  %v6952_v25 = vor.u32 %v6951_v54, %v6948_v19  ;;  %v5695_v14 = vld [vmem:[#allocation3 + $0x38] sm:$0xe]  ;;  %v6957_v55 = vrot.slane %v6955_v28, 5  ;;  %v5696_v5 = vld [vmem:[#allocation3 + $0x3c] sm:$0x1]  ;;  %v5735_v62 = vrot.slane %v5694_v31, 5 }
 0x314   :  { %6762 = vmatmul.bf16.gmra.mxu0 %v9895_v47  ;;  %v6939_v0 = vrot.slane %v6938_v42, 4  ;;  %v11037_v39 = vld [vmem:[#allocation10 + $0xe8] sm:$0xff]  ;;  %v9757_v13 = vrot.slane %v5695_v14, 9  ;;  %v5739_v26 = vrot.slane %v5696_v5, 5  ;;  %v7039_v35 = vld [vmem:[#allocation3 + $0x70] sm:$0xe] }
 0x315   :  { %6733 = vmatmul.bf16.gmra.mxu3 %v9891_v38  ;;  %v6953_v27 = vrot.slane %v6952_v25, 4  ;;  %v11045_v17 = vld [vmem:[#allocation10 + $0x128] sm:$0xff]  ;;  %v5736_v32 = vsel %vm11420_vm8, %v9756_v1, %v5735_v62  ;;  %v7040_v24 = vld [vmem:[#allocation3 + $0x74] sm:$0x1]  ;;  %v10196_v60 = vrot.slane %v7039_v35, 9  ;;  %8481 = vmatpush.bf16.msrb.mxu2 %v11037_v39  ;;  %v11036_v56 = vld [vmem:[#allocation10 + $0xe0] sm:$0xff] }
 0x316   :  { %v6944_v46 = vsel %vm11465_vm12, %v6939_v0, %v6943_v11  ;;  %v9794_v59 = vld [vmem:[#allocation4 + $0x20] sm:$0xf]  ;;  %v5740_v57 = vsel %vm11420_vm8, %v9757_v13, %v5739_v26  ;;  %v7041_v4 = vld [vmem:[#allocation3 + $0x78] sm:$0xe]  ;;  %v7042_v10 = vld [vmem:[#allocation3 + $0x7c] sm:$0x1]  ;;  %8510 = vmatpush.bf16.msrb.mxu3 %v11045_v17 }
 0x317   :  { %v6958_v12 = vsel %vm11465_vm12, %v6953_v27, %v6957_v55  ;;  %7025 = vst [vmem:[#allocation4 + $0x16c] sm:$0xf] %v6944_v46  ;;  %v10872_v16 = vld [vmem:[#allocation4 + $0x40] sm:$0xf0]  ;;  %v7081_v40 = vrot.slane %v7040_v24, 5  ;;  %v10197_v30 = vrot.slane %v7041_v4, 9 }
 0x318   :  { %7026 = vst [vmem:[#allocation4 + $0x190] sm:$0xf] %v6958_v12  ;;  %v10226_v2 = vld [vmem:[#allocation4 + $0x128] sm:$0xf]  ;;  %v10977_v22 = vld [vmem:[#allocation4 + $0x148] sm:$0xf0]  ;;  %v9795_v3 = vor.u32 %v10872_v16, %v9794_v59 }
 0x319   :  { %5761 = vst [vmem:[#allocation4 + $0xb0] sm:$0xf] %v5736_v32  ;;  %v7085_v20 = vrot.slane %v7042_v10, 5  ;;  %v10972_v61 = vld [vmem:[#allocation4 + $0x124] sm:$0xf]  ;;  %v7082_v51 = vsel %vm11420_vm8, %v10196_v60, %v7081_v40  ;;  %v10227_v29 = vor.u32 %v10977_v22, %v10226_v2  ;;  %8482 = vmatpush.bf16.msrb.mxu2 %v11036_v56  ;;  %v11063_v25 = vld [vmem:[#allocation10 + $0x1b8] sm:$0xff] }
 0x31a   :  { %5762 = vst [vmem:[#allocation4 + $0xd4] sm:$0xf] %v5740_v57  ;;  %v10220_v50 = vld [vmem:[#allocation4 + $0x144] sm:$0xf0]  ;;  %v6895_v36 = vld [vmem:[#allocation3 + $0x70] sm:$0xf]  ;;  %8566 = vmatpush.bf16.msra.mxu1 %v11063_v25 }
 0x31b   :  { %v6896_v45 = vld [vmem:[#allocation3 + $0x74] sm:$0x1]  ;;  %v6897_v43 = vld [vmem:[#allocation3 + $0x78] sm:$0xf]  ;;  %v10218_v49 = vld [vmem:[#allocation4 + $0x120] sm:$0xf]  ;;  %v7086_v18 = vsel %vm11420_vm8, %v10197_v30, %v7085_v20  ;;  %v10223_v23 = vor.u32 %v10972_v61, %v10220_v50 }
 0x31c   :  { %7107 = vst [vmem:[#allocation4 + $0x1b8] sm:$0xf] %v7082_v51  ;;  %v6898_v33 = vld [vmem:[#allocation3 + $0x7c] sm:$0x1]  ;;  %v6960_v21 = vshrl.u32 %v6895_v36, 16  ;;  %v6963_v8 = vshll.u32 %v6895_v36, 16 }
 0x31d   :  { %7108 = vst [vmem:[#allocation4 + $0x1dc] sm:$0xf] %v7086_v18  ;;  %v6969_v48 = vshll.u32 %v6896_v45, 16  ;;  %v6974_v41 = vshrl.u32 %v6897_v43, 16  ;;  %v6977_v58 = vshll.u32 %v6897_v43, 16  ;;  %v6983_v38 = vshll.u32 %v6898_v33, 16 }
 0x31e   :  { %v10976_v52 = vld [vmem:[#allocation4 + $0x140] sm:$0xf0]  ;;  %v6962_v63 = vrot.slane %v6960_v21, 4  ;;  %v6965_v47 = vrot.slane %v6963_v8, 5  ;;  %v6875_v54 = vld [vmem:[#allocation3 + $0x70] sm:$0xf] }
 0x31f   :  { %v6976_v6 = vrot.slane %v6974_v41, 4  ;;  %v6979_v7 = vrot.slane %v6977_v58, 5  ;;  %v6876_v28 = vld [vmem:[#allocation3 + $0x78] sm:$0xf]  ;;  %v10219_v42 = vor.u32 %v10976_v52, %v10218_v49  ;;  %v11044_v9 = vld [vmem:[#allocation10 + $0x120] sm:$0xff]  ;;  %v6971_v37 = vrot.slane %v6969_v48, 5 }
 0x320   :  { %v12871_v15 = vpop.f32.mrf.mxu1  ;;  %v6966_v19 = vor.u32 %v6965_v47, %v6962_v63  ;;  %6883 = vst [vmem:[#allocation4 + $0x1b0] sm:$0xf] %v6875_v54  ;;  %v11055_v14 = vld [vmem:[#allocation10 + $0x178] sm:$0xff]  ;;  %v5697_v1 = vld [vmem:[#allocation3 + $0x40] sm:$0xe]  ;;  %v6985_v55 = vrot.slane %v6983_v38, 5  ;;  %8511 = vmatpush.bf16.msrb.mxu3 %v11044_v9 }
 0x321   :  { %v6632_v44 = vpop.f32.mrf.mxu0  ;;  %6805 = vmatmul.bf16.vlgmr.msra.gmra.mxu2 %v9795_v3  ;;  %v6980_v31 = vor.u32 %v6979_v7, %v6976_v6  ;;  %6884 = vst [vmem:[#allocation4 + $0x1d4] sm:$0xf] %v6876_v28  ;;  %v5698_v5 = vld [vmem:[#allocation3 + $0x44] sm:$0x1]  ;;  %v9758_v62 = vrot.slane %v5697_v1, 9  ;;  %8537 = vmatpush.bf16.msra.mxu0 %v11055_v14  ;;  %v11062_v32 = vld [vmem:[#allocation10 + $0x1b0] sm:$0xff] }
 0x322   :  { %v6967_v11 = vrot.slane %v6966_v19, 4  ;;  %v5743_v39 = vrot.slane %v5698_v5, 5  ;;  %v7043_v26 = vld [vmem:[#allocation3 + $0x80] sm:$0xe]  ;;  %v7044_v35 = vld [vmem:[#allocation3 + $0x84] sm:$0x1]  ;;  %8567 = vmatpush.bf16.msra.mxu1 %v11062_v32 }
 0x323   :  { %8458 = vmatmul.bf16.vlgmr.msrb.gmra.mxu1 %v10227_v29  ;;  %v6981_v27 = vrot.slane %v6980_v31, 4  ;;  %v11035_v24 = vld [vmem:[#allocation10 + $0xd8] sm:$0xff]  ;;  %v7045_v59 = vld [vmem:[#allocation3 + $0x88] sm:$0xe]  ;;  %v11054_v10 = vld [vmem:[#allocation10 + $0x170] sm:$0xff]  ;;  %v10198_v40 = vrot.slane %v7043_v26, 9 }
 0x324   :  { %v6574_v0 = vpop.f32.mrf.mxu2  ;;  %8429 = vmatmul.bf16.vlgmr.msrb.gmra.mxu0 %v10223_v23  ;;  %v6972_v46 = vsel %vm11465_vm12, %v6967_v11, %v6971_v37  ;;  %v5744_v60 = vsel %vm11420_vm8, %v9758_v62, %v5743_v39  ;;  %v11043_v16 = vld [vmem:[#allocation10 + $0x118] sm:$0xff]  ;;  %v9830_v30 = vld [vmem:[#allocation4 + $0x68] sm:$0xf]  ;;  %v10881_v2 = vld [vmem:[#allocation4 + $0x88] sm:$0xf0]  ;;  %8483 = vmatpush.bf16.msrb.mxu2 %v11035_v24  ;;  %v7089_v61 = vrot.slane %v7044_v35, 5 }
 0x325   :  { %8400 = vmatmul.bf16.vlgmr.msra.gmra.mxu3 %v10219_v42  ;;  %v6986_v13 = vsel %vm11465_vm12, %v6981_v27, %v6985_v55  ;;  %7027 = vst [vmem:[#allocation4 + $0x1b4] sm:$0xf] %v6972_v46  ;;  %v11061_v22 = vld [vmem:[#allocation10 + $0x1a8] sm:$0xff]  ;;  %v10199_v50 = vrot.slane %v7045_v59, 9  ;;  %v12883_v51 = vld [vmem:[#allocation3 + $0x58] sm:$0xf]  ;;  %8538 = vmatpush.bf16.msra.mxu0 %v11054_v10  ;;  %v9831_v7 = vor.u32 %v10881_v2, %v9830_v30 }
 0x326   :  { %7028 = vst [vmem:[#allocation4 + $0x1d8] sm:$0xf] %v6986_v13  ;;  %v7046_v20 = vld [vmem:[#allocation3 + $0x8c] sm:$0x1]  ;;  %v10262_v45 = vld [vmem:[#allocation4 + $0x170] sm:$0xf]  ;;  %8512 = vmatpush.bf16.msrb.mxu3 %v11043_v16  ;;  %v7090_v8 = vsel %vm11420_vm8, %v10198_v40, %v7089_v61  ;;  %8568 = vmatpush.bf16.msra.mxu1 %v11061_v22 }
 0x327   :  { %5763 = vst [vmem:[#allocation4 + $0xf8] sm:$0xf] %v5744_v60  ;;  %v10986_v43 = vld [vmem:[#allocation4 + $0x190] sm:$0xf0]  ;;  %v7093_v49 = vrot.slane %v7046_v20, 5  ;;  %v11053_v21 = vld [vmem:[#allocation10 + $0x168] sm:$0xff] }
 0x328   :  { %v12877_v12 = vpop.f32.mrf.mxu1  ;;  %v6603_v17 = vpop.f32.mrf.mxu3  ;;  %v6899_v18 = vld [vmem:[#allocation3 + $0x80] sm:$0xf]  ;;  %v6900_v3 = vld [vmem:[#allocation3 + $0x84] sm:$0x1]  ;;  %v6901_v48 = vld [vmem:[#allocation3 + $0x88] sm:$0xf]  ;;  %v10263_v42 = vor.u32 %v10986_v43, %v10262_v45 }
 0x329   :  { %v12881_v57 = vpop.f32.mrf.mxu0  ;;  %v6604_v4 = vadd.f32 %v6603_v17, %v6574_v0  ;;  %v6988_v41 = vshrl.u32 %v6899_v18, 16  ;;  %v7094_v58 = vsel %vm11420_vm8, %v10199_v50, %v7093_v49  ;;  %7109 = vst [vmem:[#allocation4 + $0x200] sm:$0xf] %v7090_v8  ;;  %v6902_v52 = vld [vmem:[#allocation3 + $0x8c] sm:$0x1]  ;;  %v6991_v56 = vshll.u32 %v6899_v18, 16  ;;  %8539 = vmatpush.bf16.msra.mxu0 %v11053_v21 }
 0x32a   :  { %v10254_v63 = vld [vmem:[#allocation4 + $0x168] sm:$0xf]  ;;  %v10985_v47 = vld [vmem:[#allocation4 + $0x188] sm:$0xf0]  ;;  %7110 = vst [vmem:[#allocation4 + $0x224] sm:$0xf] %v7094_v58 }
 0x32b   :  { %v12885_v36 = vadd.f32 %v6632_v44, %v6604_v4  ;;  %v6990_v44 = vrot.slane %v6988_v41, 4  ;;  %v6997_v29 = vshll.u32 %v6900_v3, 16  ;;  %v7002_v6 = vshrl.u32 %v6901_v48, 16  ;;  %v10981_v38 = vld [vmem:[#allocation4 + $0x16c] sm:$0xf]  ;;  %v11060_v25 = vld [vmem:[#allocation10 + $0x1a0] sm:$0xff] }
 0x32c   :  { %v6576_v33 = vpop.f32.mrf.mxu2  ;;  %v10256_v23 = vld [vmem:[#allocation4 + $0x18c] sm:$0xf0]  ;;  %v6993_v19 = vrot.slane %v6991_v56, 5  ;;  %v7005_v54 = vshll.u32 %v6901_v48, 16  ;;  %v7144_v0 = vshrl.u32 %v12883_v51, 16  ;;  %v7147_v11 = vshll.u32 %v12883_v51, 16  ;;  %8569 = vmatpush.bf16.msra.mxu1 %v11060_v25 }
 0x32d   :  { %v11034_v37 = vld [vmem:[#allocation10 + $0xd0] sm:$0xff]  ;;  %v7004_v31 = vrot.slane %v7002_v6, 4  ;;  %v7011_v5 = vshll.u32 %v6902_v52, 16  ;;  %v6877_v62 = vld [vmem:[#allocation3 + $0x80] sm:$0xf]  ;;  %v10259_v39 = vor.u32 %v10981_v38, %v10256_v23  ;;  %v6999_v13 = vrot.slane %v6997_v29, 5 }
 0x32e   :  { %v6994_v27 = vor.u32 %v6993_v19, %v6990_v44  ;;  %v7007_v55 = vrot.slane %v7005_v54, 5  ;;  %v6878_v46 = vld [vmem:[#allocation3 + $0x88] sm:$0xf]  ;;  %8484 = vmatpush.bf16.msrb.mxu2 %v11034_v37  ;;  %6885 = vst [vmem:[#allocation4 + $0x1f8] sm:$0xf] %v6877_v62  ;;  %v10255_v17 = vor.u32 %v10985_v47, %v10254_v63  ;;  %v11052_v32 = vld [vmem:[#allocation10 + $0x160] sm:$0xff] }
 0x32f   :  { %v7111_v26 = vld [vmem:[#allocation3 + $0x58] sm:$0xf]  ;;  %v11042_v24 = vld [vmem:[#allocation10 + $0x110] sm:$0xff]  ;;  %6886 = vst [vmem:[#allocation4 + $0x21c] sm:$0xf] %v6878_v46  ;;  %v7146_v40 = vrot.slane %v7144_v0, 4  ;;  %8540 = vmatpush.bf16.msra.mxu0 %v11052_v32 }
 0x330   :  { %v12891_v28 = vpop.f32.mrf.mxu1  ;;  %v6605_v9 = vpop.f32.mrf.mxu3  ;;  %v11059_v60 = vld [vmem:[#allocation10 + $0x198] sm:$0xff]  ;;  %v6995_v59 = vrot.slane %v6994_v27, 4  ;;  %v7008_v4 = vor.u32 %v7007_v55, %v7004_v31  ;;  %v7112_v16 = vld [vmem:[#allocation3 + $0x60] sm:$0xf]  ;;  %v7013_v22 = vrot.slane %v7011_v5, 5  ;;  %v7149_v20 = vrot.slane %v7147_v11, 5  ;;  %8513 = vmatpush.bf16.msrb.mxu3 %v11042_v24 }
 0x331   :  { %v12895_v14 = vpop.f32.mrf.mxu0  ;;  %6810 = vmatmul.bf16.gmra.mxu2 %v9831_v7  ;;  %v6606_v1 = vadd.f32 %v6605_v9, %v6576_v33  ;;  %7119 = vst [vmem:[#allocation4 + $0x12c] sm:$0xf] %v7111_v26  ;;  %8570 = vmatpush.bf16.msra.mxu1 %v11059_v60  ;;  %v7352_v61 = vld [vmem:[#allocation3 + $0x60] sm:$0xf]  ;;  %v7353_v50 = vld [vmem:[#allocation3 + $0x68] sm:$0xf] }
 0x332   :  { %v7000_v30 = vsel %vm11465_vm12, %v6995_v59, %v6999_v13  ;;  %v7009_v2 = vrot.slane %v7008_v4, 4  ;;  %7120 = vst [vmem:[#allocation4 + $0x150] sm:$0xf] %v7112_v16  ;;  %v7271_v45 = vld [vmem:[#allocation3 + $0x58] sm:$0xe]  ;;  %v11058_v33 = vld [vmem:[#allocation10 + $0x190] sm:$0xff]  ;;  %v7150_v52 = vor.u32 %v7149_v20, %v7146_v40 }
 0x333   :  { %8463 = vmatmul.bf16.gmra.mxu1 %v10263_v42  ;;  %v12898_v35 = vadd.f32 %v12881_v57, %v6606_v1  ;;  %v11051_v57 = vld [vmem:[#allocation10 + $0x158] sm:$0xff]  ;;  %7029 = vst [vmem:[#allocation4 + $0x1fc] sm:$0xf] %v7000_v30  ;;  %v11033_v21 = vld [vmem:[#allocation10 + $0xc8] sm:$0xff]  ;;  %v7273_v8 = vld [vmem:[#allocation3 + $0x60] sm:$0xe] }
 0x334   :  { %v6579_v10 = vpop.f32.mrf.mxu2  ;;  %8434 = vmatmul.bf16.gmra.mxu0 %v10259_v39  ;;  %v7014_v51 = vsel %vm11465_vm12, %v7009_v2, %v7013_v22  ;;  %v7272_v43 = vld [vmem:[#allocation3 + $0x5c] sm:$0x1]  ;;  %v11050_v41 = vld [vmem:[#allocation10 + $0x150] sm:$0xff]  ;;  %v11041_v58 = vld [vmem:[#allocation10 + $0x108] sm:$0xff]  ;;  %7360 = vst [vmem:[#allocation4 + $0x138] sm:$0xf] %v7352_v61  ;;  %8485 = vmatpush.bf16.msrb.mxu2 %v11033_v21 }
 0x335   :  { %8405 = vmatmul.bf16.gmra.mxu3 %v10255_v17  ;;  %7030 = vst [vmem:[#allocation4 + $0x220] sm:$0xf] %v7014_v51  ;;  %8541 = vmatpush.bf16.msra.mxu0 %v11051_v57  ;;  %v9866_v56 = vld [vmem:[#allocation4 + $0xb0] sm:$0xf]  ;;  %v10890_v63 = vld [vmem:[#allocation4 + $0xd0] sm:$0xf0] }
 0x336   :  { %8571 = vmatpush.bf16.msra.mxu1 %v11058_v33  ;;  %v11057_v47 = vld [vmem:[#allocation10 + $0x188] sm:$0xff]  ;;  %7361 = vst [vmem:[#allocation4 + $0x15c] sm:$0xf] %v7353_v50  ;;  %v10200_v44 = vrot.slane %v7271_v45, 9  ;;  %8514 = vmatpush.bf16.msrb.mxu3 %v11041_v58  ;;  %v7274_v6 = vld [vmem:[#allocation3 + $0x64] sm:$0x1]  ;;  %v9867_v46 = vor.u32 %v10890_v63, %v9866_v56  ;;  %v12924_v33 = vadd.f32 %v12871_v15, %v12885_v36 }
 0x337   :  { %v7305_v7 = vrot.slane %v7272_v43, 5  ;;  %v10201_v38 = vrot.slane %v7273_v8, 9  ;;  %v7128_v23 = vld [vmem:[#allocation3 + $0x5c] sm:$0x1]  ;;  %v10298_v54 = vld [vmem:[#allocation4 + $0x1b8] sm:$0xf] }
 0x338   :  { %v12904_v49 = vpop.f32.mrf.mxu1  ;;  %v6608_v18 = vpop.f32.mrf.mxu3  ;;  %v10995_v42 = vld [vmem:[#allocation4 + $0x1d8] sm:$0xf0]  ;;  %v7309_v9 = vrot.slane %v7274_v6, 5  ;;  %v7129_v25 = vld [vmem:[#allocation3 + $0x60] sm:$0xf]  ;;  %v11049_v37 = vld [vmem:[#allocation10 + $0x148] sm:$0xff] }
 0x339   :  { %v12906_v3 = vpop.f32.mrf.mxu0  ;;  %v6609_v48 = vadd.f32 %v6608_v18, %v6579_v10  ;;  %8542 = vmatpush.bf16.msra.mxu0 %v11050_v41  ;;  %v7306_v31 = vsel %vm11420_vm8, %v10200_v44, %v7305_v7  ;;  %v7130_v0 = vld [vmem:[#allocation3 + $0x64] sm:$0x1]  ;;  %v7151_v11 = vrot.slane %v7150_v52, 4  ;;  %v7153_v1 = vshll.u32 %v7128_v23, 16  ;;  %v10990_v27 = vld [vmem:[#allocation4 + $0x1b4] sm:$0xf] }
 0x33a   :  { %v10290_v55 = vld [vmem:[#allocation4 + $0x1b0] sm:$0xf]  ;;  %8572 = vmatpush.bf16.msra.mxu1 %v11057_v47  ;;  %v7310_v5 = vsel %vm11420_vm8, %v10201_v38, %v7309_v9  ;;  %7343 = vst [vmem:[#allocation4 + $0x134] sm:$0xf] %v7306_v31  ;;  %v7161_v62 = vshll.u32 %v7129_v25, 16  ;;  %v11032_v60 = vld [vmem:[#allocation10 + $0xc0] sm:$0xff]  ;;  %v10299_v40 = vor.u32 %v10995_v42, %v10298_v54  ;;  %v12932_v9 = vadd.f32 %v12877_v12, %v12898_v35 }
 0x33b   :  { %v12909_v29 = vadd.f32 %v12895_v14, %v6609_v48  ;;  %v7158_v14 = vshrl.u32 %v7129_v25, 16  ;;  %v10292_v39 = vld [vmem:[#allocation4 + $0x1d4] sm:$0xf0]  ;;  %7344 = vst [vmem:[#allocation4 + $0x158] sm:$0xf] %v7310_v5  ;;  %v7155_v13 = vrot.slane %v7153_v1, 5  ;;  %8486 = vmatpush.bf16.msrb.mxu2 %v11032_v60 }
 0x33c   :  { %v6581_v19 = vpop.f32.mrf.mxu2  ;;  %v10994_v24 = vld [vmem:[#allocation4 + $0x1d0] sm:$0xf0]  ;;  %v11056_v59 = vld [vmem:[#allocation10 + $0x180] sm:$0xff]  ;;  %v7163_v4 = vrot.slane %v7161_v62, 5  ;;  %v7167_v10 = vshll.u32 %v7130_v0, 16  ;;  %v10295_v20 = vor.u32 %v10990_v27, %v10292_v39  ;;  %v11071_v6 = vld [vmem:[#allocation10 + $0x1f8] sm:$0xff] }
 0x33d   :  { %v7160_v26 = vrot.slane %v7158_v14, 4  ;;  %8543 = vmatpush.bf16.msra.mxu0 %v11049_v37  ;;  %v11048_v2 = vld [vmem:[#allocation10 + $0x140] sm:$0xff]  ;;  %v7156_v22 = vsel %vm11465_vm12, %v7151_v11, %v7155_v13  ;;  %v7113_v57 = vld [vmem:[#allocation3 + $0x68] sm:$0xf]  ;;  %v7114_v50 = vld [vmem:[#allocation3 + $0x70] sm:$0xf]  ;;  %v10291_v43 = vor.u32 %v10994_v24, %v10290_v55 }
 0x33e   :  { %8573 = vmatpush.bf16.msra.mxu1 %v11056_v59  ;;  %7263 = vst [vmem:[#allocation4 + $0x130] sm:$0xf] %v7156_v22  ;;  %v7354_v51 = vld [vmem:[#allocation3 + $0x70] sm:$0xf]  ;;  %v11040_v18 = vld [vmem:[#allocation10 + $0x100] sm:$0xff]  ;;  %v7169_v41 = vrot.slane %v7167_v10, 5 }
 0x33f   :  { %v7164_v61 = vor.u32 %v7163_v4, %v7160_v26  ;;  %7121 = vst [vmem:[#allocation4 + $0x174] sm:$0xf] %v7113_v57  ;;  %v7355_v21 = vld [vmem:[#allocation3 + $0x78] sm:$0xf]  ;;  %v7275_v58 = vld [vmem:[#allocation3 + $0x68] sm:$0xe]  ;;  %8515 = vmatpush.bf16.msrb.mxu3 %v11040_v18  ;;  %8595 = vmatpush.bf16.msra.mxu2 %v11071_v6 }
 0x340   :  { %v12915_v17 = vpop.f32.mrf.mxu1  ;;  %v6610_v32 = vpop.f32.mrf.mxu3  ;;  %7122 = vst [vmem:[#allocation4 + $0x198] sm:$0xf] %v7114_v50  ;;  %v7276_v52 = vld [vmem:[#allocation3 + $0x6c] sm:$0x1]  ;;  %v7277_v56 = vld [vmem:[#allocation3 + $0x70] sm:$0xe] }
 0x341   :  { %v6642_v16 = vpop.f32.mrf.mxu0  ;;  %6815 = vmatmul.bf16.gmra.mxu2 %v9867_v46  ;;  %v6611_v30 = vadd.f32 %v6610_v32, %v6581_v19  ;;  %v7165_v48 = vrot.slane %v7164_v61, 4  ;;  %8544 = vmatpush.bf16.msra.mxu0 %v11048_v2  ;;  %7362 = vst [vmem:[#allocation4 + $0x180] sm:$0xf] %v7354_v51  ;;  %v7278_v15 = vld [vmem:[#allocation3 + $0x74] sm:$0x1]  ;;  %v10202_v36 = vrot.slane %v7275_v58, 9 }
 0x342   :  { %7363 = vst [vmem:[#allocation4 + $0x1a4] sm:$0xf] %v7355_v21  ;;  %v7313_v63 = vrot.slane %v7276_v52, 5  ;;  %v10203_v7 = vrot.slane %v7277_v56, 9  ;;  %v7317_v38 = vrot.slane %v7278_v15, 5  ;;  %v11079_v42 = vld [vmem:[#allocation10 + $0x238] sm:$0xff] }
 0x343   :  { %8468 = vmatmul.bf16.gmra.mxu1 %v10299_v40  ;;  %v12920_v45 = vadd.f32 %v12906_v3, %v6611_v30  ;;  %v7170_v3 = vsel %vm11465_vm12, %v7165_v48, %v7169_v41  ;;  %v7131_v23 = vld [vmem:[#allocation3 + $0x68] sm:$0xf]  ;;  %v10899_v31 = vld [vmem:[#allocation4 + $0x118] sm:$0xf0]  ;;  %v7133_v11 = vld [vmem:[#allocation3 + $0x70] sm:$0xf]  ;;  %8624 = vmatpush.bf16.msra.mxu3 %v11079_v42 }
 0x344   :  { %v6584_v8 = vpop.f32.mrf.mxu2  ;;  %8439 = vmatmul.bf16.gmra.mxu0 %v10295_v20  ;;  %7264 = vst [vmem:[#allocation4 + $0x154] sm:$0xf] %v7170_v3  ;;  %v7314_v25 = vsel %vm11420_vm8, %v10202_v36, %v7313_v63  ;;  %v7172_v37 = vshrl.u32 %v7131_v23, 16  ;;  %v7318_v0 = vsel %vm11420_vm8, %v10203_v7, %v7317_v38  ;;  %v7132_v14 = vld [vmem:[#allocation3 + $0x6c] sm:$0x1]  ;;  %v7175_v62 = vshll.u32 %v7131_v23, 16 }
 0x345   :  { %8410 = vmatmul.bf16.gmra.mxu3 %v10291_v43  ;;  %7345 = vst [vmem:[#allocation4 + $0x17c] sm:$0xf] %v7314_v25  ;;  %v7134_v27 = vld [vmem:[#allocation3 + $0x74] sm:$0x1]  ;;  %v9902_v12 = vld [vmem:[#allocation4 + $0xf8] sm:$0xf]  ;;  %v12946_v63 = vadd.f32 %v12891_v28, %v12909_v29 }
 0x346   :  { %7346 = vst [vmem:[#allocation4 + $0x1a0] sm:$0xf] %v7318_v0  ;;  %v10334_v35 = vld [vmem:[#allocation4 + $0x200] sm:$0xf]  ;;  %v7174_v5 = vrot.slane %v7172_v37, 4  ;;  %v7186_v13 = vshrl.u32 %v7133_v11, 16 }
 0x347   :  { %v11004_v46 = vld [vmem:[#allocation4 + $0x220] sm:$0xf0]  ;;  %v10999_v39 = vld [vmem:[#allocation4 + $0x1fc] sm:$0xf]  ;;  %v7189_v26 = vshll.u32 %v7133_v11, 16  ;;  %v7177_v60 = vrot.slane %v7175_v62, 5 }
 0x348   :  { %v12928_v47 = vpop.f32.mrf.mxu1  ;;  %v6613_v44 = vpop.f32.mrf.mxu3  ;;  %v10326_v32 = vld [vmem:[#allocation4 + $0x1f8] sm:$0xf]  ;;  %v11003_v24 = vld [vmem:[#allocation4 + $0x218] sm:$0xf0]  ;;  %v7181_v59 = vshll.u32 %v7132_v14, 16  ;;  %v7195_v4 = vshll.u32 %v7134_v27, 16  ;;  %v10335_v43 = vor.u32 %v11004_v46, %v10334_v35 }
 0x349   :  { %v6644_v19 = vpop.f32.mrf.mxu0  ;;  %v6614_v54 = vadd.f32 %v6613_v44, %v6584_v8  ;;  %v7115_v10 = vld [vmem:[#allocation3 + $0x78] sm:$0xf]  ;;  %v10328_v40 = vld [vmem:[#allocation4 + $0x21c] sm:$0xf0]  ;;  %v7188_v30 = vrot.slane %v7186_v13, 4  ;;  %v7191_v2 = vrot.slane %v7189_v26, 5  ;;  %v7178_v61 = vor.u32 %v7177_v60, %v7174_v5 }
 0x34a   :  { %v7116_v22 = vld [vmem:[#allocation3 + $0x80] sm:$0xf]  ;;  %v11070_v20 = vld [vmem:[#allocation10 + $0x1f0] sm:$0xff]  ;;  %7123 = vst [vmem:[#allocation4 + $0x1bc] sm:$0xf] %v7115_v10  ;;  %v10331_v41 = vor.u32 %v10999_v39, %v10328_v40  ;;  %v7183_v52 = vrot.slane %v7181_v59, 5  ;;  %v10327_v15 = vor.u32 %v11003_v24, %v10326_v32  ;;  %v12958_v39 = vadd.f32 %v12904_v49, %v12920_v45 }
 0x34b   :  { %v12938_v1 = vadd.f32 %v6642_v16, %v6614_v54  ;;  %v9903_v16 = vor.u32 %v10899_v31, %v9902_v12  ;;  %v7356_v50 = vld [vmem:[#allocation3 + $0x80] sm:$0xf]  ;;  %v7192_v21 = vor.u32 %v7191_v2, %v7188_v30  ;;  %7124 = vst [vmem:[#allocation4 + $0x1e0] sm:$0xf] %v7116_v22  ;;  %v7357_v8 = vld [vmem:[#allocation3 + $0x88] sm:$0xf]  ;;  %8596 = vmatpush.bf16.msra.mxu2 %v11070_v20 }
 0x34c   :  { %v6586_v55 = vpop.f32.mrf.mxu2  ;;  %v7179_v58 = vrot.slane %v7178_v61, 4  ;;  %v7197_v3 = vrot.slane %v7195_v4, 5  ;;  %7364 = vst [vmem:[#allocation4 + $0x1c8] sm:$0xf] %v7356_v50  ;;  %v11078_v36 = vld [vmem:[#allocation10 + $0x230] sm:$0xff]  ;;  %v11069_v27 = vld [vmem:[#allocation10 + $0x1e8] sm:$0xff] }
 0x34d   :  { %v7193_v44 = vrot.slane %v7192_v21, 4  ;;  %7365 = vst [vmem:[#allocation4 + $0x1ec] sm:$0xf] %v7357_v8  ;;  %v7279_v6 = vld [vmem:[#allocation3 + $0x78] sm:$0xe]  ;;  %8625 = vmatpush.bf16.msra.mxu3 %v11078_v36  ;;  %v11077_v46 = vld [vmem:[#allocation10 + $0x228] sm:$0xff] }
 0x34e   :  { %v7184_v38 = vsel %vm11465_vm12, %v7179_v58, %v7183_v52  ;;  %v7280_v23 = vld [vmem:[#allocation3 + $0x7c] sm:$0x1]  ;;  %v7281_v54 = vld [vmem:[#allocation3 + $0x80] sm:$0xe]  ;;  %v7282_v42 = vld [vmem:[#allocation3 + $0x84] sm:$0x1] }
 0x34f   :  { %7265 = vst [vmem:[#allocation4 + $0x178] sm:$0xf] %v7184_v38  ;;  %v10204_v25 = vrot.slane %v7279_v6, 9  ;;  %v7321_v37 = vrot.slane %v7280_v23, 5  ;;  %v10205_v28 = vrot.slane %v7281_v54, 9  ;;  %v7325_v29 = vrot.slane %v7282_v42, 5  ;;  %8597 = vmatpush.bf16.msra.mxu2 %v11069_v27 }
 0x350   :  { %v6615_v57 = vpop.f32.mrf.mxu3  ;;  %v12940_v48 = vpop.f32.mrf.mxu1  ;;  %v7135_v31 = vld [vmem:[#allocation3 + $0x78] sm:$0xf]  ;;  %v7136_v11 = vld [vmem:[#allocation3 + $0x7c] sm:$0x1]  ;;  %v7137_v12 = vld [vmem:[#allocation3 + $0x80] sm:$0xf] }
 0x351   :  { %v6647_v51 = vpop.f32.mrf.mxu0  ;;  %6820 = vmatmul.bf16.gmra.mxu2 %v9903_v16  ;;  %v6616_v18 = vadd.f32 %v6615_v57, %v6586_v55  ;;  %v7322_v0 = vsel %vm11420_vm8, %v10204_v25, %v7321_v37  ;;  %v7326_v55 = vsel %vm11420_vm8, %v10205_v28, %v7325_v29  ;;  %v7200_v35 = vshrl.u32 %v7135_v31, 16  ;;  %v10973_v26 = vld [vmem:[#allocation4 + $0x12c] sm:$0xf]  ;;  %v10228_v32 = vld [vmem:[#allocation4 + $0x14c] sm:$0xf0]  ;;  %8626 = vmatpush.bf16.msra.mxu3 %v11077_v46  ;;  %v11068_v36 = vld [vmem:[#allocation10 + $0x1e0] sm:$0xff] }
 0x352   :  { %7347 = vst [vmem:[#allocation4 + $0x1c4] sm:$0xf] %v7322_v0  ;;  %v7203_v13 = vshll.u32 %v7135_v31, 16  ;;  %v7138_v24 = vld [vmem:[#allocation3 + $0x84] sm:$0x1]  ;;  %v7209_v59 = vshll.u32 %v7136_v11, 16 }
 0x353   :  { %8473 = vmatmul.bf16.gmra.mxu1 %v10335_v43  ;;  %v12942_v56 = vadd.f32 %v6644_v19, %v6616_v18  ;;  %v7198_v19 = vsel %vm11465_vm12, %v7193_v44, %v7197_v3  ;;  %7348 = vst [vmem:[#allocation4 + $0x1e8] sm:$0xf] %v7326_v55  ;;  %v7202_v60 = vrot.slane %v7200_v35, 4  ;;  %v7214_v16 = vshrl.u32 %v7137_v12, 16  ;;  %v7117_v40 = vld [vmem:[#allocation3 + $0x88] sm:$0xf]  ;;  %8598 = vmatpush.bf16.msra.mxu2 %v11068_v36 }
 0x354   :  { %v6589_v7 = vpop.f32.mrf.mxu2  ;;  %8444 = vmatmul.bf16.gmra.mxu0 %v10331_v41  ;;  %7266 = vst [vmem:[#allocation4 + $0x19c] sm:$0xf] %v7198_v19  ;;  %v7205_v10 = vrot.slane %v7203_v13, 5  ;;  %v7118_v30 = vld [vmem:[#allocation3 + $0x90] sm:$0xf]  ;;  %v7217_v57 = vshll.u32 %v7137_v12, 16  ;;  %v10231_v41 = vor.u32 %v10973_v26, %v10228_v32  ;;  %v12974_v55 = vadd.f32 %v12915_v17, %v12938_v1 }
 0x355   :  { %8415 = vmatmul.bf16.gmra.mxu3 %v10327_v15  ;;  %v10242_v49 = vld [vmem:[#allocation4 + $0x138] sm:$0xf]  ;;  %v10979_v45 = vld [vmem:[#allocation4 + $0x158] sm:$0xf0]  ;;  %v7223_v20 = vshll.u32 %v7138_v24, 16  ;;  %v7216_v21 = vrot.slane %v7214_v16, 4 }
 0x356   :  { %v10974_v61 = vld [vmem:[#allocation4 + $0x134] sm:$0xf]  ;;  %v10236_v50 = vld [vmem:[#allocation4 + $0x154] sm:$0xf0]  ;;  %v10234_v43 = vld [vmem:[#allocation4 + $0x130] sm:$0xf]  ;;  %v7206_v18 = vor.u32 %v7205_v10, %v7202_v60  ;;  %v10243_v38 = vor.u32 %v10979_v45, %v10242_v49 }
 0x357   :  { %7125 = vst [vmem:[#allocation4 + $0x204] sm:$0xf] %v7117_v40  ;;  %v7358_v8 = vld [vmem:[#allocation3 + $0x90] sm:$0xf]  ;;  %v10978_v58 = vld [vmem:[#allocation4 + $0x150] sm:$0xf0]  ;;  %v10239_v37 = vor.u32 %v10974_v61, %v10236_v50 }
 0x358   :  { %v6618_v14 = vpop.f32.mrf.mxu3  ;;  %v12962_v2 = vpop.f32.mrf.mxu1  ;;  %7126 = vst [vmem:[#allocation4 + $0x228] sm:$0xf] %v7118_v30  ;;  %v7207_v52 = vrot.slane %v7206_v18, 4  ;;  %v7211_v3 = vrot.slane %v7209_v59, 5  ;;  %v7225_v6 = vrot.slane %v7223_v20, 5  ;;  %v10235_v28 = vor.u32 %v10978_v58, %v10234_v43  ;;  %v11076_v27 = vld [vmem:[#allocation10 + $0x220] sm:$0xff] }
 0x359   :  { %v6649_v5 = vpop.f32.mrf.mxu0  ;;  %v6619_v62 = vadd.f32 %v6618_v14, %v6589_v7  ;;  %7366 = vst [vmem:[#allocation4 + $0x210] sm:$0xf] %v7358_v8  ;;  %v7283_v42 = vld [vmem:[#allocation3 + $0x88] sm:$0xe]  ;;  %v7284_v19 = vld [vmem:[#allocation3 + $0x8c] sm:$0x1]  ;;  %8627 = vmatpush.bf16.msra.mxu3 %v11076_v27 }
 0x35a   :  { %v7212_v54 = vsel %vm11465_vm12, %v7207_v52, %v7211_v3  ;;  %v7285_v25 = vld [vmem:[#allocation3 + $0x90] sm:$0xe]  ;;  %v7286_v31 = vld [vmem:[#allocation3 + $0x94] sm:$0x1]  ;;  %v10206_v0 = vrot.slane %v7283_v42, 9  ;;  %v7329_v12 = vrot.slane %v7284_v19, 5 }
 0x35b   :  { %v12960_v4 = vadd.f32 %v6647_v51, %v6619_v62  ;;  %v7219_v51 = vrot.slane %v7217_v57, 5  ;;  %7267 = vst [vmem:[#allocation4 + $0x1c0] sm:$0xf] %v7212_v54  ;;  %v12970_v14 = vld [vmem:[#allocation4 + $0x174] sm:$0xf]  ;;  %v10207_v35 = vrot.slane %v7285_v25, 9 }
 0x35c   :  { %v6591_v22 = vpop.f32.mrf.mxu2  ;;  %v7139_v62 = vld [vmem:[#allocation3 + $0x88] sm:$0xf]  ;;  %v12976_v13 = vld [vmem:[#allocation4 + $0x194] sm:$0xf0]  ;;  %v7333_v32 = vrot.slane %v7286_v31, 5  ;;  %v7330_v17 = vsel %vm11420_vm8, %v10206_v0, %v7329_v12 }
 0x35d   :  { %v7220_v44 = vor.u32 %v7219_v51, %v7216_v21  ;;  %v7228_v24 = vshrl.u32 %v7139_v62, 16  ;;  %v12981_v59 = vld [vmem:[#allocation4 + $0x180] sm:$0xf]  ;;  %v7141_v1 = vld [vmem:[#allocation3 + $0x90] sm:$0xf]  ;;  %v10267_v57 = vor.u32 %v12970_v14, %v12976_v13  ;;  %v11067_v20 = vld [vmem:[#allocation10 + $0x1d8] sm:$0xff] }
 0x35e   :  { %v12987_v16 = vld [vmem:[#allocation4 + $0x1a0] sm:$0xf0]  ;;  %v7334_v40 = vsel %vm11420_vm8, %v10207_v35, %v7333_v32  ;;  %7349 = vst [vmem:[#allocation4 + $0x20c] sm:$0xf] %v7330_v17  ;;  %v7142_v30 = vld [vmem:[#allocation3 + $0x94] sm:$0x1]  ;;  %8599 = vmatpush.bf16.msra.mxu2 %v11067_v20 }
 0x35f   :  { %v7221_v29 = vrot.slane %v7220_v44, 4  ;;  %7350 = vst [vmem:[#allocation4 + $0x230] sm:$0xf] %v7334_v40  ;;  %v7242_v61 = vshrl.u32 %v7141_v1, 16  ;;  %v7245_v50 = vshll.u32 %v7141_v1, 16  ;;  %v10279_v51 = vor.u32 %v12987_v16, %v12981_v59  ;;  %v11075_v8 = vld [vmem:[#allocation10 + $0x218] sm:$0xff] }
 0x360   :  { %v6620_v15 = vpop.f32.mrf.mxu3  ;;  %v12985_v10 = vpop.f32.mrf.mxu1  ;;  %v7368_v43 = vld [vmem:[#allocation3 + $0x60] sm:$0xf]  ;;  %v13001_v52 = vld [vmem:[#allocation4 + $0x17c] sm:$0xf]  ;;  %v7251_v44 = vshll.u32 %v7142_v30, 16  ;;  %8628 = vmatpush.bf16.msra.mxu3 %v11075_v8  ;;  %v11066_v30 = vld [vmem:[#allocation10 + $0x1d0] sm:$0xff] }
 0x361   :  { %v12964_v7 = vpop.f32.mrf.mxu0  ;;  %8487 = vmatmul.bf16.vlgmr.msrb.gmra.mxu2 %v10231_v41  ;;  %v6621_v23 = vadd.f32 %v6620_v15, %v6591_v22  ;;  %v7226_v26 = vsel %vm11465_vm12, %v7221_v29, %v7225_v6  ;;  %v7231_v22 = vshll.u32 %v7139_v62, 16  ;;  %v12999_v41 = vadd.f32 %v12928_v47, %v12942_v56  ;;  %v13003_v3 = vld [vmem:[#allocation4 + $0x19c] sm:$0xf0]  ;;  %v7369_v6 = vld [vmem:[#allocation3 + $0x64] sm:$0x1] }
 0x362   :  { %7268 = vst [vmem:[#allocation4 + $0x1e4] sm:$0xf] %v7226_v26  ;;  %v7244_v15 = vrot.slane %v7242_v61, 4  ;;  %v7247_v36 = vrot.slane %v7245_v50, 5  ;;  %v13008_v54 = vld [vmem:[#allocation4 + $0x178] sm:$0xf]  ;;  %8600 = vmatpush.bf16.msra.mxu2 %v11066_v30 }
 0x363   :  { %8574 = vmatmul.bf16.vlgmr.msra.gmra.mxu1 %v10243_v38  ;;  %v12968_v11 = vadd.f32 %v6649_v5, %v6621_v23  ;;  %v7140_v5 = vld [vmem:[#allocation3 + $0x8c] sm:$0x1]  ;;  %v7233_v58 = vrot.slane %v7231_v22, 5  ;;  %v7385_v38 = vshrl.u32 %v7368_v43, 16  ;;  %v13010_v42 = vld [vmem:[#allocation4 + $0x198] sm:$0xf0] }
 0x364   :  { %v6690_v46 = vpop.f32.mrf.mxu2  ;;  %8545 = vmatmul.bf16.vlgmr.msra.gmra.mxu0 %v10239_v37  ;;  %v7237_v49 = vshll.u32 %v7140_v5, 16  ;;  %v7370_v19 = vld [vmem:[#allocation3 + $0x68] sm:$0xf]  ;;  %v7388_v25 = vshll.u32 %v7368_v43, 16  ;;  %v7371_v29 = vld [vmem:[#allocation3 + $0x6c] sm:$0x1]  ;;  %v10275_v5 = vor.u32 %v13001_v52, %v13003_v3  ;;  %v10271_v40 = vor.u32 %v13010_v42, %v13008_v54 }
 0x365   :  { %v6691_v60 = vadd.f32 %v6690_v46, %v12924_v33  ;;  %8516 = vmatmul.bf16.vlgmr.msrb.gmra.mxu3 %v10235_v28  ;;  %v7230_v33 = vrot.slane %v7228_v24, 4  ;;  %v7248_v28 = vor.u32 %v7247_v36, %v7244_v15  ;;  %v7387_v31 = vrot.slane %v7385_v38, 4  ;;  %v7512_v62 = vld [vmem:[#allocation3 + $0x60] sm:$0xe]  ;;  %v7513_v17 = vld [vmem:[#allocation3 + $0x64] sm:$0x1] }
 0x366   :  { %v7239_v56 = vrot.slane %v7237_v49, 5  ;;  %v7399_v0 = vshrl.u32 %v7370_v19, 16  ;;  %v7402_v14 = vshll.u32 %v7370_v19, 16  ;;  %v7394_v35 = vshll.u32 %v7369_v6, 16  ;;  %v7514_v1 = vld [vmem:[#allocation3 + $0x68] sm:$0xe] }
 0x367   :  { %v7234_v47 = vor.u32 %v7233_v58, %v7230_v33  ;;  %v7249_v46 = vrot.slane %v7248_v28, 4  ;;  %v7253_v13 = vrot.slane %v7251_v44, 5  ;;  %v7408_v59 = vshll.u32 %v7371_v29, 16  ;;  %v7515_v49 = vld [vmem:[#allocation3 + $0x6c] sm:$0x1]  ;;  %v11074_v44 = vld [vmem:[#allocation10 + $0x210] sm:$0xff] }
 0x368   :  { %v6719_v45 = vpop.f32.mrf.mxu3  ;;  %v7401_v26 = vrot.slane %v7399_v0, 4  ;;  %v7404_v32 = vrot.slane %v7402_v14, 5  ;;  %v13017_v16 = vpop.f32.mrf.mxu1  ;;  %v7396_v43 = vrot.slane %v7394_v35, 5  ;;  %v10209_v52 = vrot.slane %v7514_v1, 9  ;;  %v7372_v15 = vld [vmem:[#allocation3 + $0x70] sm:$0xf]  ;;  %8629 = vmatpush.bf16.msra.mxu3 %v11074_v44 }
 0x369   :  { %v12993_v18 = vpop.f32.mrf.mxu0  ;;  %v6720_v21 = vadd.f32 %v6719_v45, %v6691_v60  ;;  %v7235_v12 = vrot.slane %v7234_v47, 4  ;;  %v7254_v33 = vsel %vm11465_vm12, %v7249_v46, %v7253_v13  ;;  %v10208_v45 = vrot.slane %v7512_v62, 9  ;;  %v7373_v54 = vld [vmem:[#allocation3 + $0x74] sm:$0x1]  ;;  %v7374_v42 = vld [vmem:[#allocation3 + $0x78] sm:$0xf] }
 0x36a   :  { %v7405_v22 = vor.u32 %v7404_v32, %v7401_v26  ;;  %7270 = vst [vmem:[#allocation4 + $0x22c] sm:$0xf] %v7254_v33  ;;  %v7410_v58 = vrot.slane %v7408_v59, 5  ;;  %v7550_v3 = vrot.slane %v7515_v49, 5  ;;  %v13030_v6 = vadd.f32 %v12940_v48, %v12960_v4  ;;  %v7516_v32 = vld [vmem:[#allocation3 + $0x70] sm:$0xe] }
 0x36b   :  { %v13006_v23 = vadd.f32 %v12964_v7, %v6720_v21  ;;  %v7390_v7 = vrot.slane %v7388_v25, 5  ;;  %v7240_v24 = vsel %vm11465_vm12, %v7235_v12, %v7239_v56  ;;  %v7546_v21 = vrot.slane %v7513_v17, 5  ;;  %v7375_v56 = vld [vmem:[#allocation3 + $0x7c] sm:$0x1]  ;;  %v10300_v59 = vld [vmem:[#allocation4 + $0x1dc] sm:$0xf0] }
 0x36c   :  { %v6692_v37 = vpop.f32.mrf.mxu2  ;;  %7269 = vst [vmem:[#allocation4 + $0x208] sm:$0xf] %v7240_v24  ;;  %v7406_v8 = vrot.slane %v7405_v22, 4  ;;  %v7413_v48 = vshrl.u32 %v7372_v15, 16  ;;  %v7416_v4 = vshll.u32 %v7372_v15, 16  ;;  %v7422_v25 = vshll.u32 %v7373_v54, 16 }
 0x36d   :  { %v6693_v27 = vadd.f32 %v6692_v37, %v12932_v9  ;;  %v7391_v60 = vor.u32 %v7390_v7, %v7387_v31  ;;  %v7547_v38 = vsel %vm11420_vm8, %v10208_v45, %v7546_v21  ;;  %v7427_v37 = vshrl.u32 %v7374_v42, 16  ;;  %v10314_v17 = vld [vmem:[#allocation4 + $0x1c8] sm:$0xf]  ;;  %v10997_v1 = vld [vmem:[#allocation4 + $0x1e8] sm:$0xf0] }
 0x36e   :  { %v7430_v28 = vshll.u32 %v7374_v42, 16  ;;  %7584 = vst [vmem:[#allocation4 + $0x140] sm:$0xf] %v7547_v38  ;;  %v7415_v29 = vrot.slane %v7413_v48, 4  ;;  %v7418_v31 = vrot.slane %v7416_v4, 5  ;;  %v7436_v35 = vshll.u32 %v7375_v56, 16 }
 0x36f   :  { %v7392_v50 = vrot.slane %v7391_v60, 4  ;;  %v7429_v0 = vrot.slane %v7427_v37, 4  ;;  %v13045_v13 = vadd.f32 %v12962_v2, %v12968_v11  ;;  %v7424_v26 = vrot.slane %v7422_v25, 5  ;;  %v10991_v60 = vld [vmem:[#allocation4 + $0x1bc] sm:$0xf] }
 0x370   :  { %v6721_v9 = vpop.f32.mrf.mxu3  ;;  %v7419_v12 = vor.u32 %v7418_v31, %v7415_v29  ;;  %v7432_v7 = vrot.slane %v7430_v28, 5  ;;  %v13047_v24 = vpop.f32.mrf.mxu1  ;;  %v7518_v30 = vld [vmem:[#allocation3 + $0x78] sm:$0xe]  ;;  %v7519_v33 = vld [vmem:[#allocation3 + $0x7c] sm:$0x1]  ;;  %v10210_v22 = vrot.slane %v7516_v32, 9 }
 0x371   :  { %v13023_v20 = vpop.f32.mrf.mxu0  ;;  %8492 = vmatmul.bf16.gmra.mxu2 %v10267_v57  ;;  %v6722_v61 = vadd.f32 %v6721_v9, %v6693_v27  ;;  %v7397_v57 = vsel %vm11465_vm12, %v7392_v50, %v7396_v43  ;;  %v11065_v27 = vld [vmem:[#allocation10 + $0x1c8] sm:$0xff]  ;;  %v10992_v2 = vld [vmem:[#allocation4 + $0x1c4] sm:$0xf]  ;;  %v10211_v45 = vrot.slane %v7518_v30, 9  ;;  %v10306_v15 = vld [vmem:[#allocation4 + $0x1c0] sm:$0xf] }
 0x372   :  { %7504 = vst [vmem:[#allocation4 + $0x13c] sm:$0xf] %v7397_v57  ;;  %8601 = vmatpush.bf16.msra.mxu2 %v11065_v27  ;;  %v7420_v9 = vrot.slane %v7419_v12, 4  ;;  %v10308_v43 = vld [vmem:[#allocation4 + $0x1e4] sm:$0xf0] }
 0x373   :  { %8579 = vmatmul.bf16.gmra.mxu1 %v10279_v51  ;;  %v13026_v36 = vadd.f32 %v12993_v18, %v6722_v61  ;;  %v7411_v51 = vsel %vm11465_vm12, %v7406_v8, %v7410_v58  ;;  %v7551_v18 = vsel %vm11420_vm8, %v10209_v52, %v7550_v3  ;;  %v7558_v61 = vrot.slane %v7519_v33, 5  ;;  %v7376_v52 = vld [vmem:[#allocation3 + $0x80] sm:$0xf]  ;;  %v7377_v57 = vld [vmem:[#allocation3 + $0x84] sm:$0x1] }
 0x374   :  { %v6695_v47 = vpop.f32.mrf.mxu2  ;;  %8550 = vmatmul.bf16.gmra.mxu0 %v10275_v5  ;;  %7505 = vst [vmem:[#allocation4 + $0x160] sm:$0xf] %v7411_v51  ;;  %v7517_v5 = vld [vmem:[#allocation3 + $0x74] sm:$0x1]  ;;  %v7425_v21 = vsel %vm11465_vm12, %v7420_v9, %v7424_v26  ;;  %v7438_v58 = vrot.slane %v7436_v35, 5  ;;  %v10315_v51 = vor.u32 %v10997_v1, %v10314_v17  ;;  %v7444_v56 = vshll.u32 %v7376_v52, 16 }
 0x375   :  { %v6696_v19 = vadd.f32 %v6695_v47, %v12946_v63  ;;  %8521 = vmatmul.bf16.gmra.mxu3 %v10271_v40  ;;  %7585 = vst [vmem:[#allocation4 + $0x164] sm:$0xf] %v7551_v18  ;;  %v11073_v63 = vld [vmem:[#allocation10 + $0x208] sm:$0xff]  ;;  %v7433_v40 = vor.u32 %v7432_v7, %v7429_v0  ;;  %v7554_v11 = vrot.slane %v7517_v5, 5  ;;  %v7559_v44 = vsel %vm11420_vm8, %v10211_v45, %v7558_v61  ;;  %v10996_v38 = vld [vmem:[#allocation4 + $0x1e0] sm:$0xf0] }
 0x376   :  { %8630 = vmatpush.bf16.msra.mxu3 %v11073_v63  ;;  %7506 = vst [vmem:[#allocation4 + $0x184] sm:$0xf] %v7425_v21  ;;  %v7378_v42 = vld [vmem:[#allocation3 + $0x88] sm:$0xf]  ;;  %v10303_v47 = vor.u32 %v10991_v60, %v10300_v59  ;;  %v7379_v18 = vld [vmem:[#allocation3 + $0x8c] sm:$0x1]  ;;  %v10311_v48 = vor.u32 %v10992_v2, %v10308_v43  ;;  %v10307_v35 = vor.u32 %v10996_v38, %v10306_v15 }
 0x377   :  { %v7434_v8 = vrot.slane %v7433_v40, 4  ;;  %7587 = vst [vmem:[#allocation4 + $0x1ac] sm:$0xf] %v7559_v44  ;;  %v7450_v25 = vshll.u32 %v7377_v57, 16  ;;  %v7455_v37 = vshrl.u32 %v7378_v42, 16  ;;  %v7458_v28 = vshll.u32 %v7378_v42, 16 }
 0x378   :  { %v6724_v14 = vpop.f32.mrf.mxu3  ;;  %v11072_v0 = vld [vmem:[#allocation10 + $0x200] sm:$0xff]  ;;  %v7446_v12 = vrot.slane %v7444_v56, 5  ;;  %v7464_v26 = vshll.u32 %v7379_v18, 16  ;;  %v7522_v59 = vld [vmem:[#allocation3 + $0x88] sm:$0xe]  ;;  %v13081_v57 = vadd.f32 %v13017_v16, %v13026_v36 }
 0x379   :  { %v13041_v62 = vpop.f32.mrf.mxu0  ;;  %v6725_v46 = vadd.f32 %v6724_v14, %v6696_v19  ;;  %v7439_v54 = vsel %vm11465_vm12, %v7434_v8, %v7438_v58  ;;  %v11064_v19 = vld [vmem:[#allocation10 + $0x1c0] sm:$0xff]  ;;  %v13063_v14 = vadd.f32 %v12985_v10, %v13006_v23  ;;  %v7460_v63 = vrot.slane %v7458_v28, 5  ;;  %v7523_v17 = vld [vmem:[#allocation3 + $0x8c] sm:$0x1]  ;;  %v13068_v23 = vpop.f32.mrf.mxu1  ;;  %v7380_v45 = vld [vmem:[#allocation3 + $0x90] sm:$0xf] }
 0x37a   :  { %7507 = vst [vmem:[#allocation4 + $0x1a8] sm:$0xf] %v7439_v54  ;;  %v7520_v7 = vld [vmem:[#allocation3 + $0x80] sm:$0xe]  ;;  %8602 = vmatpush.bf16.msra.mxu2 %v11064_v19  ;;  %v7521_v32 = vld [vmem:[#allocation3 + $0x84] sm:$0x1]  ;;  %8631 = vmatpush.bf16.msra.mxu3 %v11072_v0 }
 0x37b   :  { %v13050_v49 = vadd.f32 %v13023_v20, %v6725_v46  ;;  %v7555_v20 = vsel %vm11420_vm8, %v10210_v22, %v7554_v11  ;;  %v7457_v46 = vrot.slane %v7455_v37, 4  ;;  %v10212_v1 = vrot.slane %v7520_v7, 9  ;;  %v7381_v58 = vld [vmem:[#allocation3 + $0x94] sm:$0x1]  ;;  %v7524_v38 = vld [vmem:[#allocation3 + $0x90] sm:$0xe] }
 0x37c   :  { %v6697_v50 = vpop.f32.mrf.mxu2  ;;  %7586 = vst [vmem:[#allocation4 + $0x188] sm:$0xf] %v7555_v20  ;;  %v7562_v10 = vrot.slane %v7521_v32, 5  ;;  %v10213_v30 = vrot.slane %v7522_v59, 9  ;;  %v7566_v33 = vrot.slane %v7523_v17, 5  ;;  %v7452_v11 = vrot.slane %v7450_v25, 5 }
 0x37d   :  { %v6698_v3 = vadd.f32 %v6697_v50, %v12958_v39  ;;  %v7441_v39 = vshrl.u32 %v7376_v52, 16  ;;  %v7461_v40 = vor.u32 %v7460_v63, %v7457_v46  ;;  %v7466_v50 = vrot.slane %v7464_v26, 5  ;;  %v11006_v37 = vld [vmem:[#allocation4 + $0x230] sm:$0xf0]  ;;  %v10350_v36 = vld [vmem:[#allocation4 + $0x210] sm:$0xf] }
 0x37e   :  { %v7567_v43 = vsel %vm11420_vm8, %v10213_v30, %v7566_v33  ;;  %v7469_v21 = vshrl.u32 %v7380_v45, 16  ;;  %v7472_v15 = vshll.u32 %v7380_v45, 16  ;;  %v7478_v42 = vshll.u32 %v7381_v58, 16  ;;  %v10344_v7 = vld [vmem:[#allocation4 + $0x22c] sm:$0xf0] }
 0x37f   :  { %v7443_v27 = vrot.slane %v7441_v39, 4  ;;  %v7462_v61 = vrot.slane %v7461_v40, 4  ;;  %7589 = vst [vmem:[#allocation4 + $0x1f4] sm:$0xf] %v7567_v43  ;;  %v11005_v46 = vld [vmem:[#allocation4 + $0x228] sm:$0xf0]  ;;  %v6783_v34 = vadd.f32 %v13047_v24, %v13050_v49 }
 0x380   :  { %v6726_v4 = vpop.f32.mrf.mxu3  ;;  %v7474_v54 = vrot.slane %v7472_v15, 5  ;;  %v7480_v0 = vrot.slane %v7478_v42, 5  ;;  %v10975_v24 = vld [vmem:[#allocation4 + $0x13c] sm:$0xf]  ;;  %v10244_v49 = vld [vmem:[#allocation4 + $0x15c] sm:$0xf0] }
 0x381   :  { %v6758_v29 = vpop.f32.mrf.mxu0  ;;  %8497 = vmatmul.bf16.gmra.mxu2 %v10303_v47  ;;  %v6727_v31 = vadd.f32 %v6726_v4, %v6698_v3  ;;  %v7447_v60 = vor.u32 %v7446_v12, %v7443_v27  ;;  %v7467_v52 = vsel %vm11465_vm12, %v7462_v61, %v7466_v50  ;;  %v7471_v3 = vrot.slane %v7469_v21, 4  ;;  %v7525_v47 = vld [vmem:[#allocation3 + $0x94] sm:$0x1]  ;;  %v10336_v4 = vld [vmem:[#allocation4 + $0x224] sm:$0xf0]  ;;  %v6787_v16 = vpop.f32.mrf.mxu1 }
 0x382   :  { %7509 = vst [vmem:[#allocation4 + $0x1f0] sm:$0xf] %v7467_v52  ;;  %v7570_v39 = vrot.slane %v7525_v47, 5  ;;  %v11001_v12 = vld [vmem:[#allocation4 + $0x20c] sm:$0xf] }
 0x383   :  { %8584 = vmatmul.bf16.gmra.mxu1 %v10315_v51  ;;  %v13066_v5 = vadd.f32 %v13041_v62, %v6727_v31  ;;  %v7448_v2 = vrot.slane %v7447_v60, 4  ;;  %v7563_v62 = vsel %vm11420_vm8, %v10212_v1, %v7562_v10  ;;  %v10214_v51 = vrot.slane %v7524_v38, 9  ;;  %v10250_v61 = vld [vmem:[#allocation4 + $0x140] sm:$0xf]  ;;  %v10980_v50 = vld [vmem:[#allocation4 + $0x160] sm:$0xf0] }
 0x384   :  { %v6700_v9 = vpop.f32.mrf.mxu2  ;;  %8555 = vmatmul.bf16.gmra.mxu0 %v10311_v48  ;;  %7588 = vst [vmem:[#allocation4 + $0x1d0] sm:$0xf] %v7563_v62  ;;  %v11000_v48 = vld [vmem:[#allocation4 + $0x204] sm:$0xf]  ;;  %v7475_v19 = vor.u32 %v7474_v54, %v7471_v3  ;;  %v10347_v60 = vor.u32 %v11001_v12, %v10344_v7  ;;  %v10247_v62 = vor.u32 %v10975_v24, %v10244_v49  ;;  %v10280_v54 = vld [vmem:[#allocation4 + $0x1a4] sm:$0xf0] }
 0x385   :  { %v6701_v22 = vadd.f32 %v6700_v9, %v12974_v55  ;;  %8526 = vmatmul.bf16.gmra.mxu3 %v10307_v35  ;;  %v7453_v8 = vsel %vm11465_vm12, %v7448_v2, %v7452_v11  ;;  %v7571_v28 = vsel %vm11420_vm8, %v10214_v51, %v7570_v39  ;;  %v10339_v27 = vor.u32 %v11000_v48, %v10336_v4  ;;  %v10342_v35 = vld [vmem:[#allocation4 + $0x208] sm:$0xf]  ;;  %v10984_v38 = vld [vmem:[#allocation4 + $0x184] sm:$0xf]  ;;  %v10989_v48 = vld [vmem:[#allocation4 + $0x1a8] sm:$0xf0] }
 0x386   :  { %7508 = vst [vmem:[#allocation4 + $0x1cc] sm:$0xf] %v7453_v8  ;;  %v7476_v31 = vrot.slane %v7475_v19, 4  ;;  %v10343_v17 = vor.u32 %v11005_v46, %v10342_v35  ;;  %v6785_v33 = vadd.f32 %v13068_v23, %v13066_v5 }
 0x387   :  { %7590 = vst [vmem:[#allocation4 + $0x218] sm:$0xf] %v7571_v28 }
 0x388   :  { %v6729_v55 = vpop.f32.mrf.mxu3  ;;  %v7481_v63 = vsel %vm11465_vm12, %v7476_v31, %v7480_v0 }
 0x389   :  { %v6760_v20 = vpop.f32.mrf.mxu0  ;;  %v6730_v44 = vadd.f32 %v6729_v55, %v6701_v22  ;;  %7510 = vst [vmem:[#allocation4 + $0x214] sm:$0xf] %v7481_v63  ;;  %v6789_v9 = vpop.f32.mrf.mxu1  ;;  %v10251_v55 = vor.u32 %v10980_v50, %v10250_v61 }
 0x38b   :  { %v6759_v18 = vadd.f32 %v6758_v29, %v6730_v44 }
 0x38c   :  { %v6702_v56 = vpop.f32.mrf.mxu2 }
 0x38d   :  { %v6703_v25 = vadd.f32 %v6702_v56, %v12999_v41  ;;  %v10351_v41 = vor.u32 %v11006_v37, %v10350_v36  ;;  %v6788_v21 = vadd.f32 %v6787_v16, %v6759_v18  ;;  %v10283_v18 = vor.u32 %v10984_v38, %v10280_v54  ;;  %v10286_v56 = vld [vmem:[#allocation4 + $0x188] sm:$0xf]  ;;  %v10993_v63 = vld [vmem:[#allocation4 + $0x1cc] sm:$0xf] }
 0x390   :  { %v6731_v29 = vpop.f32.mrf.mxu3  ;;  %v11002_v50 = vld [vmem:[#allocation4 + $0x214] sm:$0xf] }
 0x391   :  { %v6763_v26 = vpop.f32.mrf.mxu0  ;;  %8502 = vmatmul.bf16.gmra.mxu2 %v10339_v27  ;;  %v6732_v32 = vadd.f32 %v6731_v29, %v6703_v25  ;;  %v6792_v8 = vpop.f32.mrf.mxu1 }
 0x393   :  { %8589 = vmatmul.bf16.gmra.mxu1 %v10351_v41  ;;  %v6761_v59 = vadd.f32 %v6760_v20, %v6732_v32 }
 0x394   :  { %v6705_v1 = vpop.f32.mrf.mxu2  ;;  %8560 = vmatmul.bf16.gmra.mxu0 %v10347_v60 }
 0x395   :  { %v6706_v10 = vadd.f32 %v6705_v1, %v13030_v6  ;;  %8531 = vmatmul.bf16.gmra.mxu3 %v10343_v17  ;;  %v10322_v1 = vld [vmem:[#allocation4 + $0x1d0] sm:$0xf] }
 0x398   :  { %v6734_v53 = vpop.f32.mrf.mxu3 }
 0x399   :  { %v6765_v40 = vpop.f32.mrf.mxu0  ;;  %v6735_v30 = vadd.f32 %v6734_v53, %v6706_v10  ;;  %v6794_v20 = vpop.f32.mrf.mxu1  ;;  %v10998_v10 = vld [vmem:[#allocation4 + $0x1f0] sm:$0xf0] }
 0x39b   :  { %v6764_v22 = vadd.f32 %v6763_v26, %v6735_v30  ;;  %v10316_v26 = vld [vmem:[#allocation4 + $0x1ec] sm:$0xf0] }
 0x39c   :  { %v6707_v2 = vpop.f32.mrf.mxu2  ;;  %v10319_v60 = vor.u32 %v10993_v63, %v10316_v26 }
 0x39d   :  { %v6708_v11 = vadd.f32 %v6707_v2, %v13045_v13  ;;  %v6790_v13 = vadd.f32 %v6789_v9, %v6761_v59  ;;  %v6793_v25 = vadd.f32 %v6792_v8, %v6764_v22 }
 0x3a0   :  { %v6736_v45 = vpop.f32.mrf.mxu3 }
 0x3a1   :  { %v8430_v43 = vpop.f32.mrf.mxu0  ;;  %8603 = vmatmul.bf16.vlgmr.msra.gmra.mxu2 %v10247_v62  ;;  %v6737_v6 = vadd.f32 %v6736_v45, %v6708_v11  ;;  %v8459_v36 = vpop.f32.mrf.mxu1 }
 0x3a3   :  { %v6766_v58 = vadd.f32 %v6765_v40, %v6737_v6  ;;  %v10323_v40 = vor.u32 %v10998_v10, %v10322_v1 }
 0x3a4   :  { %v6806_v52 = vpop.f32.mrf.mxu2 }
 0x3a5   :  { %v13095_v5 = vadd.f32 %v6806_v52, %v13063_v14  ;;  %8632 = vmatmul.bf16.vlgmr.msra.gmra.mxu3 %v10251_v55  ;;  %v6795_v29 = vadd.f32 %v6794_v20, %v6766_v58  ;;  %v10358_v20 = vld [vmem:[#allocation4 + $0x218] sm:$0xf] }
 0x3a7   :  { %v6840_v47 = vmul.f32 %v13095_v5, %v13095_v5 }
 0x3a8   :  { %v8401_v23 = vpop.f32.mrf.mxu3 }
 0x3a9   :  { %v8432_v3 = vpop.f32.mrf.mxu0  ;;  %v8431_v15 = vadd.f32 %v8430_v43, %v8401_v23  ;;  %v8461_v59 = vpop.f32.mrf.mxu1  ;;  %v10352_v43 = vld [vmem:[#allocation4 + $0x234] sm:$0xf0] }
 0x3aa   :  { %v10355_v52 = vor.u32 %v11002_v50, %v10352_v43 }
 0x3ab   :  { %v8460_v8 = vadd.f32 %v8459_v36, %v8431_v15 }
 0x3ac   :  { %v6808_v44 = vpop.f32.mrf.mxu2 }
 0x3ad   :  { %v13098_v42 = vadd.f32 %v6808_v44, %v13081_v57  ;;  %v10287_v57 = vor.u32 %v10989_v48, %v10286_v56  ;;  %v11007_v44 = vld [vmem:[#allocation4 + $0x238] sm:$0xf0] }
 0x3af   :  { %v6826_v51 = vadd.f32 %v13098_v42, %v13095_v5  ;;  %v6841_v14 = vmul.f32 %v13098_v42, %v13098_v42 }
 0x3b0   :  { %v8403_v39 = vpop.f32.mrf.mxu3 }
 0x3b1   :  { %v6848_v4 = vadd.f32 %v6841_v14, %v6840_v47  ;;  %8608 = vmatmul.bf16.gmra.mxu2 %v10283_v18  ;;  %v8433_v19 = vadd.f32 %v8432_v3, %v8403_v39  ;;  %v8435_v37 = vpop.f32.mrf.mxu0  ;;  %v8464_v45 = vpop.f32.mrf.mxu1 }
 0x3b3   :  { %v8462_v58 = vadd.f32 %v8461_v59, %v8433_v19 }
 0x3b4   :  { %v6811_v28 = vpop.f32.mrf.mxu2 }
 0x3b5   :  { %v13106_v16 = vadd.f32 %v6811_v28, %v6783_v34  ;;  %8637 = vmatmul.bf16.gmra.mxu3 %v10287_v57 }
 0x3b7   :  { %v6827_v31 = vadd.f32 %v6826_v51, %v13106_v16  ;;  %v6842_v0 = vmul.f32 %v13106_v16, %v13106_v16  ;;  %v10359_v51 = vor.u32 %v11007_v44, %v10358_v20 }
 0x3b8   :  { %v8406_v27 = vpop.f32.mrf.mxu3 }
 0x3b9   :  { %v6849_v12 = vadd.f32 %v6848_v4, %v6842_v0  ;;  %v8436_v7 = vadd.f32 %v8435_v37, %v8406_v27  ;;  %v8437_v35 = vpop.f32.mrf.mxu0  ;;  %v8466_v14 = vpop.f32.mrf.mxu1 }
 0x3bb   :  { %v8465_v47 = vadd.f32 %v8464_v45, %v8436_v7 }
 0x3bc   :  { %v6813_v46 = vpop.f32.mrf.mxu2 }
 0x3bd   :  { %v13111_v41 = vadd.f32 %v6813_v46, %v6785_v33 }
 0x3bf   :  { %v6828_v32 = vadd.f32 %v6827_v31, %v13111_v41  ;;  %v6843_v34 = vmul.f32 %v13111_v41, %v13111_v41 }
 0x3c0   :  { %v8408_v17 = vpop.f32.mrf.mxu3 }
 0x3c1   :  { %v6850_v9 = vadd.f32 %v6849_v12, %v6843_v34  ;;  %8613 = vmatmul.bf16.gmra.mxu2 %v10319_v60  ;;  %v8438_v53 = vadd.f32 %v8437_v35, %v8408_v17  ;;  %v8440_v33 = vpop.f32.mrf.mxu0  ;;  %v8469_v57 = vpop.f32.mrf.mxu1 }
 0x3c3   :  { %v8467_v4 = vadd.f32 %v8466_v14, %v8438_v53 }
 0x3c4   :  { %v6816_v30 = vpop.f32.mrf.mxu2 }
 0x3c5   :  { %v13116_v22 = vadd.f32 %v6816_v30, %v6788_v21  ;;  %8642 = vmatmul.bf16.gmra.mxu3 %v10323_v40 }
 0x3c7   :  { %v6829_v2 = vadd.f32 %v6828_v32, %v13116_v22  ;;  %v6844_v24 = vmul.f32 %v13116_v22, %v13116_v22 }
 0x3c8   :  { %v8411_v49 = vpop.f32.mrf.mxu3 }
 0x3c9   :  { %v6851_v11 = vadd.f32 %v6850_v9, %v6844_v24  ;;  %v8441_v62 = vadd.f32 %v8440_v33, %v8411_v49  ;;  %v8442_v23 = vpop.f32.mrf.mxu0  ;;  %v8471_v7 = vpop.f32.mrf.mxu1 }
 0x3cb   :  { %v8470_v0 = vadd.f32 %v8469_v57, %v8441_v62 }
 0x3cc   :  { %v6818_v61 = vpop.f32.mrf.mxu2 }
 0x3cd   :  { %v13121_v6 = vadd.f32 %v6818_v61, %v6790_v13 }
 0x3cf   :  { %v6830_v21 = vadd.f32 %v6829_v2, %v13121_v6  ;;  %v6845_v55 = vmul.f32 %v13121_v6, %v13121_v6 }
 0x3d0   :  { %v8413_v3 = vpop.f32.mrf.mxu3 }
 0x3d1   :  { %v6852_v38 = vadd.f32 %v6851_v11, %v6845_v55  ;;  %8618 = vmatmul.bf16.gmra.mxu2 %v10355_v52  ;;  %v8443_v54 = vadd.f32 %v8442_v23, %v8413_v3  ;;  %v8445_v9 = vpop.f32.mrf.mxu0  ;;  %v8474_v33 = vpop.f32.mrf.mxu1 }
 0x3d3   :  { %v8472_v63 = vadd.f32 %v8471_v7, %v8443_v54 }
 0x3d4   :  { %v6821_v13 = vpop.f32.mrf.mxu2 }
 0x3d5   :  { %v13126_v18 = vadd.f32 %v6821_v13, %v6793_v25  ;;  %8647 = vmatmul.bf16.gmra.mxu3 %v10359_v51 }
 0x3d7   :  { %v6831_v15 = vadd.f32 %v6830_v21, %v13126_v18  ;;  %v6846_v39 = vmul.f32 %v13126_v18, %v13126_v18 }
 0x3d8   :  { %v13131_v56 = vpop.f32.mrf.mxu3 }
 0x3d9   :  { %v6853_v48 = vadd.f32 %v6852_v38, %v6846_v39  ;;  %v8447_v49 = vpop.f32.mrf.mxu0  ;;  %v8476_v45 = vpop.f32.mrf.mxu1  ;;  %v8446_v7 = vadd.f32 %v8445_v9, %v13131_v56 }
 0x3dc   :  { %v6823_v19 = vpop.f32.mrf.mxu2 }
 0x3dd   :  { %v13133_v37 = vadd.f32 %v6823_v19, %v6795_v29 }
 0x3df   :  { %13250 = vst [vmem:[#allocation19_spill] sm:$0xff] %v13133_v37  ;;  %v13136_v28 = vadd.f32 %v6831_v15, %v13133_v37  ;;  %v6847_v25 = vmul.f32 %v13133_v37, %v13133_v37 }
 0x3e0   :  { %v13140_v36 = vpop.f32.mrf.mxu3 }
 0x3e1   :  { %v13142_v31 = vadd.f32 %v6853_v48, %v6847_v25  ;;  %v8575_v55 = vpop.f32.mrf.mxu1 }
 0x3e4   :  { %v8488_v27 = vpop.f32.mrf.mxu2 }
 0x3e5   :  { %v8489_v12 = vadd.f32 %v8488_v27, %v8460_v8  ;;  %v8546_v8 = vpop.f32.mrf.mxu0 }
 0x3e8   :  { %v8517_v35 = vpop.f32.mrf.mxu3 }
 0x3e9   :  { %v8518_v46 = vadd.f32 %v8517_v35, %v8489_v12  ;;  %v8577_v20 = vpop.f32.mrf.mxu1 }
 0x3ec   :  { %v8490_v29 = vpop.f32.mrf.mxu2 }
 0x3ed   :  { %v8491_v26 = vadd.f32 %v8490_v29, %v8462_v58  ;;  %v8548_v23 = vpop.f32.mrf.mxu0 }
 0x3f0   :  { %v8519_v32 = vpop.f32.mrf.mxu3 }
 0x3f1   :  { %v8520_v34 = vadd.f32 %v8519_v32, %v8491_v26  ;;  %v8580_v51 = vpop.f32.mrf.mxu1  ;;  %v8547_v26 = vadd.f32 %v8546_v8, %v8518_v46  ;;  %v8475_v32 = vadd.f32 %v8474_v33, %v8446_v7 }
 0x3f3   :  { %v8549_v35 = vadd.f32 %v8548_v23, %v8520_v34 }
 0x3f4   :  { %v8493_v60 = vpop.f32.mrf.mxu2 }
 0x3f5   :  { %v8494_v59 = vadd.f32 %v8493_v60, %v8465_v47  ;;  %v8551_v54 = vpop.f32.mrf.mxu0 }
 0x3f8   :  { %v8522_v17 = vpop.f32.mrf.mxu3 }
 0x3f9   :  { %v8523_v1 = vadd.f32 %v8522_v17, %v8494_v59  ;;  %v8582_v39 = vpop.f32.mrf.mxu1  ;;  %v8448_v59 = vadd.f32 %v8447_v49, %v13140_v36 }
 0x3fb   :  { %v8552_v60 = vadd.f32 %v8551_v54, %v8523_v1  ;;  %v8477_v37 = vadd.f32 %v8476_v45, %v8448_v59 }
 0x3fc   :  { %v8495_v10 = vpop.f32.mrf.mxu2 }
 0x3fd   :  { %v8496_v53 = vadd.f32 %v8495_v10, %v8467_v4  ;;  %v8553_v13 = vpop.f32.mrf.mxu0  ;;  %v8578_v10 = vadd.f32 %v8577_v20, %v8549_v35  ;;  %v6855_v35 = vrot.slane %v13142_v31, 4 }
 0x400   :  { %v8524_v40 = vpop.f32.mrf.mxu3 }
 0x401   :  { %v8525_v30 = vadd.f32 %v8524_v40, %v8496_v53  ;;  %v8585_v25 = vpop.f32.mrf.mxu1 }
 0x403   :  { %v8554_v40 = vadd.f32 %v8553_v13, %v8525_v30 }
 0x404   :  { %v8498_v2 = vpop.f32.mrf.mxu2 }
 0x405   :  { %v8499_v24 = vadd.f32 %v8498_v2, %v8470_v0  ;;  %v8556_v19 = vpop.f32.mrf.mxu0  ;;  %v8583_v1 = vadd.f32 %v8582_v39, %v8554_v40 }
 0x408   :  { %v8527_v11 = vpop.f32.mrf.mxu3 }
 0x409   :  { %v8528_v62 = vadd.f32 %v8527_v11, %v8499_v24  ;;  %v8576_v11 = vadd.f32 %v8575_v55, %v8547_v26 }
 0x40c   :  { %v8500_v61 = vpop.f32.mrf.mxu2 }
 0x40d   :  { %v8501_v50 = vadd.f32 %v8500_v61, %v8472_v63  ;;  %v8558_v27 = vpop.f32.mrf.mxu0  ;;  %v8587_v63 = vpop.f32.mrf.mxu1 }
 0x410   :  { %v8529_v43 = vpop.f32.mrf.mxu3 }
 0x411   :  { %v8530_v58 = vadd.f32 %v8529_v43, %v8501_v50  ;;  %v8557_v50 = vadd.f32 %v8556_v19, %v8528_v62  ;;  %v8581_v43 = vadd.f32 %v8580_v51, %v8552_v60 }
 0x413   :  { %v8559_v46 = vadd.f32 %v8558_v27, %v8530_v58  ;;  %v8586_v55 = vadd.f32 %v8585_v25, %v8557_v50  ;;  %v6833_v25 = vrot.slane %v13136_v28, 4 }
 0x414   :  { %v8503_v21 = vpop.f32.mrf.mxu2 }
 0x415   :  { %v8504_v17 = vadd.f32 %v8503_v21, %v8475_v32  ;;  %v8561_v2 = vpop.f32.mrf.mxu0  ;;  %v8590_v8 = vpop.f32.mrf.mxu1  ;;  %v8588_v58 = vadd.f32 %v8587_v63, %v8559_v46 }
 0x418   :  { %v8532_v52 = vpop.f32.mrf.mxu3 }
 0x419   :  { %v8533_v24 = vadd.f32 %v8532_v52, %v8504_v17  ;;  %v6834_v17 = vadd.f32 %v6833_v25, %v13136_v28 }
 0x41b   :  { %v8562_v49 = vadd.f32 %v8561_v2, %v8533_v24 }
 0x41c   :  { %v8505_v3 = vpop.f32.mrf.mxu2 }
 0x41d   :  { %v8506_v36 = vadd.f32 %v8505_v3, %v8477_v37  ;;  %v8591_v37 = vadd.f32 %v8590_v8, %v8562_v49  ;;  %v8563_v3 = vpop.f32.mrf.mxu0  ;;  %v8592_v63 = vpop.f32.mrf.mxu1 }
 0x420   :  { %v8534_v44 = vpop.f32.mrf.mxu3 }
 0x421   :  { %v8535_v52 = vadd.f32 %v8534_v44, %v8506_v36 }
 0x423   :  { %v8564_v13 = vadd.f32 %v8563_v3, %v8535_v52 }
 0x424   :  { %v8604_v38 = vpop.f32.mrf.mxu2 }
 0x425   :  { %v8605_v56 = vadd.f32 %v8604_v38, %v8576_v11  ;;  %v8593_v59 = vadd.f32 %v8592_v63, %v8564_v13  ;;  %v6856_v11 = vadd.f32 %v6855_v35, %v13142_v31 }
 0x428   :  { %v8633_v47 = vpop.f32.mrf.mxu3 }
 0x429   :  { %v13148_v21 = vadd.f32 %v8633_v47, %v8605_v56  ;;  %v6835_v56 = vrot.slane %v6834_v17, 2 }
 0x42b   :  { %v8667_v54 = vmul.f32 %v13148_v21, %v13148_v21  ;;  %v6836_v36 = vadd.f32 %v6835_v56, %v6834_v17 }
 0x42c   :  { %v8606_v14 = vpop.f32.mrf.mxu2 }
 0x42d   :  { %v8607_v61 = vadd.f32 %v8606_v14, %v8578_v10 }
 0x430   :  { %v8635_v15 = vpop.f32.mrf.mxu3 }
 0x431   :  { %v13146_v34 = vadd.f32 %v8635_v15, %v8607_v61 }
 0x433   :  { %v8668_v62 = vmul.f32 %v13146_v34, %v13146_v34  ;;  %v8653_v47 = vadd.f32 %v13146_v34, %v13148_v21 }
 0x434   :  { %v8609_v48 = vpop.f32.mrf.mxu2 }
 0x435   :  { %v8610_v33 = vadd.f32 %v8609_v48, %v8581_v43  ;;  %v8675_v15 = vadd.f32 %v8668_v62, %v8667_v54 }
 0x438   :  { %v8638_v4 = vpop.f32.mrf.mxu3 }
 0x439   :  { %v13150_v23 = vadd.f32 %v8638_v4, %v8610_v33 }
 0x43b   :  { %v8669_v51 = vmul.f32 %v13150_v23, %v13150_v23  ;;  %v8654_v48 = vadd.f32 %v8653_v47, %v13150_v23 }
 0x43c   :  { %v8611_v57 = vpop.f32.mrf.mxu2 }
 0x43d   :  { %v8612_v30 = vadd.f32 %v8611_v57, %v8583_v1  ;;  %v6857_v1 = vrot.slane %v6856_v11, 2 }
 0x440   :  { %v8640_v0 = vpop.f32.mrf.mxu3 }
 0x441   :  { %v13154_v38 = vadd.f32 %v8640_v0, %v8612_v30  ;;  %v8676_v0 = vadd.f32 %v8675_v15, %v8669_v51 }
 0x443   :  { %v8670_v4 = vmul.f32 %v13154_v38, %v13154_v38  ;;  %v8655_v27 = vadd.f32 %v8654_v48, %v13154_v38 }
 0x444   :  { %v8614_v12 = vpop.f32.mrf.mxu2 }
 0x445   :  { %v8615_v20 = vadd.f32 %v8614_v12, %v8586_v55  ;;  %v8677_v26 = vadd.f32 %v8676_v0, %v8670_v4  ;;  %v6858_v55 = vadd.f32 %v6857_v1, %v6856_v11 }
 0x448   :  { %v8643_v29 = vpop.f32.mrf.mxu3 }
 0x449   :  { %v13162_v14 = vadd.f32 %v8643_v29, %v8615_v20 }
 0x44b   :  { %v8671_v12 = vmul.f32 %v13162_v14, %v13162_v14  ;;  %v8656_v32 = vadd.f32 %v8655_v27, %v13162_v14 }
 0x44c   :  { %v8616_v53 = vpop.f32.mrf.mxu2 }
 0x44d   :  { %v8617_v44 = vadd.f32 %v8616_v53, %v8588_v58  ;;  %v8678_v10 = vadd.f32 %v8677_v26, %v8671_v12  ;;  %v6859_v58 = vrot.slane %v6858_v55, 1 }
 0x450   :  { %v8645_v9 = vpop.f32.mrf.mxu3 }
 0x451   :  { %v13167_v57 = vadd.f32 %v8645_v9, %v8617_v44  ;;  %v6860_v44 = vadd.f32 %v6859_v58, %v6858_v55 }
 0x453   :  { %v8672_v60 = vmul.f32 %v13167_v57, %v13167_v57  ;;  %v8657_v53 = vadd.f32 %v8656_v32, %v13167_v57  ;;  %v8697_v32 = vld [vmem:[%s13214_s5] sm:$0x1]  ;;  %s11353_s5 = smov [#allocation11]  }
 0x454   :  { %v8619_v45 = vpop.f32.mrf.mxu2 }
 0x455   :  { %v8620_v19 = vadd.f32 %v8619_v45, %v8591_v37  ;;  %v8679_v61 = vadd.f32 %v8678_v10, %v8672_v60  ;;  %v6837_v45 = vrot.slane %v6836_v36, 1  ;;  %v8698_v10 = vld [vmem:[%s13215_s6] sm:$0x1]  ;;  %s8808_s6 = sshll.u32 %s11353_s5, 4  ;;  %s8809_s6 = int_to_ptr.vmem [resolvable:$true] %s8808_s6 }
 0x457   :  { %v6838_v3 = vadd.f32 %v6837_v45, %v6836_v36 }
 0x458   :  { %v8648_v39 = vpop.f32.mrf.mxu3 }
 0x459   :  { %v13173_v7 = vadd.f32 %v8648_v39, %v8620_v19 }
 0x45b   :  { %v8673_v2 = vmul.f32 %v13173_v7, %v13173_v7  ;;  %v8658_v50 = vadd.f32 %v8657_v53, %v13173_v7 }
 0x45c   :  { %v8621_v29 = vpop.f32.mrf.mxu2 }
 0x45d   :  { %v8622_v40 = vadd.f32 %v8621_v29, %v8593_v59  ;;  %v8680_v9 = vadd.f32 %v8679_v61, %v8673_v2 }
 0x460   :  { %v8650_v24 = vpop.f32.mrf.mxu3 }
 0x461   :  { %v8651_v43 = vadd.f32 %v8650_v24, %v8622_v40 }
 0x463   :  { %v8659_v46 = vadd.f32 %v8658_v50, %v8651_v43  ;;  %v8674_v33 = vmul.f32 %v8651_v43, %v8651_v43 }
 0x465   :  { %v8660_v28 = vrot.slane %v8659_v46, 4  ;;  %v8681_v8 = vadd.f32 %v8680_v9, %v8674_v33 }
 0x467   :  { %v8661_v49 = vadd.f32 %v8660_v28, %v8659_v46  ;;  %v8682_v30 = vrot.slane %v8681_v8, 4  ;;  %v13251_v28 = vld [vmem:[#allocation19_spill] sm:$0xff] }
 0x469   :  { %v8662_v52 = vrot.slane %v8661_v49, 2  ;;  %v8683_v62 = vadd.f32 %v8682_v30, %v8681_v8 }
 0x46b   :  { %v8663_v20 = vadd.f32 %v8662_v52, %v8661_v49  ;;  %v8684_v31 = vrot.slane %v8683_v62, 2 }
 0x46d   :  { %v8664_v54 = vrot.slane %v8663_v20, 1  ;;  %v8685_v37 = vadd.f32 %v8684_v31, %v8683_v62 }
 0x46f   :  { %v8665_v47 = vadd.f32 %v8664_v54, %v8663_v20  ;;  %v8686_v51 = vrot.slane %v8685_v37, 1 }
 0x471   :  { %v8666_v13 = vadd.f32 %v8665_v47, %v6838_v3  ;;  %v8687_v15 = vadd.f32 %v8686_v51, %v8685_v37 }
 0x473   :  { %v8688_v39 = vadd.f32 %v8687_v15, %v6860_v44  ;;  %v8699_v48 = vmul.f32 0.0078125, %v8666_v13 }
 0x475   :  { %v8700_v4 = vmul.f32 0.0078125, %v8688_v39  ;;  %v8701_v19 = vmul.f32 %v8699_v48, %v8699_v48 }
 0x477   :  { %v8702_v25 = vsub.f32 %v8700_v4, %v8701_v19 }
 0x479   :  { %v8703_v0 = vmax.f32 %v8702_v25, 0.0 }
 0x47b   :  { %v8704_v27 = vadd.f32 1e-05, %v8703_v0 }
 0x47d   :  { %11243 = vrsqrt.f32 %v8704_v27  ;;  %vm8711_vm1 = vweird.f32 %v8704_v27 }
 0x483   :  { %v11244_v12 = vpop.eup %11243 }
 0x484   :  { %v8706_v35 = vmul.f32 %v11244_v12, %v8704_v27  ;;  %vm8712_vm0 = vweird.f32 %v11244_v12 }
 0x485   :  { %vm8713_vm2 = vmor %vm8711_vm1, %vm8712_vm0 }
 0x486   :  { %v8707_v63 = vmul.f32 %v11244_v12, %v8706_v35 }
 0x488   :  { %v8708_v29 = vmul.f32 0.5, %v8707_v63 }
 0x48a   :  { %v8709_v26 = vsub.f32 1.5, %v8708_v29 }
 0x48c   :  { %v8710_v60 = vmul.f32 %v11244_v12, %v8709_v26 }
 0x48e   :  { %v8714_v59 = vsel %vm8713_vm2, %v11244_v12, %v8710_v60 }
 0x48f   :  { %v8715_v17 = vmul.f32 %v8714_v59, %v8697_v32 }
 0x491   :  { %v8716_v53 = vmul.f32 %v8715_v17, %v8699_v48  ;;  %v8727_v40 = vperm.slane %v8715_v17, 0 }
 0x493   :  { %v8717_v2 = vsub.f32 %v8698_v10, %v8716_v53  ;;  %v8779_v24 = vmul.f32 %v8727_v40, %v8651_v43  ;;  %v8729_v11 = vmul.f32 %v8727_v40, %v13095_v5  ;;  %v8730_v61 = vmul.f32 %v8727_v40, %v13098_v42 }
 0x494   :  { %v8731_v50 = vmul.f32 %v8727_v40, %v13106_v16  ;;  %v8732_v56 = vmul.f32 %v8727_v40, %v13111_v41  ;;  %v8733_v9 = vmul.f32 %v8727_v40, %v13116_v22  ;;  %v8734_v46 = vmul.f32 %v8727_v40, %v13121_v6 }
 0x495   :  { %v8738_v33 = vperm.slane %v8717_v2, 0  ;;  %v8735_v1 = vmul.f32 %v8727_v40, %v13126_v18  ;;  %v8736_v8 = vmul.f32 %v8727_v40, %v13251_v28  ;;  %v8772_v36 = vmul.f32 %v8727_v40, %v13148_v21 }
 0x496   :  { %v8773_v43 = vmul.f32 %v8727_v40, %v13146_v34  ;;  %v8774_v18 = vmul.f32 %v8727_v40, %v13150_v23  ;;  %v8775_v31 = vmul.f32 %v8727_v40, %v13154_v38  ;;  %v8776_v21 = vmul.f32 %v8727_v40, %v13162_v14 }
 0x497   :  { %v8787_v5 = vadd.f32 %v8779_v24, %v8738_v33  ;;  %v8740_v49 = vadd.f32 %v8738_v33, %v8729_v11  ;;  %v8741_v42 = vadd.f32 %v8738_v33, %v8730_v61  ;;  %v8742_v30 = vadd.f32 %v8738_v33, %v8731_v50 }
 0x498   :  { %v8743_v16 = vadd.f32 %v8738_v33, %v8732_v56  ;;  %v8744_v55 = vadd.f32 %v8738_v33, %v8733_v9  ;;  %v8745_v41 = vadd.f32 %v8738_v33, %v8734_v46  ;;  %v8746_v52 = vadd.f32 %v8738_v33, %v8735_v1 }
 0x499   :  { %v8795_v22 = vmax.f32 %v8787_v5, 0.0  ;;  %v8747_v62 = vadd.f32 %v8738_v33, %v8736_v8  ;;  %v8748_v6 = vmax.f32 %v8740_v49, 0.0  ;;  %v8749_v45 = vmax.f32 %v8741_v42, 0.0 }
 0x49a   :  { %v8750_v20 = vmax.f32 %v8742_v30, 0.0  ;;  %v8751_v34 = vmax.f32 %v8743_v16, 0.0  ;;  %v8752_v58 = vmax.f32 %v8744_v55, 0.0  ;;  %v8777_v54 = vmul.f32 %v8727_v40, %v13167_v57 }
 0x49b   :  { %8803 = vst [vmem:[#allocation11 + $0x78] sm:$0xff] %v8795_v22  ;;  %v8778_v37 = vmul.f32 %v8727_v40, %v13173_v7  ;;  %v8780_v3 = vadd.f32 %v8772_v36, %v8738_v33  ;;  %v8781_v47 = vadd.f32 %v8773_v43, %v8738_v33  ;;  %v8782_v51 = vadd.f32 %v8774_v18, %v8738_v33 }
 0x49c   :  { %8756 = vst [vmem:[#allocation11] sm:$0xff] %v8748_v6  ;;  %v8783_v44 = vadd.f32 %v8775_v31, %v8738_v33  ;;  %v8753_v13 = vmax.f32 %v8745_v41, 0.0  ;;  %v8784_v15 = vadd.f32 %v8776_v21, %v8738_v33  ;;  %v8785_v23 = vadd.f32 %v8777_v54, %v8738_v33 }
 0x49d   :  { %8757 = vst [vmem:[#allocation11 + $0x8] sm:$0xff] %v8749_v45  ;;  %v8786_v39 = vadd.f32 %v8778_v37, %v8738_v33  ;;  %v8754_v38 = vmax.f32 %v8746_v52, 0.0  ;;  %v8755_v14 = vmax.f32 %v8747_v62, 0.0  ;;  %v8788_v48 = vmax.f32 %v8780_v3, 0.0 }
 0x49e   :  { %8758 = vst [vmem:[#allocation11 + $0x10] sm:$0xff] %v8750_v20  ;;  %v8789_v57 = vmax.f32 %v8781_v47, 0.0  ;;  %v8790_v7 = vmax.f32 %v8782_v51, 0.0  ;;  %v8791_v4 = vmax.f32 %v8783_v44, 0.0  ;;  %v8792_v19 = vmax.f32 %v8784_v15, 0.0 }
 0x49f   :  { %8759 = vst [vmem:[#allocation11 + $0x18] sm:$0xff] %v8751_v34  ;;  %v8793_v25 = vmax.f32 %v8785_v23, 0.0  ;;  %v8794_v0 = vmax.f32 %v8786_v39, 0.0 }
 0x4a0   :  { %8760 = vst [vmem:[#allocation11 + $0x20] sm:$0xff] %v8752_v58 }
 0x4a1   :  { %8761 = vst [vmem:[#allocation11 + $0x28] sm:$0xff] %v8753_v13 }
 0x4a2   :  { %8762 = vst [vmem:[#allocation11 + $0x30] sm:$0xff] %v8754_v38 }
 0x4a3   :  { %8763 = vst [vmem:[#allocation11 + $0x38] sm:$0xff] %v8755_v14 }
 0x4a4   :  { %8796 = vst [vmem:[#allocation11 + $0x40] sm:$0xff] %v8788_v48 }
 0x4a5   :  { %8797 = vst [vmem:[#allocation11 + $0x48] sm:$0xff] %v8789_v57 }
 0x4a6   :  { %8798 = vst [vmem:[#allocation11 + $0x50] sm:$0xff] %v8790_v7 }
 0x4a7   :  { %8799 = vst [vmem:[#allocation11 + $0x58] sm:$0xff] %v8791_v4 }
 0x4a8   :  { %8800 = vst [vmem:[#allocation11 + $0x60] sm:$0xff] %v8792_v19 }
 0x4a9   :  { %8801 = vst [vmem:[#allocation11 + $0x68] sm:$0xff] %v8793_v25 }
 0x4aa   :  { %8802 = vst [vmem:[#allocation11 + $0x70] sm:$0xff] %v8794_v0 }
 0x4ab   :  { %8816 = dma.vmem_to_hbm [thread:$0]  %s8809_s6, 2048, %s8811_s23, [#allocation7], %s11354_s24, %s11354_s24, %s11355_s25  }
 0x4ac   :  { %11345 = dma.done.wait [#allocation7], 2048  }
 0x4ad   :  { %11346 = vsyncadd [#allocation7], 4294965248 }
 0x4ae   :  { %8821 = vsyncpa [#allocation6], 1 }
 0x4af   :  { %8822 = vsyncpa [#allocation9], 1 }
 0x4b0   :  { %8823 = vsyncpa [#allocation7], 1 }

</bundles_post_ra>
